<compile_context>
chip_gen: v7x
topology: tpu7x:2x2x1
jax: 0.10.0
libtpu: 0.0.40
codegen_flags: <defaults>
</compile_context>

<pallas_src>
import math

import numpy as np
import jax
import jax.numpy as jnp
from jax.experimental import pallas as pl
from jax.experimental.pallas import tpu as pltpu

RB = 32  # batch rows processed per grid step


# --------------------------------- fused kernel ---------------------------------

def _classifier3_kernel(x_ref, w1_ref, b1_ref, w2_ref, b2_ref, w3_ref, b3_ref,
                        fc1w_ref, fc1b_ref, fc2w_ref, fc2b_ref, fc3w_ref, fc3b_ref,
                        o_ref):
    """Whole Classifier_3 forward for one tile of RB batch rows.

    Activation layout after each conv dot: (H, RB, N) with N = (parity, w_group, C)
    on lanes.  Max-pool over H = max of leading-dim pairs; max-pool over W = max of
    the two lane halves.  Bias and ReLU are applied after the pool (valid
    commutation: per-channel constant / monotone).
    """
    f32, bf16 = jnp.float32, jnp.bfloat16

    def pool_bias_relu(y, rows, half_cols, b):
        # y: (rows*2*RB, 2*half_cols) f32 dot output.
        y = y.reshape(rows, 2, RB, 2 * half_cols)
        y = jnp.maximum(y[:, 0], y[:, 1])                          # pool over H
        y = jnp.maximum(y[..., :half_cols], y[..., half_cols:])    # pool over W
        return jnp.maximum(y + b, 0.0)                             # bias + ReLU

    # ---- Conv1: 1 -> 32, k=5.  One MXU dot: LHS = H-unfolded input (K = 5*28),
    #      RHS = banded weights (140, 24*32) built on host.
    xb = x_ref[...].astype(bf16)                                   # (28, RB, 28)
    xu = jnp.concatenate([xb[di:di + 24] for di in range(5)], axis=-1)   # (24, RB, 140)
    y1 = jnp.dot(xu.reshape(24 * RB, 140), w1_ref[...], preferred_element_type=f32)
    a1 = pool_bias_relu(y1, 12, 384, b1_ref[...]).astype(bf16)     # (12, RB, 384)

    # ---- Conv2: 32 -> 64, k=5.  One dot, K = 5 * (12*32) = 1920, N = 8*64 = 512.
    lhs2 = jnp.concatenate([a1[di:di + 8] for di in range(5)], axis=-1)  # (8, RB, 1920)
    y2 = jnp.dot(lhs2.reshape(8 * RB, 1920), w2_ref[...], preferred_element_type=f32)
    a2 = pool_bias_relu(y2, 4, 256, b2_ref[...]).astype(bf16)      # (4, RB, 256)

    # ---- Conv3: 64 -> 128, k=3.  One dot, K = 3 * (4*64) = 768, N = 2*128 = 256.
    lhs3 = jnp.concatenate([a2[di:di + 2] for di in range(3)], axis=-1)  # (2, RB, 768)
    y3 = jnp.dot(lhs3.reshape(2 * RB, 768), w3_ref[...], preferred_element_type=f32)
    flat = pool_bias_relu(y3, 1, 128, b3_ref[...]).reshape(RB, 128)      # f32, = channels

    # ---- MLP head (kept in f32; dropout layers are Identity).
    h = jnp.dot(flat, fc1w_ref[...], preferred_element_type=f32) + fc1b_ref[...]
    h = jnp.maximum(h, 0.0)
    h = jnp.dot(h, fc2w_ref[...], preferred_element_type=f32) + fc2b_ref[...]
    h = jnp.maximum(h, 0.0)
    # fc3 is zero-padded on the host to 128 outputs -> lane-dense store.
    o_ref[...] = jnp.dot(h, fc3w_ref[...], preferred_element_type=f32) + fc3b_ref[...]


# ------------------------------ wrapper (glue) -----------------------------------

def _full_spec(a):
    nd = a.ndim
    return pl.BlockSpec(a.shape, lambda b, _n=nd: (0,) * _n)   # resident in VMEM


def classifier3_forward(x_nchw, kp):
    """Forward pass of Classifier_3.  x_nchw: (B, 1, 28, 28) f32 -> (B, 24) f32."""
    B = x_nchw.shape[0]
    assert x_nchw.shape[1:] == (1, 28, 28), x_nchw.shape
    Bp = -(-B // RB) * RB                                  # pad batch to multiple of RB

    # (B, 1, 28, 28) -> (28, B, 28): H leading, batch on sublanes, W on lanes.
    x_t = jnp.transpose(x_nchw[:, 0], (1, 0, 2))
    if Bp != B:
        x_t = jnp.pad(x_t, ((0, 0), (0, Bp - B), (0, 0)))

    weights = (kp["w1b"], kp["b1t"], kp["w2b"], kp["b2t"], kp["w3b"], kp["b3t"],
               kp["fc1w"], kp["fc1b"], kp["fc2w"], kp["fc2b"], kp["fc3w"], kp["fc3b"])

    macs_per_row = (24 * 24 * 25 * 32 + 8 * 8 * 25 * 32 * 64 + 2 * 2 * 9 * 64 * 128
                    + 128 * 128 + 128 * 32 + 32 * 24)
    bytes_accessed = (int(x_t.size) * x_t.dtype.itemsize + Bp * 128 * 4
                      + sum(int(w.size) * w.dtype.itemsize for w in weights))

    out = pl.pallas_call(
        _classifier3_kernel,
        out_shape=jax.ShapeDtypeStruct((Bp, 128), jnp.float32),
        grid=(Bp // RB,),
        in_specs=[pl.BlockSpec((28, RB, 28), lambda b: (0, b, 0))]
                 + [_full_spec(w) for w in weights],
        out_specs=pl.BlockSpec((RB, 128), lambda b: (b, 0)),
        compiler_params=pltpu.CompilerParams(
            dimension_semantics=("parallel",),
            # actual need ~13 MiB (weights ~2.7 MiB + input 2x0.46 MiB + intermediates);
            # 32 MiB leaves headroom and fits every generation (v7x has 64 MiB/TC).
            vmem_limit_bytes=32 * 1024 * 1024),
        cost_estimate=pl.CostEstimate(flops=2 * int(macs_per_row) * int(Bp),
                                      transcendentals=0,
                                      bytes_accessed=int(bytes_accessed)),
    )(x_t, *weights)
    return out[:B, :24]


# ------------------------- parameters (PyTorch-style init) -----------------------

def init_params(key):
    """PyTorch-style U(-1/sqrt(fan_in), 1/sqrt(fan_in)) init, deterministic."""
    def uni(k, shape, fan_in):
        bound = 1.0 / math.sqrt(fan_in)
        return jax.random.uniform(k, shape, jnp.float32, -bound, bound)

    ks = jax.random.split(key, 12)
    p = {}
    # Conv weights in PyTorch OIHW layout, biases (Cout,)
    p["c1_w"] = uni(ks[0], (32, 1, 5, 5), 1 * 5 * 5)
    p["c1_b"] = uni(ks[1], (32,), 1 * 5 * 5)
    p["c2_w"] = uni(ks[2], (64, 32, 5, 5), 32 * 5 * 5)
    p["c2_b"] = uni(ks[3], (64,), 32 * 5 * 5)
    p["c3_w"] = uni(ks[4], (128, 64, 3, 3), 64 * 3 * 3)
    p["c3_b"] = uni(ks[5], (128,), 64 * 3 * 3)
    # Linear weights in PyTorch (out, in) layout
    p["fc1_w"] = uni(ks[6], (128, 128), 128)   # FC1: Linear(128,128)+ReLU
    p["fc1_b"] = uni(ks[7], (128,), 128)
    p["fc2_w"] = uni(ks[8], (32, 128), 128)    # FC2: Linear(128,32)+ReLU
    p["fc2_b"] = uni(ks[9], (32,), 128)
    p["fc3_w"] = uni(ks[10], (24, 32), 32)     # Linear3: Linear(32,24)
    p["fc3_b"] = uni(ks[11], (24,), 32)
    return p


def _banded_conv_weight(w_oihw, in_w):
    """Build the banded conv weight matrix (host-side, once).

    Rows:  di * (in_w * Cin) + gi * Cin + ci      (H-tap, input col, input chan)
    Cols:  p * (out_w//2 * Cout) + g * Cout + co  with ow = 2*g + p
    Value: w[co, ci, di, gi - ow] if 0 <= gi - ow < k else 0.
    """
    w = np.asarray(jax.device_get(w_oihw), dtype=np.float32)
    Cout, Cin, kh, kw = w.shape
    out_w = in_w - kw + 1
    assert out_w % 2 == 0
    half = out_w // 2
    Wb = np.zeros((kh * in_w * Cin, out_w * Cout), np.float32)
    for di in range(kh):
        for ow in range(out_w):
            p, g = ow % 2, ow // 2
            c0 = p * half * Cout + g * Cout
            for dj in range(kw):
                gi = ow + dj
                r0 = di * in_w * Cin + gi * Cin
                Wb[r0:r0 + Cin, c0:c0 + Cout] = w[:, :, di, dj].T
    return Wb


def _tiled_bias(b, reps):
    bb = np.asarray(jax.device_get(b), dtype=np.float32)
    return jnp.asarray(np.tile(bb, reps).reshape(1, -1))


def prepare_kernel_params(p):
    """One-time conversion to kernel layout (done once, outside jit):
    banded bf16 conv matrices, per-group tiled biases, FC weights transposed
    to (in, out) in f32, Linear3 zero-padded to 128 outputs."""
    fc3w = jnp.zeros((32, 128), jnp.float32).at[:, :24].set(p["fc3_w"].T)
    fc3b = jnp.zeros((1, 128), jnp.float32).at[0, :24].set(p["fc3_b"])
    return {
        "w1b": jnp.asarray(_banded_conv_weight(p["c1_w"], 28)).astype(jnp.bfloat16),  # (140, 768)
        "b1t": _tiled_bias(p["c1_b"], 12),                                            # (1, 384)
        "w2b": jnp.asarray(_banded_conv_weight(p["c2_w"], 12)).astype(jnp.bfloat16),  # (1920, 512)
        "b2t": _tiled_bias(p["c2_b"], 4),                                             # (1, 256)
        "w3b": jnp.asarray(_banded_conv_weight(p["c3_w"], 4)).astype(jnp.bfloat16),   # (768, 256)
        "b3t": _tiled_bias(p["c3_b"], 1),                                             # (1, 128)
        "fc1w": p["fc1_w"].T.astype(jnp.float32),                                     # (128, 128)
        "fc1b": p["fc1_b"].reshape(1, -1).astype(jnp.float32),
        "fc2w": p["fc2_w"].T.astype(jnp.float32),                                     # (128, 32)
        "fc2b": p["fc2_b"].reshape(1, -1).astype(jnp.float32),
        "fc3w": fc3w,                                                                 # (32, 128)
        "fc3b": fc3b,
    }


# ------------------------------ pure-JAX reference -------------------------------

def classifier3_reference(x_nchw, p):
    x = jnp.transpose(x_nchw, (0, 2, 3, 1))
    for w, b in ((p["c1_w"], p["c1_b"]), (p["c2_w"], p["c2_b"]), (p["c3_w"], p["c3_b"])):
        w_hwio = jnp.transpose(w, (2, 3, 1, 0))
        y = jax.lax.conv_general_dilated(
            x, w_hwio, (1, 1), "VALID",
            dimension_numbers=("NHWC", "HWIO", "NHWC")) + b
        y = jax.lax.reduce_window(y, -jnp.inf, jax.lax.max,
                                  (1, 2, 2, 1), (1, 2, 2, 1), "VALID")
        x = jnp.maximum(y, 0.0)
    flat = x.reshape(x.shape[0], -1)
    h = jnp.maximum(flat @ p["fc1_w"].T + p["fc1_b"], 0.0)
    h = jnp.maximum(h @ p["fc2_w"].T + p["fc2_b"], 0.0)
    return h @ p["fc3_w"].T + p["fc3_b"]


# ----------------------------------- main -----------------------------------------

if __name__ == "__main__":
    key = jax.random.PRNGKey(0)
    k_params, k_x = jax.random.split(key)
    params = init_params(k_params)
    kparams = prepare_kernel_params(params)

    # Input must be 28x28 (as in the PyTorch module) so the conv stack flattens to 128.
    x = jax.random.normal(k_x, (2, 1, 28, 28), jnp.float32)

    fwd = jax.jit(classifier3_forward)
    out = jax.block_until_ready(fwd(x, kparams))
    assert out.shape == (2, 24), out.shape

    ref = classifier3_reference(x, params)
    max_err = float(jnp.max(jnp.abs(out - ref)))
    # Convolutions use bf16 operands on the MXU (f32 accumulation); FC head is f32.
    assert jnp.allclose(out, ref, rtol=2e-2, atol=2e-2), max_err

    print("KERNEL_OK")
</pallas_src>

<mosaic_0001>
module attributes {stable_mosaic.version = 11 : i64} {
  func.func @_classifier3_kernel(%arg0: i32, %arg1: memref<28x32x28xf32, #tpu.memory_space<vmem>>, %arg2: memref<140x768xbf16, #tpu.memory_space<vmem>>, %arg3: memref<1x384xf32, #tpu.memory_space<vmem>>, %arg4: memref<1920x512xbf16, #tpu.memory_space<vmem>>, %arg5: memref<1x256xf32, #tpu.memory_space<vmem>>, %arg6: memref<768x256xbf16, #tpu.memory_space<vmem>>, %arg7: memref<1x128xf32, #tpu.memory_space<vmem>>, %arg8: memref<128x128xf32, #tpu.memory_space<vmem>>, %arg9: memref<1x128xf32, #tpu.memory_space<vmem>>, %arg10: memref<128x32xf32, #tpu.memory_space<vmem>>, %arg11: memref<1x32xf32, #tpu.memory_space<vmem>>, %arg12: memref<32x128xf32, #tpu.memory_space<vmem>>, %arg13: memref<1x128xf32, #tpu.memory_space<vmem>>, %arg14: memref<32x128xf32, #tpu.memory_space<vmem>>) attributes {dimension_semantics = [#tpu.dimension_semantics<parallel>], iteration_bounds = array<i64: 1>, scalar_prefetch = 0 : i64, scratch_operands = 0 : i64, tpu.core_type = #tpu.core_type<tc>, window_params = [{transform_indices = @transform_0, window_bounds = array<i64: 28, 32, 28>}, {pipeline_mode = #tpu.pipeline_mode<synchronous>, transform_indices = @transform_1, window_bounds = array<i64: 140, 768>}, {pipeline_mode = #tpu.pipeline_mode<synchronous>, transform_indices = @transform_2, window_bounds = array<i64: 1, 384>}, {pipeline_mode = #tpu.pipeline_mode<synchronous>, transform_indices = @transform_3, window_bounds = array<i64: 1920, 512>}, {pipeline_mode = #tpu.pipeline_mode<synchronous>, transform_indices = @transform_4, window_bounds = array<i64: 1, 256>}, {pipeline_mode = #tpu.pipeline_mode<synchronous>, transform_indices = @transform_5, window_bounds = array<i64: 768, 256>}, {pipeline_mode = #tpu.pipeline_mode<synchronous>, transform_indices = @transform_6, window_bounds = array<i64: 1, 128>}, {pipeline_mode = #tpu.pipeline_mode<synchronous>, transform_indices = @transform_7, window_bounds = array<i64: 128, 128>}, {pipeline_mode = #tpu.pipeline_mode<synchronous>, transform_indices = @transform_8, window_bounds = array<i64: 1, 128>}, {pipeline_mode = #tpu.pipeline_mode<synchronous>, transform_indices = @transform_9, window_bounds = array<i64: 128, 32>}, {pipeline_mode = #tpu.pipeline_mode<synchronous>, transform_indices = @transform_10, window_bounds = array<i64: 1, 32>}, {pipeline_mode = #tpu.pipeline_mode<synchronous>, transform_indices = @transform_11, window_bounds = array<i64: 32, 128>}, {pipeline_mode = #tpu.pipeline_mode<synchronous>, transform_indices = @transform_12, window_bounds = array<i64: 1, 128>}, {transform_indices = @transform_13, window_bounds = array<i64: 32, 128>}]} {
    %c0 = arith.constant 0 : index
    %c0_0 = arith.constant 0 : index
    %c0_1 = arith.constant 0 : index
    %0 = vector.load %arg1[%c0, %c0_0, %c0_1] : memref<28x32x28xf32, #tpu.memory_space<vmem>>, vector<28x32x28xf32>
    %1 = arith.truncf %0 : vector<28x32x28xf32> to vector<28x32x28xbf16>
    %2 = vector.extract_strided_slice %1 {offsets = [0, 0, 0], sizes = [24, 32, 28], strides = [1, 1, 1]} : vector<28x32x28xbf16> to vector<24x32x28xbf16>
    %3 = vector.extract_strided_slice %1 {offsets = [1, 0, 0], sizes = [24, 32, 28], strides = [1, 1, 1]} : vector<28x32x28xbf16> to vector<24x32x28xbf16>
    %4 = vector.extract_strided_slice %1 {offsets = [2, 0, 0], sizes = [24, 32, 28], strides = [1, 1, 1]} : vector<28x32x28xbf16> to vector<24x32x28xbf16>
    %5 = vector.extract_strided_slice %1 {offsets = [3, 0, 0], sizes = [24, 32, 28], strides = [1, 1, 1]} : vector<28x32x28xbf16> to vector<24x32x28xbf16>
    %6 = vector.extract_strided_slice %1 {offsets = [4, 0, 0], sizes = [24, 32, 28], strides = [1, 1, 1]} : vector<28x32x28xbf16> to vector<24x32x28xbf16>
    %7 = tpu.concatenate %2, %3, %4, %5, %6 in 2 : vector<24x32x28xbf16>, vector<24x32x28xbf16>, vector<24x32x28xbf16>, vector<24x32x28xbf16>, vector<24x32x28xbf16> -> vector<24x32x140xbf16>
    %8 = vector.shape_cast %7 : vector<24x32x140xbf16> to vector<768x140xbf16>
    %c0_2 = arith.constant 0 : index
    %c0_3 = arith.constant 0 : index
    %9 = vector.load %arg2[%c0_2, %c0_3] : memref<140x768xbf16, #tpu.memory_space<vmem>>, vector<140x768xbf16>
    %cst = arith.constant dense<0.000000e+00> : vector<768x768xf32>
    %10 = tpu.matmul %8, %9, %cst {dimension_numbers = #tpu.dot_dimension_numbers<[1], [0], [0], [1], [0, 0, 1, 1], [], []>} : vector<768x140xbf16>, vector<140x768xbf16>, vector<768x768xf32> -> vector<768x768xf32>
    %c0_4 = arith.constant 0 : index
    %c0_5 = arith.constant 0 : index
    %11 = vector.load %arg3[%c0_4, %c0_5] : memref<1x384xf32, #tpu.memory_space<vmem>>, vector<1x384xf32>
    %12 = vector.shape_cast %10 : vector<768x768xf32> to vector<12x2x32x768xf32>
    %13 = vector.extract_strided_slice %12 {offsets = [0, 0, 0, 0], sizes = [12, 1, 32, 768], strides = [1, 1, 1, 1]} : vector<12x2x32x768xf32> to vector<12x1x32x768xf32>
    %14 = vector.shape_cast %13 : vector<12x1x32x768xf32> to vector<12x32x768xf32>
    %15 = vector.extract_strided_slice %12 {offsets = [0, 1, 0, 0], sizes = [12, 1, 32, 768], strides = [1, 1, 1, 1]} : vector<12x2x32x768xf32> to vector<12x1x32x768xf32>
    %16 = vector.shape_cast %15 : vector<12x1x32x768xf32> to vector<12x32x768xf32>
    %17 = arith.maximumf %14, %16 : vector<12x32x768xf32>
    %18 = vector.extract_strided_slice %17 {offsets = [0, 0, 0], sizes = [12, 32, 384], strides = [1, 1, 1]} : vector<12x32x768xf32> to vector<12x32x384xf32>
    %19 = vector.extract_strided_slice %17 {offsets = [0, 0, 384], sizes = [12, 32, 384], strides = [1, 1, 1]} : vector<12x32x768xf32> to vector<12x32x384xf32>
    %20 = arith.maximumf %18, %19 : vector<12x32x384xf32>
    %21 = vector.shape_cast %11 : vector<1x384xf32> to vector<1x1x384xf32>
    %22 = vector.broadcast %21 : vector<1x1x384xf32> to vector<12x32x384xf32>
    %23 = arith.addf %20, %22 : vector<12x32x384xf32>
    %cst_6 = arith.constant 0.000000e+00 : f32
    %24 = vector.broadcast %cst_6 : f32 to vector<12x32x384xf32>
    %25 = arith.maximumf %23, %24 : vector<12x32x384xf32>
    %26 = arith.truncf %25 : vector<12x32x384xf32> to vector<12x32x384xbf16>
    %27 = vector.extract_strided_slice %26 {offsets = [0, 0, 0], sizes = [8, 32, 384], strides = [1, 1, 1]} : vector<12x32x384xbf16> to vector<8x32x384xbf16>
    %28 = vector.extract_strided_slice %26 {offsets = [1, 0, 0], sizes = [8, 32, 384], strides = [1, 1, 1]} : vector<12x32x384xbf16> to vector<8x32x384xbf16>
    %29 = vector.extract_strided_slice %26 {offsets = [2, 0, 0], sizes = [8, 32, 384], strides = [1, 1, 1]} : vector<12x32x384xbf16> to vector<8x32x384xbf16>
    %30 = vector.extract_strided_slice %26 {offsets = [3, 0, 0], sizes = [8, 32, 384], strides = [1, 1, 1]} : vector<12x32x384xbf16> to vector<8x32x384xbf16>
    %31 = vector.extract_strided_slice %26 {offsets = [4, 0, 0], sizes = [8, 32, 384], strides = [1, 1, 1]} : vector<12x32x384xbf16> to vector<8x32x384xbf16>
    %32 = tpu.concatenate %27, %28, %29, %30, %31 in 2 : vector<8x32x384xbf16>, vector<8x32x384xbf16>, vector<8x32x384xbf16>, vector<8x32x384xbf16>, vector<8x32x384xbf16> -> vector<8x32x1920xbf16>
    %33 = vector.shape_cast %32 : vector<8x32x1920xbf16> to vector<256x1920xbf16>
    %c0_7 = arith.constant 0 : index
    %c0_8 = arith.constant 0 : index
    %34 = vector.load %arg4[%c0_7, %c0_8] : memref<1920x512xbf16, #tpu.memory_space<vmem>>, vector<1920x512xbf16>
    %cst_9 = arith.constant dense<0.000000e+00> : vector<256x512xf32>
    %35 = tpu.matmul %33, %34, %cst_9 {dimension_numbers = #tpu.dot_dimension_numbers<[1], [0], [0], [1], [0, 0, 1, 1], [], []>} : vector<256x1920xbf16>, vector<1920x512xbf16>, vector<256x512xf32> -> vector<256x512xf32>
    %c0_10 = arith.constant 0 : index
    %c0_11 = arith.constant 0 : index
    %36 = vector.load %arg5[%c0_10, %c0_11] : memref<1x256xf32, #tpu.memory_space<vmem>>, vector<1x256xf32>
    %37 = vector.shape_cast %35 : vector<256x512xf32> to vector<4x2x32x512xf32>
    %38 = vector.extract_strided_slice %37 {offsets = [0, 0, 0, 0], sizes = [4, 1, 32, 512], strides = [1, 1, 1, 1]} : vector<4x2x32x512xf32> to vector<4x1x32x512xf32>
    %39 = vector.shape_cast %38 : vector<4x1x32x512xf32> to vector<4x32x512xf32>
    %40 = vector.extract_strided_slice %37 {offsets = [0, 1, 0, 0], sizes = [4, 1, 32, 512], strides = [1, 1, 1, 1]} : vector<4x2x32x512xf32> to vector<4x1x32x512xf32>
    %41 = vector.shape_cast %40 : vector<4x1x32x512xf32> to vector<4x32x512xf32>
    %42 = arith.maximumf %39, %41 : vector<4x32x512xf32>
    %43 = vector.extract_strided_slice %42 {offsets = [0, 0, 0], sizes = [4, 32, 256], strides = [1, 1, 1]} : vector<4x32x512xf32> to vector<4x32x256xf32>
    %44 = vector.extract_strided_slice %42 {offsets = [0, 0, 256], sizes = [4, 32, 256], strides = [1, 1, 1]} : vector<4x32x512xf32> to vector<4x32x256xf32>
    %45 = arith.maximumf %43, %44 : vector<4x32x256xf32>
    %46 = vector.shape_cast %36 : vector<1x256xf32> to vector<1x1x256xf32>
    %47 = vector.broadcast %46 : vector<1x1x256xf32> to vector<4x32x256xf32>
    %48 = arith.addf %45, %47 : vector<4x32x256xf32>
    %cst_12 = arith.constant 0.000000e+00 : f32
    %49 = vector.broadcast %cst_12 : f32 to vector<4x32x256xf32>
    %50 = arith.maximumf %48, %49 : vector<4x32x256xf32>
    %51 = arith.truncf %50 : vector<4x32x256xf32> to vector<4x32x256xbf16>
    %52 = vector.extract_strided_slice %51 {offsets = [0, 0, 0], sizes = [2, 32, 256], strides = [1, 1, 1]} : vector<4x32x256xbf16> to vector<2x32x256xbf16>
    %53 = vector.extract_strided_slice %51 {offsets = [1, 0, 0], sizes = [2, 32, 256], strides = [1, 1, 1]} : vector<4x32x256xbf16> to vector<2x32x256xbf16>
    %54 = vector.extract_strided_slice %51 {offsets = [2, 0, 0], sizes = [2, 32, 256], strides = [1, 1, 1]} : vector<4x32x256xbf16> to vector<2x32x256xbf16>
    %55 = tpu.concatenate %52, %53, %54 in 2 : vector<2x32x256xbf16>, vector<2x32x256xbf16>, vector<2x32x256xbf16> -> vector<2x32x768xbf16>
    %56 = vector.shape_cast %55 : vector<2x32x768xbf16> to vector<64x768xbf16>
    %c0_13 = arith.constant 0 : index
    %c0_14 = arith.constant 0 : index
    %57 = vector.load %arg6[%c0_13, %c0_14] : memref<768x256xbf16, #tpu.memory_space<vmem>>, vector<768x256xbf16>
    %cst_15 = arith.constant dense<0.000000e+00> : vector<64x256xf32>
    %58 = tpu.matmul %56, %57, %cst_15 {dimension_numbers = #tpu.dot_dimension_numbers<[1], [0], [0], [1], [0, 0, 1, 1], [], []>} : vector<64x768xbf16>, vector<768x256xbf16>, vector<64x256xf32> -> vector<64x256xf32>
    %c0_16 = arith.constant 0 : index
    %c0_17 = arith.constant 0 : index
    %59 = vector.load %arg7[%c0_16, %c0_17] : memref<1x128xf32, #tpu.memory_space<vmem>>, vector<1x128xf32>
    %60 = vector.shape_cast %58 : vector<64x256xf32> to vector<1x2x32x256xf32>
    %61 = vector.extract_strided_slice %60 {offsets = [0, 0, 0, 0], sizes = [1, 1, 32, 256], strides = [1, 1, 1, 1]} : vector<1x2x32x256xf32> to vector<1x1x32x256xf32>
    %62 = vector.shape_cast %61 : vector<1x1x32x256xf32> to vector<1x32x256xf32>
    %63 = vector.extract_strided_slice %60 {offsets = [0, 1, 0, 0], sizes = [1, 1, 32, 256], strides = [1, 1, 1, 1]} : vector<1x2x32x256xf32> to vector<1x1x32x256xf32>
    %64 = vector.shape_cast %63 : vector<1x1x32x256xf32> to vector<1x32x256xf32>
    %65 = arith.maximumf %62, %64 : vector<1x32x256xf32>
    %66 = vector.extract_strided_slice %65 {offsets = [0, 0, 0], sizes = [1, 32, 128], strides = [1, 1, 1]} : vector<1x32x256xf32> to vector<1x32x128xf32>
    %67 = vector.extract_strided_slice %65 {offsets = [0, 0, 128], sizes = [1, 32, 128], strides = [1, 1, 1]} : vector<1x32x256xf32> to vector<1x32x128xf32>
    %68 = arith.maximumf %66, %67 : vector<1x32x128xf32>
    %69 = vector.shape_cast %59 : vector<1x128xf32> to vector<1x1x128xf32>
    %70 = vector.broadcast %69 : vector<1x1x128xf32> to vector<1x32x128xf32>
    %71 = arith.addf %68, %70 : vector<1x32x128xf32>
    %cst_18 = arith.constant 0.000000e+00 : f32
    %72 = vector.broadcast %cst_18 : f32 to vector<1x32x128xf32>
    %73 = arith.maximumf %71, %72 : vector<1x32x128xf32>
    %74 = vector.shape_cast %73 : vector<1x32x128xf32> to vector<32x128xf32>
    %c0_19 = arith.constant 0 : index
    %c0_20 = arith.constant 0 : index
    %75 = vector.load %arg8[%c0_19, %c0_20] : memref<128x128xf32, #tpu.memory_space<vmem>>, vector<128x128xf32>
    %cst_21 = arith.constant dense<0.000000e+00> : vector<32x128xf32>
    %76 = tpu.matmul %74, %75, %cst_21 {dimension_numbers = #tpu.dot_dimension_numbers<[1], [0], [0], [1], [0, 0, 1, 1], [], []>} : vector<32x128xf32>, vector<128x128xf32>, vector<32x128xf32> -> vector<32x128xf32>
    %c0_22 = arith.constant 0 : index
    %c0_23 = arith.constant 0 : index
    %77 = vector.load %arg9[%c0_22, %c0_23] : memref<1x128xf32, #tpu.memory_space<vmem>>, vector<1x128xf32>
    %78 = vector.broadcast %77 : vector<1x128xf32> to vector<32x128xf32>
    %79 = arith.addf %76, %78 : vector<32x128xf32>
    %cst_24 = arith.constant 0.000000e+00 : f32
    %80 = vector.broadcast %cst_24 : f32 to vector<32x128xf32>
    %81 = arith.maximumf %79, %80 : vector<32x128xf32>
    %c0_25 = arith.constant 0 : index
    %c0_26 = arith.constant 0 : index
    %82 = vector.load %arg10[%c0_25, %c0_26] : memref<128x32xf32, #tpu.memory_space<vmem>>, vector<128x32xf32>
    %cst_27 = arith.constant dense<0.000000e+00> : vector<32x32xf32>
    %83 = tpu.matmul %81, %82, %cst_27 {dimension_numbers = #tpu.dot_dimension_numbers<[1], [0], [0], [1], [0, 0, 1, 1], [], []>} : vector<32x128xf32>, vector<128x32xf32>, vector<32x32xf32> -> vector<32x32xf32>
    %c0_28 = arith.constant 0 : index
    %c0_29 = arith.constant 0 : index
    %84 = vector.load %arg11[%c0_28, %c0_29] : memref<1x32xf32, #tpu.memory_space<vmem>>, vector<1x32xf32>
    %85 = vector.broadcast %84 : vector<1x32xf32> to vector<32x32xf32>
    %86 = arith.addf %83, %85 : vector<32x32xf32>
    %cst_30 = arith.constant 0.000000e+00 : f32
    %87 = vector.broadcast %cst_30 : f32 to vector<32x32xf32>
    %88 = arith.maximumf %86, %87 : vector<32x32xf32>
    %c0_31 = arith.constant 0 : index
    %c0_32 = arith.constant 0 : index
    %89 = vector.load %arg12[%c0_31, %c0_32] : memref<32x128xf32, #tpu.memory_space<vmem>>, vector<32x128xf32>
    %cst_33 = arith.constant dense<0.000000e+00> : vector<32x128xf32>
    %90 = tpu.matmul %88, %89, %cst_33 {dimension_numbers = #tpu.dot_dimension_numbers<[1], [0], [0], [1], [0, 0, 1, 1], [], []>} : vector<32x32xf32>, vector<32x128xf32>, vector<32x128xf32> -> vector<32x128xf32>
    %c0_34 = arith.constant 0 : index
    %c0_35 = arith.constant 0 : index
    %91 = vector.load %arg13[%c0_34, %c0_35] : memref<1x128xf32, #tpu.memory_space<vmem>>, vector<1x128xf32>
    %92 = vector.broadcast %91 : vector<1x128xf32> to vector<32x128xf32>
    %93 = arith.addf %90, %92 : vector<32x128xf32>
    %c0_36 = arith.constant 0 : index
    %c0_37 = arith.constant 0 : index
    %94 = vector.load %arg14[%c0_36, %c0_37] : memref<32x128xf32, #tpu.memory_space<vmem>>, vector<32x128xf32>
    tpu.vector_store %arg14[%c0_36, %c0_37], %93 {strides = array<i32>} : memref<32x128xf32, #tpu.memory_space<vmem>>, vector<32x128xf32>,
    return
  }
  func.func @transform_0(%arg0: i32) -> (i32, i32, i32) {
    %c0_i32 = arith.constant 0 : i32
    %c0_i32_0 = arith.constant 0 : i32
    %c0_i32_1 = arith.constant 0 : i32
    return %c0_i32, %arg0, %c0_i32_0 : i32, i32, i32
  }
  func.func @transform_1(%arg0: i32) -> (i32, i32) {
    %c0_i32 = arith.constant 0 : i32
    %c0_i32_0 = arith.constant 0 : i32
    %c0_i32_1 = arith.constant 0 : i32
    return %c0_i32, %c0_i32_0 : i32, i32
  }
  func.func @transform_2(%arg0: i32) -> (i32, i32) {
    %c0_i32 = arith.constant 0 : i32
    %c0_i32_0 = arith.constant 0 : i32
    %c0_i32_1 = arith.constant 0 : i32
    return %c0_i32, %c0_i32_0 : i32, i32
  }
  func.func @transform_3(%arg0: i32) -> (i32, i32) {
    %c0_i32 = arith.constant 0 : i32
    %c0_i32_0 = arith.constant 0 : i32
    %c0_i32_1 = arith.constant 0 : i32
    return %c0_i32, %c0_i32_0 : i32, i32
  }
  func.func @transform_4(%arg0: i32) -> (i32, i32) {
    %c0_i32 = arith.constant 0 : i32
    %c0_i32_0 = arith.constant 0 : i32
    %c0_i32_1 = arith.constant 0 : i32
    return %c0_i32, %c0_i32_0 : i32, i32
  }
  func.func @transform_5(%arg0: i32) -> (i32, i32) {
    %c0_i32 = arith.constant 0 : i32
    %c0_i32_0 = arith.constant 0 : i32
    %c0_i32_1 = arith.constant 0 : i32
    return %c0_i32, %c0_i32_0 : i32, i32
  }
  func.func @transform_6(%arg0: i32) -> (i32, i32) {
    %c0_i32 = arith.constant 0 : i32
    %c0_i32_0 = arith.constant 0 : i32
    %c0_i32_1 = arith.constant 0 : i32
    return %c0_i32, %c0_i32_0 : i32, i32
  }
  func.func @transform_7(%arg0: i32) -> (i32, i32) {
    %c0_i32 = arith.constant 0 : i32
    %c0_i32_0 = arith.constant 0 : i32
    %c0_i32_1 = arith.constant 0 : i32
    return %c0_i32, %c0_i32_0 : i32, i32
  }
  func.func @transform_8(%arg0: i32) -> (i32, i32) {
    %c0_i32 = arith.constant 0 : i32
    %c0_i32_0 = arith.constant 0 : i32
    %c0_i32_1 = arith.constant 0 : i32
    return %c0_i32, %c0_i32_0 : i32, i32
  }
  func.func @transform_9(%arg0: i32) -> (i32, i32) {
    %c0_i32 = arith.constant 0 : i32
    %c0_i32_0 = arith.constant 0 : i32
    %c0_i32_1 = arith.constant 0 : i32
    return %c0_i32, %c0_i32_0 : i32, i32
  }
  func.func @transform_10(%arg0: i32) -> (i32, i32) {
    %c0_i32 = arith.constant 0 : i32
    %c0_i32_0 = arith.constant 0 : i32
    %c0_i32_1 = arith.constant 0 : i32
    return %c0_i32, %c0_i32_0 : i32, i32
  }
  func.func @transform_11(%arg0: i32) -> (i32, i32) {
    %c0_i32 = arith.constant 0 : i32
    %c0_i32_0 = arith.constant 0 : i32
    %c0_i32_1 = arith.constant 0 : i32
    return %c0_i32, %c0_i32_0 : i32, i32
  }
  func.func @transform_12(%arg0: i32) -> (i32, i32) {
    %c0_i32 = arith.constant 0 : i32
    %c0_i32_0 = arith.constant 0 : i32
    %c0_i32_1 = arith.constant 0 : i32
    return %c0_i32, %c0_i32_0 : i32, i32
  }
  func.func @transform_13(%arg0: i32) -> (i32, i32) {
    %c0_i32 = arith.constant 0 : i32
    %c0_i32_0 = arith.constant 0 : i32
    return %arg0, %c0_i32 : i32, i32
  }
}

</mosaic_0001>

<bundles_post_ra>
// kernel: classifier3_forward.1
= control target key start
LH: loop header
LB: loop body
LE: loop exit
PB: predicated region body
PF: predicated region fallthrough
CT: control target
= control target key end

     0   :  { %18 = vsyncpa [#allocation3], 0  ;;  %s18824_s0 = inlined_call_operand.vmem [shape: f32[28,32,28], index: 0, kind: input, shape index: {}]   ;;  %s18825_s1 = inlined_call_operand.hbm [shape: bf16[140,768], index: 1, kind: input, shape index: {}]   ;;  %s18826_s2 = inlined_call_operand.hbm [shape: f32[1,384], index: 2, kind: input, shape index: {}]   ;;  %s18827_s3 = inlined_call_operand.hbm [shape: bf16[1920,512], index: 3, kind: input, shape index: {}]   ;;  %s18828_s4 = inlined_call_operand.hbm [shape: f32[1,256], index: 4, kind: input, shape index: {}]   ;;  %s18829_s5 = inlined_call_operand.hbm [shape: bf16[768,256], index: 5, kind: input, shape index: {}]   ;;  %s18830_s6 = inlined_call_operand.hbm [shape: f32[1,128], index: 6, kind: input, shape index: {}]   ;;  %s18831_s7 = inlined_call_operand.hbm [shape: f32[128,128], index: 7, kind: input, shape index: {}]   ;;  %s18832_s8 = inlined_call_operand.hbm [shape: f32[1,128], index: 8, kind: input, shape index: {}]   ;;  %s18833_s9 = inlined_call_operand.vmem [shape: f32[128,32], index: 9, kind: input, shape index: {}]   ;;  %s18834_s10 = inlined_call_operand.hbm [shape: f32[1,32], index: 10, kind: input, shape index: {}]   ;;  %s18835_s11 = inlined_call_operand.hbm [shape: f32[32,128], index: 11, kind: input, shape index: {}]   ;;  %s18836_s12 = inlined_call_operand.hbm [shape: f32[1,128], index: 12, kind: input, shape index: {}]   ;;  %s18837_s13 = inlined_call_operand.vmem [shape: f32[32,128], index: 13, kind: output, shape index: {}]  }
   0x1   :  { %19 = vsyncpa [#allocation5], 0 }
   0x2   :  { %20 = vsyncpa [#allocation8], 0 }
   0x3   :  { %21 = vsyncpa [#allocation11], 0 }
   0x4   :  { %22 = vsyncpa [#allocation14], 0 }
   0x5   :  { %23 = vsyncpa [#allocation17], 0  ;;  %s14541_s25 = smov [#allocation4]   ;;  %s14542_s27 = smov [#allocation7]  }
   0x6   :  { %s44_s26 = sshll.u32 %s14541_s25, 4  ;;  %s66_s28 = sshll.u32 %s14542_s27, 4  ;;  %s45_s26 = int_to_ptr.vmem [resolvable:$true] %s44_s26  ;;  %s67_s28 = int_to_ptr.vmem [resolvable:$true] %s66_s28 }
   0x7   :  { %s14287_s14 = scalar_lea.hbm %s18826_s2, 48 }
   0x8   :  { %p14288_p0 = scmp.ne.s32.totalorder %s18826_s2, %s14287_s14  ;;  %p14291_p1 = scmp.lt.u32.totalorder %s14287_s14, %s18826_s2 }
   0xa   :  { %p14293_p2 = pnand %p14291_p1, %p14288_p0 }
   0xc   :  { %14296 = shalt.err (!%p14293_p2)
}
   0xd   :  { %s14297_s19 = scalar_lea.vmem %s45_s26, 48  ;;  %s14301_s20 = scalar_lea.vmem %s45_s26, 64 }
   0xe   :  { %p14298_p3 = scmp.ne.s32.totalorder %s45_s26, %s14297_s19  ;;  %p14302_p4 = scmp.lt.s32.totalorder %s45_s26, %s45_s26 }
   0xf   :  { %p14303_p5 = scmp.lt.s32.totalorder %s14301_s20, %s14297_s19 }
  0x11   :  { %p14304_p6 = por %p14303_p5, %p14302_p4 }
  0x13   :  { %p14305_p7 = pnand %p14304_p6, %p14298_p3 }
  0x15   :  { %14308 = shalt.err (!%p14305_p7)
}
  0x16   :  { %47 = dma.hbm_to_vmem [thread:$0]  %s18826_s2, 48, %s45_s26, [#allocation5]  }
  0x17   :  { %s14309_s25 = scalar_lea.hbm %s18828_s4, 32 }
  0x18   :  { %p14310_p8 = scmp.ne.s32.totalorder %s18828_s4, %s14309_s25  ;;  %p14313_p9 = scmp.lt.u32.totalorder %s14309_s25, %s18828_s4 }
  0x1a   :  { %p14315_p10 = pnand %p14313_p9, %p14310_p8 }
  0x1c   :  { %14318 = shalt.err (!%p14315_p10)
}
  0x1d   :  { %s14319_s15 = scalar_lea.vmem %s67_s28, 32  ;;  %p14324_p12 = scmp.lt.s32.totalorder %s67_s28, %s67_s28 }
  0x1e   :  { %p14320_p11 = scmp.ne.s32.totalorder %s67_s28, %s14319_s15  ;;  %p14325_p13 = scmp.lt.s32.totalorder %s14319_s15, %s14319_s15 }
  0x20   :  { %p14326_p0 = por %p14325_p13, %p14324_p12 }
  0x22   :  { %p14327_p1 = pnand %p14326_p0, %p14320_p11 }
  0x24   :  { %14330 = shalt.err (!%p14327_p1)
}
  0x25   :  { %69 = dma.hbm_to_vmem [thread:$0]  %s18828_s4, 32, %s67_s28, [#allocation8]  }
  0x26   :  { %s14543_s16 = smov [#allocation10]   ;;  %s14544_s18 = smov [#allocation13]  }
  0x27   :  { %s88_s17 = sshll.u32 %s14543_s16, 4  ;;  %s110_s19 = sshll.u32 %s14544_s18, 4  ;;  %s89_s17 = int_to_ptr.vmem [resolvable:$true] %s88_s17  ;;  %s111_s19 = int_to_ptr.vmem [resolvable:$true] %s110_s19 }
  0x28   :  { %s14331_s22 = scalar_lea.hbm %s18830_s6, 16 }
  0x29   :  { %p14332_p2 = scmp.ne.s32.totalorder %s18830_s6, %s14331_s22  ;;  %p14335_p3 = scmp.lt.u32.totalorder %s14331_s22, %s18830_s6 }
  0x2b   :  { %p14337_p4 = pnand %p14335_p3, %p14332_p2 }
  0x2d   :  { %14340 = shalt.err (!%p14337_p4)
}
  0x2e   :  { %s14341_s4 = scalar_lea.vmem %s89_s17, 16  ;;  %s14345_s28 = scalar_lea.vmem %s89_s17, 32 }
  0x2f   :  { %p14342_p5 = scmp.ne.s32.totalorder %s89_s17, %s14341_s4  ;;  %p14346_p6 = scmp.lt.s32.totalorder %s89_s17, %s89_s17 }
  0x30   :  { %p14347_p7 = scmp.lt.s32.totalorder %s14345_s28, %s14341_s4 }
  0x32   :  { %p14348_p8 = por %p14347_p7, %p14346_p6 }
  0x34   :  { %p14349_p9 = pnand %p14348_p8, %p14342_p5 }
  0x36   :  { %14352 = shalt.err (!%p14349_p9)
}
  0x37   :  { %91 = dma.hbm_to_vmem [thread:$0]  %s18830_s6, 16, %s89_s17, [#allocation11]  }
  0x38   :  { %s14353_s2 = scalar_lea.hbm %s18832_s8, 16 }
  0x39   :  { %p14354_p10 = scmp.ne.s32.totalorder %s18832_s8, %s14353_s2  ;;  %p14357_p11 = scmp.lt.u32.totalorder %s14353_s2, %s18832_s8 }
  0x3b   :  { %p14359_p12 = pnand %p14357_p11, %p14354_p10 }
  0x3d   :  { %14362 = shalt.err (!%p14359_p12)
}
  0x3e   :  { %s14363_s21 = scalar_lea.vmem %s111_s19, 16  ;;  %s14367_s22 = scalar_lea.vmem %s111_s19, 32 }
  0x3f   :  { %p14364_p13 = scmp.ne.s32.totalorder %s111_s19, %s14363_s21  ;;  %p14368_p0 = scmp.lt.s32.totalorder %s111_s19, %s111_s19 }
  0x40   :  { %p14369_p1 = scmp.lt.s32.totalorder %s14367_s22, %s14363_s21 }
  0x42   :  { %p14370_p2 = por %p14369_p1, %p14368_p0 }
  0x44   :  { %p14371_p3 = pnand %p14370_p2, %p14364_p13 }
  0x46   :  { %14374 = shalt.err (!%p14371_p3)
}
  0x47   :  { %113 = dma.hbm_to_vmem [thread:$0]  %s18832_s8, 16, %s111_s19, [#allocation14]  }
  0x48   :  { %s14545_s23 = smov [#allocation16]   ;;  %s14546_s25 = smov [#allocation2]  }
  0x49   :  { %s131_s24 = sshll.u32 %s14545_s23, 4  ;;  %s31_s27 = sshll.u32 %s14546_s25, 4  ;;  %s132_s24 = int_to_ptr.vmem [resolvable:$true] %s131_s24  ;;  %s14681_s27 = int_to_ptr.vmem [resolvable:$true] %s31_s27 }
  0x4a   :  { %s14375_s29 = scalar_lea.hbm %s18835_s11, 512 }
  0x4b   :  { %p14376_p4 = scmp.ne.s32.totalorder %s18835_s11, %s14375_s29  ;;  %p14379_p5 = scmp.lt.u32.totalorder %s14375_s29, %s18835_s11 }
  0x4d   :  { %p14381_p6 = pnand %p14379_p5, %p14376_p4 }
  0x4f   :  { %14384 = shalt.err (!%p14381_p6)
}
  0x50   :  { %s14385_s8 = scalar_lea.vmem %s132_s24, 512  ;;  %p14390_p8 = scmp.lt.s32.totalorder %s132_s24, %s132_s24 }
  0x51   :  { %p14386_p7 = scmp.ne.s32.totalorder %s132_s24, %s14385_s8  ;;  %p14391_p9 = scmp.lt.s32.totalorder %s14385_s8, %s14385_s8 }
  0x53   :  { %p14392_p10 = por %p14391_p9, %p14390_p8 }
  0x55   :  { %p14393_p11 = pnand %p14392_p10, %p14386_p7 }
  0x57   :  { %14396 = shalt.err (!%p14393_p11)
}
  0x58   :  { %s14547_s19 = smov 128   ;;  %s14548_s26 = smov 8  }
  0x59   :  { %137 = dma.hbm_to_vmem [thread:$0]  %s18835_s11, 512, %s132_s24, [#allocation17], %s14547_s19, %s14547_s19, %s14548_s26  }
  0x5a   :  { %s14397_s22 = scalar_lea.hbm %s18825_s1, 6912 }
  0x5b   :  { %p14398_p12 = scmp.ne.s32.totalorder %s18825_s1, %s14397_s22  ;;  %p14401_p13 = scmp.lt.u32.totalorder %s14397_s22, %s18825_s1 }
  0x5d   :  { %p14403_p0 = pnand %p14401_p13, %p14398_p12 }
  0x5f   :  { %14406 = shalt.err (!%p14403_p0)
}
  0x60   :  { %s14407_s4 = scalar_lea.vmem %s14681_s27, 6912  ;;  %p14412_p2 = scmp.lt.s32.totalorder %s14681_s27, %s14681_s27 }
  0x61   :  { %p14408_p1 = scmp.ne.s32.totalorder %s14681_s27, %s14407_s4  ;;  %p14413_p3 = scmp.lt.s32.totalorder %s14407_s4, %s14407_s4 }
  0x63   :  { %p14414_p4 = por %p14413_p3, %p14412_p2 }
  0x65   :  { %p14415_p5 = pnand %p14414_p4, %p14408_p1 }
  0x67   :  { %14418 = shalt.err (!%p14415_p5)
}
  0x68   :  { %s14549_s11 = smov 384   ;;  %s14550_s24 = smov 24  }
  0x69   :  { %37 = dma.hbm_to_vmem [thread:$0]  %s18825_s1, 6912, %s14681_s27, [#allocation3], %s14549_s11, %s14549_s11, %s14550_s24  }
  0x6a   :  { %s14551_s30 = smov [#allocation6]   ;;  %s14419_s8 = scalar_lea.hbm %s18827_s3, 61440 }
  0x6b   :  { %s53_s14 = sshll.u32 %s14551_s30, 4  ;;  %p14420_p6 = scmp.ne.s32.totalorder %s18827_s3, %s14419_s8  ;;  %s54_s14 = int_to_ptr.vmem [resolvable:$true] %s53_s14 }
  0x6c   :  { %p14423_p7 = scmp.lt.u32.totalorder %s14419_s8, %s18827_s3 }
  0x6e   :  { %p14425_p8 = pnand %p14423_p7, %p14420_p6 }
  0x70   :  { %14428 = shalt.err (!%p14425_p8)
}
  0x71   :  { %s14429_s22 = scalar_lea.vmem %s54_s14, 61440  ;;  %p14434_p10 = scmp.lt.s32.totalorder %s54_s14, %s54_s14 }
  0x72   :  { %p14430_p9 = scmp.ne.s32.totalorder %s54_s14, %s14429_s22  ;;  %p14435_p11 = scmp.lt.s32.totalorder %s14429_s22, %s14429_s22 }
  0x74   :  { %p14436_p12 = por %p14435_p11, %p14434_p10 }
  0x76   :  { %p14437_p13 = pnand %p14436_p12, %p14430_p9 }
  0x78   :  { %14440 = shalt.err (!%p14437_p13)
}
  0x79   :  { %s14552_s1 = smov 256   ;;  %s14553_s27 = smov 16  }
  0x7a   :  { %59 = dma.hbm_to_vmem [thread:$0]  %s18827_s3, 61440, %s54_s14, [#allocation5], %s14552_s1, %s14552_s1, %s14553_s27  }
  0x7b   :  { %s14554_s23 = smov [#allocation9]   ;;  %s14555_s4 = smov [#allocation12]  }
  0x7c   :  { %s75_s25 = sshll.u32 %s14554_s23, 4  ;;  %s97_s11 = sshll.u32 %s14555_s4, 4  ;;  %s76_s25 = int_to_ptr.vmem [resolvable:$true] %s75_s25  ;;  %s98_s11 = int_to_ptr.vmem [resolvable:$true] %s97_s11 }
  0x7d   :  { %s14441_s29 = scalar_lea.hbm %s18829_s5, 12288 }
  0x7e   :  { %p14442_p0 = scmp.ne.s32.totalorder %s18829_s5, %s14441_s29  ;;  %p14445_p1 = scmp.lt.u32.totalorder %s14441_s29, %s18829_s5 }
  0x80   :  { %p14447_p2 = pnand %p14445_p1, %p14442_p0 }
  0x82   :  { %14450 = shalt.err (!%p14447_p2)
}
  0x83   :  { %s14451_s3 = scalar_lea.vmem %s76_s25, 12288  ;;  %p14456_p4 = scmp.lt.s32.totalorder %s76_s25, %s76_s25 }
  0x84   :  { %p14452_p3 = scmp.ne.s32.totalorder %s76_s25, %s14451_s3  ;;  %p14457_p5 = scmp.lt.s32.totalorder %s14451_s3, %s14451_s3 }
  0x86   :  { %p14458_p6 = por %p14457_p5, %p14456_p4 }
  0x88   :  { %p14459_p7 = pnand %p14458_p6, %p14452_p3 }
  0x8a   :  { %14462 = shalt.err (!%p14459_p7)
}
  0x8b   :  { %81 = dma.hbm_to_vmem [thread:$0]  %s18829_s5, 12288, %s76_s25, [#allocation8], %s14547_s19, %s14547_s19, %s14548_s26  }
  0x8c   :  { %s14463_s21 = scalar_lea.hbm %s18831_s7, 2048 }
  0x8d   :  { %p14464_p8 = scmp.ne.s32.totalorder %s18831_s7, %s14463_s21  ;;  %p14467_p9 = scmp.lt.u32.totalorder %s14463_s21, %s18831_s7 }
  0x8f   :  { %p14469_p10 = pnand %p14467_p9, %p14464_p8 }
  0x91   :  { %14472 = shalt.err (!%p14469_p10)
}
  0x92   :  { %s14473_s17 = scalar_lea.vmem %s98_s11, 2048  ;;  %p14478_p12 = scmp.lt.s32.totalorder %s98_s11, %s98_s11 }
  0x93   :  { %p14474_p11 = scmp.ne.s32.totalorder %s98_s11, %s14473_s17  ;;  %p14479_p13 = scmp.lt.s32.totalorder %s14473_s17, %s14473_s17 }
  0x95   :  { %p14480_p0 = por %p14479_p13, %p14478_p12 }
  0x97   :  { %p14481_p1 = pnand %p14480_p0, %p14474_p11 }
  0x99   :  { %14484 = shalt.err (!%p14481_p1)
}
  0x9a   :  { %103 = dma.hbm_to_vmem [thread:$0]  %s18831_s7, 2048, %s98_s11, [#allocation11], %s14547_s19, %s14547_s19, %s14548_s26  }
  0x9b   :  { %s14556_s25 = smov [#allocation15]   ;;  %s14557_s24 = smov [#allocation18]  }
  0x9c   :  { %s122_s4 = sshll.u32 %s14556_s25, 4  ;;  %s144_s28 = sshll.u32 %s14557_s24, 4  ;;  %s123_s4 = int_to_ptr.vmem [resolvable:$true] %s122_s4  ;;  %s145_s28 = int_to_ptr.vmem [resolvable:$true] %s144_s28 }
  0x9d   :  { %s14485_s15 = scalar_lea.hbm %s18834_s10, 16 }
  0x9e   :  { %p14486_p2 = scmp.ne.s32.totalorder %s18834_s10, %s14485_s15  ;;  %p14489_p3 = scmp.lt.u32.totalorder %s14485_s15, %s18834_s10 }
  0xa0   :  { %p14491_p4 = pnand %p14489_p3, %p14486_p2 }
  0xa2   :  { %14494 = shalt.err (!%p14491_p4)
}
  0xa3   :  { %s14495_s7 = scalar_lea.vmem %s123_s4, 16  ;;  %s14499_s19 = scalar_lea.vmem %s123_s4, 32 }
  0xa4   :  { %p14496_p5 = scmp.ne.s32.totalorder %s123_s4, %s14495_s7  ;;  %p14500_p6 = scmp.lt.s32.totalorder %s123_s4, %s123_s4 }
  0xa5   :  { %p14501_p7 = scmp.lt.s32.totalorder %s14499_s19, %s14495_s7 }
  0xa7   :  { %p14502_p8 = por %p14501_p7, %p14500_p6 }
  0xa9   :  { %p14503_p9 = pnand %p14502_p8, %p14496_p5 }
  0xab   :  { %14506 = shalt.err (!%p14503_p9)
}
  0xac   :  { %125 = dma.hbm_to_vmem [thread:$0]  %s18834_s10, 16, %s123_s4, [#allocation14]  }
  0xad   :  { %s14507_s20 = scalar_lea.hbm %s18836_s12, 16 }
  0xae   :  { %p14508_p10 = scmp.ne.s32.totalorder %s18836_s12, %s14507_s20  ;;  %p14511_p11 = scmp.lt.u32.totalorder %s14507_s20, %s18836_s12 }
  0xb0   :  { %p14513_p12 = pnand %p14511_p11, %p14508_p10 }
  0xb2   :  { %14516 = shalt.err (!%p14513_p12)
}
  0xb3   :  { %s14517_s6 = scalar_lea.vmem %s145_s28, 16  ;;  %s14521_s17 = scalar_lea.vmem %s145_s28, 32 }
  0xb4   :  { %p14518_p13 = scmp.ne.s32.totalorder %s145_s28, %s14517_s6  ;;  %p14522_p0 = scmp.lt.s32.totalorder %s145_s28, %s145_s28 }
  0xb5   :  { %p14523_p1 = scmp.lt.s32.totalorder %s14521_s17, %s14517_s6 }
  0xb7   :  { %p14524_p2 = por %p14523_p1, %p14522_p0 }
  0xb9   :  { %p14525_p3 = pnand %p14524_p2, %p14518_p13 }
  0xbb   :  { %14528 = shalt.err (!%p14525_p3)
}
  0xbc   :  { %147 = dma.hbm_to_vmem [thread:$0]  %s18836_s12, 16, %s145_s28, [#allocation17]  }
  0xbd   :  { %14529 = dma.done.wait [#allocation3], 6912  }
  0xbe   :  { %14530 = vsyncadd [#allocation3], 4294960384 }
  0xbf   :  { %14531 = dma.done.wait [#allocation5], 61488  }
  0xc0   :  { %14532 = vsyncadd [#allocation5], 4294905808 }
  0xc1   :  { %14533 = dma.done.wait [#allocation8], 12320  }
  0xc2   :  { %14534 = vsyncadd [#allocation8], 4294954976 }
  0xc3   :  { %14535 = dma.done.wait [#allocation11], 2064  }
  0xc4   :  { %14536 = vsyncadd [#allocation11], 4294965232 }
  0xc5   :  { %14537 = dma.done.wait [#allocation14], 32  }
  0xc6   :  { %14538 = vsyncadd [#allocation14], 4294967264 }
  0xc7   :  { %14539 = dma.done.wait [#allocation17], 528  }
  0xc8   :  { %14540 = vsyncadd [#allocation17], 4294966768  ;;  %v194_v0 = vld [vmem:[%s18824_s0 + $0x60] sm:$0xff]  ;;  %v195_v1 = vld [vmem:[%s18824_s0 + $0x68] sm:$0xff]  ;;  %s14558_s11 = smov 84   ;;  %s14559_s16 = smov 28  }
  0xc9   :  { %v186_v2 = vld [vmem:[%s18824_s0 + $0x20] sm:$0xff]  ;;  %v14790_v3 = vpack.c.bf16 %v195_v1, %v194_v0  ;;  %v187_v4 = vld [vmem:[%s18824_s0 + $0x28] sm:$0xff]  ;;  %v192_v12 = vld [vmem:[%s18824_s0 + $0x50] sm:$0xff]  ;;  %s14560_s10 = smov 112   ;;  %s14561_s5 = smov 56   ;;  %vm1687_vm0 = vcmask 1045504  }
  0xca   :  { %v198_v5 = vld [vmem:[%s18824_s0 + $0x80] sm:$0xff]  ;;  %v199_v6 = vld [vmem:[%s18824_s0 + $0x88] sm:$0xff]  ;;  %v14801_v7 = vpack.c.bf16 %v187_v4, %v186_v2  ;;  %v193_v13 = vld [vmem:[%s18824_s0 + $0x58] sm:$0xff]  ;;  %vm788_vm1 = vcmask 228352   ;;  %vm1590_vm2 = vcmask 97280   ;;  %vm933_vm3 = vcmask 457728  }
  0xcb   :  { %v190_v8 = vld [vmem:[%s18824_s0 + $0x40] sm:$0xff]  ;;  %v191_v9 = vld [vmem:[%s18824_s0 + $0x48] sm:$0xff]  ;;  %594 = vrot.lane.b32.xlu1 %v14790_v3, %s14558_s11  ;;  %v14811_v10 = vpack.c.bf16 %v199_v6, %v198_v5  ;;  %v188_v14 = vld [vmem:[%s18824_s0 + $0x30] sm:$0xff]  ;;  %v14831_v16 = vpack.c.bf16 %v193_v13, %v192_v12  ;;  %vm1030_vm4 = vcmask 687104   ;;  %vm1127_vm5 = vcmask 916480  }
  0xcc   :  { %398 = vrot.lane.b32.xlu0 %v14801_v7, %s14559_s16  ;;  %v14815_v11 = vpack.c.bf16 %v191_v9, %v190_v8  ;;  %v189_v15 = vld [vmem:[%s18824_s0 + $0x38] sm:$0xff]  ;;  %v200_v18 = vld [vmem:[%s18824_s0 + $0x90] sm:$0xff]  ;;  %v202_v27 = vld [vmem:[%s18824_s0 + $0xa0] sm:$0xff]  ;;  %vm11267_vm6 = vcmask 261120  }
  0xcd   :  { %v14835_v17 = vpack.c.bf16 %v189_v15, %v188_v14  ;;  %v201_v19 = vld [vmem:[%s18824_s0 + $0x98] sm:$0xff]  ;;  %v196_v20 = vld [vmem:[%s18824_s0 + $0x70] sm:$0xff]  ;;  %v203_v28 = vld [vmem:[%s18824_s0 + $0xa8] sm:$0xff] }
  0xce   :  { %v197_v21 = vld [vmem:[%s18824_s0 + $0x78] sm:$0xff]  ;;  %v14851_v22 = vpack.c.bf16 %v201_v19, %v200_v18  ;;  %v13345_v26 = vld [vmem:[#allocation2 + $0x34] ss:$24 sps:$4 sm:$0xff]   ;;  %v13347_v29 = vld [vmem:[#allocation2 + $0x30] ss:$24 sps:$4 sm:$0xff]   ;;  %v14869_v31 = vpack.c.bf16 %v203_v28, %v202_v27 }
  0xcf   :  { %692 = vrot.lane.b32.xlu1 %v14811_v10, %s14560_s10  ;;  %v14855_v23 = vpack.c.bf16 %v197_v21, %v196_v20  ;;  %v13342_v24 = vld [vmem:[#allocation2 + $0x4] ss:$24 sps:$4 sm:$0xff]   ;;  %v13344_v25 = vld [vmem:[#allocation2] ss:$24 sps:$4 sm:$0xff]   ;;  %v13351_v33 = vld [vmem:[#allocation2 + $0x94] ss:$24 sps:$4 sm:$0xff]  }
  0xd0   :  { %496 = vrot.lane.b32.xlu0 %v14815_v11, %s14561_s5  ;;  %1706 = vmatprep.subr.bf16.mxu0 %v13342_v24  ;;  %v13348_v30 = vld [vmem:[#allocation2 + $0x64] ss:$24 sps:$4 sm:$0xff]   ;;  %v13350_v32 = vld [vmem:[#allocation2 + $0x60] ss:$24 sps:$4 sm:$0xff]   ;;  %v13353_v34 = vld [vmem:[#allocation2 + $0x90] ss:$24 sps:$4 sm:$0xff]  }
  0xd1   :  { %12374 = vmatprep.subr.bf16.mxu1 %v13342_v24  ;;  %1707 = vmatpush1.bf16.msra.mxu0 %v13344_v25  ;;  %v204_v35 = vld [vmem:[%s18824_s0 + $0xb0] sm:$0xff]  ;;  %v205_v36 = vld [vmem:[%s18824_s0 + $0xb8] sm:$0xff]  ;;  %v206_v41 = vld [vmem:[%s18824_s0 + $0xc0] sm:$0xff] }
  0xd2   :  { %1708 = vmatprep.subr.bf16.mxu0 %v13345_v26  ;;  %12383 = vmatpush1.bf16.msra.mxu1 %v13344_v25  ;;  %v13354_v37 = vld [vmem:[#allocation2 + $0xc4] ss:$24 sps:$4 sm:$0xff]   ;;  %v14885_v38 = vpack.c.bf16 %v205_v36, %v204_v35  ;;  %v13356_v39 = vld [vmem:[#allocation2 + $0xc0] ss:$24 sps:$4 sm:$0xff]   ;;  %v13357_v40 = vld [vmem:[#allocation2 + $0xf4] ss:$24 sps:$4 sm:$0xff]  }
  0xd3   :  { %498 = vrot.lane.b32.xlu1 %v14831_v16, %s14561_s5  ;;  %12375 = vmatprep.subr.bf16.mxu1 %v13345_v26  ;;  %v207_v42 = vld [vmem:[%s18824_s0 + $0xc8] sm:$0xff]  ;;  %v13360_v44 = vld [vmem:[#allocation2 + $0x124] ss:$24 sps:$4 sm:$0xff]   ;;  %v13362_v45 = vld [vmem:[#allocation2 + $0x120] ss:$24 sps:$4 sm:$0xff]  }
  0xd4   :  { %400 = vrot.lane.b32.xlu0 %v14835_v17, %s14559_s16  ;;  %v13359_v43 = vld [vmem:[#allocation2 + $0xf0] ss:$24 sps:$4 sm:$0xff]   ;;  %v13363_v46 = vld [vmem:[#allocation2 + $0x154] ss:$24 sps:$4 sm:$0xff]   ;;  %v14901_v47 = vpack.c.bf16 %v207_v42, %v206_v41  ;;  %v209_v50 = vld [vmem:[%s18824_s0 + $0xd8] sm:$0xff] }
  0xd5   :  { %1709 = vmatpush1.bf16.msra.mxu0 %v13347_v29  ;;  %v13365_v48 = vld [vmem:[#allocation2 + $0x150] ss:$24 sps:$4 sm:$0xff]   ;;  %v13366_v51 = vld [vmem:[#allocation2 + $0x184] ss:$24 sps:$4 sm:$0x3f]  }
  0xd6   :  { %1710 = vmatprep.subr.bf16.mxu0 %v13348_v30  ;;  %12384 = vmatpush1.bf16.msra.mxu1 %v13347_v29  ;;  %v208_v49 = vld [vmem:[%s18824_s0 + $0xd0] sm:$0xff]  ;;  %v13368_v52 = vld [vmem:[#allocation2 + $0x180] ss:$24 sps:$4 sm:$0x3f]   ;;  %v211_v56 = vld [vmem:[%s18824_s0 + $0xe8] sm:$0xff] }
  0xd7   :  { %694 = vrot.lane.b32.xlu1 %v14851_v22, %s14560_s10  ;;  %12376 = vmatprep.subr.bf16.mxu1 %v13348_v30  ;;  %v14917_v53 = vpack.c.bf16 %v209_v50, %v208_v49  ;;  %v1689_v54 = vsel %vm1687_vm0, %v13368_v52, 0  ;;  %v210_v55 = vld [vmem:[%s18824_s0 + $0xe0] sm:$0xff]  ;;  %v212_v58 = vld [vmem:[%s18824_s0 + $0xf0] sm:$0xff]  ;;  %v213_v59 = vld [vmem:[%s18824_s0 + $0xf8] sm:$0xff] }
  0xd8   :  { %596 = vrot.lane.b32.xlu0 %v14855_v23, %s14558_s11  ;;  %v14936_v57 = vpack.c.bf16 %v211_v56, %v210_v55  ;;  %v14952_v60 = vpack.c.bf16 %v213_v59, %v212_v58  ;;  %v214_v61 = vld [vmem:[%s18824_s0 + $0x100] sm:$0xff]  ;;  %v215_v62 = vld [vmem:[%s18824_s0 + $0x108] sm:$0xff]  ;;  %v216_v0 = vld [vmem:[%s18824_s0 + $0x110] sm:$0xff] }
  0xd9   :  { %1711 = vmatpush1.bf16.msra.mxu0 %v13350_v32  ;;  %v14968_v63 = vpack.c.bf16 %v215_v62, %v214_v61  ;;  %v217_v1 = vld [vmem:[%s18824_s0 + $0x118] sm:$0xff]  ;;  %v218_v4 = vld [vmem:[%s18824_s0 + $0x120] sm:$0xff]  ;;  %v219_v5 = vld [vmem:[%s18824_s0 + $0x128] sm:$0xff] }
  0xda   :  { %1712 = vmatprep.subr.bf16.mxu0 %v13351_v33  ;;  %12385 = vmatpush1.bf16.msra.mxu1 %v13350_v32  ;;  %v14984_v2 = vpack.c.bf16 %v217_v1, %v216_v0  ;;  %v15000_v6 = vpack.c.bf16 %v219_v5, %v218_v4  ;;  %v13371_v8 = vld [vmem:[#allocation2 + $0x14] ss:$24 sps:$4 sm:$0xff]   ;;  %v221_v12 = vld [vmem:[%s18824_s0 + $0x138] sm:$0xff]  ;;  %v222_v14 = vld [vmem:[%s18824_s0 + $0x140] sm:$0xff] }
  0xdb   :  { %500 = vrot.lane.b32.xlu1 %v14790_v3, %s14561_s5  ;;  %12377 = vmatprep.subr.bf16.mxu1 %v13351_v33  ;;  %v220_v9 = vld [vmem:[%s18824_s0 + $0x130] sm:$0xff]  ;;  %v223_v15 = vld [vmem:[%s18824_s0 + $0x148] sm:$0xff]  ;;  %v225_v20 = vld [vmem:[%s18824_s0 + $0x158] sm:$0xff] }
  0xdc   :  { %402 = vrot.lane.b32.xlu0 %v14815_v11, %s14559_s16  ;;  %v15016_v13 = vpack.c.bf16 %v221_v12, %v220_v9  ;;  %v15032_v18 = vpack.c.bf16 %v223_v15, %v222_v14  ;;  %v224_v19 = vld [vmem:[%s18824_s0 + $0x150] sm:$0xff]  ;;  %v226_v24 = vld [vmem:[%s18824_s0 + $0x160] sm:$0xff]  ;;  %v227_v25 = vld [vmem:[%s18824_s0 + $0x168] sm:$0xff] }
  0xdd   :  { %1713 = vmatpush1.bf16.msra.mxu0 %v13353_v34  ;;  %v15048_v21 = vpack.c.bf16 %v225_v20, %v224_v19  ;;  %v182_v26 = vld [vmem:[%s18824_s0] sm:$0xff]  ;;  %v183_v27 = vld [vmem:[%s18824_s0 + $0x8] sm:$0xff]  ;;  %v15070_v28 = vpack.c.bf16 %v227_v25, %v226_v24  ;;  %v184_v33 = vld [vmem:[%s18824_s0 + $0x10] sm:$0xff] }
  0xde   :  { %1714 = vmatprep.subr.bf16.mxu0 %v13354_v37  ;;  %12386 = vmatpush1.bf16.msra.mxu1 %v13353_v34  ;;  %v294_v32 = vpack.c.bf16 %v183_v27, %v182_v26  ;;  %v185_v34 = vld [vmem:[%s18824_s0 + $0x18] sm:$0xff]  ;;  %v228_v35 = vld [vmem:[%s18824_s0 + $0x170] sm:$0xff]  ;;  %v231_v52 = vld [vmem:[%s18824_s0 + $0x188] sm:$0xff] }
  0xdf   :  { %696 = vrot.lane.b32.xlu1 %v14869_v31, %s14560_s10  ;;  %12378 = vmatprep.subr.bf16.mxu1 %v13354_v37  ;;  %v229_v36 = vld [vmem:[%s18824_s0 + $0x178] sm:$0xff]  ;;  %v232_v5 = vld [vmem:[%s18824_s0 + $0x190] sm:$0xff]  ;;  %v234_v26 = vld [vmem:[%s18824_s0 + $0x1a0] sm:$0xff] }
  0xe0   :  { %598 = vrot.lane.b32.xlu0 %v14811_v10, %s14558_s11  ;;  %v13374_v42 = vld [vmem:[#allocation2 + $0x44] ss:$24 sps:$4 sm:$0xff]   ;;  %v235_v27 = vld [vmem:[%s18824_s0 + $0x1a8] sm:$0xff] }
  0xe1   :  { %1715 = vmatpush1.bf16.msra.mxu0 %v13356_v39 }
  0xe2   :  { %1716 = vmatprep.subr.bf16.mxu0 %v13357_v40  ;;  %12387 = vmatpush1.bf16.msra.mxu1 %v13356_v39  ;;  %v13369_v39 = vld [vmem:[#allocation2 + $0x10] ss:$24 sps:$4 sm:$0xff]  }
  0xe3   :  { %502 = vrot.lane.b32.xlu1 %v14855_v23, %s14561_s5  ;;  %12379 = vmatprep.subr.bf16.mxu1 %v13357_v40 }
  0xe4   :  { %404 = vrot.lane.b32.xlu0 %v14831_v16, %s14559_s16 }
  0xe5   :  { %1717 = vmatpush1.bf16.msra.mxu0 %v13359_v43 }
  0xe6   :  { %1718 = vmatprep.subr.bf16.mxu0 %v13360_v44  ;;  %12388 = vmatpush1.bf16.msra.mxu1 %v13359_v43 }
  0xe7   :  { %698 = vrot.lane.b32.xlu1 %v14885_v38, %s14560_s10  ;;  %12380 = vmatprep.subr.bf16.mxu1 %v13360_v44  ;;  %v295_v44 = vpack.c.bf16 %v185_v34, %v184_v33 }
  0xe8   :  { %600 = vrot.lane.b32.xlu0 %v14851_v22, %s14558_s11 }
  0xe9   :  { %1719 = vmatpush1.bf16.msra.mxu0 %v13362_v45 }
  0xea   :  { %1720 = vmatprep.subr.bf16.mxu0 %v13363_v46  ;;  %12389 = vmatpush1.bf16.msra.mxu1 %v13362_v45  ;;  %v15098_v45 = vpack.c.bf16 %v229_v36, %v228_v35  ;;  %v13375_v36 = vld [vmem:[#allocation2 + $0x70] ss:$24 sps:$4 sm:$0xff]  }
  0xeb   :  { %504 = vrot.lane.b32.xlu1 %v14811_v10, %s14561_s5  ;;  %12381 = vmatprep.subr.bf16.mxu1 %v13363_v46 }
  0xec   :  { %406 = vrot.lane.b32.xlu0 %v14790_v3, %s14559_s16 }
  0xed   :  { %1721 = vmatpush1.bf16.msra.mxu0 %v13365_v48 }
  0xee   :  { %11433 = vmatprep.subr.msk.bf16.mxu0 %vm1687_vm0, %v13366_v51  ;;  %12390 = vmatpush1.bf16.msra.mxu1 %v13365_v48 }
  0xef   :  { %700 = vrot.lane.b32.xlu1 %v14901_v47, %s14560_s10  ;;  %12382 = vmatprep.subr.msk.bf16.mxu1 %vm1687_vm0, %v13366_v51  ;;  %v230_v51 = vld [vmem:[%s18824_s0 + $0x180] sm:$0xff] }
  0xf0   :  { %602 = vrot.lane.b32.xlu0 %v14869_v31, %s14558_s11  ;;  %v15127_v62 = vpack.c.bf16 %v231_v52, %v230_v51 }
  0xf1   :  { %1723 = vmatpush1.bf16.msra.mxu0 %v1689_v54 }
  0xf2   :  { %12391 = vmatpush1.bf16.msra.mxu1 %v1689_v54  ;;  %2732 = vmatprep.subr.bf16.mxu0 %v13371_v8  ;;  %v13372_v54 = vld [vmem:[#allocation2 + $0x40] ss:$24 sps:$4 sm:$0xff]  }
  0xf3   :  { %506 = vrot.lane.b32.xlu1 %v14851_v22, %s14561_s5  ;;  %v233_v8 = vld [vmem:[%s18824_s0 + $0x198] sm:$0xff] }
  0xf4   :  { %408 = vrot.lane.b32.xlu0 %v14855_v23, %s14559_s16 }
  0xf7   :  { %702 = vrot.lane.b32.xlu1 %v14917_v53, %s14560_s10 }
  0xf8   :  { %604 = vrot.lane.b32.xlu0 %v14885_v38, %s14558_s11 }
  0xfb   :  { %508 = vrot.lane.b32.xlu1 %v14869_v31, %s14561_s5 }
  0xfc   :  { %410 = vrot.lane.b32.xlu0 %v14811_v10, %s14559_s16 }
  0xff   :  { %704 = vrot.lane.b32.xlu1 %v14936_v57, %s14560_s10 }
 0x100   :  { %606 = vrot.lane.b32.xlu0 %v14901_v47, %s14558_s11 }
 0x103   :  { %510 = vrot.lane.b32.xlu1 %v14885_v38, %s14561_s5 }
 0x104   :  { %412 = vrot.lane.b32.xlu0 %v14851_v22, %s14559_s16 }
 0x107   :  { %706 = vrot.lane.b32.xlu1 %v14952_v60, %s14560_s10 }
 0x108   :  { %608 = vrot.lane.b32.xlu0 %v14917_v53, %s14558_s11 }
 0x10b   :  { %512 = vrot.lane.b32.xlu1 %v14901_v47, %s14561_s5 }
 0x10c   :  { %414 = vrot.lane.b32.xlu0 %v14869_v31, %s14559_s16 }
 0x10f   :  { %708 = vrot.lane.b32.xlu1 %v14968_v63, %s14560_s10 }
 0x110   :  { %610 = vrot.lane.b32.xlu0 %v14936_v57, %s14558_s11 }
 0x113   :  { %514 = vrot.lane.b32.xlu1 %v14917_v53, %s14561_s5 }
 0x114   :  { %416 = vrot.lane.b32.xlu0 %v14885_v38, %s14559_s16 }
 0x117   :  { %710 = vrot.lane.b32.xlu1 %v14984_v2, %s14560_s10 }
 0x118   :  { %612 = vrot.lane.b32.xlu0 %v14952_v60, %s14558_s11 }
 0x11b   :  { %516 = vrot.lane.b32.xlu1 %v14936_v57, %s14561_s5 }
 0x11c   :  { %418 = vrot.lane.b32.xlu0 %v14901_v47, %s14559_s16 }
 0x11f   :  { %712 = vrot.lane.b32.xlu1 %v15000_v6, %s14560_s10 }
 0x120   :  { %614 = vrot.lane.b32.xlu0 %v14968_v63, %s14558_s11 }
 0x123   :  { %518 = vrot.lane.b32.xlu1 %v14952_v60, %s14561_s5 }
 0x124   :  { %420 = vrot.lane.b32.xlu0 %v14917_v53, %s14559_s16 }
 0x127   :  { %714 = vrot.lane.b32.xlu1 %v15016_v13, %s14560_s10 }
 0x128   :  { %616 = vrot.lane.b32.xlu0 %v14984_v2, %s14558_s11 }
 0x12b   :  { %520 = vrot.lane.b32.xlu1 %v14968_v63, %s14561_s5 }
 0x12c   :  { %422 = vrot.lane.b32.xlu0 %v14936_v57, %s14559_s16 }
 0x12f   :  { %716 = vrot.lane.b32.xlu1 %v15032_v18, %s14560_s10 }
 0x130   :  { %618 = vrot.lane.b32.xlu0 %v15000_v6, %s14558_s11 }
 0x133   :  { %522 = vrot.lane.b32.xlu1 %v14984_v2, %s14561_s5 }
 0x134   :  { %424 = vrot.lane.b32.xlu0 %v14952_v60, %s14559_s16 }
 0x137   :  { %718 = vrot.lane.b32.xlu1 %v15048_v21, %s14560_s10 }
 0x138   :  { %620 = vrot.lane.b32.xlu0 %v15016_v13, %s14558_s11 }
 0x13b   :  { %524 = vrot.lane.b32.xlu1 %v15000_v6, %s14561_s5 }
 0x13c   :  { %426 = vrot.lane.b32.xlu0 %v14968_v63, %s14559_s16 }
 0x13d   :  { %v595_v29 = vpop.permute.xlu1 %594 }
 0x13e   :  { %v399_v30 = vpop.permute.xlu0 %398 }
 0x13f   :  { %720 = vrot.lane.b32.xlu1 %v15070_v28, %s14560_s10  ;;  %v791_v40 = vsel %vm788_vm1, %v294_v32, %v399_v30 }
 0x140   :  { %622 = vrot.lane.b32.xlu0 %v15032_v18, %s14558_s11 }
 0x141   :  { %v15090_v37 = vpop.permute.xlu1 %692 }
 0x142   :  { %v497_v41 = vpop.permute.xlu0 %496  ;;  %11434 = vmatprep.mubr.msk.bf16.mxu0 %vm1590_vm2, %v15090_v37 }
 0x143   :  { %v935_v43 = vsel %vm933_vm3, %v791_v40, %v497_v41  ;;  %526 = vrot.lane.b32.xlu1 %v15016_v13, %s14561_s5 }
 0x144   :  { %428 = vrot.lane.b32.xlu0 %v14984_v2, %s14559_s16  ;;  %v1032_v46 = vsel %vm1030_vm4, %v935_v43, %v595_v29  ;;  %v237_v43 = vld [vmem:[%s18824_s0 + $0x1b8] sm:$0xff] }
 0x145   :  { %v499_v48 = vpop.permute.xlu1 %498  ;;  %v15105_v49 = vsel %vm1127_vm5, %v1032_v46, %v15090_v37 }
 0x146   :  { %v401_v50 = vpop.permute.xlu0 %400  ;;  %1739 = vmatmul.mubr.bf16.vlgmr.msra.gmra.mrb[0].mxu0 %v15105_v49 }
 0x147   :  { %v794_v55 = vsel %vm788_vm1, %v295_v44, %v401_v50  ;;  %722 = vrot.lane.b32.xlu1 %v15098_v45, %s14560_s10  ;;  %2733 = vmatpush1.bf16.msra.mxu0 %v13369_v39  ;;  %v13377_v39 = vld [vmem:[#allocation2 + $0x74] ss:$24 sps:$4 sm:$0xff]  }
 0x148   :  { %624 = vrot.lane.b32.xlu0 %v15048_v21, %s14558_s11  ;;  %2734 = vmatprep.subr.bf16.mxu0 %v13374_v42  ;;  %v937_v59 = vsel %vm933_vm3, %v794_v55, %v499_v48  ;;  %v236_v42 = vld [vmem:[%s18824_s0 + $0x1b0] sm:$0xff] }
 0x149   :  { %v15119_v56 = vpop.permute.xlu1 %694 }
 0x14a   :  { %v597_v58 = vpop.permute.xlu0 %596  ;;  %11435 = vmatprep.mubr.msk.bf16.mxu0 %vm1590_vm2, %v15119_v56 }
 0x14b   :  { %v1034_v61 = vsel %vm1030_vm4, %v937_v59, %v597_v58  ;;  %528 = vrot.lane.b32.xlu1 %v15032_v18, %s14561_s5  ;;  %2735 = vmatpush1.bf16.msra.mxu0 %v13372_v54  ;;  %v238_v58 = vld [vmem:[%s18824_s0 + $0x1c0] sm:$0xff]  ;;  %v239_v59 = vld [vmem:[%s18824_s0 + $0x1c8] sm:$0xff] }
 0x14c   :  { %430 = vrot.lane.b32.xlu0 %v15000_v6, %s14559_s16  ;;  %v15133_v0 = vsel %vm1127_vm5, %v1034_v61, %v15119_v56  ;;  %2736 = vmatprep.subr.bf16.mxu0 %v13377_v39  ;;  %v242_v39 = vld [vmem:[%s18824_s0 + $0x1e0] sm:$0xff] }
 0x14d   :  { %v501_v1 = vpop.permute.xlu1 %500 }
 0x14e   :  { %v403_v4 = vpop.permute.xlu0 %402  ;;  %1749 = vmatmul.mubr.bf16.gmra.mrb[4].mxu0 %v15133_v0 }
 0x14f   :  { %v797_v9 = vsel %vm788_vm1, %v14801_v7, %v403_v4  ;;  %724 = vrot.lane.b32.xlu1 %v15127_v62, %s14560_s10  ;;  %v15156_v7 = vpack.c.bf16 %v233_v8, %v232_v5  ;;  %2737 = vmatpush1.bf16.msra.mxu0 %v13375_v36 }
 0x150   :  { %626 = vrot.lane.b32.xlu0 %v15070_v28, %s14558_s11  ;;  %v939_v14 = vsel %vm933_vm3, %v797_v9, %v501_v1 }
 0x151   :  { %v15148_v12 = vpop.permute.xlu1 %696 }
 0x152   :  { %v599_v15 = vpop.permute.xlu0 %598  ;;  %11436 = vmatprep.mubr.msk.bf16.mxu0 %vm1590_vm2, %v15148_v12 }
 0x153   :  { %v1036_v19 = vsel %vm1030_vm4, %v939_v14, %v599_v15  ;;  %530 = vrot.lane.b32.xlu1 %v15048_v21, %s14561_s5 }
 0x154   :  { %432 = vrot.lane.b32.xlu0 %v15016_v13, %s14559_s16  ;;  %v15162_v20 = vsel %vm1127_vm5, %v1036_v19, %v15148_v12  ;;  %v240_v19 = vld [vmem:[%s18824_s0 + $0x1d0] sm:$0xff] }
 0x155   :  { %v503_v24 = vpop.permute.xlu1 %502 }
 0x156   :  { %v405_v25 = vpop.permute.xlu0 %404  ;;  %1759 = vmatmul.mubr.bf16.gmra.mrb[8].mxu0 %v15162_v20 }
 0x157   :  { %v800_v29 = vsel %vm788_vm1, %v14835_v17, %v405_v25  ;;  %726 = vrot.lane.b32.xlu1 %v15156_v7, %s14560_s10  ;;  %v15185_v17 = vpack.c.bf16 %v235_v27, %v234_v26 }
 0x158   :  { %628 = vrot.lane.b32.xlu0 %v15098_v45, %s14558_s11  ;;  %v941_v32 = vsel %vm933_vm3, %v800_v29, %v503_v24  ;;  %v241_v24 = vld [vmem:[%s18824_s0 + $0x1d8] sm:$0xff] }
 0x159   :  { %v15177_v30 = vpop.permute.xlu1 %698 }
 0x15a   :  { %v601_v33 = vpop.permute.xlu0 %600  ;;  %11437 = vmatprep.mubr.msk.bf16.mxu0 %vm1590_vm2, %v15177_v30 }
 0x15b   :  { %v1038_v34 = vsel %vm1030_vm4, %v941_v32, %v601_v33  ;;  %532 = vrot.lane.b32.xlu1 %v15070_v28, %s14561_s5 }
 0x15c   :  { %434 = vrot.lane.b32.xlu0 %v15032_v18, %s14559_s16  ;;  %v15191_v35 = vsel %vm1127_vm5, %v1038_v34, %v15177_v30 }
 0x15d   :  { %v505_v40 = vpop.permute.xlu1 %504 }
 0x15e   :  { %v407_v41 = vpop.permute.xlu0 %406  ;;  %1769 = vmatmul.mubr.bf16.gmra.mrb[12].mxu0 %v15191_v35 }
 0x15f   :  { %v803_v44 = vsel %vm788_vm1, %v14815_v11, %v407_v41  ;;  %728 = vrot.lane.b32.xlu1 %v15185_v17, %s14560_s10  ;;  %v15214_v11 = vpack.c.bf16 %v237_v43, %v236_v42 }
 0x160   :  { %630 = vrot.lane.b32.xlu0 %v15127_v62, %s14558_s11  ;;  %v943_v48 = vsel %vm933_vm3, %v803_v44, %v505_v40  ;;  %v243_v40 = vld [vmem:[%s18824_s0 + $0x1e8] sm:$0xff] }
 0x161   :  { %v15206_v46 = vpop.permute.xlu1 %700 }
 0x162   :  { %v603_v50 = vpop.permute.xlu0 %602  ;;  %11438 = vmatprep.mubr.msk.bf16.mxu0 %vm1590_vm2, %v15206_v46 }
 0x163   :  { %v1040_v51 = vsel %vm1030_vm4, %v943_v48, %v603_v50  ;;  %534 = vrot.lane.b32.xlu1 %v15098_v45, %s14561_s5 }
 0x164   :  { %436 = vrot.lane.b32.xlu0 %v15048_v21, %s14559_s16  ;;  %v15220_v52 = vsel %vm1127_vm5, %v1040_v51, %v15206_v46 }
 0x165   :  { %v507_v54 = vpop.permute.xlu1 %506 }
 0x166   :  { %v409_v55 = vpop.permute.xlu0 %408  ;;  %1779 = vmatmul.mubr.bf16.gmra.mrb[16].mxu0 %v15220_v52 }
 0x167   :  { %v806_v61 = vsel %vm788_vm1, %v14831_v16, %v409_v55  ;;  %730 = vrot.lane.b32.xlu1 %v15214_v11, %s14560_s10  ;;  %v15243_v16 = vpack.c.bf16 %v239_v59, %v238_v58  ;;  %v244_v55 = vld [vmem:[%s18824_s0 + $0x1f0] sm:$0xff]  ;;  %v245_v58 = vld [vmem:[%s18824_s0 + $0x1f8] sm:$0xff] }
 0x168   :  { %632 = vrot.lane.b32.xlu0 %v15156_v7, %s14558_s11  ;;  %v945_v4 = vsel %vm933_vm3, %v806_v61, %v507_v54  ;;  %v13378_v61 = vld [vmem:[#allocation2 + $0xa0] ss:$24 sps:$4 sm:$0xff]  }
 0x169   :  { %v15235_v1 = vpop.permute.xlu1 %702 }
 0x16a   :  { %v605_v5 = vpop.permute.xlu0 %604  ;;  %11439 = vmatprep.mubr.msk.bf16.mxu0 %vm1590_vm2, %v15235_v1 }
 0x16b   :  { %v1042_v8 = vsel %vm1030_vm4, %v945_v4, %v605_v5  ;;  %536 = vrot.lane.b32.xlu1 %v15127_v62, %s14561_s5  ;;  %v13380_v4 = vld [vmem:[#allocation2 + $0xa4] ss:$24 sps:$4 sm:$0xff]  }
 0x16c   :  { %438 = vrot.lane.b32.xlu0 %v15070_v28, %s14559_s16  ;;  %v15249_v9 = vsel %vm1127_vm5, %v1042_v8, %v15235_v1  ;;  %2738 = vmatprep.subr.bf16.mxu0 %v13380_v4 }
 0x16d   :  { %v509_v14 = vpop.permute.xlu1 %508  ;;  %2739 = vmatpush1.bf16.msra.mxu0 %v13378_v61  ;;  %v260_v61 = vld [vmem:[%s18824_s0 + $0x270] sm:$0xff] }
 0x16e   :  { %v411_v15 = vpop.permute.xlu0 %410  ;;  %1789 = vmatmul.mubr.bf16.gmra.mrb[20].mxu0 %v15249_v9 }
 0x16f   :  { %v809_v25 = vsel %vm788_vm1, %v14790_v3, %v411_v15  ;;  %732 = vrot.lane.b32.xlu1 %v15243_v16, %s14560_s10  ;;  %v15272_v3 = vpack.c.bf16 %v241_v24, %v240_v19  ;;  %v15330_v15 = vpack.c.bf16 %v245_v58, %v244_v55 }
 0x170   :  { %634 = vrot.lane.b32.xlu0 %v15185_v17, %s14558_s11  ;;  %v947_v27 = vsel %vm933_vm3, %v809_v25, %v509_v14 }
 0x171   :  { %v15264_v26 = vpop.permute.xlu1 %704 }
 0x172   :  { %v607_v29 = vpop.permute.xlu0 %606  ;;  %11440 = vmatprep.mubr.msk.bf16.mxu0 %vm1590_vm2, %v15264_v26 }
 0x173   :  { %v1044_v32 = vsel %vm1030_vm4, %v947_v27, %v607_v29  ;;  %538 = vrot.lane.b32.xlu1 %v15156_v7, %s14561_s5  ;;  %v246_v27 = vld [vmem:[%s18824_s0 + $0x200] sm:$0xff]  ;;  %v247_v29 = vld [vmem:[%s18824_s0 + $0x208] sm:$0xff] }
 0x174   :  { %440 = vrot.lane.b32.xlu0 %v15098_v45, %s14559_s16  ;;  %v15278_v33 = vsel %vm1127_vm5, %v1044_v32, %v15264_v26 }
 0x175   :  { %19200 = vst [vmem:[#allocation25_spill] sm:$0xff] %v15278_v33  ;;  %v511_v34 = vpop.permute.xlu1 %510 }
 0x176   :  { %v413_v36 = vpop.permute.xlu0 %412  ;;  %1799 = vmatmul.mubr.bf16.gmra.mrb[24].mxu0 %v15278_v33 }
 0x177   :  { %v812_v41 = vsel %vm788_vm1, %v14855_v23, %v413_v36  ;;  %734 = vrot.lane.b32.xlu1 %v15272_v3, %s14560_s10  ;;  %v15301_v23 = vpack.c.bf16 %v243_v40, %v242_v39 }
 0x178   :  { %636 = vrot.lane.b32.xlu0 %v15214_v11, %s14558_s11  ;;  %v949_v43 = vsel %vm933_vm3, %v812_v41, %v511_v34 }
 0x179   :  { %v15293_v42 = vpop.permute.xlu1 %706 }
 0x17a   :  { %19201 = vst [vmem:[#allocation26_spill] sm:$0xff] %v15293_v42  ;;  %v609_v44 = vpop.permute.xlu0 %608  ;;  %11441 = vmatprep.mubr.msk.bf16.mxu0 %vm1590_vm2, %v15293_v42 }
 0x17b   :  { %v1046_v48 = vsel %vm1030_vm4, %v949_v43, %v609_v44  ;;  %540 = vrot.lane.b32.xlu1 %v15185_v17, %s14561_s5 }
 0x17c   :  { %442 = vrot.lane.b32.xlu0 %v15127_v62, %s14559_s16  ;;  %v15307_v50 = vsel %vm1127_vm5, %v1046_v48, %v15293_v42  ;;  %v248_v48 = vld [vmem:[%s18824_s0 + $0x210] sm:$0xff] }
 0x17d   :  { %19202 = vst [vmem:[#allocation27_spill] sm:$0xff] %v15307_v50  ;;  %v513_v51 = vpop.permute.xlu1 %512 }
 0x17e   :  { %v415_v54 = vpop.permute.xlu0 %414  ;;  %1809 = vmatmul.mubr.bf16.gmra.mrb[28].mxu0 %v15307_v50  ;;  %v13407_v50 = vld [vmem:[#allocation2 + $0xcc] ss:$24 sps:$4 sm:$0xff]  }
 0x17f   :  { %v815_v59 = vsel %vm788_vm1, %v14811_v10, %v415_v54  ;;  %736 = vrot.lane.b32.xlu1 %v15301_v23, %s14560_s10 }
 0x180   :  { %638 = vrot.lane.b32.xlu0 %v15243_v16, %s14558_s11  ;;  %v951_v8 = vsel %vm933_vm3, %v815_v59, %v513_v51  ;;  %v249_v51 = vld [vmem:[%s18824_s0 + $0x218] sm:$0xff] }
 0x181   :  { %v15322_v5 = vpop.permute.xlu1 %708 }
 0x182   :  { %19203 = vst [vmem:[#allocation28_spill] sm:$0xff] %v15322_v5  ;;  %v611_v14 = vpop.permute.xlu0 %610  ;;  %11442 = vmatprep.mubr.msk.bf16.mxu0 %vm1590_vm2, %v15322_v5 }
 0x183   :  { %v1048_v10 = vsel %vm1030_vm4, %v951_v8, %v611_v14  ;;  %542 = vrot.lane.b32.xlu1 %v15214_v11, %s14561_s5  ;;  %v15394_v8 = vpack.c.bf16 %v249_v51, %v248_v48 }
 0x184   :  { %444 = vrot.lane.b32.xlu0 %v15156_v7, %s14559_s16  ;;  %v15336_v19 = vsel %vm1127_vm5, %v1048_v10, %v15322_v5  ;;  %v13402_v5 = vld [vmem:[#allocation2 + $0x98] ss:$24 sps:$4 sm:$0xff]  }
 0x185   :  { %19204 = vst [vmem:[#allocation29_spill] sm:$0xff] %v15336_v19  ;;  %v515_v24 = vpop.permute.xlu1 %514 }
 0x186   :  { %v417_v25 = vpop.permute.xlu0 %416  ;;  %1819 = vmatmul.mubr.bf16.gmra.mrb[32].mxu0 %v15336_v19 }
 0x187   :  { %v818_v32 = vsel %vm788_vm1, %v14851_v22, %v417_v25  ;;  %738 = vrot.lane.b32.xlu1 %v15330_v15, %s14560_s10  ;;  %v15359_v22 = vpack.c.bf16 %v247_v29, %v246_v27  ;;  %v264_v25 = vld [vmem:[%s18824_s0 + $0x290] sm:$0xff]  ;;  %v265_v27 = vld [vmem:[%s18824_s0 + $0x298] sm:$0xff] }
 0x188   :  { %640 = vrot.lane.b32.xlu0 %v15272_v3, %s14558_s11  ;;  %v953_v36 = vsel %vm933_vm3, %v818_v32, %v515_v24  ;;  %v15431_v48 = vpack.c.bf16 %v265_v27, %v264_v25  ;;  %v13381_v25 = vld [vmem:[#allocation2 + $0xd0] ss:$24 sps:$4 sm:$0xff]   ;;  %v13383_v27 = vld [vmem:[#allocation2 + $0xd4] ss:$24 sps:$4 sm:$0xff]  }
 0x189   :  { %v15351_v34 = vpop.permute.xlu1 %710  ;;  %2740 = vmatprep.subr.bf16.mxu0 %v13383_v27 }
 0x18a   :  { %19205 = vst [vmem:[#allocation30_spill] sm:$0xff] %v15351_v34  ;;  %v613_v39 = vpop.permute.xlu0 %612  ;;  %11443 = vmatprep.mubr.msk.bf16.mxu0 %vm1590_vm2, %v15351_v34  ;;  %2741 = vmatpush1.bf16.msra.mxu0 %v13381_v25  ;;  %v266_v25 = vld [vmem:[%s18824_s0 + $0x2a0] sm:$0xff] }
 0x18b   :  { %v1050_v40 = vsel %vm1030_vm4, %v953_v36, %v613_v39  ;;  %544 = vrot.lane.b32.xlu1 %v15243_v16, %s14561_s5 }
 0x18c   :  { %446 = vrot.lane.b32.xlu0 %v15185_v17, %s14559_s16  ;;  %v15365_v41 = vsel %vm1127_vm5, %v1050_v40, %v15351_v34 }
 0x18d   :  { %19206 = vst [vmem:[#allocation31_spill] sm:$0xff] %v15365_v41  ;;  %v517_v43 = vpop.permute.xlu1 %516 }
 0x18e   :  { %v419_v44 = vpop.permute.xlu0 %418  ;;  %1829 = vmatmul.mubr.bf16.gmra.mrb[36].mxu0 %v15365_v41  ;;  %v13411_v41 = vld [vmem:[#allocation2 + $0x194] ss:$24 sps:$4 sm:$0x3f]  }
 0x18f   :  { %v821_v54 = vsel %vm788_vm1, %v14869_v31, %v419_v44  ;;  %740 = vrot.lane.b32.xlu1 %v15359_v22, %s14560_s10  ;;  %v261_v31 = vld [vmem:[%s18824_s0 + $0x278] sm:$0xff] }
 0x190   :  { %642 = vrot.lane.b32.xlu0 %v15301_v23, %s14558_s11  ;;  %v955_v58 = vsel %vm933_vm3, %v821_v54, %v517_v43  ;;  %v15413_v32 = vpack.c.bf16 %v261_v31, %v260_v61  ;;  %v269_v43 = vld [vmem:[%s18824_s0 + $0x2b8] sm:$0xff] }
 0x191   :  { %v15380_v55 = vpop.permute.xlu1 %712  ;;  %v273_v61 = vld [vmem:[%s18824_s0 + $0x2d8] sm:$0xff] }
 0x192   :  { %19207 = vst [vmem:[#allocation32_spill] sm:$0xff] %v15380_v55  ;;  %v615_v59 = vpop.permute.xlu0 %614  ;;  %11444 = vmatprep.mubr.msk.bf16.mxu0 %vm1590_vm2, %v15380_v55 }
 0x193   :  { %v1052_v4 = vsel %vm1030_vm4, %v955_v58, %v615_v59  ;;  %546 = vrot.lane.b32.xlu1 %v15272_v3, %s14561_s5  ;;  %v272_v59 = vld [vmem:[%s18824_s0 + $0x2d0] sm:$0xff] }
 0x194   :  { %448 = vrot.lane.b32.xlu0 %v15214_v11, %s14559_s16  ;;  %v15400_v14 = vsel %vm1127_vm5, %v1052_v4, %v15380_v55 }
 0x195   :  { %19208 = vst [vmem:[#allocation33_spill] sm:$0xff] %v15400_v14  ;;  %v519_v10 = vpop.permute.xlu1 %518 }
 0x196   :  { %v421_v24 = vpop.permute.xlu0 %420  ;;  %1839 = vmatmul.mubr.bf16.gmra.mrb[40].mxu0 %v15400_v14 }
 0x197   :  { %v824_v29 = vsel %vm788_vm1, %v14885_v38, %v421_v24  ;;  %742 = vrot.lane.b32.xlu1 %v15394_v8, %s14560_s10  ;;  %v268_v38 = vld [vmem:[%s18824_s0 + $0x2b0] sm:$0xff]  ;;  %v251_v24 = vld [vmem:[%s18824_s0 + $0x228] sm:$0xff] }
 0x198   :  { %644 = vrot.lane.b32.xlu0 %v15330_v15, %s14558_s11  ;;  %v957_v39 = vsel %vm933_vm3, %v824_v29, %v519_v10  ;;  %v15450_v4 = vpack.c.bf16 %v269_v43, %v268_v38  ;;  %v250_v10 = vld [vmem:[%s18824_s0 + $0x220] sm:$0xff]  ;;  %v263_v38 = vld [vmem:[%s18824_s0 + $0x288] sm:$0xff] }
 0x199   :  { %v15417_v36 = vpop.permute.xlu1 %714 }
 0x19a   :  { %19209 = vst [vmem:[#allocation34_spill] sm:$0xff] %v15417_v36  ;;  %v617_v40 = vpop.permute.xlu0 %616  ;;  %11445 = vmatprep.mubr.msk.bf16.mxu0 %vm1590_vm2, %v15417_v36 }
 0x19b   :  { %v1054_v44 = vsel %vm1030_vm4, %v957_v39, %v617_v40  ;;  %472 = vrot.lane.b32.xlu1 %v15413_v32, %s14559_s16  ;;  %v262_v40 = vld [vmem:[%s18824_s0 + $0x280] sm:$0xff] }
 0x19c   :  { %450 = vrot.lane.b32.xlu0 %v15243_v16, %s14559_s16  ;;  %v15437_v51 = vsel %vm1127_vm5, %v1054_v44, %v15417_v36  ;;  %v15474_v44 = vpack.c.bf16 %v273_v61, %v272_v59  ;;  %v267_v59 = vld [vmem:[%s18824_s0 + $0x2a8] sm:$0xff] }
 0x19d   :  { %19210 = vst [vmem:[#allocation35_spill] sm:$0xff] %v15437_v51  ;;  %v521_v54 = vpop.permute.xlu1 %520 }
 0x19e   :  { %v423_v58 = vpop.permute.xlu0 %422  ;;  %1849 = vmatmul.mubr.bf16.gmra.mrb[44].mxu0 %v15437_v51 }
 0x19f   :  { %v827_v31 = vsel %vm788_vm1, %v14901_v47, %v423_v58  ;;  %570 = vrot.lane.b32.xlu1 %v15431_v48, %s14561_s5  ;;  %v15482_v58 = vpack.c.bf16 %v251_v24, %v250_v10  ;;  %v15495_v10 = vpack.c.bf16 %v263_v38, %v262_v40  ;;  %v271_v40 = vld [vmem:[%s18824_s0 + $0x2c8] sm:$0xff] }
 0x1a0   :  { %548 = vrot.lane.b32.xlu0 %v15301_v23, %s14561_s5  ;;  %v959_v47 = vsel %vm933_vm3, %v827_v31, %v521_v54 }
 0x1a1   :  { %v15460_v29 = vpop.permute.xlu1 %716 }
 0x1a2   :  { %19211 = vst [vmem:[#allocation36_spill] sm:$0xff] %v15460_v29  ;;  %v619_v39 = vpop.permute.xlu0 %618  ;;  %11446 = vmatprep.mubr.msk.bf16.mxu0 %vm1590_vm2, %v15460_v29 }
 0x1a3   :  { %v1056_v43 = vsel %vm1030_vm4, %v959_v47, %v619_v39  ;;  %668 = vrot.lane.b32.xlu1 %v15450_v4, %s14558_s11 }
 0x1a4   :  { %646 = vrot.lane.b32.xlu0 %v15359_v22, %s14558_s11  ;;  %v15480_v54 = vsel %vm1127_vm5, %v1056_v43, %v15460_v29  ;;  %v15513_v43 = vpack.c.bf16 %v267_v59, %v266_v25  ;;  %v275_v25 = vld [vmem:[%s18824_s0 + $0x2e8] sm:$0xff] }
 0x1a5   :  { %19212 = vst [vmem:[#allocation37_spill] sm:$0xff] %v15480_v54  ;;  %v523_v31 = vpop.permute.xlu1 %522 }
 0x1a6   :  { %v425_v27 = vpop.permute.xlu0 %424  ;;  %1859 = vmatmul.mubr.bf16.gmra.mrb[48].mxu0 %v15480_v54 }
 0x1a7   :  { %v830_v61 = vsel %vm788_vm1, %v14917_v53, %v425_v27  ;;  %766 = vrot.lane.b32.xlu1 %v15474_v44, %s14560_s10  ;;  %v270_v53 = vld [vmem:[%s18824_s0 + $0x2c0] sm:$0xff] }
 0x1a8   :  { %744 = vrot.lane.b32.xlu0 %v15482_v58, %s14560_s10  ;;  %v961_v47 = vsel %vm933_vm3, %v830_v61, %v523_v31 }
 0x1a9   :  { %v15499_v24 = vpop.permute.xlu1 %718 }
 0x1aa   :  { %19213 = vst [vmem:[#allocation38_spill] sm:$0xff] %v15499_v24  ;;  %v621_v39 = vpop.permute.xlu0 %620  ;;  %11447 = vmatprep.mubr.msk.bf16.mxu0 %vm1590_vm2, %v15499_v24 }
 0x1ab   :  { %v1058_v38 = vsel %vm1030_vm4, %v961_v47, %v621_v39  ;;  %474 = vrot.lane.b32.xlu1 %v15495_v10, %s14559_s16  ;;  %v274_v47 = vld [vmem:[%s18824_s0 + $0x2e0] sm:$0xff]  ;;  %v15532_v39 = vpack.c.bf16 %v271_v40, %v270_v53 }
 0x1ac   :  { %452 = vrot.lane.b32.xlu0 %v15272_v3, %s14559_s16  ;;  %v15519_v31 = vsel %vm1127_vm5, %v1058_v38, %v15499_v24  ;;  %v252_v38 = vld [vmem:[%s18824_s0 + $0x230] sm:$0xff]  ;;  %v15550_v40 = vpack.c.bf16 %v275_v25, %v274_v47 }
 0x1ad   :  { %19214 = vst [vmem:[#allocation39_spill] sm:$0xff] %v15519_v31  ;;  %v525_v27 = vpop.permute.xlu1 %524 }
 0x1ae   :  { %v427_v61 = vpop.permute.xlu0 %426  ;;  %1869 = vmatmul.mubr.bf16.gmra.mrb[52].mxu0 %v15519_v31  ;;  %v253_v31 = vld [vmem:[%s18824_s0 + $0x238] sm:$0xff] }
 0x1af   :  { %v833_v59 = vsel %vm788_vm1, %v14936_v57, %v427_v61  ;;  %572 = vrot.lane.b32.xlu1 %v15513_v43, %s14561_s5  ;;  %v15558_v29 = vpack.c.bf16 %v253_v31, %v252_v38 }
 0x1b0   :  { %550 = vrot.lane.b32.xlu0 %v15330_v15, %s14561_s5  ;;  %v963_v57 = vsel %vm933_vm3, %v833_v59, %v525_v27 }
 0x1b1   :  { %v15542_v24 = vpop.permute.xlu1 %720 }
 0x1b2   :  { %19215 = vst [vmem:[#allocation40_spill] sm:$0xff] %v15542_v24  ;;  %v623_v61 = vpop.permute.xlu0 %622  ;;  %11448 = vmatprep.mubr.msk.bf16.mxu0 %vm1590_vm2, %v15542_v24 }
 0x1b3   :  { %v1060_v53 = vsel %vm1030_vm4, %v963_v57, %v623_v61  ;;  %670 = vrot.lane.b32.xlu1 %v15532_v39, %s14558_s11 }
 0x1b4   :  { %648 = vrot.lane.b32.xlu0 %v15394_v8, %s14558_s11  ;;  %v15556_v54 = vsel %vm1127_vm5, %v1060_v53, %v15542_v24 }
 0x1b5   :  { %19216 = vst [vmem:[#allocation41_spill] sm:$0xff] %v15556_v54  ;;  %v527_v27 = vpop.permute.xlu1 %526 }
 0x1b6   :  { %v429_v59 = vpop.permute.xlu0 %428  ;;  %1879 = vmatmul.mubr.bf16.gmra.mrb[56].mxu0 %v15556_v54 }
 0x1b7   :  { %v836_v57 = vsel %vm788_vm1, %v14952_v60, %v429_v59  ;;  %768 = vrot.lane.b32.xlu1 %v15550_v40, %s14560_s10  ;;  %v277_v59 = vld [vmem:[%s18824_s0 + $0x2f8] sm:$0xff] }
 0x1b8   :  { %746 = vrot.lane.b32.xlu0 %v15558_v29, %s14560_s10  ;;  %v965_v25 = vsel %vm933_vm3, %v836_v57, %v527_v27  ;;  %v276_v27 = vld [vmem:[%s18824_s0 + $0x2f0] sm:$0xff] }
 0x1b9   :  { %v15567_v47 = vpop.permute.xlu1 %722  ;;  %v15608_v24 = vpack.c.bf16 %v277_v59, %v276_v27 }
 0x1ba   :  { %19217 = vst [vmem:[#allocation42_spill] sm:$0xff] %v15567_v47  ;;  %v625_v61 = vpop.permute.xlu0 %624  ;;  %11449 = vmatprep.mubr.msk.bf16.mxu0 %vm1590_vm2, %v15567_v47 }
 0x1bb   :  { %v1062_v31 = vsel %vm1030_vm4, %v965_v25, %v625_v61  ;;  %476 = vrot.lane.b32.xlu1 %v15431_v48, %s14559_s16  ;;  %v254_v25 = vld [vmem:[%s18824_s0 + $0x240] sm:$0xff]  ;;  %v255_v61 = vld [vmem:[%s18824_s0 + $0x248] sm:$0xff] }
 0x1bc   :  { %454 = vrot.lane.b32.xlu0 %v15301_v23, %s14559_s16  ;;  %v15579_v60 = vsel %vm1127_vm5, %v1062_v31, %v15567_v47  ;;  %v13384_v31 = vld [vmem:[#allocation2 + $0x100] ss:$24 sps:$4 sm:$0xff]  }
 0x1bd   :  { %19218 = vst [vmem:[#allocation43_spill] sm:$0xff] %v15579_v60  ;;  %v529_v38 = vpop.permute.xlu1 %528 }
 0x1be   :  { %v431_v53 = vpop.permute.xlu0 %430  ;;  %1889 = vmatmul.mubr.bf16.gmra.mrb[60].mxu0 %v15579_v60  ;;  %v13386_v60 = vld [vmem:[#allocation2 + $0x104] ss:$24 sps:$4 sm:$0xff]  }
 0x1bf   :  { %v839_v57 = vsel %vm788_vm1, %v14968_v63, %v431_v53  ;;  %574 = vrot.lane.b32.xlu1 %v15450_v4, %s14561_s5  ;;  %2742 = vmatprep.subr.bf16.mxu0 %v13386_v60 }
 0x1c0   :  { %552 = vrot.lane.b32.xlu0 %v15359_v22, %s14561_s5  ;;  %v967_v63 = vsel %vm933_vm3, %v839_v57, %v529_v38  ;;  %2743 = vmatpush1.bf16.msra.mxu0 %v13384_v31  ;;  %v15616_v38 = vpack.c.bf16 %v255_v61, %v254_v25 }
 0x1c1   :  { %v15600_v47 = vpop.permute.xlu1 %724 }
 0x1c2   :  { %19219 = vst [vmem:[#allocation44_spill] sm:$0xff] %v15600_v47  ;;  %v627_v53 = vpop.permute.xlu0 %626  ;;  %11450 = vmatprep.mubr.msk.bf16.mxu0 %vm1590_vm2, %v15600_v47 }
 0x1c3   :  { %v1064_v54 = vsel %vm1030_vm4, %v967_v63, %v627_v53  ;;  %672 = vrot.lane.b32.xlu1 %v15474_v44, %s14558_s11  ;;  %v278_v63 = vld [vmem:[%s18824_s0 + $0x300] sm:$0xff]  ;;  %v279_v53 = vld [vmem:[%s18824_s0 + $0x308] sm:$0xff] }
 0x1c4   :  { %650 = vrot.lane.b32.xlu0 %v15482_v58, %s14558_s11  ;;  %v15614_v51 = vsel %vm1127_vm5, %v1064_v54, %v15600_v47 }
 0x1c5   :  { %19220 = vst [vmem:[#allocation45_spill] sm:$0xff] %v15614_v51  ;;  %v531_v57 = vpop.permute.xlu1 %530 }
 0x1c6   :  { %v433_v36 = vpop.permute.xlu0 %432  ;;  %1899 = vmatmul.mubr.bf16.gmra.mrb[64].mxu0 %v15614_v51 }
 0x1c7   :  { %v842_v60 = vsel %vm788_vm1, %v14984_v2, %v433_v36  ;;  %770 = vrot.lane.b32.xlu1 %v15608_v24, %s14560_s10 }
 0x1c8   :  { %748 = vrot.lane.b32.xlu0 %v15616_v38, %s14560_s10  ;;  %v969_v54 = vsel %vm933_vm3, %v842_v60, %v531_v57  ;;  %v257_v60 = vld [vmem:[%s18824_s0 + $0x258] sm:$0xff] }
 0x1c9   :  { %v15625_v27 = vpop.permute.xlu1 %726 }
 0x1ca   :  { %19221 = vst [vmem:[#allocation46_spill] sm:$0xff] %v15625_v27  ;;  %v629_v59 = vpop.permute.xlu0 %628  ;;  %11451 = vmatprep.mubr.msk.bf16.mxu0 %vm1590_vm2, %v15625_v27 }
 0x1cb   :  { %v1066_v25 = vsel %vm1030_vm4, %v969_v54, %v629_v59  ;;  %478 = vrot.lane.b32.xlu1 %v15513_v43, %s14559_s16 }
 0x1cc   :  { %456 = vrot.lane.b32.xlu0 %v15330_v15, %s14559_s16  ;;  %v15637_v2 = vsel %vm1127_vm5, %v1066_v25, %v15625_v27 }
 0x1cd   :  { %19222 = vst [vmem:[#allocation47_spill] sm:$0xff] %v15637_v2  ;;  %v533_v36 = vpop.permute.xlu1 %532 }
 0x1ce   :  { %v435_v61 = vpop.permute.xlu0 %434  ;;  %1909 = vmatmul.mubr.bf16.gmra.mrb[68].mxu0 %v15637_v2 }
 0x1cf   :  { %v845_v31 = vsel %vm788_vm1, %v15000_v6, %v435_v61  ;;  %576 = vrot.lane.b32.xlu1 %v15532_v39, %s14561_s5  ;;  %v256_v6 = vld [vmem:[%s18824_s0 + $0x250] sm:$0xff]  ;;  %v15666_v61 = vpack.c.bf16 %v279_v53, %v278_v63 }
 0x1d0   :  { %554 = vrot.lane.b32.xlu0 %v15394_v8, %s14561_s5  ;;  %v971_v54 = vsel %vm933_vm3, %v845_v31, %v533_v36  ;;  %v15674_v27 = vpack.c.bf16 %v257_v60, %v256_v6 }
 0x1d1   :  { %v15652_v57 = vpop.permute.xlu1 %728 }
 0x1d2   :  { %19223 = vst [vmem:[#allocation48_spill] sm:$0xff] %v15652_v57  ;;  %v631_v59 = vpop.permute.xlu0 %630  ;;  %11452 = vmatprep.mubr.msk.bf16.mxu0 %vm1590_vm2, %v15652_v57 }
 0x1d3   :  { %v1068_v25 = vsel %vm1030_vm4, %v971_v54, %v631_v59  ;;  %674 = vrot.lane.b32.xlu1 %v15550_v40, %s14558_s11 }
 0x1d4   :  { %652 = vrot.lane.b32.xlu0 %v15558_v29, %s14558_s11  ;;  %v15672_v2 = vsel %vm1127_vm5, %v1068_v25, %v15652_v57 }
 0x1d5   :  { %19224 = vst [vmem:[#allocation49_spill] sm:$0xff] %v15672_v2  ;;  %v535_v36 = vpop.permute.xlu1 %534 }
 0x1d6   :  { %v437_v31 = vpop.permute.xlu0 %436  ;;  %1919 = vmatmul.mubr.bf16.gmra.mrb[72].mxu0 %v15672_v2 }
 0x1d7   :  { %v848_v54 = vsel %vm788_vm1, %v15016_v13, %v437_v31  ;;  %772 = vrot.lane.b32.xlu1 %v15666_v61, %s14560_s10  ;;  %v280_v31 = vld [vmem:[%s18824_s0 + $0x310] sm:$0xff] }
 0x1d8   :  { %750 = vrot.lane.b32.xlu0 %v15674_v27, %s14560_s10  ;;  %v973_v53 = vsel %vm933_vm3, %v848_v54, %v535_v36  ;;  %v281_v54 = vld [vmem:[%s18824_s0 + $0x318] sm:$0xff] }
 0x1d9   :  { %v15683_v63 = vpop.permute.xlu1 %730  ;;  %v15724_v57 = vpack.c.bf16 %v281_v54, %v280_v31 }
 0x1da   :  { %19225 = vst [vmem:[#allocation50_spill] sm:$0xff] %v15683_v63  ;;  %v633_v59 = vpop.permute.xlu0 %632  ;;  %11453 = vmatprep.mubr.msk.bf16.mxu0 %vm1590_vm2, %v15683_v63 }
 0x1db   :  { %v1070_v6 = vsel %vm1030_vm4, %v973_v53, %v633_v59  ;;  %480 = vrot.lane.b32.xlu1 %v15450_v4, %s14559_s16  ;;  %v258_v53 = vld [vmem:[%s18824_s0 + $0x260] sm:$0xff] }
 0x1dc   :  { %458 = vrot.lane.b32.xlu0 %v15359_v22, %s14559_s16  ;;  %v15695_v13 = vsel %vm1127_vm5, %v1070_v6, %v15683_v63  ;;  %v13387_v6 = vld [vmem:[#allocation2 + $0x130] ss:$24 sps:$4 sm:$0xff]  }
 0x1dd   :  { %19226 = vst [vmem:[#allocation51_spill] sm:$0xff] %v15695_v13  ;;  %v537_v60 = vpop.permute.xlu1 %536 }
 0x1de   :  { %v439_v25 = vpop.permute.xlu0 %438  ;;  %1929 = vmatmul.mubr.bf16.gmra.mrb[76].mxu0 %v15695_v13 }
 0x1df   :  { %v851_v36 = vsel %vm788_vm1, %v15032_v18, %v439_v25  ;;  %578 = vrot.lane.b32.xlu1 %v15474_v44, %s14561_s5  ;;  %v259_v18 = vld [vmem:[%s18824_s0 + $0x268] sm:$0xff] }
 0x1e0   :  { %556 = vrot.lane.b32.xlu0 %v15482_v58, %s14561_s5  ;;  %v13389_v25 = vld [vmem:[#allocation2 + $0x134] ss:$24 sps:$4 sm:$0xff]   ;;  %v975_v13 = vsel %vm933_vm3, %v851_v36, %v537_v60  ;;  %v15732_v60 = vpack.c.bf16 %v259_v18, %v258_v53 }
 0x1e1   :  { %v15713_v59 = vpop.permute.xlu1 %732  ;;  %2744 = vmatprep.subr.bf16.mxu0 %v13389_v25  ;;  %v282_v25 = vld [vmem:[%s18824_s0 + $0x320] sm:$0xff] }
 0x1e2   :  { %19227 = vst [vmem:[#allocation52_spill] sm:$0xff] %v15713_v59  ;;  %v635_v63 = vpop.permute.xlu0 %634  ;;  %11454 = vmatprep.mubr.msk.bf16.mxu0 %vm1590_vm2, %v15713_v59  ;;  %2745 = vmatpush1.bf16.msra.mxu0 %v13387_v6 }
 0x1e3   :  { %v1072_v2 = vsel %vm1030_vm4, %v975_v13, %v635_v63  ;;  %676 = vrot.lane.b32.xlu1 %v15608_v24, %s14558_s11 }
 0x1e4   :  { %654 = vrot.lane.b32.xlu0 %v15616_v38, %s14558_s11  ;;  %v15730_v51 = vsel %vm1127_vm5, %v1072_v2, %v15713_v59 }
 0x1e5   :  { %19228 = vst [vmem:[#allocation53_spill] sm:$0xff] %v15730_v51  ;;  %v539_v36 = vpop.permute.xlu1 %538 }
 0x1e6   :  { %v441_v47 = vpop.permute.xlu0 %440  ;;  %1939 = vmatmul.mubr.bf16.gmra.mrb[80].mxu0 %v15730_v51 }
 0x1e7   :  { %v854_v63 = vsel %vm788_vm1, %v15048_v21, %v441_v47  ;;  %774 = vrot.lane.b32.xlu1 %v15724_v57, %s14560_s10  ;;  %v13392_v47 = vld [vmem:[#allocation2 + $0xc] ss:$24 sps:$4 sm:$0xff]  }
 0x1e8   :  { %752 = vrot.lane.b32.xlu0 %v15732_v60, %s14560_s10  ;;  %v977_v2 = vsel %vm933_vm3, %v854_v63, %v539_v36  ;;  %2219 = vmatprep.subr.bf16.mxu1 %v13392_v47  ;;  %v283_v36 = vld [vmem:[%s18824_s0 + $0x328] sm:$0xff] }
 0x1e9   :  { %v15741_v13 = vpop.permute.xlu1 %734 }
 0x1ea   :  { %19229 = vst [vmem:[#allocation54_spill] sm:$0xff] %v15741_v13  ;;  %v637_v31 = vpop.permute.xlu0 %636  ;;  %11455 = vmatprep.mubr.msk.bf16.mxu0 %vm1590_vm2, %v15741_v13 }
 0x1eb   :  { %v1074_v54 = vsel %vm1030_vm4, %v977_v2, %v637_v31  ;;  %482 = vrot.lane.b32.xlu1 %v15532_v39, %s14559_s16 }
 0x1ec   :  { %460 = vrot.lane.b32.xlu0 %v15394_v8, %s14559_s16  ;;  %v15753_v21 = vsel %vm1127_vm5, %v1074_v54, %v15741_v13  ;;  %v15776_v54 = vpack.c.bf16 %v283_v36, %v282_v25 }
 0x1ed   :  { %19230 = vst [vmem:[#allocation55_spill] sm:$0xff] %v15753_v21  ;;  %v541_v53 = vpop.permute.xlu1 %540 }
 0x1ee   :  { %v443_v18 = vpop.permute.xlu0 %442  ;;  %1949 = vmatmul.mubr.bf16.gmra.mrb[84].mxu0 %v15753_v21 }
 0x1ef   :  { %v857_v6 = vsel %vm788_vm1, %v15070_v28, %v443_v18  ;;  %580 = vrot.lane.b32.xlu1 %v15550_v40, %s14561_s5 }
 0x1f0   :  { %558 = vrot.lane.b32.xlu0 %v15558_v29, %s14561_s5  ;;  %v979_v2 = vsel %vm933_vm3, %v857_v6, %v541_v53 }
 0x1f1   :  { %v15768_v63 = vpop.permute.xlu1 %736 }
 0x1f2   :  { %19231 = vst [vmem:[#allocation56_spill] sm:$0xff] %v15768_v63  ;;  %v639_v31 = vpop.permute.xlu0 %638  ;;  %11456 = vmatprep.mubr.msk.bf16.mxu0 %vm1590_vm2, %v15768_v63 }
 0x1f3   :  { %v1076_v28 = vsel %vm1030_vm4, %v979_v2, %v639_v31  ;;  %678 = vrot.lane.b32.xlu1 %v15666_v61, %s14558_s11 }
 0x1f4   :  { %656 = vrot.lane.b32.xlu0 %v15674_v27, %s14558_s11  ;;  %v15782_v47 = vsel %vm1127_vm5, %v1076_v28, %v15768_v63 }
 0x1f5   :  { %19232 = vst [vmem:[#allocation57_spill] sm:$0xff] %v15782_v47  ;;  %v543_v18 = vpop.permute.xlu1 %542 }
 0x1f6   :  { %v445_v53 = vpop.permute.xlu0 %444  ;;  %1959 = vmatmul.mubr.bf16.gmra.mrb[88].mxu0 %v15782_v47  ;;  %v13401_v47 = vld [vmem:[#allocation2 + $0x164] ss:$24 sps:$4 sm:$0xff]  }
 0x1f7   :  { %v860_v6 = vsel %vm788_vm1, %v15098_v45, %v445_v53  ;;  %776 = vrot.lane.b32.xlu1 %v15776_v54, %s14560_s10  ;;  %2746 = vmatprep.subr.bf16.mxu0 %v13401_v47 }
 0x1f8   :  { %754 = vrot.lane.b32.xlu0 %v15413_v32, %s14560_s10  ;;  %v981_v36 = vsel %vm933_vm3, %v860_v6, %v543_v18  ;;  %v284_v6 = vld [vmem:[%s18824_s0 + $0x330] sm:$0xff] }
 0x1f9   :  { %v15791_v25 = vpop.permute.xlu1 %738 }
 0x1fa   :  { %19233 = vst [vmem:[#allocation58_spill] sm:$0xff] %v15791_v25  ;;  %v641_v2 = vpop.permute.xlu0 %640  ;;  %11457 = vmatprep.mubr.msk.bf16.mxu0 %vm1590_vm2, %v15791_v25 }
 0x1fb   :  { %v1078_v31 = vsel %vm1030_vm4, %v981_v36, %v641_v2  ;;  %484 = vrot.lane.b32.xlu1 %v15474_v44, %s14559_s16  ;;  %v285_v36 = vld [vmem:[%s18824_s0 + $0x338] sm:$0xff] }
 0x1fc   :  { %462 = vrot.lane.b32.xlu0 %v15482_v58, %s14559_s16  ;;  %v15803_v45 = vsel %vm1127_vm5, %v1078_v31, %v15791_v25  ;;  %v13399_v25 = vld [vmem:[#allocation2 + $0x160] ss:$24 sps:$4 sm:$0xff]  }
 0x1fd   :  { %19234 = vst [vmem:[#allocation59_spill] sm:$0xff] %v15803_v45  ;;  %v545_v28 = vpop.permute.xlu1 %544  ;;  %2747 = vmatpush1.bf16.msra.mxu0 %v13399_v25 }
 0x1fe   :  { %v447_v53 = vpop.permute.xlu0 %446  ;;  %1969 = vmatmul.mubr.bf16.gmra.mrb[92].mxu0 %v15803_v45  ;;  %11531 = vmatprep.subr.msk.bf16.mxu0 %vm1687_vm0, %v13411_v41 }
 0x1ff   :  { %v863_v18 = vsel %vm788_vm1, %v15127_v62, %v447_v53  ;;  %582 = vrot.lane.b32.xlu1 %v15608_v24, %s14561_s5  ;;  %v15826_v53 = vpack.c.bf16 %v285_v36, %v284_v6 }
 0x200   :  { %560 = vrot.lane.b32.xlu0 %v15616_v38, %s14561_s5  ;;  %v983_v31 = vsel %vm933_vm3, %v863_v18, %v545_v28 }
 0x201   :  { %v15818_v2 = vpop.permute.xlu1 %740 }
 0x202   :  { %19235 = vst [vmem:[#allocation60_spill] sm:$0xff] %v15818_v2  ;;  %v643_v45 = vpop.permute.xlu0 %642  ;;  %11458 = vmatprep.mubr.msk.bf16.mxu0 %vm1590_vm2, %v15818_v2 }
 0x203   :  { %v1080_v62 = vsel %vm1030_vm4, %v983_v31, %v643_v45  ;;  %680 = vrot.lane.b32.xlu1 %v15724_v57, %s14558_s11 }
 0x204   :  { %658 = vrot.lane.b32.xlu0 %v15732_v60, %s14558_s11  ;;  %v15832_v63 = vsel %vm1127_vm5, %v1080_v62, %v15818_v2 }
 0x205   :  { %19236 = vst [vmem:[#allocation61_spill] sm:$0xff] %v15832_v63  ;;  %v547_v28 = vpop.permute.xlu1 %546 }
 0x206   :  { %v449_v18 = vpop.permute.xlu0 %448  ;;  %1979 = vmatmul.mubr.bf16.gmra.mrb[96].mxu0 %v15832_v63 }
 0x207   :  { %v866_v45 = vsel %vm788_vm1, %v15156_v7, %v449_v18  ;;  %778 = vrot.lane.b32.xlu1 %v15826_v53, %s14560_s10  ;;  %v287_v18 = vld [vmem:[%s18824_s0 + $0x348] sm:$0xff] }
 0x208   :  { %756 = vrot.lane.b32.xlu0 %v15495_v10, %s14560_s10  ;;  %v985_v36 = vsel %vm933_vm3, %v866_v45, %v547_v28  ;;  %v286_v28 = vld [vmem:[%s18824_s0 + $0x340] sm:$0xff] }
 0x209   :  { %v15841_v6 = vpop.permute.xlu1 %742 }
 0x20a   :  { %19237 = vst [vmem:[#allocation62_spill] sm:$0xff] %v15841_v6  ;;  %v645_v31 = vpop.permute.xlu0 %644  ;;  %11459 = vmatprep.mubr.msk.bf16.mxu0 %vm1590_vm2, %v15841_v6 }
 0x20b   :  { %v1082_v47 = vsel %vm1030_vm4, %v985_v36, %v645_v31  ;;  %486 = vrot.lane.b32.xlu1 %v15550_v40, %s14559_s16  ;;  %v15868_v31 = vpack.c.bf16 %v287_v18, %v286_v28 }
 0x20c   :  { %464 = vrot.lane.b32.xlu0 %v15558_v29, %s14559_s16  ;;  %v15853_v7 = vsel %vm1127_vm5, %v1082_v47, %v15841_v6 }
 0x20d   :  { %19238 = vst [vmem:[#allocation63_spill] sm:$0xff] %v15853_v7  ;;  %v473_v25 = vpop.permute.xlu1 %472 }
 0x20e   :  { %v451_v62 = vpop.permute.xlu0 %450  ;;  %1989 = vmatmul.mubr.bf16.gmra.mrb[100].mxu0 %v15853_v7  ;;  %v902_v6 = vsel %vm788_vm1, %v15674_v27, %v473_v25  ;;  %v13390_v25 = vld [vmem:[#allocation2 + $0x8] ss:$24 sps:$4 sm:$0xff]  }
 0x20f   :  { %584 = vrot.lane.b32.xlu1 %v15666_v61, %s14561_s5  ;;  %v869_v63 = vsel %vm788_vm1, %v15185_v17, %v451_v62 }
 0x210   :  { %562 = vrot.lane.b32.xlu0 %v15674_v27, %s14561_s5 }
 0x211   :  { %v571_v45 = vpop.permute.xlu1 %570 }
 0x212   :  { %v549_v36 = vpop.permute.xlu0 %548  ;;  %v1009_v2 = vsel %vm933_vm3, %v902_v6, %v571_v45  ;;  %v13393_v45 = vld [vmem:[#allocation2 + $0x38] ss:$24 sps:$4 sm:$0xff]  }
 0x213   :  { %682 = vrot.lane.b32.xlu1 %v15776_v54, %s14558_s11  ;;  %v987_v28 = vsel %vm933_vm3, %v869_v63, %v549_v36  ;;  %v13395_v63 = vld [vmem:[#allocation2 + $0x3c] ss:$24 sps:$4 sm:$0xff]  }
 0x214   :  { %660 = vrot.lane.b32.xlu0 %v15413_v32, %s14558_s11 }
 0x215   :  { %v669_v47 = vpop.permute.xlu1 %668 }
 0x216   :  { %v647_v7 = vpop.permute.xlu0 %646  ;;  %v1106_v18 = vsel %vm1030_vm4, %v1009_v2, %v669_v47  ;;  %v13398_v47 = vld [vmem:[#allocation2 + $0x6c] ss:$24 sps:$4 sm:$0xff]  }
 0x217   :  { %780 = vrot.lane.b32.xlu1 %v15868_v31, %s14560_s10  ;;  %v1084_v51 = vsel %vm1030_vm4, %v987_v28, %v647_v7  ;;  %v289_v28 = vld [vmem:[%s18824_s0 + $0x358] sm:$0xff] }
 0x218   :  { %758 = vrot.lane.b32.xlu0 %v15431_v48, %s14560_s10 }
 0x219   :  { %v15883_v21 = vpop.f32.mrb[0].mxu0  ;;  %v15885_v13 = vpop.permute.xlu1 %766 }
 0x21a   :  { %19239 = vst [vmem:[#allocation64_spill] sm:$0xff] %v15885_v13  ;;  %v15888_v59 = vpop.permute.xlu0 %744  ;;  %v15890_v14 = vpop.f32.mrb[1].mxu0  ;;  %11471 = vmatprep.mubr.msk.bf16.mxu1 %vm1590_vm2, %v15885_v13  ;;  %v15896_v17 = vsel %vm1127_vm5, %v1106_v18, %v15885_v13 }
 0x21b   :  { %19240 = vst [vmem:[#allocation65_spill] sm:$0xff] %v15888_v59  ;;  %19241 = vst [vmem:[#allocation66_spill] sm:$0xff] %v15896_v17  ;;  %v15898_v2 = vpop.f32.mrb[2].mxu0  ;;  %11460 = vmatprep.mubr.msk.bf16.mxu0 %vm1590_vm2, %v15888_v59  ;;  %488 = vrot.lane.b32.xlu1 %v15608_v24, %s14559_s16  ;;  %v15906_v6 = vsel %vm1127_vm5, %v1084_v51, %v15888_v59  ;;  %v288_v51 = vld [vmem:[%s18824_s0 + $0x350] sm:$0xff] }
 0x21c   :  { %19242 = vst [vmem:[#allocation67_spill] sm:$0xff] %v15898_v2  ;;  %19243 = vst [vmem:[#allocation68_spill] sm:$0xff] %v15906_v6  ;;  %2109 = vmatmul.mubr.bf16.vlgmr.msra.gmra.mrb[0].mxu1 %v15896_v17  ;;  %466 = vrot.lane.b32.xlu0 %v15616_v38, %s14559_s16  ;;  %v15911_v7 = vpop.f32.mrb[3].mxu0  ;;  %v15932_v55 = vpack.c.bf16 %v289_v28, %v288_v51 }
 0x21d   :  { %1999 = vmatmul.mubr.bf16.gmra.mrb[104].mxu0 %v15906_v6  ;;  %v475_v62 = vpop.permute.xlu1 %474  ;;  %2220 = vmatpush1.bf16.msra.mxu1 %v13390_v25  ;;  %v13404_v6 = vld [vmem:[#allocation2 + $0x9c] ss:$24 sps:$4 sm:$0xff]  }
 0x21e   :  { %v453_v36 = vpop.permute.xlu0 %452  ;;  %2221 = vmatprep.subr.bf16.mxu1 %v13395_v63  ;;  %v13396_v63 = vld [vmem:[#allocation2 + $0x68] ss:$24 sps:$4 sm:$0xff]   ;;  %v905_v51 = vsel %vm788_vm1, %v15732_v60, %v475_v62 }
 0x21f   :  { %586 = vrot.lane.b32.xlu1 %v15724_v57, %s14561_s5  ;;  %v872_v28 = vsel %vm788_vm1, %v15214_v11, %v453_v36  ;;  %v13405_v62 = vld [vmem:[#allocation2 + $0xc8] ss:$24 sps:$4 sm:$0xff]  }
 0x220   :  { %564 = vrot.lane.b32.xlu0 %v15732_v60, %s14561_s5 }
 0x221   :  { %v15924_v18 = vpop.f32.mrb[4].mxu0  ;;  %v573_v25 = vpop.permute.xlu1 %572  ;;  %2222 = vmatpush1.bf16.msra.mxu1 %v13393_v45  ;;  %v13413_v45 = vld [vmem:[#allocation2 + $0x190] ss:$24 sps:$4 sm:$0x3f]  }
 0x222   :  { %19244 = vst [vmem:[#allocation69_spill] sm:$0xff] %v15924_v18  ;;  %v551_v17 = vpop.permute.xlu0 %550  ;;  %v15926_v13 = vpop.f32.mrb[5].mxu0  ;;  %2223 = vmatprep.subr.bf16.mxu1 %v13398_v47  ;;  %v1701_v42 = vsel %vm1687_vm0, %v13413_v45, 0 }
 0x223   :  { %v15928_v59 = vpop.f32.mrb[6].mxu0  ;;  %684 = vrot.lane.b32.xlu1 %v15826_v53, %s14558_s11  ;;  %2749 = vmatpush1.bf16.msra.mxu0 %v1701_v42  ;;  %v989_v41 = vsel %vm933_vm3, %v872_v28, %v551_v17  ;;  %v13410_v17 = vld [vmem:[#allocation2 + $0xfc] ss:$24 sps:$4 sm:$0xff]   ;;  %v291_v28 = vld [vmem:[%s18824_s0 + $0x368] sm:$0xff] }
 0x224   :  { %19245 = vst [vmem:[#allocation70_spill] sm:$0xff] %v15928_v59  ;;  %662 = vrot.lane.b32.xlu0 %v15495_v10, %s14558_s11  ;;  %v15936_v34 = vpop.f32.mrb[7].mxu0 }
 0x225   :  { %19246 = vst [vmem:[#allocation71_spill] sm:$0xff] %v15936_v34  ;;  %v671_v19 = vpop.permute.xlu1 %670  ;;  %2224 = vmatpush1.bf16.msra.mxu1 %v13396_v63  ;;  %v1011_v63 = vsel %vm933_vm3, %v905_v51, %v573_v25 }
 0x226   :  { %v649_v47 = vpop.permute.xlu0 %648  ;;  %2225 = vmatprep.subr.bf16.mxu1 %v13404_v6  ;;  %v1108_v6 = vsel %vm1030_vm4, %v1011_v63, %v671_v19 }
 0x227   :  { %782 = vrot.lane.b32.xlu1 %v15932_v55, %s14560_s10  ;;  %v1086_v42 = vsel %vm1030_vm4, %v989_v41, %v649_v47  ;;  %v13408_v41 = vld [vmem:[#allocation2 + $0xf8] ss:$24 sps:$4 sm:$0xff]  }
 0x228   :  { %760 = vrot.lane.b32.xlu0 %v15513_v43, %s14560_s10 }
 0x229   :  { %v15951_v45 = vpop.f32.mrb[8].mxu0  ;;  %v15953_v33 = vpop.permute.xlu1 %768  ;;  %2226 = vmatpush1.bf16.msra.mxu1 %v13402_v5 }
 0x22a   :  { %19247 = vst [vmem:[#allocation72_spill] sm:$0xff] %v15953_v33  ;;  %v15958_v36 = vpop.permute.xlu0 %746  ;;  %v15960_v25 = vpop.f32.mrb[9].mxu0  ;;  %11472 = vmatprep.mubr.msk.bf16.mxu1 %vm1590_vm2, %v15953_v33  ;;  %v15966_v19 = vsel %vm1127_vm5, %v1108_v6, %v15953_v33  ;;  %2227 = vmatprep.subr.bf16.mxu1 %v13407_v50  ;;  %v13417_v33 = vld [vmem:[#allocation2 + $0x158] ss:$24 sps:$4 sm:$0xff]  }
 0x22b   :  { %19248 = vst [vmem:[#allocation73_spill] sm:$0xff] %v15966_v19  ;;  %v15970_v47 = vpop.f32.mrb[10].mxu0  ;;  %11461 = vmatprep.mubr.msk.bf16.mxu0 %vm1590_vm2, %v15958_v36  ;;  %490 = vrot.lane.b32.xlu1 %v15666_v61, %s14559_s16  ;;  %v15978_v51 = vsel %vm1127_vm5, %v1086_v42, %v15958_v36  ;;  %v13416_v42 = vld [vmem:[#allocation2 + $0x12c] ss:$24 sps:$4 sm:$0xff]  }
 0x22c   :  { %19249 = vst [vmem:[#allocation74_spill] sm:$0xff] %v15970_v47  ;;  %2119 = vmatmul.mubr.bf16.gmra.mrb[4].mxu1 %v15966_v19  ;;  %468 = vrot.lane.b32.xlu0 %v15674_v27, %s14559_s16  ;;  %v15985_v50 = vpop.f32.mrb[11].mxu0  ;;  %v290_v27 = vld [vmem:[%s18824_s0 + $0x360] sm:$0xff]  ;;  %v13419_v19 = vld [vmem:[#allocation2 + $0x15c] ss:$24 sps:$4 sm:$0xff]  }
 0x22d   :  { %2009 = vmatmul.mubr.bf16.gmra.mrb[108].mxu0 %v15978_v51  ;;  %v477_v61 = vpop.permute.xlu1 %476  ;;  %2228 = vmatpush1.bf16.msra.mxu1 %v13405_v62  ;;  %v348_v2 = vpack.c.bf16 %v291_v28, %v290_v27 }
 0x22e   :  { %v455_v6 = vpop.permute.xlu0 %454  ;;  %2229 = vmatprep.subr.bf16.mxu1 %v13410_v17  ;;  %v13414_v17 = vld [vmem:[#allocation2 + $0x128] ss:$24 sps:$4 sm:$0xff]  }
 0x22f   :  { %588 = vrot.lane.b32.xlu1 %v15776_v54, %s14561_s5  ;;  %v875_v28 = vsel %vm788_vm1, %v15243_v16, %v455_v6 }
 0x230   :  { %566 = vrot.lane.b32.xlu0 %v15413_v32, %s14561_s5 }
 0x231   :  { %v16000_v63 = vpop.f32.mrb[12].mxu0  ;;  %v575_v62 = vpop.permute.xlu1 %574  ;;  %2230 = vmatpush1.bf16.msra.mxu1 %v13408_v41 }
 0x232   :  { %19250 = vst [vmem:[#allocation75_spill] sm:$0xff] %v16000_v63  ;;  %v553_v54 = vpop.permute.xlu0 %552  ;;  %v16004_v5 = vpop.f32.mrb[13].mxu0  ;;  %2231 = vmatprep.subr.bf16.mxu1 %v13416_v42 }
 0x233   :  { %v16008_v47 = vpop.f32.mrb[14].mxu0  ;;  %686 = vrot.lane.b32.xlu1 %v15868_v31, %s14558_s11  ;;  %v908_v31 = vsel %vm788_vm1, %v15413_v32, %v477_v61  ;;  %v991_v41 = vsel %vm933_vm3, %v875_v28, %v553_v54  ;;  %v13420_v32 = vld [vmem:[#allocation2 + $0x18c] ss:$24 sps:$4 sm:$0x3f]  }
 0x234   :  { %19251 = vst [vmem:[#allocation76_spill] sm:$0xff] %v16008_v47  ;;  %664 = vrot.lane.b32.xlu0 %v15431_v48, %s14558_s11  ;;  %v16016_v11 = vpop.f32.mrb[15].mxu0  ;;  %v1013_v27 = vsel %vm933_vm3, %v908_v31, %v575_v62  ;;  %v293_v31 = vld [vmem:[%s18824_s0 + $0x378] sm:$0xff] }
 0x235   :  { %19252 = vst [vmem:[#allocation77_spill] sm:$0xff] %v16016_v11  ;;  %v673_v63 = vpop.permute.xlu1 %672  ;;  %2232 = vmatpush1.bf16.msra.mxu1 %v13414_v17 }
 0x236   :  { %v651_v18 = vpop.permute.xlu0 %650  ;;  %2233 = vmatprep.subr.bf16.mxu1 %v13419_v19  ;;  %v1110_v17 = vsel %vm1030_vm4, %v1013_v27, %v673_v63 }
 0x237   :  { %784 = vrot.lane.b32.xlu1 %v348_v2, %s14560_s10  ;;  %v1088_v2 = vsel %vm1030_vm4, %v991_v41, %v651_v18  ;;  %v13422_v18 = vld [vmem:[#allocation2 + $0x188] ss:$24 sps:$4 sm:$0x3f]  }
 0x238   :  { %762 = vrot.lane.b32.xlu0 %v15450_v4, %s14560_s10  ;;  %v1695_v41 = vsel %vm1687_vm0, %v13422_v18, 0  ;;  %v13425_v18 = vld [vmem:[#allocation6 + $0x4] ss:$16 sps:$4 sm:$0xff]  }
 0x239   :  { %v16030_v42 = vpop.f32.mrb[16].mxu0  ;;  %v16032_v19 = vpop.permute.xlu1 %770  ;;  %2234 = vmatpush1.bf16.msra.mxu1 %v13417_v33 }
 0x23a   :  { %19253 = vst [vmem:[#allocation78_spill] sm:$0xff] %v16030_v42  ;;  %19254 = vst [vmem:[#allocation79_spill] sm:$0xff] %v16032_v19  ;;  %v16035_v61 = vpop.permute.xlu0 %748  ;;  %v16037_v16 = vpop.f32.mrb[17].mxu0  ;;  %11473 = vmatprep.mubr.msk.bf16.mxu1 %vm1590_vm2, %v16032_v19  ;;  %v16043_v6 = vsel %vm1127_vm5, %v1110_v17, %v16032_v19  ;;  %11482 = vmatprep.subr.msk.bf16.mxu1 %vm1687_vm0, %v13420_v32 }
 0x23b   :  { %19255 = vst [vmem:[#allocation80_spill] sm:$0xff] %v16037_v16  ;;  %19256 = vst [vmem:[#allocation81_spill] sm:$0xff] %v16043_v6  ;;  %v16045_v63 = vpop.f32.mrb[18].mxu0  ;;  %11462 = vmatprep.mubr.msk.bf16.mxu0 %vm1590_vm2, %v16035_v61  ;;  %492 = vrot.lane.b32.xlu1 %v15724_v57, %s14559_s16  ;;  %v16053_v33 = vsel %vm1127_vm5, %v1088_v2, %v16035_v61 }
 0x23c   :  { %19257 = vst [vmem:[#allocation82_spill] sm:$0xff] %v16045_v63  ;;  %2129 = vmatmul.mubr.bf16.gmra.mrb[8].mxu1 %v16043_v6  ;;  %470 = vrot.lane.b32.xlu0 %v15732_v60, %s14559_s16  ;;  %v16058_v62 = vpop.f32.mrb[19].mxu0  ;;  %v292_v60 = vld [vmem:[%s18824_s0 + $0x370] sm:$0xff] }
 0x23d   :  { %19258 = vst [vmem:[#allocation83_spill] sm:$0xff] %v16058_v62  ;;  %2019 = vmatmul.mubr.bf16.gmra.mrb[112].mxu0 %v16053_v33  ;;  %v479_v54 = vpop.permute.xlu1 %478  ;;  %2236 = vmatpush1.bf16.msra.mxu1 %v1695_v41  ;;  %v13428_v6 = vld [vmem:[#allocation6 + $0xc] ss:$16 sps:$4 sm:$0xff]  }
 0x23e   :  { %v457_v57 = vpop.permute.xlu0 %456  ;;  %6934 = vmatprep.subr.bf16.mxu1 %v13425_v18  ;;  %8478 = vmatprep.subr.bf16.mxu0 %v13428_v6  ;;  %v911_v59 = vsel %vm788_vm1, %v15495_v10, %v479_v54 }
 0x23f   :  { %590 = vrot.lane.b32.xlu1 %v15826_v53, %s14561_s5  ;;  %v349_v53 = vpack.c.bf16 %v293_v31, %v292_v60 }
 0x240   :  { %568 = vrot.lane.b32.xlu0 %v15495_v10, %s14561_s5 }
 0x241   :  { %v16073_v28 = vpop.f32.mrb[20].mxu0  ;;  %v577_v27 = vpop.permute.xlu1 %576 }
 0x242   :  { %19259 = vst [vmem:[#allocation84_spill] sm:$0xff] %v16073_v28  ;;  %v555_v17 = vpop.permute.xlu0 %554  ;;  %v16075_v32 = vpop.f32.mrb[21].mxu0  ;;  %v1015_v60 = vsel %vm933_vm3, %v911_v59, %v577_v27 }
 0x243   :  { %19260 = vst [vmem:[#allocation85_spill] sm:$0xff] %v16075_v32  ;;  %v16077_v2 = vpop.f32.mrb[22].mxu0  ;;  %688 = vrot.lane.b32.xlu1 %v15932_v55, %s14558_s11  ;;  %v878_v55 = vsel %vm788_vm1, %v15272_v3, %v457_v57 }
 0x244   :  { %19261 = vst [vmem:[#allocation86_spill] sm:$0xff] %v16077_v2  ;;  %666 = vrot.lane.b32.xlu0 %v15513_v43, %s14558_s11  ;;  %v16083_v41 = vpop.f32.mrb[23].mxu0  ;;  %v993_v31 = vsel %vm933_vm3, %v878_v55, %v555_v17 }
 0x245   :  { %19262 = vst [vmem:[#allocation87_spill] sm:$0xff] %v16083_v41  ;;  %v675_v19 = vpop.permute.xlu1 %674 }
 0x246   :  { %v653_v47 = vpop.permute.xlu0 %652  ;;  %v1112_v11 = vsel %vm1030_vm4, %v1015_v60, %v675_v19 }
 0x247   :  { %786 = vrot.lane.b32.xlu1 %v349_v53, %s14560_s10  ;;  %v1090_v10 = vsel %vm1030_vm4, %v993_v31, %v653_v47 }
 0x248   :  { %764 = vrot.lane.b32.xlu0 %v15532_v39, %s14560_s10 }
 0x249   :  { %v16095_v18 = vpop.f32.mrb[24].mxu0  ;;  %v16097_v6 = vpop.permute.xlu1 %772 }
 0x24a   :  { %19263 = vst [vmem:[#allocation88_spill] sm:$0xff] %v16095_v18  ;;  %19264 = vst [vmem:[#allocation89_spill] sm:$0xff] %v16097_v6  ;;  %v16102_v53 = vpop.permute.xlu0 %750  ;;  %v16104_v3 = vpop.f32.mrb[25].mxu0  ;;  %11474 = vmatprep.mubr.msk.bf16.mxu1 %vm1590_vm2, %v16097_v6  ;;  %v16110_v59 = vsel %vm1127_vm5, %v1112_v11, %v16097_v6 }
 0x24b   :  { %19265 = vst [vmem:[#allocation90_spill] sm:$0xff] %v16104_v3  ;;  %19266 = vst [vmem:[#allocation91_spill] sm:$0xff] %v16110_v59  ;;  %v16114_v57 = vpop.f32.mrb[26].mxu0  ;;  %11463 = vmatprep.mubr.msk.bf16.mxu0 %vm1590_vm2, %v16102_v53  ;;  %v16120_v47 = vsel %vm1127_vm5, %v1090_v10, %v16102_v53  ;;  %2139 = vmatmul.mubr.bf16.gmra.mrb[12].mxu1 %v16110_v59 }
 0x24c   :  { %19267 = vst [vmem:[#allocation92_spill] sm:$0xff] %v16114_v57  ;;  %v16125_v17 = vpop.f32.mrb[27].mxu0  ;;  %2029 = vmatmul.mubr.bf16.gmra.mrb[116].mxu0 %v16120_v47 }
 0x24d   :  { %19268 = vst [vmem:[#allocation93_spill] sm:$0xff] %v16125_v17  ;;  %v481_v55 = vpop.permute.xlu1 %480 }
 0x24e   :  { %v459_v60 = vpop.permute.xlu0 %458  ;;  %v914_v10 = vsel %vm788_vm1, %v15431_v48, %v481_v55 }
 0x251   :  { %v16130_v31 = vpop.f32.mrb[28].mxu0  ;;  %v579_v54 = vpop.permute.xlu1 %578 }
 0x252   :  { %19269 = vst [vmem:[#allocation94_spill] sm:$0xff] %v16130_v31  ;;  %v557_v19 = vpop.permute.xlu0 %556  ;;  %v16134_v59 = vpop.f32.mrb[29].mxu0  ;;  %v881_v31 = vsel %vm788_vm1, %v15301_v23, %v459_v60  ;;  %v1017_v27 = vsel %vm933_vm3, %v914_v10, %v579_v54 }
 0x253   :  { %19270 = vst [vmem:[#allocation95_spill] sm:$0xff] %v16134_v59  ;;  %v16138_v6 = vpop.f32.mrb[30].mxu0  ;;  %v995_v28 = vsel %vm933_vm3, %v881_v31, %v557_v19 }
 0x254   :  { %19271 = vst [vmem:[#allocation96_spill] sm:$0xff] %v16138_v6  ;;  %v16142_v11 = vpop.f32.mrb[31].mxu0 }
 0x255   :  { %19272 = vst [vmem:[#allocation97_spill] sm:$0xff] %v16142_v11  ;;  %v677_v17 = vpop.permute.xlu1 %676 }
 0x256   :  { %v655_v62 = vpop.permute.xlu0 %654  ;;  %v1114_v59 = vsel %vm1030_vm4, %v1017_v27, %v677_v17 }
 0x257   :  { %v1092_v63 = vsel %vm1030_vm4, %v995_v28, %v655_v62 }
 0x259   :  { %v16153_v57 = vpop.f32.mrb[32].mxu0  ;;  %v16155_v6 = vpop.permute.xlu1 %774 }
 0x25a   :  { %19273 = vst [vmem:[#allocation98_spill] sm:$0xff] %v16153_v57  ;;  %19274 = vst [vmem:[#allocation99_spill] sm:$0xff] %v16155_v6  ;;  %v16158_v2 = vpop.permute.xlu0 %752  ;;  %v16160_v11 = vpop.f32.mrb[33].mxu0  ;;  %11475 = vmatprep.mubr.msk.bf16.mxu1 %vm1590_vm2, %v16155_v6  ;;  %v16166_v23 = vsel %vm1127_vm5, %v1114_v59, %v16155_v6 }
 0x25b   :  { %19275 = vst [vmem:[#allocation100_spill] sm:$0xff] %v16160_v11  ;;  %19276 = vst [vmem:[#allocation101_spill] sm:$0xff] %v16166_v23  ;;  %v16168_v48 = vpop.f32.mrb[34].mxu0  ;;  %11464 = vmatprep.mubr.msk.bf16.mxu0 %vm1590_vm2, %v16158_v2  ;;  %v16174_v54 = vsel %vm1127_vm5, %v1092_v63, %v16158_v2  ;;  %2149 = vmatmul.mubr.bf16.gmra.mrb[16].mxu1 %v16166_v23 }
 0x25c   :  { %19277 = vst [vmem:[#allocation102_spill] sm:$0xff] %v16168_v48  ;;  %19278 = vst [vmem:[#allocation103_spill] sm:$0xff] %v16174_v54  ;;  %v16177_v62 = vpop.f32.mrb[35].mxu0  ;;  %2039 = vmatmul.mubr.bf16.gmra.mrb[120].mxu0 %v16174_v54 }
 0x25d   :  { %19279 = vst [vmem:[#allocation104_spill] sm:$0xff] %v16177_v62  ;;  %v483_v28 = vpop.permute.xlu1 %482 }
 0x25e   :  { %v461_v19 = vpop.permute.xlu0 %460  ;;  %v917_v23 = vsel %vm788_vm1, %v15513_v43, %v483_v28 }
 0x25f   :  { %v884_v6 = vsel %vm788_vm1, %v15330_v15, %v461_v19 }
 0x261   :  { %v16180_v27 = vpop.f32.mrb[36].mxu0  ;;  %v581_v59 = vpop.permute.xlu1 %580 }
 0x262   :  { %19280 = vst [vmem:[#allocation105_spill] sm:$0xff] %v16180_v27  ;;  %v559_v17 = vpop.permute.xlu0 %558  ;;  %v16182_v55 = vpop.f32.mrb[37].mxu0  ;;  %v1019_v41 = vsel %vm933_vm3, %v917_v23, %v581_v59 }
 0x263   :  { %19281 = vst [vmem:[#allocation106_spill] sm:$0xff] %v16182_v55  ;;  %v16184_v60 = vpop.f32.mrb[38].mxu0  ;;  %v997_v32 = vsel %vm933_vm3, %v884_v6, %v559_v17 }
 0x264   :  { %19282 = vst [vmem:[#allocation107_spill] sm:$0xff] %v16184_v60  ;;  %v16186_v31 = vpop.f32.mrb[39].mxu0 }
 0x265   :  { %19283 = vst [vmem:[#allocation108_spill] sm:$0xff] %v16186_v31  ;;  %v679_v63 = vpop.permute.xlu1 %678 }
 0x266   :  { %v657_v10 = vpop.permute.xlu0 %656  ;;  %v1116_v18 = vsel %vm1030_vm4, %v1019_v41, %v679_v63 }
 0x267   :  { %v1094_v16 = vsel %vm1030_vm4, %v997_v32, %v657_v10 }
 0x269   :  { %v16195_v42 = vpop.f32.mrb[40].mxu0  ;;  %v16197_v3 = vpop.permute.xlu1 %776 }
 0x26a   :  { %19284 = vst [vmem:[#allocation109_spill] sm:$0xff] %v16195_v42  ;;  %19285 = vst [vmem:[#allocation110_spill] sm:$0xff] %v16197_v3  ;;  %v16202_v54 = vpop.permute.xlu0 %754  ;;  %v16204_v43 = vpop.f32.mrb[41].mxu0  ;;  %11476 = vmatprep.mubr.msk.bf16.mxu1 %vm1590_vm2, %v16197_v3  ;;  %v16210_v15 = vsel %vm1127_vm5, %v1116_v18, %v16197_v3 }
 0x26b   :  { %19286 = vst [vmem:[#allocation111_spill] sm:$0xff] %v16204_v43  ;;  %19287 = vst [vmem:[#allocation112_spill] sm:$0xff] %v16210_v15  ;;  %v16214_v6 = vpop.f32.mrb[42].mxu0  ;;  %11465 = vmatprep.mubr.msk.bf16.mxu0 %vm1590_vm2, %v16202_v54  ;;  %v16220_v32 = vsel %vm1127_vm5, %v1094_v16, %v16202_v54  ;;  %2159 = vmatmul.mubr.bf16.gmra.mrb[20].mxu1 %v16210_v15 }
 0x26c   :  { %19288 = vst [vmem:[#allocation113_spill] sm:$0xff] %v16214_v6  ;;  %v16225_v28 = vpop.f32.mrb[43].mxu0  ;;  %2049 = vmatmul.mubr.bf16.gmra.mrb[124].mxu0 %v16220_v32 }
 0x26d   :  { %19289 = vst [vmem:[#allocation114_spill] sm:$0xff] %v16225_v28  ;;  %v485_v19 = vpop.permute.xlu1 %484 }
 0x26e   :  { %v463_v59 = vpop.permute.xlu0 %462  ;;  %v920_v16 = vsel %vm788_vm1, %v15450_v4, %v485_v19 }
 0x271   :  { %v16230_v17 = vpop.f32.mrb[44].mxu0  ;;  %v583_v63 = vpop.permute.xlu1 %582 }
 0x272   :  { %19290 = vst [vmem:[#allocation115_spill] sm:$0xff] %v16230_v17  ;;  %v561_v10 = vpop.permute.xlu0 %560  ;;  %v16234_v34 = vpop.f32.mrb[45].mxu0  ;;  %v887_v17 = vsel %vm788_vm1, %v15359_v22, %v463_v59  ;;  %v1021_v23 = vsel %vm933_vm3, %v920_v16, %v583_v63 }
 0x273   :  { %19291 = vst [vmem:[#allocation116_spill] sm:$0xff] %v16234_v34  ;;  %v16238_v41 = vpop.f32.mrb[46].mxu0  ;;  %v999_v27 = vsel %vm933_vm3, %v887_v17, %v561_v10 }
 0x274   :  { %19292 = vst [vmem:[#allocation117_spill] sm:$0xff] %v16238_v41  ;;  %v16242_v18 = vpop.f32.mrb[47].mxu0 }
 0x275   :  { %19293 = vst [vmem:[#allocation118_spill] sm:$0xff] %v16242_v18  ;;  %v681_v6 = vpop.permute.xlu1 %680 }
 0x276   :  { %v659_v48 = vpop.permute.xlu0 %658  ;;  %v1118_v34 = vsel %vm1030_vm4, %v1021_v23, %v681_v6 }
 0x277   :  { %v1096_v3 = vsel %vm1030_vm4, %v999_v27, %v659_v48 }
 0x279   :  { %v16253_v15 = vpop.f32.mrb[48].mxu0  ;;  %v16255_v41 = vpop.permute.xlu1 %778 }
 0x27a   :  { %19294 = vst [vmem:[#allocation119_spill] sm:$0xff] %v16253_v15  ;;  %19295 = vst [vmem:[#allocation120_spill] sm:$0xff] %v16255_v41  ;;  %v16258_v60 = vpop.permute.xlu0 %756  ;;  %v16260_v18 = vpop.f32.mrb[49].mxu0  ;;  %11477 = vmatprep.mubr.msk.bf16.mxu1 %vm1590_vm2, %v16255_v41  ;;  %v16266_v22 = vsel %vm1127_vm5, %v1118_v34, %v16255_v41 }
 0x27b   :  { %19296 = vst [vmem:[#allocation121_spill] sm:$0xff] %v16260_v18  ;;  %19297 = vst [vmem:[#allocation122_spill] sm:$0xff] %v16266_v22  ;;  %v16268_v4 = vpop.f32.mrb[50].mxu0  ;;  %11466 = vmatprep.mubr.msk.bf16.mxu0 %vm1590_vm2, %v16258_v60  ;;  %v16274_v6 = vsel %vm1127_vm5, %v1096_v3, %v16258_v60  ;;  %2169 = vmatmul.mubr.bf16.gmra.mrb[24].mxu1 %v16266_v22 }
 0x27c   :  { %19298 = vst [vmem:[#allocation123_spill] sm:$0xff] %v16268_v4  ;;  %v16277_v48 = vpop.f32.mrb[51].mxu0  ;;  %2059 = vmatmul.mubr.bf16.gmra.mrb[128].mxu0 %v16274_v6 }
 0x27d   :  { %19299 = vst [vmem:[#allocation124_spill] sm:$0xff] %v16277_v48  ;;  %v487_v27 = vpop.permute.xlu1 %486 }
 0x27e   :  { %v465_v23 = vpop.permute.xlu0 %464  ;;  %v923_v22 = vsel %vm788_vm1, %v15532_v39, %v487_v27 }
 0x27f   :  { %v890_v41 = vsel %vm788_vm1, %v15394_v8, %v465_v23 }
 0x281   :  { %v16280_v19 = vpop.f32.mrb[52].mxu0  ;;  %v585_v34 = vpop.permute.xlu1 %584 }
 0x282   :  { %19300 = vst [vmem:[#allocation125_spill] sm:$0xff] %v16280_v19  ;;  %v563_v59 = vpop.permute.xlu0 %562  ;;  %v16282_v17 = vpop.f32.mrb[53].mxu0  ;;  %v1023_v31 = vsel %vm933_vm3, %v923_v22, %v585_v34 }
 0x283   :  { %19301 = vst [vmem:[#allocation126_spill] sm:$0xff] %v16282_v17  ;;  %v16284_v63 = vpop.f32.mrb[54].mxu0  ;;  %v1001_v55 = vsel %vm933_vm3, %v890_v41, %v563_v59 }
 0x284   :  { %19302 = vst [vmem:[#allocation127_spill] sm:$0xff] %v16284_v63  ;;  %v16286_v16 = vpop.f32.mrb[55].mxu0 }
 0x285   :  { %19303 = vst [vmem:[#allocation128_spill] sm:$0xff] %v16286_v16  ;;  %v683_v3 = vpop.permute.xlu1 %682 }
 0x286   :  { %v661_v10 = vpop.permute.xlu0 %660  ;;  %v1120_v28 = vsel %vm1030_vm4, %v1023_v31, %v683_v3 }
 0x287   :  { %v1098_v57 = vsel %vm1030_vm4, %v1001_v55, %v661_v10 }
 0x289   :  { %v16295_v62 = vpop.f32.mrb[56].mxu0  ;;  %v16297_v42 = vpop.permute.xlu1 %780 }
 0x28a   :  { %19304 = vst [vmem:[#allocation129_spill] sm:$0xff] %v16295_v62  ;;  %19305 = vst [vmem:[#allocation130_spill] sm:$0xff] %v16297_v42  ;;  %v16302_v11 = vpop.permute.xlu0 %758  ;;  %v16304_v39 = vpop.f32.mrb[57].mxu0  ;;  %11478 = vmatprep.mubr.msk.bf16.mxu1 %vm1590_vm2, %v16297_v42  ;;  %v16310_v8 = vsel %vm1127_vm5, %v1120_v28, %v16297_v42 }
 0x28b   :  { %19306 = vst [vmem:[#allocation131_spill] sm:$0xff] %v16304_v39  ;;  %19307 = vst [vmem:[#allocation132_spill] sm:$0xff] %v16310_v8  ;;  %v16314_v41 = vpop.f32.mrb[58].mxu0  ;;  %11467 = vmatprep.mubr.msk.bf16.mxu0 %vm1590_vm2, %v16302_v11  ;;  %v16320_v55 = vsel %vm1127_vm5, %v1098_v57, %v16302_v11  ;;  %2179 = vmatmul.mubr.bf16.gmra.mrb[28].mxu1 %v16310_v8 }
 0x28c   :  { %19308 = vst [vmem:[#allocation133_spill] sm:$0xff] %v16314_v41  ;;  %v16325_v27 = vpop.f32.mrb[59].mxu0  ;;  %2069 = vmatmul.mubr.bf16.gmra.mrb[132].mxu0 %v16320_v55 }
 0x28d   :  { %19309 = vst [vmem:[#allocation134_spill] sm:$0xff] %v16325_v27  ;;  %v489_v23 = vpop.permute.xlu1 %488 }
 0x28e   :  { %v467_v34 = vpop.permute.xlu0 %466  ;;  %v926_v57 = vsel %vm788_vm1, %v15474_v44, %v489_v23 }
 0x291   :  { %v16330_v59 = vpop.f32.mrb[60].mxu0  ;;  %v587_v3 = vpop.permute.xlu1 %586 }
 0x292   :  { %19310 = vst [vmem:[#allocation135_spill] sm:$0xff] %v16330_v59  ;;  %v565_v10 = vpop.permute.xlu0 %564  ;;  %v16334_v43 = vpop.f32.mrb[61].mxu0  ;;  %v893_v59 = vsel %vm788_vm1, %v15482_v58, %v467_v34  ;;  %v1025_v22 = vsel %vm933_vm3, %v926_v57, %v587_v3 }
 0x293   :  { %19311 = vst [vmem:[#allocation136_spill] sm:$0xff] %v16334_v43  ;;  %v16338_v31 = vpop.f32.mrb[62].mxu0  ;;  %v1003_v19 = vsel %vm933_vm3, %v893_v59, %v565_v10 }
 0x294   :  { %19312 = vst [vmem:[#allocation137_spill] sm:$0xff] %v16338_v31  ;;  %v16342_v28 = vpop.f32.mrb[63].mxu0 }
 0x295   :  { %19313 = vst [vmem:[#allocation138_spill] sm:$0xff] %v16342_v28  ;;  %v685_v41 = vpop.permute.xlu1 %684 }
 0x296   :  { %v663_v4 = vpop.permute.xlu0 %662  ;;  %v1122_v43 = vsel %vm1030_vm4, %v1025_v22, %v685_v41 }
 0x297   :  { %v1100_v42 = vsel %vm1030_vm4, %v1003_v19, %v663_v4 }
 0x299   :  { %v16353_v8 = vpop.f32.mrb[64].mxu0  ;;  %v16355_v31 = vpop.permute.xlu1 %782 }
 0x29a   :  { %19314 = vst [vmem:[#allocation139_spill] sm:$0xff] %v16355_v31  ;;  %v16358_v63 = vpop.permute.xlu0 %760  ;;  %v16360_v28 = vpop.f32.mrb[65].mxu0  ;;  %11479 = vmatprep.mubr.msk.bf16.mxu1 %vm1590_vm2, %v16355_v31  ;;  %v16366_v44 = vsel %vm1127_vm5, %v1122_v43, %v16355_v31 }
 0x29b   :  { %19315 = vst [vmem:[#allocation140_spill] sm:$0xff] %v16366_v44  ;;  %v16368_v58 = vpop.f32.mrb[66].mxu0  ;;  %11468 = vmatprep.mubr.msk.bf16.mxu0 %vm1590_vm2, %v16358_v63  ;;  %v16374_v41 = vsel %vm1127_vm5, %v1100_v42, %v16358_v63  ;;  %2189 = vmatmul.mubr.bf16.gmra.mrb[32].mxu1 %v16366_v44 }
 0x29c   :  { %19316 = vst [vmem:[#allocation141_spill] sm:$0xff] %v16368_v58  ;;  %v16377_v4 = vpop.f32.mrb[67].mxu0  ;;  %2079 = vmatmul.mubr.bf16.gmra.mrb[136].mxu0 %v16374_v41 }
 0x29d   :  { %v491_v19 = vpop.permute.xlu1 %490 }
 0x29e   :  { %v469_v22 = vpop.permute.xlu0 %468  ;;  %v929_v44 = vsel %vm788_vm1, %v15550_v40, %v491_v19 }
 0x29f   :  { %v896_v31 = vsel %vm788_vm1, %v15558_v29, %v469_v22 }
 0x2a1   :  { %v16380_v23 = vpop.f32.mrb[68].mxu0  ;;  %v589_v43 = vpop.permute.xlu1 %588 }
 0x2a2   :  { %19317 = vst [vmem:[#allocation142_spill] sm:$0xff] %v16380_v23  ;;  %v567_v34 = vpop.permute.xlu0 %566  ;;  %v16382_v59 = vpop.f32.mrb[69].mxu0  ;;  %v1027_v16 = vsel %vm933_vm3, %v929_v44, %v589_v43 }
 0x2a3   :  { %19318 = vst [vmem:[#allocation143_spill] sm:$0xff] %v16382_v59  ;;  %v16384_v3 = vpop.f32.mrb[70].mxu0  ;;  %v1005_v17 = vsel %vm933_vm3, %v896_v31, %v567_v34  ;;  %v13449_v59 = vld [vmem:[#allocation6 + $0x84] ss:$16 sps:$4 sm:$0xff]  }
 0x2a4   :  { %19319 = vst [vmem:[#allocation144_spill] sm:$0xff] %v16384_v3  ;;  %v16386_v57 = vpop.f32.mrb[71].mxu0 }
 0x2a5   :  { %19320 = vst [vmem:[#allocation145_spill] sm:$0xff] %v16386_v57  ;;  %v687_v42 = vpop.permute.xlu1 %686 }
 0x2a6   :  { %v665_v10 = vpop.permute.xlu0 %664  ;;  %v1124_v27 = vsel %vm1030_vm4, %v1027_v16, %v687_v42 }
 0x2a7   :  { %v1102_v15 = vsel %vm1030_vm4, %v1005_v17, %v665_v10 }
 0x2a9   :  { %v16395_v48 = vpop.f32.mrb[72].mxu0  ;;  %v16397_v62 = vpop.permute.xlu1 %784 }
 0x2aa   :  { %19321 = vst [vmem:[#allocation146_spill] sm:$0xff] %v16397_v62  ;;  %v16402_v18 = vpop.permute.xlu0 %762  ;;  %v16404_v40 = vpop.f32.mrb[73].mxu0  ;;  %11480 = vmatprep.mubr.msk.bf16.mxu1 %vm1590_vm2, %v16397_v62  ;;  %v16410_v29 = vsel %vm1127_vm5, %v1124_v27, %v16397_v62 }
 0x2ab   :  { %19322 = vst [vmem:[#allocation147_spill] sm:$0xff] %v16410_v29  ;;  %v16414_v31 = vpop.f32.mrb[74].mxu0  ;;  %11469 = vmatprep.mubr.msk.bf16.mxu0 %vm1590_vm2, %v16402_v18  ;;  %v16420_v17 = vsel %vm1127_vm5, %v1102_v15, %v16402_v18  ;;  %2199 = vmatmul.mubr.bf16.gmra.mrb[36].mxu1 %v16410_v29 }
 0x2ac   :  { %19323 = vst [vmem:[#allocation148_spill] sm:$0xff] %v16414_v31  ;;  %v16425_v19 = vpop.f32.mrb[75].mxu0  ;;  %2089 = vmatmul.mubr.bf16.gmra.mrb[140].mxu0 %v16420_v17 }
 0x2ad   :  { %19324 = vst [vmem:[#allocation149_spill] sm:$0xff] %v16425_v19  ;;  %v493_v22 = vpop.permute.xlu1 %492 }
 0x2ae   :  { %v471_v43 = vpop.permute.xlu0 %470  ;;  %v932_v15 = vsel %vm788_vm1, %v15608_v24, %v493_v22 }
 0x2b1   :  { %v16430_v34 = vpop.f32.mrb[76].mxu0  ;;  %v591_v42 = vpop.permute.xlu1 %590 }
 0x2b2   :  { %19325 = vst [vmem:[#allocation150_spill] sm:$0xff] %v16430_v34  ;;  %v569_v10 = vpop.permute.xlu0 %568  ;;  %v16434_v39 = vpop.f32.mrb[77].mxu0  ;;  %v899_v34 = vsel %vm788_vm1, %v15616_v38, %v471_v43  ;;  %v1029_v44 = vsel %vm933_vm3, %v932_v15, %v591_v42  ;;  %v13429_v15 = vld [vmem:[#allocation6 + $0x20] ss:$16 sps:$4 sm:$0xff]  }
 0x2b3   :  { %19326 = vst [vmem:[#allocation151_spill] sm:$0xff] %v16434_v39  ;;  %v16438_v16 = vpop.f32.mrb[78].mxu0  ;;  %v1007_v23 = vsel %vm933_vm3, %v899_v34, %v569_v10  ;;  %v13434_v34 = vld [vmem:[#allocation6 + $0x2c] ss:$16 sps:$4 sm:$0xff]   ;;  %v13437_v10 = vld [vmem:[#allocation6 + $0x44] ss:$16 sps:$4 sm:$0xff]  }
 0x2b4   :  { %19327 = vst [vmem:[#allocation152_spill] sm:$0xff] %v16438_v16  ;;  %v16442_v27 = vpop.f32.mrb[79].mxu0 }
 0x2b5   :  { %19328 = vst [vmem:[#allocation153_spill] sm:$0xff] %v16442_v27  ;;  %v689_v31 = vpop.permute.xlu1 %688 }
 0x2b6   :  { %v667_v58 = vpop.permute.xlu0 %666  ;;  %v1126_v39 = vsel %vm1030_vm4, %v1029_v44, %v689_v31  ;;  %v13426_v44 = vld [vmem:[#allocation6 + $0x8] ss:$16 sps:$4 sm:$0xff]  }
 0x2b7   :  { %v1104_v62 = vsel %vm1030_vm4, %v1007_v23, %v667_v58 }
 0x2b9   :  { %v16453_v29 = vpop.f32.mrb[80].mxu0  ;;  %v16455_v16 = vpop.permute.xlu1 %786 }
 0x2ba   :  { %19329 = vst [vmem:[#allocation154_spill] sm:$0xff] %v16453_v29  ;;  %19330 = vst [vmem:[#allocation155_spill] sm:$0xff] %v16455_v16  ;;  %v16458_v3 = vpop.permute.xlu0 %764  ;;  %v16460_v27 = vpop.f32.mrb[81].mxu0  ;;  %11481 = vmatprep.mubr.msk.bf16.mxu1 %vm1590_vm2, %v16455_v16  ;;  %v16466_v24 = vsel %vm1127_vm5, %v1126_v39, %v16455_v16  ;;  %v13423_v39 = vld [vmem:[#allocation6] ss:$16 sps:$4 sm:$0xff]  }
 0x2bb   :  { %19331 = vst [vmem:[#allocation156_spill] sm:$0xff] %v16460_v27  ;;  %19332 = vst [vmem:[#allocation157_spill] sm:$0xff] %v16466_v24  ;;  %v16468_v38 = vpop.f32.mrb[82].mxu0  ;;  %11470 = vmatprep.mubr.msk.bf16.mxu0 %vm1590_vm2, %v16458_v3  ;;  %v16474_v31 = vsel %vm1127_vm5, %v1104_v62, %v16458_v3  ;;  %2209 = vmatmul.mubr.bf16.gmra.mrb[40].mxu1 %v16466_v24  ;;  %v13431_v62 = vld [vmem:[#allocation6 + $0x24] ss:$16 sps:$4 sm:$0xff]  }
 0x2bc   :  { %19333 = vst [vmem:[#allocation158_spill] sm:$0xff] %v16468_v38  ;;  %v16477_v58 = vpop.f32.mrb[83].mxu0  ;;  %2099 = vmatmul.mubr.bf16.gmra.mrb[144].mxu0 %v16474_v31  ;;  %11483 = vmatprep.mubr.msk.bf16.mxu1 %vm1590_vm2, %v15090_v37  ;;  %v13440_v24 = vld [vmem:[#allocation6 + $0x4c] ss:$16 sps:$4 sm:$0xff]   ;;  %v13435_v16 = vld [vmem:[#allocation6 + $0x40] ss:$16 sps:$4 sm:$0xff]  }
 0x2bd   :  { %19334 = vst [vmem:[#allocation159_spill] sm:$0xff] %v16477_v58  ;;  %11532 = vmatprep.mubr.msk.bf16.mxu0 %vm1590_vm2, %v15090_v37  ;;  %v13432_v37 = vld [vmem:[#allocation6 + $0x28] ss:$16 sps:$4 sm:$0xff]  }
 0x2be   :  { %v19415_v58 = vld [vmem:[#allocation44_spill] sm:$0xff] }
 0x2c1   :  { %v16484_v23 = vpop.f32.mrb[84].mxu0 }
 0x2c2   :  { %19335 = vst [vmem:[#allocation160_spill] sm:$0xff] %v16484_v23  ;;  %v16486_v22 = vpop.f32.mrb[85].mxu0 }
 0x2c3   :  { %19336 = vst [vmem:[#allocation161_spill] sm:$0xff] %v16486_v22  ;;  %v16488_v43 = vpop.f32.mrb[86].mxu0  ;;  %2252 = vmatmul.mubr.bf16.vlgmr.msra.gmra.mrb[44].mxu1 %v15105_v49 }
 0x2c4   :  { %19337 = vst [vmem:[#allocation162_spill] sm:$0xff] %v16488_v43  ;;  %v16491_v42 = vpop.f32.mrb[87].mxu0  ;;  %2765 = vmatmul.mubr.bf16.vlgmr.msra.gmra.mrb[148].mxu0 %v15105_v49  ;;  %6935 = vmatpush1.bf16.msra.mxu1 %v13423_v39  ;;  %v13438_v39 = vld [vmem:[#allocation6 + $0x48] ss:$16 sps:$4 sm:$0xff]  }
 0x2c5   :  { %19338 = vst [vmem:[#allocation163_spill] sm:$0xff] %v16491_v42  ;;  %8479 = vmatpush1.bf16.msra.mxu0 %v13426_v44  ;;  %11484 = vmatprep.mubr.msk.bf16.mxu1 %vm1590_vm2, %v15119_v56  ;;  %v13443_v44 = vld [vmem:[#allocation6 + $0x64] ss:$16 sps:$4 sm:$0xff]   ;;  %v13474_v43 = vld [vmem:[#allocation6 + $0x108] ss:$16 sps:$4 sm:$0xff]  }
 0x2c6   :  { %11533 = vmatprep.mubr.msk.bf16.mxu0 %vm1590_vm2, %v15119_v56  ;;  %6936 = vmatprep.subr.bf16.mxu1 %v13431_v62  ;;  %v13446_v56 = vld [vmem:[#allocation6 + $0x6c] ss:$16 sps:$4 sm:$0xff]   ;;  %v19378_v42 = vld [vmem:[#allocation32_spill] sm:$0xff] }
 0x2c7   :  { %8480 = vmatprep.subr.bf16.mxu0 %v13434_v34 }
 0x2c8   :  { %6937 = vmatpush1.bf16.msra.mxu1 %v13429_v15  ;;  %v13441_v15 = vld [vmem:[#allocation6 + $0x60] ss:$16 sps:$4 sm:$0xff]  }
 0x2c9   :  { %v16498_v57 = vpop.f32.mrb[88].mxu0  ;;  %8481 = vmatpush1.bf16.msra.mxu0 %v13432_v37  ;;  %6938 = vmatprep.subr.bf16.mxu1 %v13437_v10  ;;  %v13444_v10 = vld [vmem:[#allocation6 + $0x68] ss:$16 sps:$4 sm:$0xff]  }
 0x2ca   :  { %19339 = vst [vmem:[#allocation164_spill] sm:$0xff] %v16498_v57  ;;  %v16500_v49 = vpop.f32.mrb[89].mxu0  ;;  %8482 = vmatprep.subr.bf16.mxu0 %v13440_v24  ;;  %v13447_v57 = vld [vmem:[#allocation6 + $0x80] ss:$16 sps:$4 sm:$0xff]   ;;  %v13461_v24 = vld [vmem:[#allocation6 + $0xc4] ss:$16 sps:$4 sm:$0xff]  }
 0x2cb   :  { %19340 = vst [vmem:[#allocation165_spill] sm:$0xff] %v16500_v49  ;;  %v16504_v19 = vpop.f32.mrb[90].mxu0  ;;  %2262 = vmatmul.mubr.bf16.gmra.mrb[48].mxu1 %v15133_v0  ;;  %v19412_v49 = vld [vmem:[#allocation41_spill] sm:$0xff] }
 0x2cc   :  { %19341 = vst [vmem:[#allocation166_spill] sm:$0xff] %v16504_v19  ;;  %v16509_v34 = vpop.f32.mrb[91].mxu0  ;;  %2775 = vmatmul.mubr.bf16.gmra.mrb[152].mxu0 %v15133_v0  ;;  %11485 = vmatprep.mubr.msk.bf16.mxu1 %vm1590_vm2, %v15148_v12  ;;  %v13452_v0 = vld [vmem:[#allocation6 + $0x8c] ss:$16 sps:$4 sm:$0xff]  }
 0x2cd   :  { %19342 = vst [vmem:[#allocation167_spill] sm:$0xff] %v16509_v34  ;;  %11534 = vmatprep.mubr.msk.bf16.mxu0 %vm1590_vm2, %v15148_v12  ;;  %6939 = vmatpush1.bf16.msra.mxu1 %v13435_v16  ;;  %v13450_v12 = vld [vmem:[#allocation6 + $0x88] ss:$16 sps:$4 sm:$0xff]   ;;  %v13455_v16 = vld [vmem:[#allocation6 + $0xa4] ss:$16 sps:$4 sm:$0xff]  }
 0x2ce   :  { %8483 = vmatpush1.bf16.msra.mxu0 %v13438_v39  ;;  %6940 = vmatprep.subr.bf16.mxu1 %v13443_v44  ;;  %v13458_v39 = vld [vmem:[#allocation6 + $0xac] ss:$16 sps:$4 sm:$0xff]  }
 0x2cf   :  { %8484 = vmatprep.subr.bf16.mxu0 %v13446_v56 }
 0x2d1   :  { %v16520_v62 = vpop.f32.mrb[92].mxu0  ;;  %6941 = vmatpush1.bf16.msra.mxu1 %v13441_v15  ;;  %v13453_v15 = vld [vmem:[#allocation6 + $0xa0] ss:$16 sps:$4 sm:$0xff]  }
 0x2d2   :  { %19343 = vst [vmem:[#allocation168_spill] sm:$0xff] %v16520_v62  ;;  %v16522_v29 = vpop.f32.mrb[93].mxu0  ;;  %8485 = vmatpush1.bf16.msra.mxu0 %v13444_v10  ;;  %6942 = vmatprep.subr.bf16.mxu1 %v13449_v59  ;;  %v13459_v62 = vld [vmem:[#allocation6 + $0xc0] ss:$16 sps:$4 sm:$0xff]  }
 0x2d3   :  { %19344 = vst [vmem:[#allocation169_spill] sm:$0xff] %v16522_v29  ;;  %v16526_v37 = vpop.f32.mrb[94].mxu0  ;;  %2272 = vmatmul.mubr.bf16.gmra.mrb[52].mxu1 %v15162_v20  ;;  %8486 = vmatprep.subr.bf16.mxu0 %v13452_v0  ;;  %v13456_v0 = vld [vmem:[#allocation6 + $0xa8] ss:$16 sps:$4 sm:$0xff]  }
 0x2d4   :  { %19345 = vst [vmem:[#allocation170_spill] sm:$0xff] %v16526_v37  ;;  %v16531_v56 = vpop.f32.mrb[95].mxu0  ;;  %2785 = vmatmul.mubr.bf16.gmra.mrb[156].mxu0 %v15162_v20  ;;  %11486 = vmatprep.mubr.msk.bf16.mxu1 %vm1590_vm2, %v15177_v30  ;;  %v13464_v20 = vld [vmem:[#allocation6 + $0xcc] ss:$16 sps:$4 sm:$0xff]   ;;  %v19364_v37 = vld [vmem:[#allocation26_spill] sm:$0xff] }
 0x2d5   :  { %19346 = vst [vmem:[#allocation171_spill] sm:$0xff] %v16531_v56  ;;  %11535 = vmatprep.mubr.msk.bf16.mxu0 %vm1590_vm2, %v15177_v30  ;;  %6943 = vmatpush1.bf16.msra.mxu1 %v13447_v57  ;;  %v13462_v30 = vld [vmem:[#allocation6 + $0xc8] ss:$16 sps:$4 sm:$0xff]   ;;  %v13476_v56 = vld [vmem:[#allocation6 + $0x10c] ss:$16 sps:$4 sm:$0xff]  }
 0x2d6   :  { %8487 = vmatpush1.bf16.msra.mxu0 %v13450_v12  ;;  %6944 = vmatprep.subr.bf16.mxu1 %v13455_v16  ;;  %v19363_v59 = vld [vmem:[#allocation25_spill] sm:$0xff] }
 0x2d7   :  { %8488 = vmatprep.subr.bf16.mxu0 %v13458_v39 }
 0x2d9   :  { %v16542_v44 = vpop.f32.mrb[96].mxu0  ;;  %6945 = vmatpush1.bf16.msra.mxu1 %v13453_v15 }
 0x2da   :  { %19347 = vst [vmem:[#allocation172_spill] sm:$0xff] %v16542_v44  ;;  %v16544_v23 = vpop.f32.mrb[97].mxu0  ;;  %8489 = vmatpush1.bf16.msra.mxu0 %v13456_v0  ;;  %6946 = vmatprep.subr.bf16.mxu1 %v13461_v24  ;;  %v13470_v0 = vld [vmem:[#allocation6 + $0xec] ss:$16 sps:$4 sm:$0xff]   ;;  %v13473_v44 = vld [vmem:[#allocation6 + $0x104] ss:$16 sps:$4 sm:$0xff]  }
 0x2db   :  { %19348 = vst [vmem:[#allocation173_spill] sm:$0xff] %v16544_v23  ;;  %v16546_v57 = vpop.f32.mrb[98].mxu0  ;;  %2282 = vmatmul.mubr.bf16.gmra.mrb[56].mxu1 %v15191_v35  ;;  %8490 = vmatprep.subr.bf16.mxu0 %v13464_v20  ;;  %v19375_v23 = vld [vmem:[#allocation29_spill] sm:$0xff] }
 0x2dc   :  { %19349 = vst [vmem:[#allocation174_spill] sm:$0xff] %v16546_v57  ;;  %v16549_v12 = vpop.f32.mrb[99].mxu0  ;;  %2795 = vmatmul.mubr.bf16.gmra.mrb[160].mxu0 %v15191_v35  ;;  %11487 = vmatprep.mubr.msk.bf16.mxu1 %vm1590_vm2, %v15206_v46  ;;  %v13465_v35 = vld [vmem:[#allocation6 + $0xe0] ss:$16 sps:$4 sm:$0xff]  }
 0x2dd   :  { %19350 = vst [vmem:[#allocation175_spill] sm:$0xff] %v16549_v12  ;;  %11536 = vmatprep.mubr.msk.bf16.mxu0 %vm1590_vm2, %v15206_v46  ;;  %6947 = vmatpush1.bf16.msra.mxu1 %v13459_v62  ;;  %v13467_v46 = vld [vmem:[#allocation6 + $0xe4] ss:$16 sps:$4 sm:$0xff]   ;;  %v13468_v62 = vld [vmem:[#allocation6 + $0xe8] ss:$16 sps:$4 sm:$0xff]  }
 0x2de   :  { %8491 = vmatpush1.bf16.msra.mxu0 %v13462_v30  ;;  %6948 = vmatprep.subr.bf16.mxu1 %v13467_v46  ;;  %v13471_v12 = vld [vmem:[#allocation6 + $0x100] ss:$16 sps:$4 sm:$0xff]  }
 0x2df   :  { %8492 = vmatprep.subr.bf16.mxu0 %v13470_v0 }
 0x2e1   :  { %v16556_v16 = vpop.f32.mrb[100].mxu0  ;;  %6949 = vmatpush1.bf16.msra.mxu1 %v13465_v35 }
 0x2e2   :  { %19351 = vst [vmem:[#allocation176_spill] sm:$0xff] %v16556_v16  ;;  %v16558_v24 = vpop.f32.mrb[101].mxu0  ;;  %8493 = vmatpush1.bf16.msra.mxu0 %v13468_v62  ;;  %6950 = vmatprep.subr.bf16.mxu1 %v13473_v44 }
 0x2e3   :  { %19352 = vst [vmem:[#allocation177_spill] sm:$0xff] %v16558_v24  ;;  %v16560_v39 = vpop.f32.mrb[102].mxu0  ;;  %2292 = vmatmul.mubr.bf16.gmra.mrb[60].mxu1 %v15220_v52  ;;  %8494 = vmatprep.subr.bf16.mxu0 %v13476_v56  ;;  %v19403_v24 = vld [vmem:[#allocation40_spill] sm:$0xff] }
 0x2e4   :  { %19353 = vst [vmem:[#allocation178_spill] sm:$0xff] %v16560_v39  ;;  %v16563_v15 = vpop.f32.mrb[103].mxu0  ;;  %2805 = vmatmul.mubr.bf16.gmra.mrb[164].mxu0 %v15220_v52  ;;  %11488 = vmatprep.mubr.msk.bf16.mxu1 %vm1590_vm2, %v15235_v1 }
 0x2e5   :  { %19354 = vst [vmem:[#allocation179_spill] sm:$0xff] %v16563_v15  ;;  %11537 = vmatprep.mubr.msk.bf16.mxu0 %vm1590_vm2, %v15235_v1  ;;  %6951 = vmatpush1.bf16.msra.mxu1 %v13471_v12  ;;  %v13477_v12 = vld [vmem:[#allocation6 + $0x120] ss:$16 sps:$4 sm:$0xff]  }
 0x2e6   :  { %8495 = vmatpush1.bf16.msra.mxu0 %v13474_v43 }
 0x2eb   :  { %2302 = vmatmul.mubr.bf16.gmra.mrb[64].mxu1 %v15249_v9 }
 0x2ec   :  { %2815 = vmatmul.mubr.bf16.gmra.mrb[168].mxu0 %v15249_v9  ;;  %11489 = vmatprep.mubr.msk.bf16.mxu1 %vm1590_vm2, %v15264_v26 }
 0x2ed   :  { %11538 = vmatprep.mubr.msk.bf16.mxu0 %vm1590_vm2, %v15264_v26  ;;  %v19366_v26 = vld [vmem:[#allocation28_spill] sm:$0xff] }
 0x2ef   :  { %v16576_v52 = vpop.f32.mrb[0].mxu1 }
 0x2f0   :  { %19355 = vst [vmem:[#allocation180_spill] sm:$0xff] %v16576_v52  ;;  %v16578_v1 = vpop.f32.mrb[104].mxu0  ;;  %v16580_v20 = vpop.f32.mrb[1].mxu1  ;;  %v13479_v52 = vld [vmem:[#allocation6 + $0x124] ss:$16 sps:$4 sm:$0xff]  }
 0x2f1   :  { %19356 = vst [vmem:[#allocation181_spill] sm:$0xff] %v16578_v1  ;;  %19357 = vst [vmem:[#allocation182_spill] sm:$0xff] %v16580_v20  ;;  %v16582_v30 = vpop.f32.mrb[105].mxu0  ;;  %v16584_v35 = vpop.f32.mrb[2].mxu1  ;;  %v19365_v1 = vld [vmem:[#allocation27_spill] sm:$0xff]  ;;  %6952 = vmatprep.subr.bf16.mxu1 %v13479_v52  ;;  %v19399_v52 = vld [vmem:[#allocation37_spill] sm:$0xff] }
 0x2f2   :  { %19358 = vst [vmem:[#allocation183_spill] sm:$0xff] %v16582_v30  ;;  %19359 = vst [vmem:[#allocation184_spill] sm:$0xff] %v16584_v35  ;;  %v16588_v9 = vpop.f32.mrb[106].mxu0  ;;  %v16590_v62 = vpop.f32.mrb[3].mxu1  ;;  %v19390_v35 = vld [vmem:[#allocation36_spill] sm:$0xff]  ;;  %6953 = vmatpush1.bf16.msra.mxu1 %v13477_v12 }
 0x2f3   :  { %19360 = vst [vmem:[#allocation185_spill] sm:$0xff] %v16588_v9  ;;  %19361 = vst [vmem:[#allocation186_spill] sm:$0xff] %v16590_v62  ;;  %v16594_v0 = vpop.f32.mrb[107].mxu0  ;;  %2312 = vmatmul.mubr.bf16.gmra.mrb[68].mxu1 %v19363_v59 }
 0x2f4   :  { %19362 = vst [vmem:[#allocation187_spill] sm:$0xff] %v16594_v0  ;;  %2825 = vmatmul.mubr.bf16.gmra.mrb[172].mxu0 %v19363_v59  ;;  %11490 = vmatprep.mubr.msk.bf16.mxu1 %vm1590_vm2, %v19364_v37 }
 0x2f5   :  { %11539 = vmatprep.mubr.msk.bf16.mxu0 %vm1590_vm2, %v19364_v37  ;;  %v19376_v37 = vld [vmem:[#allocation30_spill] sm:$0xff] }
 0x2fb   :  { %2322 = vmatmul.mubr.bf16.gmra.mrb[72].mxu1 %v19365_v1 }
 0x2fc   :  { %2835 = vmatmul.mubr.bf16.gmra.mrb[176].mxu0 %v19365_v1  ;;  %11491 = vmatprep.mubr.msk.bf16.mxu1 %vm1590_vm2, %v19366_v26 }
 0x2fd   :  { %11540 = vmatprep.mubr.msk.bf16.mxu0 %vm1590_vm2, %v19366_v26  ;;  %v19377_v26 = vld [vmem:[#allocation31_spill] sm:$0xff] }
 0x2ff   :  { %v16612_v59 = vpop.f32.mrb[4].mxu1 }
 0x300   :  { %19367 = vst [vmem:[#allocation25_spill] sm:$0xff] %v16612_v59  ;;  %v16614_v10 = vpop.f32.mrb[108].mxu0  ;;  %v16616_v9 = vpop.f32.mrb[5].mxu1 }
 0x301   :  { %19368 = vst [vmem:[#allocation26_spill] sm:$0xff] %v16614_v10  ;;  %19369 = vst [vmem:[#allocation27_spill] sm:$0xff] %v16616_v9  ;;  %v16618_v46 = vpop.f32.mrb[109].mxu0  ;;  %v16620_v57 = vpop.f32.mrb[6].mxu1 }
 0x302   :  { %19370 = vst [vmem:[#allocation28_spill] sm:$0xff] %v16618_v46  ;;  %19371 = vst [vmem:[#allocation188_spill] sm:$0xff] %v16620_v57  ;;  %v16624_v1 = vpop.f32.mrb[110].mxu0  ;;  %v16626_v0 = vpop.f32.mrb[7].mxu1  ;;  %v19402_v46 = vld [vmem:[#allocation39_spill] sm:$0xff] }
 0x303   :  { %19372 = vst [vmem:[#allocation189_spill] sm:$0xff] %v16624_v1  ;;  %19373 = vst [vmem:[#allocation190_spill] sm:$0xff] %v16626_v0  ;;  %v16630_v30 = vpop.f32.mrb[111].mxu0  ;;  %2332 = vmatmul.mubr.bf16.gmra.mrb[76].mxu1 %v19375_v23 }
 0x304   :  { %19374 = vst [vmem:[#allocation191_spill] sm:$0xff] %v16630_v30  ;;  %2845 = vmatmul.mubr.bf16.gmra.mrb[180].mxu0 %v19375_v23  ;;  %11492 = vmatprep.mubr.msk.bf16.mxu1 %vm1590_vm2, %v19376_v37  ;;  %v19387_v30 = vld [vmem:[#allocation33_spill] sm:$0xff] }
 0x305   :  { %11541 = vmatprep.mubr.msk.bf16.mxu0 %vm1590_vm2, %v19376_v37 }
 0x30b   :  { %2342 = vmatmul.mubr.bf16.gmra.mrb[80].mxu1 %v19377_v26 }
 0x30c   :  { %2855 = vmatmul.mubr.bf16.gmra.mrb[184].mxu0 %v19377_v26  ;;  %11493 = vmatprep.mubr.msk.bf16.mxu1 %vm1590_vm2, %v19378_v42 }
 0x30d   :  { %11542 = vmatprep.mubr.msk.bf16.mxu0 %vm1590_vm2, %v19378_v42  ;;  %v13480_v42 = vld [vmem:[#allocation6 + $0x128] ss:$16 sps:$4 sm:$0xff]  }
 0x30f   :  { %v16648_v23 = vpop.f32.mrb[8].mxu1 }
 0x310   :  { %19379 = vst [vmem:[#allocation29_spill] sm:$0xff] %v16648_v23  ;;  %v16650_v10 = vpop.f32.mrb[112].mxu0  ;;  %v16652_v1 = vpop.f32.mrb[9].mxu1  ;;  %v19388_v23 = vld [vmem:[#allocation34_spill] sm:$0xff] }
 0x311   :  { %19380 = vst [vmem:[#allocation30_spill] sm:$0xff] %v16650_v10  ;;  %19381 = vst [vmem:[#allocation31_spill] sm:$0xff] %v16652_v1  ;;  %v16656_v43 = vpop.f32.mrb[113].mxu0  ;;  %v16658_v56 = vpop.f32.mrb[10].mxu1  ;;  %v19389_v1 = vld [vmem:[#allocation35_spill] sm:$0xff] }
 0x312   :  { %19382 = vst [vmem:[#allocation32_spill] sm:$0xff] %v16656_v43  ;;  %19383 = vst [vmem:[#allocation192_spill] sm:$0xff] %v16658_v56  ;;  %v16662_v37 = vpop.f32.mrb[114].mxu0  ;;  %v16664_v26 = vpop.f32.mrb[11].mxu1  ;;  %v13482_v56 = vld [vmem:[#allocation6 + $0x12c] ss:$16 sps:$4 sm:$0xff]  }
 0x313   :  { %19384 = vst [vmem:[#allocation193_spill] sm:$0xff] %v16662_v37  ;;  %19385 = vst [vmem:[#allocation194_spill] sm:$0xff] %v16664_v26  ;;  %v16668_v39 = vpop.f32.mrb[115].mxu0  ;;  %2352 = vmatmul.mubr.bf16.gmra.mrb[84].mxu1 %v19387_v30  ;;  %8496 = vmatprep.subr.bf16.mxu0 %v13482_v56  ;;  %v3679_v56 = vlaneseq  ;;  %v13486_v10 = vld [vmem:[#allocation6 + $0x148] ss:$16 sps:$4 sm:$0xff]  }
 0x314   :  { %19386 = vst [vmem:[#allocation195_spill] sm:$0xff] %v16668_v39  ;;  %2865 = vmatmul.mubr.bf16.gmra.mrb[188].mxu0 %v19387_v30  ;;  %11494 = vmatprep.mubr.msk.bf16.mxu1 %vm1590_vm2, %v19388_v23  ;;  %v19414_v43 = vld [vmem:[#allocation43_spill] sm:$0xff] }
 0x315   :  { %11543 = vmatprep.mubr.msk.bf16.mxu0 %vm1590_vm2, %v19388_v23  ;;  %8497 = vmatpush1.bf16.msra.mxu0 %v13480_v42  ;;  %v16706_v12 = vshrl.u32 %v3679_v56, 7  ;;  %v16708_v42 = vld [vmem:[#allocation4] sm:$0x7] }
 0x317   :  { %19401 = vst [vmem:[#allocation37_spill] sm:$0xff] %v16706_v12  ;;  %v3689_v16 = vsub.s32 2, %v16706_v12 }
 0x31b   :  { %2362 = vmatmul.mubr.bf16.gmra.mrb[88].mxu1 %v19389_v1 }
 0x31c   :  { %2875 = vmatmul.mubr.bf16.gmra.mrb[192].mxu0 %v19389_v1  ;;  %11495 = vmatprep.mubr.msk.bf16.mxu1 %vm1590_vm2, %v19390_v35 }
 0x31d   :  { %11544 = vmatprep.mubr.msk.bf16.mxu0 %vm1590_vm2, %v19390_v35  ;;  %v19400_v35 = vld [vmem:[#allocation38_spill] sm:$0xff] }
 0x31e   :  { %v16684_v30 = vpop.f32.mrb[12].mxu1 }
 0x31f   :  { %19391 = vst [vmem:[#allocation33_spill] sm:$0xff] %v16684_v30  ;;  %v16686_v23 = vpop.f32.mrb[116].mxu0  ;;  %v16688_v44 = vpop.f32.mrb[13].mxu1  ;;  %v19427_v30 = vld [vmem:[#allocation48_spill] sm:$0xff] }
 0x320   :  { %19392 = vst [vmem:[#allocation34_spill] sm:$0xff] %v16686_v23  ;;  %19393 = vst [vmem:[#allocation35_spill] sm:$0xff] %v16688_v44  ;;  %v16690_v26 = vpop.f32.mrb[117].mxu0  ;;  %v16692_v62 = vpop.f32.mrb[14].mxu1  ;;  %v19439_v44 = vld [vmem:[#allocation52_spill] sm:$0xff] }
 0x321   :  { %19394 = vst [vmem:[#allocation36_spill] sm:$0xff] %v16690_v26  ;;  %19395 = vst [vmem:[#allocation196_spill] sm:$0xff] %v16692_v62  ;;  %v16694_v1 = vpop.f32.mrb[118].mxu0  ;;  %v16696_v20 = vpop.f32.mrb[15].mxu1  ;;  %v13501_v26 = vld [vmem:[#allocation6 + $0x1a0] ss:$16 sps:$4 sm:$0xff]  }
 0x322   :  { %19396 = vst [vmem:[#allocation197_spill] sm:$0xff] %v16694_v1  ;;  %19397 = vst [vmem:[#allocation198_spill] sm:$0xff] %v16696_v20  ;;  %v16698_v15 = vpop.f32.mrb[119].mxu0  ;;  %v19448_v1 = vld [vmem:[#allocation54_spill] sm:$0xff] }
 0x323   :  { %19398 = vst [vmem:[#allocation199_spill] sm:$0xff] %v16698_v15  ;;  %2372 = vmatmul.mubr.bf16.gmra.mrb[92].mxu1 %v19399_v52  ;;  %v19450_v15 = vld [vmem:[#allocation56_spill] sm:$0xff] }
 0x324   :  { %2885 = vmatmul.mubr.bf16.gmra.mrb[196].mxu0 %v19399_v52  ;;  %11496 = vmatprep.mubr.msk.bf16.mxu1 %vm1590_vm2, %v19400_v35  ;;  %v16716_v52 = vrot.slane %v16708_v42, %v3689_v16 }
 0x325   :  { %11545 = vmatprep.mubr.msk.bf16.mxu0 %vm1590_vm2, %v19400_v35 }
 0x32b   :  { %2382 = vmatmul.mubr.bf16.gmra.mrb[96].mxu1 %v19402_v46 }
 0x32c   :  { %2895 = vmatmul.mubr.bf16.gmra.mrb[200].mxu0 %v19402_v46  ;;  %11497 = vmatprep.mubr.msk.bf16.mxu1 %vm1590_vm2, %v19403_v24  ;;  %v19413_v46 = vld [vmem:[#allocation42_spill] sm:$0xff] }
 0x32d   :  { %11546 = vmatprep.mubr.msk.bf16.mxu0 %vm1590_vm2, %v19403_v24  ;;  %v13483_v24 = vld [vmem:[#allocation6 + $0x140] ss:$16 sps:$4 sm:$0xff]  }
 0x32e   :  { %v16720_v35 = vpop.f32.mrb[16].mxu1 }
 0x32f   :  { %19404 = vst [vmem:[#allocation38_spill] sm:$0xff] %v16720_v35  ;;  %v16722_v56 = vpop.f32.mrb[120].mxu0  ;;  %v16724_v29 = vpop.f32.mrb[17].mxu1  ;;  %v13491_v35 = vld [vmem:[#allocation6 + $0x164] ss:$16 sps:$4 sm:$0xff]  }
 0x330   :  { %19405 = vst [vmem:[#allocation39_spill] sm:$0xff] %v16722_v56  ;;  %19406 = vst [vmem:[#allocation40_spill] sm:$0xff] %v16724_v29  ;;  %v16726_v22 = vpop.f32.mrb[121].mxu0  ;;  %v16728_v19 = vpop.f32.mrb[18].mxu1  ;;  %v13485_v56 = vld [vmem:[#allocation6 + $0x144] ss:$16 sps:$4 sm:$0xff]  }
 0x331   :  { %19407 = vst [vmem:[#allocation200_spill] sm:$0xff] %v16726_v22  ;;  %19408 = vst [vmem:[#allocation201_spill] sm:$0xff] %v16728_v19  ;;  %v16732_v38 = vpop.f32.mrb[122].mxu0  ;;  %v16734_v16 = vpop.f32.mrb[19].mxu1  ;;  %v13488_v22 = vld [vmem:[#allocation6 + $0x14c] ss:$16 sps:$4 sm:$0xff]   ;;  %6954 = vmatprep.subr.bf16.mxu1 %v13485_v56 }
 0x332   :  { %19409 = vst [vmem:[#allocation202_spill] sm:$0xff] %v16732_v38  ;;  %19410 = vst [vmem:[#allocation203_spill] sm:$0xff] %v16734_v16  ;;  %v16738_v34 = vpop.f32.mrb[123].mxu0  ;;  %8498 = vmatprep.subr.bf16.mxu0 %v13488_v22  ;;  %6955 = vmatpush1.bf16.msra.mxu1 %v13483_v24  ;;  %v19426_v56 = vld [vmem:[#allocation47_spill] sm:$0xff]  ;;  %v19436_v24 = vld [vmem:[#allocation49_spill] sm:$0xff] }
 0x333   :  { %19411 = vst [vmem:[#allocation204_spill] sm:$0xff] %v16738_v34  ;;  %2392 = vmatmul.mubr.bf16.gmra.mrb[100].mxu1 %v19412_v49  ;;  %8499 = vmatpush1.bf16.msra.mxu0 %v13486_v10  ;;  %v19447_v16 = vld [vmem:[#allocation53_spill] sm:$0xff] }
 0x334   :  { %2905 = vmatmul.mubr.bf16.gmra.mrb[204].mxu0 %v19412_v49  ;;  %11498 = vmatprep.mubr.msk.bf16.mxu1 %vm1590_vm2, %v19413_v46  ;;  %v13500_v29 = vld [vmem:[#allocation6 + $0x18c] ss:$16 sps:$4 sm:$0xff]  }
 0x335   :  { %11547 = vmatprep.mubr.msk.bf16.mxu0 %vm1590_vm2, %v19413_v46  ;;  %6956 = vmatprep.subr.bf16.mxu1 %v13491_v35  ;;  %v19459_v34 = vld [vmem:[#allocation57_spill] sm:$0xff] }
 0x33b   :  { %2402 = vmatmul.mubr.bf16.gmra.mrb[104].mxu1 %v19414_v43 }
 0x33c   :  { %2915 = vmatmul.mubr.bf16.gmra.mrb[208].mxu0 %v19414_v43  ;;  %11499 = vmatprep.mubr.msk.bf16.mxu1 %vm1590_vm2, %v19415_v58 }
 0x33d   :  { %11548 = vmatprep.mubr.msk.bf16.mxu0 %vm1590_vm2, %v19415_v58 }
 0x33e   :  { %v16756_v49 = vpop.f32.mrb[20].mxu1 }
 0x33f   :  { %19416 = vst [vmem:[#allocation41_spill] sm:$0xff] %v16756_v49  ;;  %v16758_v46 = vpop.f32.mrb[124].mxu0  ;;  %v16760_v27 = vpop.f32.mrb[21].mxu1 }
 0x340   :  { %19417 = vst [vmem:[#allocation42_spill] sm:$0xff] %v16758_v46  ;;  %19418 = vst [vmem:[#allocation43_spill] sm:$0xff] %v16760_v27  ;;  %v16764_v38 = vpop.f32.mrb[125].mxu0  ;;  %v16766_v43 = vpop.f32.mrb[22].mxu1  ;;  %v19424_v46 = vld [vmem:[#allocation45_spill] sm:$0xff]  ;;  %v19425_v27 = vld [vmem:[#allocation46_spill] sm:$0xff] }
 0x341   :  { %19419 = vst [vmem:[#allocation44_spill] sm:$0xff] %v16764_v38  ;;  %19420 = vst [vmem:[#allocation205_spill] sm:$0xff] %v16766_v43  ;;  %v16772_v22 = vpop.f32.mrb[126].mxu0  ;;  %v16774_v10 = vpop.f32.mrb[23].mxu1 }
 0x342   :  { %19421 = vst [vmem:[#allocation206_spill] sm:$0xff] %v16772_v22  ;;  %19422 = vst [vmem:[#allocation207_spill] sm:$0xff] %v16774_v10  ;;  %v16780_v49 = vpop.f32.mrb[127].mxu0  ;;  %v13492_v22 = vld [vmem:[#allocation6 + $0x168] ss:$16 sps:$4 sm:$0xff]  }
 0x343   :  { %19423 = vst [vmem:[#allocation208_spill] sm:$0xff] %v16780_v49  ;;  %2412 = vmatmul.mubr.bf16.gmra.mrb[108].mxu1 %v19424_v46  ;;  %v19449_v49 = vld [vmem:[#allocation55_spill] sm:$0xff] }
 0x344   :  { %2925 = vmatmul.mubr.bf16.gmra.mrb[212].mxu0 %v19424_v46  ;;  %11500 = vmatprep.mubr.msk.bf16.mxu1 %vm1590_vm2, %v19425_v27 }
 0x345   :  { %11549 = vmatprep.mubr.msk.bf16.mxu0 %vm1590_vm2, %v19425_v27 }
 0x34b   :  { %2422 = vmatmul.mubr.bf16.gmra.mrb[112].mxu1 %v19426_v56 }
 0x34c   :  { %2935 = vmatmul.mubr.bf16.gmra.mrb[216].mxu0 %v19426_v56  ;;  %11501 = vmatprep.mubr.msk.bf16.mxu1 %vm1590_vm2, %v19427_v30  ;;  %v19437_v56 = vld [vmem:[#allocation50_spill] sm:$0xff] }
 0x34d   :  { %11550 = vmatprep.mubr.msk.bf16.mxu0 %vm1590_vm2, %v19427_v30  ;;  %v19438_v30 = vld [vmem:[#allocation51_spill] sm:$0xff] }
 0x34e   :  { %v16800_v37 = vpop.f32.mrb[24].mxu1 }
 0x34f   :  { %19428 = vst [vmem:[#allocation45_spill] sm:$0xff] %v16800_v37  ;;  %v16802_v58 = vpop.f32.mrb[128].mxu0  ;;  %v16804_v46 = vpop.f32.mrb[25].mxu1  ;;  %v13489_v37 = vld [vmem:[#allocation6 + $0x160] ss:$16 sps:$4 sm:$0xff]  }
 0x350   :  { %19429 = vst [vmem:[#allocation46_spill] sm:$0xff] %v16802_v58  ;;  %19430 = vst [vmem:[#allocation47_spill] sm:$0xff] %v16804_v46  ;;  %v16808_v27 = vpop.f32.mrb[129].mxu0  ;;  %v16810_v43 = vpop.f32.mrb[26].mxu1  ;;  %v13494_v46 = vld [vmem:[#allocation6 + $0x16c] ss:$16 sps:$4 sm:$0xff]   ;;  %6957 = vmatpush1.bf16.msra.mxu1 %v13489_v37 }
 0x351   :  { %19431 = vst [vmem:[#allocation48_spill] sm:$0xff] %v16808_v27  ;;  %19432 = vst [vmem:[#allocation209_spill] sm:$0xff] %v16810_v43  ;;  %v16814_v62 = vpop.f32.mrb[130].mxu0  ;;  %v16816_v10 = vpop.f32.mrb[27].mxu1  ;;  %8500 = vmatprep.subr.bf16.mxu0 %v13494_v46 }
 0x352   :  { %19433 = vst [vmem:[#allocation210_spill] sm:$0xff] %v16814_v62  ;;  %19434 = vst [vmem:[#allocation211_spill] sm:$0xff] %v16816_v10  ;;  %v16820_v20 = vpop.f32.mrb[131].mxu0  ;;  %8501 = vmatpush1.bf16.msra.mxu0 %v13492_v22  ;;  %v13497_v10 = vld [vmem:[#allocation6 + $0x184] ss:$16 sps:$4 sm:$0xff]  }
 0x353   :  { %19435 = vst [vmem:[#allocation212_spill] sm:$0xff] %v16820_v20  ;;  %2432 = vmatmul.mubr.bf16.gmra.mrb[116].mxu1 %v19436_v24  ;;  %6958 = vmatprep.subr.bf16.mxu1 %v13497_v10  ;;  %v19460_v10 = vld [vmem:[#allocation58_spill] sm:$0xff] }
 0x354   :  { %2945 = vmatmul.mubr.bf16.gmra.mrb[220].mxu0 %v19436_v24  ;;  %11502 = vmatprep.mubr.msk.bf16.mxu1 %vm1590_vm2, %v19437_v56  ;;  %v13504_v62 = vld [vmem:[#allocation6 + $0x1a8] ss:$16 sps:$4 sm:$0xff]  }
 0x355   :  { %11551 = vmatprep.mubr.msk.bf16.mxu0 %vm1590_vm2, %v19437_v56  ;;  %8502 = vmatprep.subr.bf16.mxu0 %v13500_v29 }
 0x35b   :  { %2442 = vmatmul.mubr.bf16.gmra.mrb[120].mxu1 %v19438_v30 }
 0x35c   :  { %2955 = vmatmul.mubr.bf16.gmra.mrb[224].mxu0 %v19438_v30  ;;  %11503 = vmatprep.mubr.msk.bf16.mxu1 %vm1590_vm2, %v19439_v44  ;;  %v13495_v30 = vld [vmem:[#allocation6 + $0x180] ss:$16 sps:$4 sm:$0xff]  }
 0x35d   :  { %11552 = vmatprep.mubr.msk.bf16.mxu0 %vm1590_vm2, %v19439_v44  ;;  %v13498_v44 = vld [vmem:[#allocation6 + $0x188] ss:$16 sps:$4 sm:$0xff]   ;;  %6959 = vmatpush1.bf16.msra.mxu1 %v13495_v30 }
 0x35e   :  { %v16836_v24 = vpop.f32.mrb[28].mxu1  ;;  %8503 = vmatpush1.bf16.msra.mxu0 %v13498_v44 }
 0x35f   :  { %19440 = vst [vmem:[#allocation49_spill] sm:$0xff] %v16836_v24  ;;  %v16838_v43 = vpop.f32.mrb[132].mxu0  ;;  %v16840_v19 = vpop.f32.mrb[29].mxu1  ;;  %v19471_v24 = vld [vmem:[#allocation62_spill] sm:$0xff] }
 0x360   :  { %19441 = vst [vmem:[#allocation50_spill] sm:$0xff] %v16838_v43  ;;  %19442 = vst [vmem:[#allocation51_spill] sm:$0xff] %v16840_v19  ;;  %v16842_v35 = vpop.f32.mrb[133].mxu0  ;;  %v16844_v37 = vpop.f32.mrb[30].mxu1 }
 0x361   :  { %19443 = vst [vmem:[#allocation52_spill] sm:$0xff] %v16844_v37  ;;  %v16846_v22 = vpop.f32.mrb[134].mxu0  ;;  %v16848_v46 = vpop.f32.mrb[31].mxu1  ;;  %v13509_v37 = vld [vmem:[#allocation6 + $0x1c4] ss:$16 sps:$4 sm:$0xff]  }
 0x362   :  { %19444 = vst [vmem:[#allocation213_spill] sm:$0xff] %v16846_v22  ;;  %19445 = vst [vmem:[#allocation214_spill] sm:$0xff] %v16848_v46  ;;  %v16850_v56 = vpop.f32.mrb[135].mxu0 }
 0x363   :  { %19446 = vst [vmem:[#allocation215_spill] sm:$0xff] %v16850_v56  ;;  %2452 = vmatmul.mubr.bf16.gmra.mrb[124].mxu1 %v19447_v16 }
 0x364   :  { %2965 = vmatmul.mubr.bf16.gmra.mrb[228].mxu0 %v19447_v16  ;;  %11504 = vmatprep.mubr.msk.bf16.mxu1 %vm1590_vm2, %v19448_v1 }
 0x365   :  { %11553 = vmatprep.mubr.msk.bf16.mxu0 %vm1590_vm2, %v19448_v1 }
 0x36b   :  { %2462 = vmatmul.mubr.bf16.gmra.mrb[128].mxu1 %v19449_v49 }
 0x36c   :  { %2975 = vmatmul.mubr.bf16.gmra.mrb[232].mxu0 %v19449_v49  ;;  %11505 = vmatprep.mubr.msk.bf16.mxu1 %vm1590_vm2, %v19450_v15 }
 0x36d   :  { %11554 = vmatprep.mubr.msk.bf16.mxu0 %vm1590_vm2, %v19450_v15  ;;  %v19462_v15 = vld [vmem:[#allocation60_spill] sm:$0xff] }
 0x36e   :  { %v16864_v16 = vpop.f32.mrb[32].mxu1 }
 0x36f   :  { %19451 = vst [vmem:[#allocation53_spill] sm:$0xff] %v16864_v16  ;;  %v16866_v23 = vpop.f32.mrb[136].mxu0  ;;  %v16868_v38 = vpop.f32.mrb[33].mxu1 }
 0x370   :  { %19452 = vst [vmem:[#allocation54_spill] sm:$0xff] %v16866_v23  ;;  %19453 = vst [vmem:[#allocation55_spill] sm:$0xff] %v16868_v38  ;;  %v16870_v1 = vpop.f32.mrb[137].mxu0  ;;  %v16872_v29 = vpop.f32.mrb[34].mxu1  ;;  %v19461_v23 = vld [vmem:[#allocation59_spill] sm:$0xff] }
 0x371   :  { %19454 = vst [vmem:[#allocation56_spill] sm:$0xff] %v16870_v1  ;;  %19455 = vst [vmem:[#allocation216_spill] sm:$0xff] %v16872_v29  ;;  %v16876_v49 = vpop.f32.mrb[138].mxu0  ;;  %v16878_v30 = vpop.f32.mrb[35].mxu1 }
 0x372   :  { %19456 = vst [vmem:[#allocation217_spill] sm:$0xff] %v16876_v49  ;;  %19457 = vst [vmem:[#allocation218_spill] sm:$0xff] %v16878_v30  ;;  %v16882_v44 = vpop.f32.mrb[139].mxu0  ;;  %v13503_v49 = vld [vmem:[#allocation6 + $0x1a4] ss:$16 sps:$4 sm:$0xff]  }
 0x373   :  { %19458 = vst [vmem:[#allocation219_spill] sm:$0xff] %v16882_v44  ;;  %2472 = vmatmul.mubr.bf16.gmra.mrb[132].mxu1 %v19459_v34  ;;  %6960 = vmatprep.subr.bf16.mxu1 %v13503_v49  ;;  %v13510_v30 = vld [vmem:[#allocation6 + $0x1c8] ss:$16 sps:$4 sm:$0xff]  }
 0x374   :  { %2985 = vmatmul.mubr.bf16.gmra.mrb[236].mxu0 %v19459_v34  ;;  %11506 = vmatprep.mubr.msk.bf16.mxu1 %vm1590_vm2, %v19460_v10  ;;  %v13506_v34 = vld [vmem:[#allocation6 + $0x1ac] ss:$16 sps:$4 sm:$0xff]  }
 0x375   :  { %11555 = vmatprep.mubr.msk.bf16.mxu0 %vm1590_vm2, %v19460_v10  ;;  %8504 = vmatprep.subr.bf16.mxu0 %v13506_v34  ;;  %v19472_v34 = vld [vmem:[#allocation63_spill] sm:$0xff] }
 0x376   :  { %6961 = vmatpush1.bf16.msra.mxu1 %v13501_v26  ;;  %8505 = vmatpush1.bf16.msra.mxu0 %v13504_v62  ;;  %v19473_v62 = vld [vmem:[#allocation65_spill] sm:$0xff] }
 0x377   :  { %6962 = vmatprep.subr.bf16.mxu1 %v13509_v37  ;;  %v19143_v37 = vsub.s32 1, %v16706_v12 }
 0x37b   :  { %2482 = vmatmul.mubr.bf16.gmra.mrb[136].mxu1 %v19461_v23 }
 0x37c   :  { %2995 = vmatmul.mubr.bf16.gmra.mrb[240].mxu0 %v19461_v23  ;;  %11507 = vmatprep.mubr.msk.bf16.mxu1 %vm1590_vm2, %v19462_v15 }
 0x37d   :  { %11556 = vmatprep.mubr.msk.bf16.mxu0 %vm1590_vm2, %v19462_v15 }
 0x37e   :  { %v16900_v39 = vpop.f32.mrb[36].mxu1 }
 0x37f   :  { %19463 = vst [vmem:[#allocation57_spill] sm:$0xff] %v16900_v39  ;;  %v16902_v44 = vpop.f32.mrb[140].mxu0  ;;  %v16904_v10 = vpop.f32.mrb[37].mxu1  ;;  %v19470_v39 = vld [vmem:[#allocation61_spill] sm:$0xff] }
 0x380   :  { %19464 = vst [vmem:[#allocation58_spill] sm:$0xff] %v16902_v44  ;;  %19465 = vst [vmem:[#allocation59_spill] sm:$0xff] %v16904_v10  ;;  %v16908_v20 = vpop.f32.mrb[141].mxu0  ;;  %v16910_v58 = vpop.f32.mrb[38].mxu1  ;;  %v19482_v10 = vld [vmem:[#allocation68_spill] sm:$0xff] }
 0x381   :  { %19466 = vst [vmem:[#allocation60_spill] sm:$0xff] %v16910_v58  ;;  %v16916_v1 = vpop.f32.mrb[142].mxu0  ;;  %v16918_v27 = vpop.f32.mrb[39].mxu1 }
 0x382   :  { %19467 = vst [vmem:[#allocation220_spill] sm:$0xff] %v16916_v1  ;;  %19468 = vst [vmem:[#allocation221_spill] sm:$0xff] %v16918_v27  ;;  %v16924_v23 = vpop.f32.mrb[143].mxu0 }
 0x383   :  { %19469 = vst [vmem:[#allocation222_spill] sm:$0xff] %v16924_v23  ;;  %2492 = vmatmul.mubr.bf16.gmra.mrb[140].mxu1 %v19470_v39 }
 0x384   :  { %3005 = vmatmul.mubr.bf16.gmra.mrb[244].mxu0 %v19470_v39  ;;  %11508 = vmatprep.mubr.msk.bf16.mxu1 %vm1590_vm2, %v19471_v24 }
 0x385   :  { %11557 = vmatprep.mubr.msk.bf16.mxu0 %vm1590_vm2, %v19471_v24 }
 0x38b   :  { %2502 = vmatmul.mubr.bf16.gmra.mrb[144].mxu1 %v19472_v34 }
 0x38c   :  { %3015 = vmatmul.mubr.bf16.gmra.mrb[248].mxu0 %v19472_v34  ;;  %11509 = vmatprep.mubr.msk.bf16.mxu1 %vm1590_vm2, %v19473_v62 }
 0x38d   :  { %11558 = vmatprep.mubr.msk.bf16.mxu0 %vm1590_vm2, %v19473_v62 }
 0x38e   :  { %v16944_v15 = vpop.f32.mrb[40].mxu1 }
 0x38f   :  { %19474 = vst [vmem:[#allocation61_spill] sm:$0xff] %v16944_v15  ;;  %v16946_v49 = vpop.f32.mrb[144].mxu0  ;;  %v16948_v39 = vpop.f32.mrb[41].mxu1 }
 0x390   :  { %19475 = vst [vmem:[#allocation62_spill] sm:$0xff] %v16946_v49  ;;  %19476 = vst [vmem:[#allocation63_spill] sm:$0xff] %v16948_v39  ;;  %v16952_v24 = vpop.f32.mrb[145].mxu0  ;;  %v16954_v58 = vpop.f32.mrb[42].mxu1 }
 0x391   :  { %19477 = vst [vmem:[#allocation65_spill] sm:$0xff] %v16952_v24  ;;  %19478 = vst [vmem:[#allocation223_spill] sm:$0xff] %v16954_v58  ;;  %v16960_v62 = vpop.f32.mrb[146].mxu0  ;;  %v16962_v27 = vpop.f32.mrb[43].mxu1  ;;  %v17015_v24 = vrot.slane %v16708_v42, %v19143_v37 }
 0x392   :  { %19479 = vst [vmem:[#allocation224_spill] sm:$0xff] %v16960_v62  ;;  %19480 = vst [vmem:[#allocation225_spill] sm:$0xff] %v16962_v27  ;;  %v16968_v15 = vpop.f32.mrb[147].mxu0 }
 0x393   :  { %19481 = vst [vmem:[#allocation226_spill] sm:$0xff] %v16968_v15  ;;  %2512 = vmatmul.mubr.bf16.gmra.mrb[148].mxu1 %v19482_v10 }
 0x394   :  { %3025 = vmatmul.mubr.bf16.gmra.mrb[252].mxu0 %v19482_v10  ;;  %11510 = vmatprep.mubr.msk.bf16.mxu1 %vm1590_vm2, %v15958_v36  ;;  %v13507_v10 = vld [vmem:[#allocation6 + $0x1c0] ss:$16 sps:$4 sm:$0xff]  }
 0x395   :  { %11559 = vmatprep.mubr.msk.bf16.mxu0 %vm1590_vm2, %v15958_v36  ;;  %v13512_v36 = vld [vmem:[#allocation6 + $0x1cc] ss:$16 sps:$4 sm:$0xff]   ;;  %6963 = vmatpush1.bf16.msra.mxu1 %v13507_v10  ;;  %v19146_v10 = vsub.s32 0, %v16706_v12 }
 0x396   :  { %v2253_v26 = vpop.f32.mrb[44].mxu1  ;;  %8506 = vmatprep.subr.bf16.mxu0 %v13512_v36 }
 0x397   :  { %v2766_v46 = vpop.f32.mrb[148].mxu0  ;;  %v2255_v58 = vpop.f32.mrb[45].mxu1  ;;  %8507 = vmatpush1.bf16.msra.mxu0 %v13510_v30  ;;  %v17020_v1 = vrot.slane %v16708_v42, %v19146_v10 }
 0x398   :  { %v2768_v16 = vpop.f32.mrb[149].mxu0  ;;  %v2257_v29 = vpop.f32.mrb[46].mxu1 }
 0x399   :  { %v2770_v39 = vpop.f32.mrb[150].mxu0  ;;  %v2259_v34 = vpop.f32.mrb[47].mxu1 }
 0x39a   :  { %v2772_v27 = vpop.f32.mrb[151].mxu0 }
 0x39b   :  { %2522 = vmatmul.mubr.bf16.gmra.mrb[152].mxu1 %v15978_v51 }
 0x39c   :  { %3035 = vmatmul.mubr.bf16.gmra.mrb[0].mxu0 %v15978_v51  ;;  %11511 = vmatprep.mubr.msk.bf16.mxu1 %vm1590_vm2, %v16035_v61 }
 0x39d   :  { %11560 = vmatprep.mubr.msk.bf16.mxu0 %vm1590_vm2, %v16035_v61 }
 0x39e   :  { %v16988_v38 = vpop.f32.mrb[48].mxu1 }
 0x39f   :  { %v16990_v19 = vpop.f32.mrb[152].mxu0  ;;  %v16992_v57 = vpop.f32.mrb[49].mxu1 }
 0x3a0   :  { %v16994_v51 = vpop.f32.mrb[153].mxu0  ;;  %v16996_v62 = vpop.f32.mrb[50].mxu1 }
 0x3a1   :  { %v16998_v0 = vpop.f32.mrb[154].mxu0  ;;  %v17000_v15 = vpop.f32.mrb[51].mxu1 }
 0x3a2   :  { %v17002_v61 = vpop.f32.mrb[155].mxu0 }
 0x3a3   :  { %2532 = vmatmul.mubr.bf16.gmra.mrb[156].mxu1 %v16053_v33 }
 0x3a4   :  { %3045 = vmatmul.mubr.bf16.gmra.mrb[4].mxu0 %v16053_v33  ;;  %11512 = vmatprep.mubr.msk.bf16.mxu1 %vm1590_vm2, %v16102_v53 }
 0x3a5   :  { %11561 = vmatprep.mubr.msk.bf16.mxu0 %vm1590_vm2, %v16102_v53 }
 0x3a6   :  { %v2273_v30 = vpop.f32.mrb[52].mxu1 }
 0x3a7   :  { %v2786_v36 = vpop.f32.mrb[156].mxu0  ;;  %v2275_v59 = vpop.f32.mrb[53].mxu1  ;;  %v3248_v49 = vmax.f32 %v2253_v26, %v2273_v30  ;;  %v19484_v30 = vmax.f32 %v15883_v21, %v15951_v45 }
 0x3a8   :  { %v3250_v9 = vmax.f32 %v2766_v46, %v2786_v36  ;;  %v3249_v33 = vmax.f32 %v2255_v58, %v2275_v59  ;;  %v2788_v22 = vpop.f32.mrb[157].mxu0  ;;  %v2277_v23 = vpop.f32.mrb[54].mxu1  ;;  %v19483_v46 = vmax.f32 %v15890_v14, %v15960_v25  ;;  %v19486_v25 = vld [vmem:[#allocation67_spill] sm:$0xff] }
 0x3a9   :  { %v3251_v56 = vmax.f32 %v2768_v16, %v2788_v22  ;;  %v2790_v53 = vpop.f32.mrb[158].mxu0  ;;  %v2279_v44 = vpop.f32.mrb[55].mxu1  ;;  %v3254_v43 = vmax.f32 %v2257_v29, %v2277_v23  ;;  %v19485_v29 = vmax.f32 %v15911_v7, %v15985_v50 }
 0x3aa   :  { %v3535_v26 = vmax.f32 %v19483_v46, %v3250_v9  ;;  %v3534_v36 = vmax.f32 %v19484_v30, %v3249_v33  ;;  %v3256_v59 = vmax.f32 %v2770_v39, %v2790_v53  ;;  %v3255_v58 = vmax.f32 %v2259_v34, %v2279_v44  ;;  %v2792_v37 = vpop.f32.mrb[159].mxu0  ;;  %v19487_v9 = vld [vmem:[#allocation74_spill] sm:$0xff] }
 0x3ab   :  { %v3536_v12 = vmax.f32 %v3248_v49, %v3251_v56  ;;  %v3257_v42 = vmax.f32 %v2772_v27, %v2792_v37  ;;  %2542 = vmatmul.mubr.bf16.gmra.mrb[160].mxu1 %v16120_v47  ;;  %v19488_v23 = vmax.f32 %v19486_v25, %v19487_v9  ;;  %v19490_v9 = vld [vmem:[#allocation103_spill] sm:$0xff] }
 0x3ac   :  { %v3695_v22 = vadd.f32 %v17015_v24, %v3535_v26  ;;  %v3694_v16 = vadd.f32 %v17020_v1, %v3534_v36  ;;  %v3538_v14 = vmax.f32 %v19485_v29, %v3256_v59  ;;  %3055 = vmatmul.mubr.bf16.gmra.mrb[8].mxu0 %v16120_v47  ;;  %11513 = vmatprep.mubr.msk.bf16.mxu1 %vm1590_vm2, %v16158_v2 }
 0x3ad   :  { %v3537_v21 = vmax.f32 %v19488_v23, %v3255_v58  ;;  %v3696_v45 = vadd.f32 %v16716_v52, %v3536_v12  ;;  %v3539_v56 = vmax.f32 %v3254_v43, %v3257_v42  ;;  %11562 = vmatprep.mubr.msk.bf16.mxu0 %vm1590_vm2, %v16158_v2  ;;  %v13513_v23 = vld [vmem:[#allocation6 + $0x1e0] ss:$16 sps:$4 sm:$0xff]  }
 0x3ae   :  { %v3698_v27 = vadd.f32 %v17015_v24, %v3538_v14  ;;  %v2283_v50 = vpop.f32.mrb[56].mxu1  ;;  %v3839_v44 = vmax.f32 %v3695_v22, 0.0  ;;  %v3838_v49 = vmax.f32 %v3694_v16, 0.0  ;;  %v19489_v22 = vmax.f32 %v15926_v13, %v16004_v5  ;;  %v19491_v5 = vld [vmem:[#allocation71_spill] sm:$0xff] }
 0x3af   :  { %v3697_v7 = vadd.f32 %v17020_v1, %v3537_v21  ;;  %v3699_v39 = vadd.f32 %v16716_v52, %v3539_v56  ;;  %v2796_v34 = vpop.f32.mrb[160].mxu0  ;;  %v2285_v47 = vpop.f32.mrb[57].mxu1  ;;  %v3260_v12 = vmax.f32 %v16988_v38, %v2283_v50  ;;  %v3840_v26 = vmax.f32 %v3696_v45, 0.0  ;;  %v13516_v21 = vld [vmem:[#allocation6 + $0x1e8] ss:$16 sps:$4 sm:$0xff]  }
 0x3b0   :  { %v3842_v43 = vmax.f32 %v3698_v27, 0.0  ;;  %v3262_v33 = vmax.f32 %v16990_v19, %v2796_v34  ;;  %v3261_v53 = vmax.f32 %v16992_v57, %v2285_v47  ;;  %v2798_v2 = vpop.f32.mrb[161].mxu0  ;;  %v2287_v46 = vpop.f32.mrb[58].mxu1  ;;  %v13518_v27 = vld [vmem:[#allocation6 + $0x1ec] ss:$16 sps:$4 sm:$0xff]   ;;  %v19497_v34 = vld [vmem:[#allocation70_spill] sm:$0xff] }
 0x3b1   :  { %v3841_v37 = vmax.f32 %v3697_v7, 0.0  ;;  %v3843_v30 = vmax.f32 %v3699_v39, 0.0  ;;  %v3263_v36 = vmax.f32 %v16994_v51, %v2798_v2  ;;  %v2800_v59 = vpop.f32.mrb[162].mxu0  ;;  %v2289_v58 = vpop.f32.mrb[59].mxu1  ;;  %v3266_v42 = vmax.f32 %v16996_v62, %v2287_v46  ;;  %v13515_v62 = vld [vmem:[#allocation6 + $0x1e4] ss:$16 sps:$4 sm:$0xff]   ;;  %8508 = vmatprep.subr.bf16.mxu0 %v13518_v27 }
 0x3b2   :  { %v3541_v38 = vmax.f32 %v19489_v22, %v3262_v33  ;;  %v3268_v16 = vmax.f32 %v16998_v0, %v2800_v59  ;;  %v3267_v19 = vmax.f32 %v17000_v15, %v2289_v58  ;;  %v2802_v29 = vpop.f32.mrb[163].mxu0  ;;  %v17056_v57 = vpack.c.bf16 %v3842_v43, %v3839_v44  ;;  %v19492_v0 = vld [vmem:[#allocation77_spill] sm:$0xff]  ;;  %v19495_v7 = vld [vmem:[#allocation75_spill] sm:$0xff]  ;;  %6964 = vmatprep.subr.bf16.mxu1 %v13515_v62  ;;  %v19498_v47 = vld [vmem:[#allocation76_spill] sm:$0xff] }
 0x3b3   :  { %v17058_v14 = vpack.c.bf16 %v3843_v30, %v3840_v26  ;;  %v3542_v25 = vmax.f32 %v3260_v12, %v3263_v36  ;;  %v3269_v51 = vmax.f32 %v17002_v61, %v2802_v29  ;;  %2552 = vmatmul.mubr.bf16.gmra.mrb[164].mxu1 %v19490_v9  ;;  %v17062_v45 = vpack.c.bf16 %v3841_v37, %v3838_v49  ;;  %v19494_v61 = vld [vmem:[#allocation69_spill] sm:$0xff]  ;;  %v13521_v27 = vld [vmem:[#allocation6 + $0x204] ss:$16 sps:$4 sm:$0xff]  }
 0x3b4   :  { %v3701_v13 = vadd.f32 %v17015_v24, %v3541_v38  ;;  %v19493_v15 = vmax.f32 %v19491_v5, %v19492_v0  ;;  %3065 = vmatmul.mubr.bf16.gmra.mrb[12].mxu0 %v19490_v9  ;;  %11514 = vmatprep.mubr.msk.bf16.mxu1 %vm1590_vm2, %v16202_v54  ;;  %v19496_v50 = vmax.f32 %v19494_v61, %v19495_v7 }
 0x3b5   :  { %v3702_v39 = vadd.f32 %v16716_v52, %v3542_v25  ;;  %v3545_v49 = vmax.f32 %v3266_v42, %v3269_v51  ;;  %11563 = vmatprep.mubr.msk.bf16.mxu0 %vm1590_vm2, %v16202_v54  ;;  %v19499_v12 = vmax.f32 %v19497_v34, %v19498_v47  ;;  %6965 = vmatpush1.bf16.msra.mxu1 %v13513_v23 }
 0x3b6   :  { %v3544_v56 = vmax.f32 %v19493_v15, %v3268_v16  ;;  %v3540_v44 = vmax.f32 %v19496_v50, %v3261_v53  ;;  %v2293_v33 = vpop.f32.mrb[60].mxu1  ;;  %8509 = vmatpush1.bf16.msra.mxu0 %v13516_v21  ;;  %v3845_v54 = vmax.f32 %v3701_v13, 0.0  ;;  %7127 = vmatprep.subr.bf16.mxu1 %v13521_v27 }
 0x3b7   :  { %v3543_v43 = vmax.f32 %v19499_v12, %v3267_v19  ;;  %v3705_v53 = vadd.f32 %v16716_v52, %v3545_v49  ;;  %v2806_v46 = vpop.f32.mrb[164].mxu0  ;;  %v2295_v26 = vpop.f32.mrb[61].mxu1  ;;  %v3846_v42 = vmax.f32 %v3702_v39, 0.0 }
 0x3b8   :  { %v3704_v37 = vadd.f32 %v17015_v24, %v3544_v56  ;;  %v3700_v2 = vadd.f32 %v17020_v1, %v3540_v44  ;;  %v2808_v59 = vpop.f32.mrb[165].mxu0  ;;  %v2297_v58 = vpop.f32.mrb[62].mxu1 }
 0x3b9   :  { %v3703_v30 = vadd.f32 %v17020_v1, %v3543_v43  ;;  %v3849_v22 = vmax.f32 %v3705_v53, 0.0  ;;  %v2810_v38 = vpop.f32.mrb[166].mxu0  ;;  %v2299_v16 = vpop.f32.mrb[63].mxu1  ;;  %v19501_v53 = vld [vmem:[#allocation90_spill] sm:$0xff] }
 0x3ba   :  { %v3848_v36 = vmax.f32 %v3704_v37, 0.0  ;;  %v3844_v19 = vmax.f32 %v3700_v2, 0.0  ;;  %v2812_v25 = vpop.f32.mrb[167].mxu0  ;;  %v19500_v2 = vld [vmem:[#allocation80_spill] sm:$0xff] }
 0x3bb   :  { %v3847_v29 = vmax.f32 %v3703_v30, 0.0  ;;  %2562 = vmatmul.mubr.bf16.gmra.mrb[168].mxu1 %v16220_v32  ;;  %v17089_v23 = vpack.c.bf16 %v3849_v22, %v3846_v42  ;;  %v19502_v30 = vmax.f32 %v19500_v2, %v19501_v53 }
 0x3bc   :  { %v17084_v51 = vpack.c.bf16 %v3848_v36, %v3845_v54  ;;  %3075 = vmatmul.mubr.bf16.gmra.mrb[16].mxu0 %v16220_v32  ;;  %11515 = vmatprep.mubr.msk.bf16.mxu1 %vm1590_vm2, %v16258_v60  ;;  %v19503_v36 = vld [vmem:[#allocation78_spill] sm:$0xff] }
 0x3bd   :  { %v17087_v9 = vpack.c.bf16 %v3847_v29, %v3844_v19  ;;  %11564 = vmatprep.mubr.msk.bf16.mxu0 %vm1590_vm2, %v16258_v60  ;;  %v13524_v60 = vld [vmem:[#allocation6 + $0x20c] ss:$16 sps:$4 sm:$0xff]  }
 0x3be   :  { %v17096_v62 = vpop.f32.mrb[64].mxu1  ;;  %8671 = vmatprep.subr.bf16.mxu0 %v13524_v60  ;;  %v19507_v60 = vld [vmem:[#allocation93_spill] sm:$0xff] }
 0x3bf   :  { %v17098_v21 = vpop.f32.mrb[168].mxu0  ;;  %v17100_v13 = vpop.f32.mrb[65].mxu1 }
 0x3c0   :  { %v17102_v5 = vpop.f32.mrb[169].mxu0  ;;  %v17104_v0 = vpop.f32.mrb[66].mxu1 }
 0x3c1   :  { %v17106_v15 = vpop.f32.mrb[170].mxu0  ;;  %v17108_v56 = vpop.f32.mrb[67].mxu1 }
 0x3c2   :  { %v17110_v32 = vpop.f32.mrb[171].mxu0 }
 0x3c3   :  { %2572 = vmatmul.mubr.bf16.gmra.mrb[172].mxu1 %v16274_v6 }
 0x3c4   :  { %3085 = vmatmul.mubr.bf16.gmra.mrb[20].mxu0 %v16274_v6  ;;  %11516 = vmatprep.mubr.msk.bf16.mxu1 %vm1590_vm2, %v16302_v11 }
 0x3c5   :  { %11565 = vmatprep.mubr.msk.bf16.mxu0 %vm1590_vm2, %v16302_v11  ;;  %v19504_v11 = vld [vmem:[#allocation88_spill] sm:$0xff] }
 0x3c6   :  { %v2313_v61 = vpop.f32.mrb[68].mxu1  ;;  %v19505_v42 = vmax.f32 %v19503_v36, %v19504_v11 }
 0x3c7   :  { %v3272_v7 = vmax.f32 %v2293_v33, %v2313_v61  ;;  %v2826_v50 = vpop.f32.mrb[172].mxu0  ;;  %v2315_v44 = vpop.f32.mrb[69].mxu1 }
 0x3c8   :  { %v3274_v39 = vmax.f32 %v2806_v46, %v2826_v50  ;;  %v3273_v49 = vmax.f32 %v2295_v26, %v2315_v44  ;;  %v2828_v34 = vpop.f32.mrb[173].mxu0  ;;  %v2317_v47 = vpop.f32.mrb[70].mxu1  ;;  %v19509_v44 = vld [vmem:[#allocation82_spill] sm:$0xff] }
 0x3c9   :  { %v3275_v12 = vmax.f32 %v2808_v59, %v2828_v34  ;;  %v3278_v43 = vmax.f32 %v2297_v58, %v2317_v47  ;;  %v2830_v37 = vpop.f32.mrb[174].mxu0  ;;  %v2319_v6 = vpop.f32.mrb[71].mxu1  ;;  %v19506_v58 = vld [vmem:[#allocation83_spill] sm:$0xff] }
 0x3ca   :  { %v3547_v54 = vmax.f32 %v19502_v30, %v3274_v39  ;;  %v3546_v22 = vmax.f32 %v19505_v42, %v3273_v49  ;;  %v3280_v19 = vmax.f32 %v2810_v38, %v2830_v37  ;;  %v3279_v33 = vmax.f32 %v2299_v16, %v2319_v6  ;;  %v2832_v29 = vpop.f32.mrb[175].mxu0  ;;  %v19510_v39 = vld [vmem:[#allocation92_spill] sm:$0xff] }
 0x3cb   :  { %v3548_v27 = vmax.f32 %v3272_v7, %v3275_v12  ;;  %v3281_v46 = vmax.f32 %v2812_v25, %v2832_v29  ;;  %2582 = vmatmul.mubr.bf16.gmra.mrb[176].mxu1 %v16320_v55  ;;  %v19508_v61 = vmax.f32 %v19506_v58, %v19507_v60  ;;  %v19511_v34 = vmax.f32 %v19509_v44, %v19510_v39  ;;  %v19516_v60 = vld [vmem:[#allocation84_spill] sm:$0xff] }
 0x3cc   :  { %v3707_v26 = vadd.f32 %v17015_v24, %v3547_v54  ;;  %v3706_v59 = vadd.f32 %v17020_v1, %v3546_v22  ;;  %3095 = vmatmul.mubr.bf16.gmra.mrb[24].mxu0 %v16320_v55  ;;  %11517 = vmatprep.mubr.msk.bf16.mxu1 %vm1590_vm2, %v16358_v63 }
 0x3cd   :  { %v3550_v50 = vmax.f32 %v19508_v61, %v3280_v19  ;;  %v3549_v47 = vmax.f32 %v19511_v34, %v3279_v33  ;;  %v3708_v38 = vadd.f32 %v16716_v52, %v3548_v27  ;;  %v3551_v16 = vmax.f32 %v3278_v43, %v3281_v46  ;;  %11566 = vmatprep.mubr.msk.bf16.mxu0 %vm1590_vm2, %v16358_v63 }
 0x3ce   :  { %v2323_v49 = vpop.f32.mrb[72].mxu1  ;;  %v3851_v12 = vmax.f32 %v3707_v26, 0.0  ;;  %v3850_v37 = vmax.f32 %v3706_v59, 0.0  ;;  %v19514_v26 = vld [vmem:[#allocation95_spill] sm:$0xff] }
 0x3cf   :  { %v3710_v25 = vadd.f32 %v17015_v24, %v3550_v50  ;;  %v3709_v7 = vadd.f32 %v17020_v1, %v3549_v47  ;;  %v3711_v6 = vadd.f32 %v16716_v52, %v3551_v16  ;;  %v3284_v55 = vmax.f32 %v17096_v62, %v2323_v49  ;;  %v2836_v2 = vpop.f32.mrb[176].mxu0  ;;  %v2325_v53 = vpop.f32.mrb[73].mxu1  ;;  %v19513_v62 = vld [vmem:[#allocation85_spill] sm:$0xff]  ;;  %v19519_v16 = vld [vmem:[#allocation87_spill] sm:$0xff] }
 0x3d0   :  { %v3852_v43 = vmax.f32 %v3708_v38, 0.0  ;;  %v3286_v54 = vmax.f32 %v17098_v21, %v2836_v2  ;;  %v3285_v36 = vmax.f32 %v17100_v13, %v2325_v53  ;;  %v2838_v63 = vpop.f32.mrb[177].mxu0  ;;  %v2327_v11 = vpop.f32.mrb[74].mxu1  ;;  %v19515_v59 = vmax.f32 %v19513_v62, %v19514_v26  ;;  %v19517_v21 = vld [vmem:[#allocation94_spill] sm:$0xff] }
 0x3d1   :  { %v3854_v30 = vmax.f32 %v3710_v25, 0.0  ;;  %v3853_v42 = vmax.f32 %v3709_v7, 0.0  ;;  %v3855_v22 = vmax.f32 %v3711_v6, 0.0  ;;  %v3287_v19 = vmax.f32 %v17102_v5, %v2838_v63  ;;  %v2840_v29 = vpop.f32.mrb[178].mxu0  ;;  %v2329_v27 = vpop.f32.mrb[75].mxu1  ;;  %v19520_v25 = vld [vmem:[#allocation97_spill] sm:$0xff] }
 0x3d2   :  { %v3290_v33 = vmax.f32 %v17104_v0, %v2327_v11  ;;  %v3553_v58 = vmax.f32 %v19515_v59, %v3286_v54  ;;  %v19518_v61 = vmax.f32 %v19516_v60, %v19517_v21  ;;  %v3292_v50 = vmax.f32 %v17106_v15, %v2840_v29  ;;  %v2842_v44 = vpop.f32.mrb[179].mxu0 }
 0x3d3   :  { %v17147_v46 = vpack.c.bf16 %v3854_v30, %v3851_v12  ;;  %v17156_v39 = vpack.c.bf16 %v3855_v22, %v3852_v43  ;;  %v3554_v5 = vmax.f32 %v3284_v55, %v3287_v19  ;;  %v3291_v0 = vmax.f32 %v17108_v56, %v2329_v27  ;;  %2592 = vmatmul.mubr.bf16.gmra.mrb[180].mxu1 %v16374_v41  ;;  %v19522_v56 = vld [vmem:[#allocation86_spill] sm:$0xff]  ;;  %v19523_v12 = vld [vmem:[#allocation96_spill] sm:$0xff] }
 0x3d4   :  { %v3552_v13 = vmax.f32 %v19518_v61, %v3285_v36  ;;  %v3293_v34 = vmax.f32 %v17110_v32, %v2842_v44  ;;  %v3713_v47 = vadd.f32 %v17015_v24, %v3553_v58  ;;  %v19521_v7 = vmax.f32 %v19519_v16, %v19520_v25  ;;  %3105 = vmatmul.mubr.bf16.gmra.mrb[28].mxu0 %v16374_v41 }
 0x3d5   :  { %19512 = vst [vmem:[#allocation68_spill] sm:$0xff] %v17147_v46  ;;  %11518 = vmatprep.mubr.msk.bf16.mxu1 %vm1590_vm2, %v16402_v18  ;;  %v3714_v15 = vadd.f32 %v16716_v52, %v3554_v5  ;;  %v19524_v32 = vmax.f32 %v19522_v56, %v19523_v12  ;;  %11567 = vmatprep.mubr.msk.bf16.mxu0 %vm1590_vm2, %v16402_v18 }
 0x3d6   :  { %v3712_v38 = vadd.f32 %v17020_v1, %v3552_v13  ;;  %v3556_v49 = vmax.f32 %v19521_v7, %v3292_v50  ;;  %v3557_v55 = vmax.f32 %v3290_v33, %v3293_v34  ;;  %v17175_v2 = vpack.c.bf16 %v3853_v42, %v3850_v37  ;;  %v2333_v43 = vpop.f32.mrb[76].mxu1 }
 0x3d7   :  { %v3555_v6 = vmax.f32 %v19524_v32, %v3291_v0  ;;  %v2846_v54 = vpop.f32.mrb[180].mxu0  ;;  %v2335_v36 = vpop.f32.mrb[77].mxu1  ;;  %v3857_v63 = vmax.f32 %v3713_v47, 0.0  ;;  %v3858_v33 = vmax.f32 %v3714_v15, 0.0 }
 0x3d8   :  { %v3716_v53 = vadd.f32 %v17015_v24, %v3556_v49  ;;  %v3717_v30 = vadd.f32 %v16716_v52, %v3557_v55  ;;  %v2848_v22 = vpop.f32.mrb[181].mxu0  ;;  %v2337_v19 = vpop.f32.mrb[78].mxu1  ;;  %v3856_v29 = vmax.f32 %v3712_v38, 0.0 }
 0x3d9   :  { %v3715_v41 = vadd.f32 %v17020_v1, %v3555_v6  ;;  %v2850_v18 = vpop.f32.mrb[182].mxu0  ;;  %v2339_v37 = vpop.f32.mrb[79].mxu1  ;;  %v19527_v6 = vld [vmem:[#allocation100_spill] sm:$0xff] }
 0x3da   :  { %v3860_v11 = vmax.f32 %v3716_v53, 0.0  ;;  %v3861_v62 = vmax.f32 %v3717_v30, 0.0  ;;  %v2852_v26 = vpop.f32.mrb[183].mxu0  ;;  %v19531_v30 = vld [vmem:[#allocation109_spill] sm:$0xff] }
 0x3db   :  { %v3859_v27 = vmax.f32 %v3715_v41, 0.0  ;;  %2602 = vmatmul.mubr.bf16.gmra.mrb[184].mxu1 %v16420_v17  ;;  %v19530_v41 = vld [vmem:[#allocation98_spill] sm:$0xff] }
 0x3dc   :  { %v17180_v42 = vpack.c.bf16 %v3860_v11, %v3857_v63  ;;  %v17184_v58 = vpack.c.bf16 %v3861_v62, %v3858_v33  ;;  %3115 = vmatmul.mubr.bf16.gmra.mrb[32].mxu0 %v16420_v17  ;;  %11519 = vmatprep.mubr.msk.bf16.mxu1 %vm1590_vm2, %v16458_v3  ;;  %v19532_v63 = vmax.f32 %v19530_v41, %v19531_v30  ;;  %v19534_v62 = vld [vmem:[#allocation104_spill] sm:$0xff] }
 0x3dd   :  { %v17182_v59 = vpack.c.bf16 %v3859_v27, %v3856_v29  ;;  %11568 = vmatprep.mubr.msk.bf16.mxu0 %vm1590_vm2, %v16458_v3  ;;  %v19526_v3 = vld [vmem:[#allocation64_spill] sm:$0xff] }
 0x3de   :  { %19525 = vst [vmem:[#allocation67_spill] sm:$0xff] %v17180_v42  ;;  %v17192_v60 = vpop.f32.mrb[80].mxu1 }
 0x3df   :  { %v17194_v21 = vpop.f32.mrb[184].mxu0  ;;  %v17196_v61 = vpop.f32.mrb[81].mxu1 }
 0x3e0   :  { %v17198_v13 = vpop.f32.mrb[185].mxu0  ;;  %v17200_v50 = vpop.f32.mrb[82].mxu1 }
 0x3e1   :  { %v17202_v44 = vpop.f32.mrb[186].mxu0  ;;  %v17204_v5 = vpop.f32.mrb[83].mxu1 }
 0x3e2   :  { %v17206_v17 = vpop.f32.mrb[187].mxu0 }
 0x3e3   :  { %2612 = vmatmul.mubr.bf16.gmra.mrb[188].mxu1 %v16474_v31 }
 0x3e4   :  { %3125 = vmatmul.mubr.bf16.gmra.mrb[36].mxu0 %v16474_v31  ;;  %11520 = vmatprep.mubr.msk.bf16.mxu1 %vm1590_vm2, %v19526_v3  ;;  %v19528_v31 = vld [vmem:[#allocation111_spill] sm:$0xff] }
 0x3e5   :  { %11569 = vmatprep.mubr.msk.bf16.mxu0 %vm1590_vm2, %v19526_v3  ;;  %v19529_v55 = vmax.f32 %v19527_v6, %v19528_v31  ;;  %v19535_v3 = vld [vmem:[#allocation114_spill] sm:$0xff] }
 0x3e6   :  { %v2353_v0 = vpop.f32.mrb[84].mxu1 }
 0x3e7   :  { %v3296_v34 = vmax.f32 %v2333_v43, %v2353_v0  ;;  %v2866_v47 = vpop.f32.mrb[188].mxu0  ;;  %v2355_v38 = vpop.f32.mrb[85].mxu1  ;;  %v19536_v0 = vmax.f32 %v19534_v62, %v19535_v3  ;;  %v19542_v62 = vld [vmem:[#allocation106_spill] sm:$0xff]  ;;  %v19543_v3 = vld [vmem:[#allocation116_spill] sm:$0xff] }
 0x3e8   :  { %v3298_v16 = vmax.f32 %v2846_v54, %v2866_v47  ;;  %v3297_v25 = vmax.f32 %v2335_v36, %v2355_v38  ;;  %v2868_v7 = vpop.f32.mrb[189].mxu0  ;;  %v2357_v49 = vpop.f32.mrb[86].mxu1  ;;  %v19533_v36 = vld [vmem:[#allocation66_spill] sm:$0xff] }
 0x3e9   :  { %v3299_v15 = vmax.f32 %v2848_v22, %v2868_v7  ;;  %v3302_v56 = vmax.f32 %v2337_v19, %v2357_v49  ;;  %v2870_v12 = vpop.f32.mrb[190].mxu0  ;;  %v2359_v32 = vpop.f32.mrb[87].mxu1  ;;  %v19537_v38 = vld [vmem:[#allocation102_spill] sm:$0xff] }
 0x3ea   :  { %v3559_v53 = vmax.f32 %v19529_v55, %v3298_v16  ;;  %v3558_v11 = vmax.f32 %v19532_v63, %v3297_v25  ;;  %v3304_v29 = vmax.f32 %v2850_v18, %v2870_v12  ;;  %v3303_v43 = vmax.f32 %v2339_v37, %v2359_v32  ;;  %v2872_v33 = vpop.f32.mrb[191].mxu0  ;;  %v19538_v16 = vld [vmem:[#allocation113_spill] sm:$0xff] }
 0x3eb   :  { %v3560_v27 = vmax.f32 %v3296_v34, %v3299_v15  ;;  %v3305_v54 = vmax.f32 %v2852_v26, %v2872_v33  ;;  %2622 = vmatmul.mubr.bf16.gmra.mrb[192].mxu1 %v19533_v36  ;;  %v19539_v7 = vmax.f32 %v19537_v38, %v19538_v16  ;;  %v19540_v26 = vld [vmem:[#allocation72_spill] sm:$0xff] }
 0x3ec   :  { %v3719_v22 = vadd.f32 %v17015_v24, %v3559_v53  ;;  %v3718_v19 = vadd.f32 %v17020_v1, %v3558_v11  ;;  %v3562_v47 = vmax.f32 %v19536_v0, %v3304_v29  ;;  %3135 = vmatmul.mubr.bf16.gmra.mrb[40].mxu0 %v19533_v36  ;;  %11521 = vmatprep.mubr.msk.bf16.mxu1 %vm1590_vm2, %v19540_v26 }
 0x3ed   :  { %v3561_v49 = vmax.f32 %v19539_v7, %v3303_v43  ;;  %v3720_v18 = vadd.f32 %v16716_v52, %v3560_v27  ;;  %v3563_v37 = vmax.f32 %v3302_v56, %v3305_v54  ;;  %11570 = vmatprep.mubr.msk.bf16.mxu0 %vm1590_vm2, %v19540_v26  ;;  %v19544_v0 = vmax.f32 %v19542_v62, %v19543_v3 }
 0x3ee   :  { %v3722_v34 = vadd.f32 %v17015_v24, %v3562_v47  ;;  %v2363_v15 = vpop.f32.mrb[88].mxu1  ;;  %v3863_v12 = vmax.f32 %v3719_v22, 0.0  ;;  %v3862_v32 = vmax.f32 %v3718_v19, 0.0  ;;  %v19545_v47 = vld [vmem:[#allocation105_spill] sm:$0xff] }
 0x3ef   :  { %v3721_v25 = vadd.f32 %v17020_v1, %v3561_v49  ;;  %v3723_v6 = vadd.f32 %v16716_v52, %v3563_v37  ;;  %v3308_v31 = vmax.f32 %v17192_v60, %v2363_v15  ;;  %v2876_v55 = vpop.f32.mrb[192].mxu0  ;;  %v2365_v53 = vpop.f32.mrb[89].mxu1  ;;  %v3864_v43 = vmax.f32 %v3720_v18, 0.0  ;;  %v19549_v37 = vld [vmem:[#allocation73_spill] sm:$0xff] }
 0x3f0   :  { %v3866_v56 = vmax.f32 %v3722_v34, 0.0  ;;  %v3310_v30 = vmax.f32 %v17194_v21, %v2876_v55  ;;  %v3309_v63 = vmax.f32 %v17196_v61, %v2365_v53  ;;  %v2878_v11 = vpop.f32.mrb[193].mxu0  ;;  %v2367_v29 = vpop.f32.mrb[90].mxu1  ;;  %v19546_v61 = vld [vmem:[#allocation115_spill] sm:$0xff]  ;;  %v19555_v55 = vld [vmem:[#allocation117_spill] sm:$0xff] }
 0x3f1   :  { %v3865_v41 = vmax.f32 %v3721_v25, 0.0  ;;  %v3867_v33 = vmax.f32 %v3723_v6, 0.0  ;;  %v3311_v27 = vmax.f32 %v17198_v13, %v2878_v11  ;;  %v3314_v54 = vmax.f32 %v17200_v50, %v2367_v29  ;;  %v2880_v36 = vpop.f32.mrb[194].mxu0  ;;  %v2369_v22 = vpop.f32.mrb[91].mxu1  ;;  %v19550_v34 = vld [vmem:[#allocation79_spill] sm:$0xff] }
 0x3f2   :  { %v17243_v19 = vpack.c.bf16 %v3866_v56, %v3863_v12  ;;  %v3565_v21 = vmax.f32 %v19544_v0, %v3310_v30  ;;  %v19547_v38 = vmax.f32 %v19545_v47, %v19546_v61  ;;  %v2882_v7 = vpop.f32.mrb[195].mxu0  ;;  %v3316_v50 = vmax.f32 %v17202_v44, %v2880_v36  ;;  %v19551_v12 = vld [vmem:[#allocation108_spill] sm:$0xff]  ;;  %v19554_v44 = vld [vmem:[#allocation107_spill] sm:$0xff] }
 0x3f3   :  { %v17245_v60 = vpack.c.bf16 %v3865_v41, %v3862_v32  ;;  %v17253_v49 = vpack.c.bf16 %v3867_v33, %v3864_v43  ;;  %v3566_v13 = vmax.f32 %v3308_v31, %v3311_v27  ;;  %v3315_v18 = vmax.f32 %v17204_v5, %v2369_v22  ;;  %2632 = vmatmul.mubr.bf16.gmra.mrb[196].mxu1 %v19549_v37  ;;  %v19552_v32 = vld [vmem:[#allocation118_spill] sm:$0xff] }
 0x3f4   :  { %19541 = vst [vmem:[#allocation74_spill] sm:$0xff] %v17243_v19  ;;  %v3564_v16 = vmax.f32 %v19547_v38, %v3309_v63  ;;  %v3317_v26 = vmax.f32 %v17206_v17, %v2882_v7  ;;  %3145 = vmatmul.mubr.bf16.gmra.mrb[44].mxu0 %v19549_v37  ;;  %11522 = vmatprep.mubr.msk.bf16.mxu1 %vm1590_vm2, %v19550_v34  ;;  %v19558_v7 = vld [vmem:[#allocation81_spill] sm:$0xff] }
 0x3f5   :  { %19548 = vst [vmem:[#allocation103_spill] sm:$0xff] %v17253_v49  ;;  %v3725_v25 = vadd.f32 %v17015_v24, %v3565_v21  ;;  %v19553_v6 = vmax.f32 %v19551_v12, %v19552_v32  ;;  %v19556_v5 = vmax.f32 %v19554_v44, %v19555_v55  ;;  %11571 = vmatprep.mubr.msk.bf16.mxu0 %vm1590_vm2, %v19550_v34 }
 0x3f6   :  { %v3724_v15 = vadd.f32 %v17020_v1, %v3564_v16  ;;  %v3726_v17 = vadd.f32 %v16716_v52, %v3566_v13  ;;  %v3569_v56 = vmax.f32 %v3314_v54, %v3317_v26  ;;  %v2373_v41 = vpop.f32.mrb[92].mxu1 }
 0x3f7   :  { %v3568_v31 = vmax.f32 %v19553_v6, %v3316_v50  ;;  %v3567_v53 = vmax.f32 %v19556_v5, %v3315_v18  ;;  %v2886_v11 = vpop.f32.mrb[196].mxu0  ;;  %v2375_v29 = vpop.f32.mrb[93].mxu1  ;;  %v3869_v36 = vmax.f32 %v3725_v25, 0.0  ;;  %v19560_v50 = vld [vmem:[#allocation89_spill] sm:$0xff]  ;;  %v19561_v6 = vld [vmem:[#allocation91_spill] sm:$0xff] }
 0x3f8   :  { %v3729_v43 = vadd.f32 %v16716_v52, %v3569_v56  ;;  %v2888_v33 = vpop.f32.mrb[197].mxu0  ;;  %v2377_v27 = vpop.f32.mrb[94].mxu1  ;;  %v3868_v22 = vmax.f32 %v3724_v15, 0.0  ;;  %v3870_v47 = vmax.f32 %v3726_v17, 0.0 }
 0x3f9   :  { %v3728_v30 = vadd.f32 %v17015_v24, %v3568_v31  ;;  %v3727_v63 = vadd.f32 %v17020_v1, %v3567_v53  ;;  %v2890_v0 = vpop.f32.mrb[198].mxu0  ;;  %v2379_v21 = vpop.f32.mrb[95].mxu1  ;;  %v19562_v31 = vld [vmem:[#allocation99_spill] sm:$0xff] }
 0x3fa   :  { %v3873_v61 = vmax.f32 %v3729_v43, 0.0  ;;  %v2892_v54 = vpop.f32.mrb[199].mxu0 }
 0x3fb   :  { %v3872_v62 = vmax.f32 %v3728_v30, 0.0  ;;  %v3871_v3 = vmax.f32 %v3727_v63, 0.0  ;;  %2642 = vmatmul.mubr.bf16.gmra.mrb[200].mxu1 %v19558_v7 }
 0x3fc   :  { %v17281_v13 = vpack.c.bf16 %v3873_v61, %v3870_v47  ;;  %3155 = vmatmul.mubr.bf16.gmra.mrb[48].mxu0 %v19558_v7  ;;  %11523 = vmatprep.mubr.msk.bf16.mxu1 %vm1590_vm2, %v19560_v50  ;;  %v19564_v47 = vld [vmem:[#allocation131_spill] sm:$0xff] }
 0x3fd   :  { %v17276_v38 = vpack.c.bf16 %v3872_v62, %v3869_v36  ;;  %v17278_v16 = vpack.c.bf16 %v3871_v3, %v3868_v22  ;;  %11572 = vmatprep.mubr.msk.bf16.mxu0 %vm1590_vm2, %v19560_v50  ;;  %v19563_v3 = vld [vmem:[#allocation121_spill] sm:$0xff]  ;;  %v19566_v50 = vld [vmem:[#allocation119_spill] sm:$0xff] }
 0x3fe   :  { %19559 = vst [vmem:[#allocation77_spill] sm:$0xff] %v17281_v13  ;;  %v17288_v18 = vpop.f32.mrb[96].mxu1  ;;  %v19565_v61 = vmax.f32 %v19563_v3, %v19564_v47  ;;  %v19574_v3 = vld [vmem:[#allocation133_spill] sm:$0xff] }
 0x3ff   :  { %19557 = vst [vmem:[#allocation71_spill] sm:$0xff] %v17276_v38  ;;  %v17290_v37 = vpop.f32.mrb[200].mxu0  ;;  %v17292_v26 = vpop.f32.mrb[97].mxu1 }
 0x400   :  { %v17294_v34 = vpop.f32.mrb[201].mxu0  ;;  %v17296_v25 = vpop.f32.mrb[98].mxu1 }
 0x401   :  { %v17298_v15 = vpop.f32.mrb[202].mxu0  ;;  %v17300_v12 = vpop.f32.mrb[99].mxu1 }
 0x402   :  { %v17302_v32 = vpop.f32.mrb[203].mxu0 }
 0x403   :  { %2652 = vmatmul.mubr.bf16.gmra.mrb[204].mxu1 %v19561_v6 }
 0x404   :  { %3165 = vmatmul.mubr.bf16.gmra.mrb[52].mxu0 %v19561_v6  ;;  %11524 = vmatprep.mubr.msk.bf16.mxu1 %vm1590_vm2, %v19562_v31  ;;  %v19567_v6 = vld [vmem:[#allocation129_spill] sm:$0xff] }
 0x405   :  { %11573 = vmatprep.mubr.msk.bf16.mxu0 %vm1590_vm2, %v19562_v31  ;;  %v19568_v10 = vmax.f32 %v19566_v50, %v19567_v6 }
 0x406   :  { %v2393_v44 = vpop.f32.mrb[100].mxu1 }
 0x407   :  { %v3320_v55 = vmax.f32 %v2373_v41, %v2393_v44  ;;  %v2906_v5 = vpop.f32.mrb[204].mxu0  ;;  %v2395_v53 = vpop.f32.mrb[101].mxu1 }
 0x408   :  { %v3322_v17 = vmax.f32 %v2886_v11, %v2906_v5  ;;  %v3321_v56 = vmax.f32 %v2375_v29, %v2395_v53  ;;  %v2908_v30 = vpop.f32.mrb[205].mxu0  ;;  %v2397_v63 = vpop.f32.mrb[102].mxu1  ;;  %v19569_v29 = vld [vmem:[#allocation101_spill] sm:$0xff]  ;;  %v19570_v5 = vld [vmem:[#allocation124_spill] sm:$0xff]  ;;  %v19571_v53 = vld [vmem:[#allocation134_spill] sm:$0xff] }
 0x409   :  { %v3323_v43 = vmax.f32 %v2888_v33, %v2908_v30  ;;  %v3326_v36 = vmax.f32 %v2377_v27, %v2397_v63  ;;  %v2910_v22 = vpop.f32.mrb[206].mxu0  ;;  %v2399_v62 = vpop.f32.mrb[103].mxu1  ;;  %v19572_v30 = vmax.f32 %v19570_v5, %v19571_v53 }
 0x40a   :  { %v3571_v7 = vmax.f32 %v19565_v61, %v3322_v17  ;;  %v3570_v31 = vmax.f32 %v19568_v10, %v3321_v56  ;;  %v3328_v13 = vmax.f32 %v2890_v0, %v2910_v22  ;;  %v3327_v41 = vmax.f32 %v2379_v21, %v2399_v62  ;;  %v2912_v44 = vpop.f32.mrb[207].mxu0  ;;  %v19573_v17 = vld [vmem:[#allocation123_spill] sm:$0xff]  ;;  %v19576_v21 = vld [vmem:[#allocation110_spill] sm:$0xff] }
 0x40b   :  { %v3572_v49 = vmax.f32 %v3320_v55, %v3323_v43  ;;  %v3329_v11 = vmax.f32 %v2892_v54, %v2912_v44  ;;  %2662 = vmatmul.mubr.bf16.gmra.mrb[208].mxu1 %v19569_v29  ;;  %v19575_v47 = vmax.f32 %v19573_v17, %v19574_v3  ;;  %v19579_v17 = vld [vmem:[#allocation136_spill] sm:$0xff] }
 0x40c   :  { %v3731_v33 = vadd.f32 %v17015_v24, %v3571_v7  ;;  %v3730_v27 = vadd.f32 %v17020_v1, %v3570_v31  ;;  %v3574_v63 = vmax.f32 %v19572_v30, %v3328_v13  ;;  %3175 = vmatmul.mubr.bf16.gmra.mrb[56].mxu0 %v19569_v29  ;;  %11525 = vmatprep.mubr.msk.bf16.mxu1 %vm1590_vm2, %v19576_v21 }
 0x40d   :  { %v3573_v61 = vmax.f32 %v19575_v47, %v3327_v41  ;;  %v3732_v10 = vadd.f32 %v16716_v52, %v3572_v49  ;;  %v3575_v0 = vmax.f32 %v3326_v36, %v3329_v11  ;;  %11574 = vmatprep.mubr.msk.bf16.mxu0 %vm1590_vm2, %v19576_v21  ;;  %v19581_v47 = vld [vmem:[#allocation125_spill] sm:$0xff] }
 0x40e   :  { %v3734_v54 = vadd.f32 %v17015_v24, %v3574_v63  ;;  %v2403_v13 = vpop.f32.mrb[104].mxu1  ;;  %v3875_v56 = vmax.f32 %v3731_v33, 0.0  ;;  %v3874_v43 = vmax.f32 %v3730_v27, 0.0  ;;  %v19578_v63 = vld [vmem:[#allocation126_spill] sm:$0xff] }
 0x40f   :  { %v3733_v55 = vadd.f32 %v17020_v1, %v3573_v61  ;;  %v3735_v22 = vadd.f32 %v16716_v52, %v3575_v0  ;;  %v3332_v62 = vmax.f32 %v17288_v18, %v2403_v13  ;;  %v2916_v7 = vpop.f32.mrb[208].mxu0  ;;  %v2405_v49 = vpop.f32.mrb[105].mxu1  ;;  %v3876_v11 = vmax.f32 %v3732_v10, 0.0 }
 0x410   :  { %v3878_v36 = vmax.f32 %v3734_v54, 0.0  ;;  %v3334_v6 = vmax.f32 %v17290_v37, %v2916_v7  ;;  %v3333_v31 = vmax.f32 %v17292_v26, %v2405_v49  ;;  %v2918_v41 = vpop.f32.mrb[209].mxu0  ;;  %v2407_v44 = vpop.f32.mrb[106].mxu1  ;;  %v19580_v3 = vmax.f32 %v19578_v63, %v19579_v17  ;;  %v19582_v26 = vld [vmem:[#allocation135_spill] sm:$0xff]  ;;  %v19587_v7 = vld [vmem:[#allocation128_spill] sm:$0xff]  ;;  %v19588_v49 = vld [vmem:[#allocation138_spill] sm:$0xff] }
 0x411   :  { %v3877_v50 = vmax.f32 %v3733_v55, 0.0  ;;  %v3879_v29 = vmax.f32 %v3735_v22, 0.0  ;;  %v3335_v5 = vmax.f32 %v17294_v34, %v2918_v41  ;;  %v3338_v33 = vmax.f32 %v17296_v25, %v2407_v44  ;;  %v2920_v27 = vpop.f32.mrb[210].mxu0  ;;  %v2409_v53 = vpop.f32.mrb[107].mxu1  ;;  %v19585_v55 = vld [vmem:[#allocation112_spill] sm:$0xff] }
 0x412   :  { %v17339_v30 = vpack.c.bf16 %v3878_v36, %v3875_v56  ;;  %v3577_v37 = vmax.f32 %v19580_v3, %v3334_v6  ;;  %v19583_v61 = vmax.f32 %v19581_v47, %v19582_v26  ;;  %v2922_v10 = vpop.f32.mrb[211].mxu0  ;;  %v3340_v25 = vmax.f32 %v17298_v15, %v2920_v27  ;;  %v19586_v56 = vld [vmem:[#allocation120_spill] sm:$0xff]  ;;  %v19590_v15 = vld [vmem:[#allocation127_spill] sm:$0xff] }
 0x413   :  { %v17341_v18 = vpack.c.bf16 %v3877_v50, %v3874_v43  ;;  %v17349_v21 = vpack.c.bf16 %v3879_v29, %v3876_v11  ;;  %v3578_v34 = vmax.f32 %v3332_v62, %v3335_v5  ;;  %v3339_v54 = vmax.f32 %v17300_v12, %v2409_v53  ;;  %2672 = vmatmul.mubr.bf16.gmra.mrb[212].mxu1 %v19585_v55  ;;  %v19591_v50 = vld [vmem:[#allocation137_spill] sm:$0xff] }
 0x414   :  { %19577 = vst [vmem:[#allocation69_spill] sm:$0xff] %v17339_v30  ;;  %v3576_v0 = vmax.f32 %v19583_v61, %v3333_v31  ;;  %v3341_v13 = vmax.f32 %v17302_v32, %v2922_v10  ;;  %3185 = vmatmul.mubr.bf16.gmra.mrb[60].mxu0 %v19585_v55  ;;  %11526 = vmatprep.mubr.msk.bf16.mxu1 %vm1590_vm2, %v19586_v56 }
 0x415   :  { %19584 = vst [vmem:[#allocation75_spill] sm:$0xff] %v17349_v21  ;;  %v3737_v43 = vadd.f32 %v17015_v24, %v3577_v37  ;;  %v19589_v62 = vmax.f32 %v19587_v7, %v19588_v49  ;;  %v19592_v12 = vmax.f32 %v19590_v15, %v19591_v50  ;;  %11575 = vmatprep.mubr.msk.bf16.mxu0 %vm1590_vm2, %v19586_v56  ;;  %v19597_v50 = vld [vmem:[#allocation132_spill] sm:$0xff] }
 0x416   :  { %v3736_v22 = vadd.f32 %v17020_v1, %v3576_v0  ;;  %v3738_v32 = vadd.f32 %v16716_v52, %v3578_v34  ;;  %v3581_v31 = vmax.f32 %v3338_v33, %v3341_v13  ;;  %v2413_v41 = vpop.f32.mrb[108].mxu1  ;;  %v19596_v13 = vld [vmem:[#allocation130_spill] sm:$0xff] }
 0x417   :  { %v3580_v36 = vmax.f32 %v19589_v62, %v3340_v25  ;;  %v3579_v6 = vmax.f32 %v19592_v12, %v3339_v54  ;;  %v2926_v29 = vpop.f32.mrb[212].mxu0  ;;  %v2415_v5 = vpop.f32.mrb[109].mxu1  ;;  %v3881_v17 = vmax.f32 %v3737_v43, 0.0  ;;  %v19594_v54 = vld [vmem:[#allocation122_spill] sm:$0xff]  ;;  %v19598_v12 = vld [vmem:[#allocation139_spill] sm:$0xff] }
 0x418   :  { %v3741_v27 = vadd.f32 %v16716_v52, %v3581_v31  ;;  %v2928_v53 = vpop.f32.mrb[213].mxu0  ;;  %v2417_v63 = vpop.f32.mrb[110].mxu1  ;;  %v3880_v3 = vmax.f32 %v3736_v22, 0.0  ;;  %v3882_v0 = vmax.f32 %v3738_v32, 0.0 }
 0x419   :  { %v3740_v44 = vadd.f32 %v17015_v24, %v3580_v36  ;;  %v3739_v11 = vadd.f32 %v17020_v1, %v3579_v6  ;;  %v2930_v26 = vpop.f32.mrb[214].mxu0  ;;  %v2419_v61 = vpop.f32.mrb[111].mxu1 }
 0x41a   :  { %v3885_v10 = vmax.f32 %v3741_v27, 0.0  ;;  %v2932_v33 = vpop.f32.mrb[215].mxu0 }
 0x41b   :  { %v3884_v37 = vmax.f32 %v3740_v44, 0.0  ;;  %v3883_v47 = vmax.f32 %v3739_v11, 0.0  ;;  %2682 = vmatmul.mubr.bf16.gmra.mrb[216].mxu1 %v19594_v54 }
 0x41c   :  { %v17377_v55 = vpack.c.bf16 %v3885_v10, %v3882_v0  ;;  %3195 = vmatmul.mubr.bf16.gmra.mrb[64].mxu0 %v19594_v54  ;;  %11527 = vmatprep.mubr.msk.bf16.mxu1 %vm1590_vm2, %v19596_v13  ;;  %v19599_v54 = vmax.f32 %v16360_v28, %v16404_v40  ;;  %v19604_v40 = vld [vmem:[#allocation141_spill] sm:$0xff] }
 0x41d   :  { %v17372_v34 = vpack.c.bf16 %v3884_v37, %v3881_v17  ;;  %v17374_v25 = vpack.c.bf16 %v3883_v47, %v3880_v3  ;;  %11576 = vmatprep.mubr.msk.bf16.mxu0 %vm1590_vm2, %v19596_v13 }
 0x41e   :  { %19595 = vst [vmem:[#allocation76_spill] sm:$0xff] %v17377_v55  ;;  %v17384_v56 = vpop.f32.mrb[112].mxu1 }
 0x41f   :  { %19593 = vst [vmem:[#allocation70_spill] sm:$0xff] %v17372_v34  ;;  %v17386_v43 = vpop.f32.mrb[216].mxu0  ;;  %v17388_v22 = vpop.f32.mrb[113].mxu1 }
 0x420   :  { %v17390_v7 = vpop.f32.mrb[217].mxu0  ;;  %v17392_v49 = vpop.f32.mrb[114].mxu1 }
 0x421   :  { %v17394_v62 = vpop.f32.mrb[218].mxu0  ;;  %v17396_v36 = vpop.f32.mrb[115].mxu1 }
 0x422   :  { %v17398_v15 = vpop.f32.mrb[219].mxu0 }
 0x423   :  { %2692 = vmatmul.mubr.bf16.gmra.mrb[220].mxu1 %v19597_v50 }
 0x424   :  { %3205 = vmatmul.mubr.bf16.gmra.mrb[68].mxu0 %v19597_v50  ;;  %11528 = vmatprep.mubr.msk.bf16.mxu1 %vm1590_vm2, %v19598_v12  ;;  %v19600_v50 = vmax.f32 %v16353_v8, %v16395_v48 }
 0x425   :  { %11577 = vmatprep.mubr.msk.bf16.mxu0 %vm1590_vm2, %v19598_v12 }
 0x426   :  { %v2433_v6 = vpop.f32.mrb[116].mxu1 }
 0x427   :  { %v3344_v32 = vmax.f32 %v2413_v41, %v2433_v6  ;;  %v2946_v31 = vpop.f32.mrb[220].mxu0  ;;  %v2435_v44 = vpop.f32.mrb[117].mxu1 }
 0x428   :  { %v3346_v11 = vmax.f32 %v2926_v29, %v2946_v31  ;;  %v3345_v27 = vmax.f32 %v2415_v5, %v2435_v44  ;;  %v2948_v17 = vpop.f32.mrb[221].mxu0  ;;  %v2437_v3 = vpop.f32.mrb[118].mxu1  ;;  %v19601_v5 = vld [vmem:[#allocation140_spill] sm:$0xff]  ;;  %v19602_v31 = vld [vmem:[#allocation149_spill] sm:$0xff] }
 0x429   :  { %v3347_v37 = vmax.f32 %v2928_v53, %v2948_v17  ;;  %v3350_v47 = vmax.f32 %v2417_v63, %v2437_v3  ;;  %v2950_v0 = vpop.f32.mrb[222].mxu0  ;;  %v2439_v10 = vpop.f32.mrb[119].mxu1  ;;  %v19603_v44 = vmax.f32 %v16377_v4, %v19602_v31 }
 0x42a   :  { %v3583_v13 = vmax.f32 %v19599_v54, %v3346_v11  ;;  %v3582_v12 = vmax.f32 %v19600_v50, %v3345_v27  ;;  %v3352_v55 = vmax.f32 %v2930_v26, %v2950_v0  ;;  %v3351_v41 = vmax.f32 %v2419_v61, %v2439_v10  ;;  %v2952_v6 = vpop.f32.mrb[223].mxu0  ;;  %v19605_v11 = vld [vmem:[#allocation148_spill] sm:$0xff]  ;;  %v19607_v61 = vld [vmem:[#allocation146_spill] sm:$0xff] }
 0x42b   :  { %v3584_v21 = vmax.f32 %v3344_v32, %v3347_v37  ;;  %v3353_v29 = vmax.f32 %v2932_v33, %v2952_v6  ;;  %2702 = vmatmul.mubr.bf16.gmra.mrb[224].mxu1 %v19601_v5  ;;  %v19606_v17 = vmax.f32 %v19604_v40, %v19605_v11  ;;  %v19612_v11 = vld [vmem:[#allocation142_spill] sm:$0xff] }
 0x42c   :  { %v3743_v53 = vadd.f32 %v17015_v24, %v3583_v13  ;;  %v3742_v63 = vadd.f32 %v17020_v1, %v3582_v12  ;;  %v3586_v28 = vmax.f32 %v19603_v44, %v3352_v55  ;;  %3215 = vmatmul.mubr.bf16.gmra.mrb[72].mxu0 %v19601_v5  ;;  %11529 = vmatprep.mubr.msk.bf16.mxu1 %vm1590_vm2, %v19607_v61  ;;  %v19609_v44 = vld [vmem:[#allocation143_spill] sm:$0xff] }
 0x42d   :  { %v3585_v48 = vmax.f32 %v19606_v17, %v3351_v41  ;;  %v3744_v8 = vadd.f32 %v16716_v52, %v3584_v21  ;;  %v3587_v26 = vmax.f32 %v3350_v47, %v3353_v29  ;;  %11578 = vmatprep.mubr.msk.bf16.mxu0 %vm1590_vm2, %v19607_v61 }
 0x42e   :  { %v3746_v33 = vadd.f32 %v17015_v24, %v3586_v28  ;;  %v2443_v55 = vpop.f32.mrb[120].mxu1  ;;  %v3887_v32 = vmax.f32 %v3743_v53, 0.0  ;;  %v3886_v27 = vmax.f32 %v3742_v63, 0.0  ;;  %v19610_v28 = vld [vmem:[#allocation151_spill] sm:$0xff] }
 0x42f   :  { %v3745_v4 = vadd.f32 %v17020_v1, %v3585_v48  ;;  %v3747_v3 = vadd.f32 %v16716_v52, %v3587_v26  ;;  %v3356_v37 = vmax.f32 %v17384_v56, %v2443_v55  ;;  %v2956_v0 = vpop.f32.mrb[224].mxu0  ;;  %v2445_v21 = vpop.f32.mrb[121].mxu1  ;;  %v3888_v41 = vmax.f32 %v3744_v8, 0.0  ;;  %v19616_v55 = vld [vmem:[#allocation155_spill] sm:$0xff] }
 0x430   :  { %v3890_v47 = vmax.f32 %v3746_v33, 0.0  ;;  %v3358_v54 = vmax.f32 %v17386_v43, %v2956_v0  ;;  %v3357_v13 = vmax.f32 %v17388_v22, %v2445_v21  ;;  %v2958_v50 = vpop.f32.mrb[225].mxu0  ;;  %v2447_v12 = vpop.f32.mrb[122].mxu1  ;;  %v19611_v40 = vmax.f32 %v19609_v44, %v19610_v28  ;;  %v19613_v22 = vld [vmem:[#allocation150_spill] sm:$0xff]  ;;  %v19615_v33 = vld [vmem:[#allocation147_spill] sm:$0xff]  ;;  %v19618_v0 = vld [vmem:[#allocation153_spill] sm:$0xff] }
 0x431   :  { %v3889_v10 = vmax.f32 %v3745_v4, 0.0  ;;  %v3891_v6 = vmax.f32 %v3747_v3, 0.0  ;;  %v3359_v29 = vmax.f32 %v17390_v7, %v2958_v50  ;;  %v3362_v5 = vmax.f32 %v17392_v49, %v2447_v12  ;;  %v2960_v53 = vpop.f32.mrb[226].mxu0  ;;  %v2449_v63 = vpop.f32.mrb[123].mxu1  ;;  %v19617_v3 = vld [vmem:[#allocation145_spill] sm:$0xff] }
 0x432   :  { %v17435_v31 = vpack.c.bf16 %v3890_v47, %v3887_v32  ;;  %v3589_v43 = vmax.f32 %v19611_v40, %v3358_v54  ;;  %v19614_v17 = vmax.f32 %v19612_v11, %v19613_v22  ;;  %v2962_v8 = vpop.f32.mrb[227].mxu0  ;;  %v3364_v49 = vmax.f32 %v17394_v62, %v2960_v53  ;;  %v19620_v62 = vld [vmem:[#allocation144_spill] sm:$0xff] }
 0x433   :  { %v17437_v56 = vpack.c.bf16 %v3889_v10, %v3886_v27  ;;  %v17445_v26 = vpack.c.bf16 %v3891_v6, %v3888_v41  ;;  %v3590_v7 = vmax.f32 %v3356_v37, %v3359_v29  ;;  %v3363_v61 = vmax.f32 %v17396_v36, %v2449_v63  ;;  %2712 = vmatmul.mubr.bf16.gmra.mrb[228].mxu1 %v19615_v33  ;;  %v19621_v47 = vld [vmem:[#allocation152_spill] sm:$0xff] }
 0x434   :  { %19608 = vst [vmem:[#allocation80_spill] sm:$0xff] %v17435_v31  ;;  %v3588_v48 = vmax.f32 %v19614_v17, %v3357_v13  ;;  %v3365_v4 = vmax.f32 %v17398_v15, %v2962_v8  ;;  %3225 = vmatmul.mubr.bf16.gmra.mrb[76].mxu0 %v19615_v33  ;;  %11530 = vmatprep.mubr.msk.bf16.mxu1 %vm1590_vm2, %v19616_v55 }
 0x435   :  { %v3749_v32 = vadd.f32 %v17015_v24, %v3589_v43  ;;  %v19619_v37 = vmax.f32 %v19617_v3, %v19618_v0  ;;  %v19622_v36 = vmax.f32 %v19620_v62, %v19621_v47  ;;  %11579 = vmatprep.mubr.msk.bf16.mxu0 %vm1590_vm2, %v19616_v55  ;;  %v3750_v15 = vadd.f32 %v16716_v52, %v3590_v7  ;;  %v13519_v3 = vld [vmem:[#allocation6 + $0x200] ss:$16 sps:$4 sm:$0xff]   ;;  %v13527_v47 = vld [vmem:[#allocation6 + $0x224] ss:$16 sps:$4 sm:$0xff]  }
 0x436   :  { %v3748_v27 = vadd.f32 %v17020_v1, %v3588_v48  ;;  %v3593_v54 = vmax.f32 %v3362_v5, %v3365_v4  ;;  %v17465_v13 = vpop.f32.mrb[124].mxu1 }
 0x437   :  { %v3592_v21 = vmax.f32 %v19619_v37, %v3364_v49  ;;  %v3591_v10 = vmax.f32 %v19622_v36, %v3363_v61  ;;  %v2966_v41 = vpop.f32.mrb[228].mxu0  ;;  %v2455_v6 = vpop.f32.mrb[125].mxu1  ;;  %v3893_v44 = vmax.f32 %v3749_v32, 0.0  ;;  %v3894_v22 = vmax.f32 %v3750_v15, 0.0  ;;  %v19625_v49 = vld [vmem:[#allocation157_spill] sm:$0xff] }
 0x438   :  { %v3753_v29 = vadd.f32 %v16716_v52, %v3593_v54  ;;  %v17470_v53 = vpop.f32.mrb[229].mxu0  ;;  %v17472_v63 = vpop.f32.mrb[126].mxu1  ;;  %v3892_v28 = vmax.f32 %v3748_v27, 0.0  ;;  %v13525_v36 = vld [vmem:[#allocation6 + $0x220] ss:$16 sps:$4 sm:$0xff]  }
 0x439   :  { %v3752_v50 = vadd.f32 %v17015_v24, %v3592_v21  ;;  %v3751_v12 = vadd.f32 %v17020_v1, %v3591_v10  ;;  %v17474_v11 = vpop.f32.mrb[230].mxu0  ;;  %v17476_v5 = vpop.f32.mrb[127].mxu1  ;;  %v13522_v21 = vld [vmem:[#allocation6 + $0x208] ss:$16 sps:$4 sm:$0xff]   ;;  %v13533_v15 = vld [vmem:[#allocation6 + $0x244] ss:$16 sps:$4 sm:$0xff]  }
 0x43a   :  { %v3897_v17 = vmax.f32 %v3753_v29, 0.0  ;;  %v17478_v48 = vpop.f32.mrb[231].mxu0  ;;  %v13528_v10 = vld [vmem:[#allocation6 + $0x228] ss:$16 sps:$4 sm:$0xff]  }
 0x43b   :  { %v3896_v40 = vmax.f32 %v3752_v50, 0.0  ;;  %v3895_v43 = vmax.f32 %v3751_v12, 0.0  ;;  %2722 = vmatmul.mubr.bf16.gmra.mrb[232].mxu1 %v19625_v49  ;;  %v13536_v50 = vld [vmem:[#allocation6 + $0x24c] ss:$16 sps:$4 sm:$0xff]  }
 0x43c   :  { %v17485_v61 = vpack.c.bf16 %v3897_v17, %v3894_v22  ;;  %3235 = vmatmul.mubr.bf16.gmra.mrb[80].mxu0 %v19625_v49  ;;  %6966 = vmatprep.mubr.bf16.mxu1 %v17056_v57 }
 0x43d   :  { %v17480_v8 = vpack.c.bf16 %v3896_v40, %v3893_v44  ;;  %v17482_v7 = vpack.c.bf16 %v3895_v43, %v3892_v28  ;;  %8510 = vmatprep.mubr.bf16.mxu0 %v17056_v57  ;;  %v13530_v57 = vld [vmem:[#allocation6 + $0x22c] ss:$16 sps:$4 sm:$0xff]  }
 0x43e   :  { %19626 = vst [vmem:[#allocation88_spill] sm:$0xff] %v17485_v61  ;;  %v17490_v33 = vpop.f32.mrb[128].mxu1  ;;  %v19631_v61 = vld [vmem:[#allocation164_spill] sm:$0xff] }
 0x43f   :  { %19623 = vst [vmem:[#allocation90_spill] sm:$0xff] %v17480_v8  ;;  %19624 = vst [vmem:[#allocation78_spill] sm:$0xff] %v17482_v7  ;;  %v17492_v4 = vpop.f32.mrb[232].mxu0  ;;  %v17494_v55 = vpop.f32.mrb[129].mxu1 }
 0x440   :  { %v17496_v32 = vpop.f32.mrb[233].mxu0  ;;  %v17498_v27 = vpop.f32.mrb[130].mxu1 }
 0x441   :  { %v17500_v0 = vpop.f32.mrb[234].mxu0  ;;  %v17502_v37 = vpop.f32.mrb[131].mxu1 }
 0x442   :  { %v17504_v62 = vpop.f32.mrb[235].mxu0 }
 0x443   :  { %6967 = vmatmul.mubr.bf16.vlgmr.msra.gmra.mrb[236].mxu1 %v17062_v45 }
 0x444   :  { %7128 = vmatpush1.bf16.msra.mxu1 %v13519_v3  ;;  %8511 = vmatmul.mubr.bf16.vlgmr.msra.gmra.mrb[84].mxu0 %v17062_v45 }
 0x445   :  { %8672 = vmatpush1.bf16.msra.mxu0 %v13522_v21  ;;  %6976 = vmatprep.mubr.bf16.mxu1 %v17084_v51  ;;  %v19628_v21 = vld [vmem:[#allocation165_spill] sm:$0xff] }
 0x446   :  { %8520 = vmatprep.mubr.bf16.mxu0 %v17084_v51  ;;  %v2473_v54 = vpop.f32.mrb[132].mxu1  ;;  %7129 = vmatprep.subr.bf16.mxu1 %v13527_v47  ;;  %v19627_v51 = vld [vmem:[#allocation156_spill] sm:$0xff] }
 0x447   :  { %v3368_v12 = vmax.f32 %v17465_v13, %v2473_v54  ;;  %v2986_v29 = vpop.f32.mrb[236].mxu0  ;;  %v2475_v44 = vpop.f32.mrb[133].mxu1  ;;  %8673 = vmatprep.subr.bf16.mxu0 %v13530_v57  ;;  %v19629_v47 = vmax.f32 %v19627_v51, %v19628_v21  ;;  %v19630_v54 = vld [vmem:[#allocation154_spill] sm:$0xff] }
 0x448   :  { %v3370_v28 = vmax.f32 %v2966_v41, %v2986_v29  ;;  %v3369_v40 = vmax.f32 %v2455_v6, %v2475_v44  ;;  %v2988_v43 = vpop.f32.mrb[237].mxu0  ;;  %v2477_v45 = vpop.f32.mrb[134].mxu1  ;;  %7130 = vmatpush1.bf16.msra.mxu1 %v13525_v36  ;;  %v19632_v57 = vmax.f32 %v19630_v54, %v19631_v61  ;;  %v13534_v44 = vld [vmem:[#allocation6 + $0x248] ss:$16 sps:$4 sm:$0xff]  }
 0x449   :  { %v3371_v22 = vmax.f32 %v17470_v53, %v2988_v43  ;;  %v3374_v17 = vmax.f32 %v17472_v63, %v2477_v45  ;;  %v2990_v49 = vpop.f32.mrb[238].mxu0  ;;  %v2479_v3 = vpop.f32.mrb[135].mxu1  ;;  %8674 = vmatpush1.bf16.msra.mxu0 %v13528_v10  ;;  %7131 = vmatprep.subr.bf16.mxu1 %v13533_v15  ;;  %v13531_v53 = vld [vmem:[#allocation6 + $0x240] ss:$16 sps:$4 sm:$0xff]   ;;  %v13539_v15 = vld [vmem:[#allocation6 + $0x264] ss:$16 sps:$4 sm:$0xff]  }
 0x44a   :  { %v3595_v13 = vmax.f32 %v19629_v47, %v3370_v28  ;;  %v3594_v41 = vmax.f32 %v19632_v57, %v3369_v40  ;;  %v3376_v6 = vmax.f32 %v17474_v11, %v2990_v49  ;;  %v3375_v36 = vmax.f32 %v17476_v5, %v2479_v3  ;;  %v2992_v29 = vpop.f32.mrb[239].mxu0  ;;  %8675 = vmatprep.subr.bf16.mxu0 %v13536_v50  ;;  %v13542_v43 = vld [vmem:[#allocation6 + $0x26c] ss:$16 sps:$4 sm:$0xff]   ;;  %v19636_v5 = vld [vmem:[#allocation158_spill] sm:$0xff] }
 0x44b   :  { %v3596_v63 = vmax.f32 %v3368_v12, %v3371_v22  ;;  %v3377_v10 = vmax.f32 %v17478_v48, %v2992_v29  ;;  %6977 = vmatmul.mubr.bf16.gmra.mrb[240].mxu1 %v17087_v9  ;;  %v19633_v40 = vld [vmem:[#allocation159_spill] sm:$0xff]  ;;  %v19637_v3 = vld [vmem:[#allocation166_spill] sm:$0xff] }
 0x44c   :  { %v3755_v28 = vadd.f32 %v17015_v24, %v3595_v13  ;;  %v3754_v61 = vadd.f32 %v17020_v1, %v3594_v41  ;;  %v19634_v45 = vld [vmem:[#allocation167_spill] sm:$0xff]  ;;  %v19638_v51 = vmax.f32 %v19636_v5, %v19637_v3  ;;  %8521 = vmatmul.mubr.bf16.gmra.mrb[88].mxu0 %v17087_v9  ;;  %6986 = vmatprep.mubr.bf16.mxu1 %v17147_v46  ;;  %v19642_v3 = vld [vmem:[#allocation169_spill] sm:$0xff] }
 0x44d   :  { %v19635_v11 = vmax.f32 %v19633_v40, %v19634_v45  ;;  %v3756_v48 = vadd.f32 %v16716_v52, %v3596_v63  ;;  %v3599_v50 = vmax.f32 %v3374_v17, %v3377_v10  ;;  %8530 = vmatprep.mubr.bf16.mxu0 %v17147_v46  ;;  %7132 = vmatpush1.bf16.msra.mxu1 %v13531_v53  ;;  %v13537_v13 = vld [vmem:[#allocation6 + $0x260] ss:$16 sps:$4 sm:$0xff]  }
 0x44e   :  { %v3597_v21 = vmax.f32 %v19638_v51, %v3375_v36  ;;  %v2483_v47 = vpop.f32.mrb[136].mxu1  ;;  %8676 = vmatpush1.bf16.msra.mxu0 %v13534_v44  ;;  %v3899_v54 = vmax.f32 %v3755_v28, 0.0  ;;  %v3898_v57 = vmax.f32 %v3754_v61, 0.0  ;;  %7133 = vmatprep.subr.bf16.mxu1 %v13539_v15 }
 0x44f   :  { %v3598_v49 = vmax.f32 %v19635_v11, %v3376_v6  ;;  %v3759_v41 = vadd.f32 %v16716_v52, %v3599_v50  ;;  %v3380_v9 = vmax.f32 %v17490_v33, %v2483_v47  ;;  %v2996_v6 = vpop.f32.mrb[240].mxu0  ;;  %v2485_v17 = vpop.f32.mrb[137].mxu1  ;;  %8677 = vmatprep.subr.bf16.mxu0 %v13542_v43  ;;  %v3900_v44 = vmax.f32 %v3756_v48, 0.0  ;;  %v19641_v43 = vld [vmem:[#allocation161_spill] sm:$0xff] }
 0x450   :  { %v3757_v22 = vadd.f32 %v17020_v1, %v3597_v21  ;;  %v3382_v63 = vmax.f32 %v17492_v4, %v2996_v6  ;;  %v3381_v10 = vmax.f32 %v17494_v55, %v2485_v17  ;;  %v2998_v40 = vpop.f32.mrb[241].mxu0  ;;  %v2487_v53 = vpop.f32.mrb[138].mxu1  ;;  %v19643_v4 = vmax.f32 %v19641_v43, %v19642_v3  ;;  %v19644_v55 = vld [vmem:[#allocation160_spill] sm:$0xff] }
 0x451   :  { %v3758_v12 = vadd.f32 %v17015_v24, %v3598_v49  ;;  %v3903_v45 = vmax.f32 %v3759_v41, 0.0  ;;  %v3383_v28 = vmax.f32 %v17496_v32, %v2998_v40  ;;  %v3386_v61 = vmax.f32 %v17498_v27, %v2487_v53  ;;  %v3000_v11 = vpop.f32.mrb[242].mxu0  ;;  %v2489_v33 = vpop.f32.mrb[139].mxu1  ;;  %v13540_v49 = vld [vmem:[#allocation6 + $0x268] ss:$16 sps:$4 sm:$0xff]   ;;  %7134 = vmatpush1.bf16.msra.mxu1 %v13537_v13 }
 0x452   :  { %v3901_v29 = vmax.f32 %v3757_v22, 0.0  ;;  %v3601_v51 = vmax.f32 %v19643_v4, %v3382_v63  ;;  %v19645_v21 = vld [vmem:[#allocation168_spill] sm:$0xff]  ;;  %v13548_v22 = vld [vmem:[#allocation6 + $0x28c] ss:$16 sps:$4 sm:$0xff]   ;;  %8678 = vmatpush1.bf16.msra.mxu0 %v13540_v49 }
 0x453   :  { %v3902_v36 = vmax.f32 %v3758_v12, 0.0  ;;  %v19646_v50 = vmax.f32 %v19644_v55, %v19645_v21  ;;  %v3002_v12 = vpop.f32.mrb[243].mxu0  ;;  %v13545_v32 = vld [vmem:[#allocation6 + $0x284] ss:$16 sps:$4 sm:$0xff]   ;;  %v17553_v27 = vpack.c.bf16 %v3903_v45, %v3900_v44  ;;  %v3602_v47 = vmax.f32 %v3380_v9, %v3383_v28  ;;  %6987 = vmatmul.mubr.bf16.gmra.mrb[244].mxu1 %v17175_v2  ;;  %v13543_v41 = vld [vmem:[#allocation6 + $0x280] ss:$16 sps:$4 sm:$0xff]   ;;  %8679 = vmatprep.subr.bf16.mxu0 %v13548_v22 }
 0x454   :  { %v17545_v15 = vpack.c.bf16 %v3901_v29, %v3898_v57  ;;  %v3387_v57 = vmax.f32 %v17502_v37, %v2489_v33  ;;  %v3761_v6 = vadd.f32 %v17015_v24, %v3601_v51  ;;  %v3389_v17 = vmax.f32 %v17504_v62, %v3002_v12  ;;  %8531 = vmatmul.mubr.bf16.gmra.mrb[92].mxu0 %v17175_v2  ;;  %v13551_v13 = vld [vmem:[#allocation6 + $0x2a4] ss:$16 sps:$4 sm:$0xff]   ;;  %v19648_v29 = vld [vmem:[#allocation163_spill] sm:$0xff] }
 0x455   :  { %v17543_v5 = vpack.c.bf16 %v3902_v36, %v3899_v54  ;;  %v3600_v48 = vmax.f32 %v19646_v50, %v3381_v10  ;;  %19647 = vst [vmem:[#allocation82_spill] sm:$0xff] %v17553_v27  ;;  %v3388_v54 = vmax.f32 %v17500_v0, %v3000_v11  ;;  %6996 = vmatprep.mubr.bf16.mxu1 %v17180_v42  ;;  %v19649_v9 = vld [vmem:[#allocation171_spill] sm:$0xff]  ;;  %v19651_v10 = vld [vmem:[#allocation162_spill] sm:$0xff] }
 0x456   :  { %19640 = vst [vmem:[#allocation93_spill] sm:$0xff] %v17545_v15  ;;  %v19650_v63 = vmax.f32 %v19648_v29, %v19649_v9  ;;  %v19652_v37 = vld [vmem:[#allocation170_spill] sm:$0xff]  ;;  %8540 = vmatprep.mubr.bf16.mxu0 %v17180_v42  ;;  %v3762_v62 = vadd.f32 %v16716_v52, %v3602_v47  ;;  %v3605_v45 = vmax.f32 %v3386_v61, %v3389_v17  ;;  %v17571_v28 = vpop.f32.mrb[140].mxu1  ;;  %v13554_v11 = vld [vmem:[#allocation6 + $0x2ac] ss:$16 sps:$4 sm:$0xff]   ;;  %v3905_v50 = vmax.f32 %v3761_v6, 0.0 }
 0x457   :  { %19639 = vst [vmem:[#allocation83_spill] sm:$0xff] %v17543_v5  ;;  %v3760_v36 = vadd.f32 %v17020_v1, %v3600_v48  ;;  %v19653_v40 = vmax.f32 %v19651_v10, %v19652_v37  ;;  %v13546_v44 = vld [vmem:[#allocation6 + $0x288] ss:$16 sps:$4 sm:$0xff]   ;;  %7135 = vmatprep.subr.bf16.mxu1 %v13545_v32  ;;  %v17575_v3 = vpop.f32.mrb[244].mxu0  ;;  %v17577_v4 = vpop.f32.mrb[141].mxu1 }
 0x458   :  { %v3604_v0 = vmax.f32 %v19650_v63, %v3388_v54  ;;  %7136 = vmatpush1.bf16.msra.mxu1 %v13543_v41  ;;  %v3765_v49 = vadd.f32 %v16716_v52, %v3605_v45  ;;  %v17580_v51 = vpop.f32.mrb[245].mxu0  ;;  %v17582_v55 = vpop.f32.mrb[142].mxu1  ;;  %v13549_v61 = vld [vmem:[#allocation6 + $0x2a0] ss:$16 sps:$4 sm:$0xff]   ;;  %v13552_v21 = vld [vmem:[#allocation6 + $0x2a8] ss:$16 sps:$4 sm:$0xff]   ;;  %8680 = vmatpush1.bf16.msra.mxu0 %v13546_v44 }
 0x459   :  { %v3603_v53 = vmax.f32 %v19653_v40, %v3387_v57  ;;  %7137 = vmatprep.subr.bf16.mxu1 %v13551_v13  ;;  %v3904_v48 = vmax.f32 %v3760_v36, 0.0  ;;  %v17584_v22 = vpop.f32.mrb[246].mxu0  ;;  %v17586_v47 = vpop.f32.mrb[143].mxu1  ;;  %v3906_v54 = vmax.f32 %v3762_v62, 0.0  ;;  %8681 = vmatprep.subr.bf16.mxu0 %v13554_v11  ;;  %v13557_v17 = vld [vmem:[#allocation6 + $0x2c4] ss:$16 sps:$4 sm:$0xff]  }
 0x45a   :  { %v3764_v33 = vadd.f32 %v17015_v24, %v3604_v0  ;;  %v3909_v57 = vmax.f32 %v3765_v49, 0.0  ;;  %v17588_v41 = vpop.f32.mrb[247].mxu0  ;;  %v13560_v6 = vld [vmem:[#allocation6 + $0x2cc] ss:$16 sps:$4 sm:$0xff]   ;;  %v13555_v36 = vld [vmem:[#allocation6 + $0x2c0] ss:$16 sps:$4 sm:$0xff]  }
 0x45b   :  { %v3763_v43 = vadd.f32 %v17020_v1, %v3603_v53  ;;  %6997 = vmatmul.mubr.bf16.gmra.mrb[248].mxu1 %v17182_v59  ;;  %v13558_v0 = vld [vmem:[#allocation6 + $0x2c8] ss:$16 sps:$4 sm:$0xff]   ;;  %v13563_v10 = vld [vmem:[#allocation6 + $0x2e4] ss:$16 sps:$4 sm:$0xff]   ;;  %v13566_v53 = vld [vmem:[#allocation6 + $0x2ec] ss:$16 sps:$4 sm:$0xff]  }
 0x45c   :  { %v3908_v12 = vmax.f32 %v3764_v33, 0.0  ;;  %v17595_v13 = vpack.c.bf16 %v3909_v57, %v3906_v54  ;;  %8541 = vmatmul.mubr.bf16.gmra.mrb[96].mxu0 %v17182_v59  ;;  %7006 = vmatprep.mubr.bf16.mxu1 %v17243_v19  ;;  %v13561_v33 = vld [vmem:[#allocation6 + $0x2e0] ss:$16 sps:$4 sm:$0xff]   ;;  %v13564_v49 = vld [vmem:[#allocation6 + $0x2e8] ss:$16 sps:$4 sm:$0xff]  }
 0x45d   :  { %v3907_v32 = vmax.f32 %v3763_v43, 0.0  ;;  %8550 = vmatprep.mubr.bf16.mxu0 %v17243_v19  ;;  %7138 = vmatpush1.bf16.msra.mxu1 %v13549_v61  ;;  %v13569_v61 = vld [vmem:[#allocation6 + $0x304] ss:$16 sps:$4 sm:$0xff]   ;;  %v19658_v19 = vld [vmem:[#allocation183_spill] sm:$0xff] }
 0x45e   :  { %v17590_v29 = vpack.c.bf16 %v3908_v12, %v3905_v50  ;;  %19656 = vst [vmem:[#allocation95_spill] sm:$0xff] %v17595_v13  ;;  %v17600_v63 = vpop.f32.mrb[144].mxu1  ;;  %8682 = vmatpush1.bf16.msra.mxu0 %v13552_v21  ;;  %7139 = vmatprep.subr.bf16.mxu1 %v13557_v17  ;;  %v13572_v21 = vld [vmem:[#allocation6 + $0x30c] ss:$16 sps:$4 sm:$0xff]   ;;  %v13567_v50 = vld [vmem:[#allocation6 + $0x300] ss:$16 sps:$4 sm:$0xff]  }
 0x45f   :  { %v17592_v9 = vpack.c.bf16 %v3907_v32, %v3904_v48  ;;  %v17602_v37 = vpop.f32.mrb[248].mxu0  ;;  %v17604_v40 = vpop.f32.mrb[145].mxu1  ;;  %8683 = vmatprep.subr.bf16.mxu0 %v13560_v6  ;;  %v13570_v12 = vld [vmem:[#allocation6 + $0x308] ss:$16 sps:$4 sm:$0xff]   ;;  %v13575_v17 = vld [vmem:[#allocation6 + $0x324] ss:$16 sps:$4 sm:$0xff]  }
 0x460   :  { %19654 = vst [vmem:[#allocation92_spill] sm:$0xff] %v17590_v29  ;;  %v17606_v44 = vpop.f32.mrb[249].mxu0  ;;  %v17608_v62 = vpop.f32.mrb[146].mxu1  ;;  %v19660_v42 = vld [vmem:[#allocation172_spill] sm:$0xff] }
 0x461   :  { %19655 = vst [vmem:[#allocation85_spill] sm:$0xff] %v17592_v9  ;;  %v17610_v45 = vpop.f32.mrb[250].mxu0  ;;  %v17612_v11 = vpop.f32.mrb[147].mxu1  ;;  %7140 = vmatpush1.bf16.msra.mxu1 %v13555_v36 }
 0x462   :  { %v17614_v43 = vpop.f32.mrb[251].mxu0  ;;  %8684 = vmatpush1.bf16.msra.mxu0 %v13558_v0  ;;  %7141 = vmatprep.subr.bf16.mxu1 %v13563_v10 }
 0x463   :  { %7007 = vmatmul.mubr.bf16.gmra.mrb[252].mxu1 %v17245_v60  ;;  %8685 = vmatprep.subr.bf16.mxu0 %v13566_v53 }
 0x464   :  { %8551 = vmatmul.mubr.bf16.gmra.mrb[100].mxu0 %v17245_v60  ;;  %7016 = vmatprep.mubr.bf16.mxu1 %v17276_v38 }
 0x465   :  { %8560 = vmatprep.mubr.bf16.mxu0 %v17276_v38  ;;  %7142 = vmatpush1.bf16.msra.mxu1 %v13561_v33 }
 0x466   :  { %v2513_v48 = vpop.f32.mrb[148].mxu1  ;;  %8686 = vmatpush1.bf16.msra.mxu0 %v13564_v49  ;;  %7143 = vmatprep.subr.bf16.mxu1 %v13569_v61  ;;  %v19657_v61 = vld [vmem:[#allocation173_spill] sm:$0xff] }
 0x467   :  { %v3392_v32 = vmax.f32 %v17571_v28, %v2513_v48  ;;  %v3026_v54 = vpop.f32.mrb[252].mxu0  ;;  %v2515_v57 = vpop.f32.mrb[149].mxu1  ;;  %8687 = vmatprep.subr.bf16.mxu0 %v13572_v21  ;;  %v19659_v28 = vmax.f32 %v19657_v61, %v19658_v19  ;;  %v19661_v21 = vld [vmem:[#allocation181_spill] sm:$0xff] }
 0x468   :  { %v3394_v6 = vmax.f32 %v17575_v3, %v3026_v54  ;;  %v3393_v36 = vmax.f32 %v17577_v4, %v2515_v57  ;;  %v3028_v0 = vpop.f32.mrb[253].mxu0  ;;  %v2517_v10 = vpop.f32.mrb[150].mxu1  ;;  %v19662_v46 = vmax.f32 %v19660_v42, %v19661_v21  ;;  %v13578_v57 = vld [vmem:[#allocation6 + $0x32c] ss:$16 sps:$4 sm:$0xff]   ;;  %v13576_v19 = vld [vmem:[#allocation6 + $0x328] ss:$16 sps:$4 sm:$0xff]  }
 0x469   :  { %v3395_v53 = vmax.f32 %v17580_v51, %v3028_v0  ;;  %v3398_v33 = vmax.f32 %v17582_v55, %v2517_v10  ;;  %v3030_v38 = vpop.f32.mrb[254].mxu0  ;;  %v2519_v49 = vpop.f32.mrb[151].mxu1  ;;  %7144 = vmatpush1.bf16.msra.mxu1 %v13567_v50  ;;  %v13573_v51 = vld [vmem:[#allocation6 + $0x320] ss:$16 sps:$4 sm:$0xff]   ;;  %v13581_v50 = vld [vmem:[#allocation6 + $0x344] ss:$16 sps:$4 sm:$0xff]  }
 0x46a   :  { %v3607_v48 = vmax.f32 %v19659_v28, %v3394_v6  ;;  %v3606_v13 = vmax.f32 %v19662_v46, %v3393_v36  ;;  %v3400_v3 = vmax.f32 %v17584_v22, %v3030_v38  ;;  %v3399_v4 = vmax.f32 %v17586_v47, %v2519_v49  ;;  %v3032_v54 = vpop.f32.mrb[255].mxu0  ;;  %8688 = vmatpush1.bf16.msra.mxu0 %v13570_v12  ;;  %v19663_v42 = vld [vmem:[#allocation175_spill] sm:$0xff]  ;;  %v19666_v36 = vld [vmem:[#allocation174_spill] sm:$0xff]  ;;  %v19667_v12 = vld [vmem:[#allocation185_spill] sm:$0xff] }
 0x46b   :  { %v3608_v55 = vmax.f32 %v3392_v32, %v3395_v53  ;;  %v3401_v0 = vmax.f32 %v17588_v41, %v3032_v54  ;;  %7017 = vmatmul.mubr.bf16.gmra.mrb[0].mxu1 %v17278_v16  ;;  %7145 = vmatprep.subr.bf16.mxu1 %v13575_v17  ;;  %v19664_v38 = vld [vmem:[#allocation187_spill] sm:$0xff]  ;;  %v19668_v10 = vmax.f32 %v19666_v36, %v19667_v12 }
 0x46c   :  { %v3767_v6 = vadd.f32 %v17015_v24, %v3607_v48  ;;  %v3766_v46 = vadd.f32 %v17020_v1, %v3606_v13  ;;  %v19665_v22 = vmax.f32 %v19663_v42, %v19664_v38  ;;  %8561 = vmatmul.mubr.bf16.gmra.mrb[104].mxu0 %v17278_v16  ;;  %v13584_v41 = vld [vmem:[#allocation6 + $0x34c] ss:$16 sps:$4 sm:$0xff]   ;;  %7026 = vmatprep.mubr.bf16.mxu1 %v17339_v30  ;;  %v13579_v28 = vld [vmem:[#allocation6 + $0x340] ss:$16 sps:$4 sm:$0xff]   ;;  %v13582_v12 = vld [vmem:[#allocation6 + $0x348] ss:$16 sps:$4 sm:$0xff]  }
 0x46d   :  { %v3609_v49 = vmax.f32 %v19668_v10, %v3399_v4  ;;  %v3768_v32 = vadd.f32 %v16716_v52, %v3608_v55  ;;  %v3611_v17 = vmax.f32 %v3398_v33, %v3401_v0  ;;  %8570 = vmatprep.mubr.bf16.mxu0 %v17339_v30  ;;  %8689 = vmatprep.subr.bf16.mxu0 %v13578_v57  ;;  %v19670_v10 = vld [vmem:[#allocation177_spill] sm:$0xff]  ;;  %v19688_v30 = vld [vmem:[#allocation30_spill] sm:$0xff] }
 0x46e   :  { %v3610_v47 = vmax.f32 %v19665_v22, %v3400_v3  ;;  %v2523_v61 = vpop.f32.mrb[152].mxu1  ;;  %7146 = vmatpush1.bf16.msra.mxu1 %v13573_v51  ;;  %v3911_v48 = vmax.f32 %v3767_v6, 0.0  ;;  %v3910_v21 = vmax.f32 %v3766_v46, 0.0  ;;  %8690 = vmatpush1.bf16.msra.mxu0 %v13576_v19 }
 0x46f   :  { %v3769_v53 = vadd.f32 %v17020_v1, %v3609_v49  ;;  %v3771_v3 = vadd.f32 %v16716_v52, %v3611_v17  ;;  %v3404_v4 = vmax.f32 %v17600_v63, %v2523_v61  ;;  %v3036_v54 = vpop.f32.mrb[0].mxu0  ;;  %v2525_v33 = vpop.f32.mrb[153].mxu1  ;;  %7147 = vmatprep.subr.bf16.mxu1 %v13581_v50  ;;  %8691 = vmatprep.subr.bf16.mxu0 %v13584_v41  ;;  %v3912_v51 = vmax.f32 %v3768_v32, 0.0  ;;  %v19673_v17 = vld [vmem:[#allocation176_spill] sm:$0xff]  ;;  %v13590_v61 = vld [vmem:[#allocation6 + $0x36c] ss:$16 sps:$4 sm:$0xff]  }
 0x470   :  { %v3770_v13 = vadd.f32 %v17015_v24, %v3610_v47  ;;  %v3406_v42 = vmax.f32 %v17602_v37, %v3036_v54  ;;  %v3405_v38 = vmax.f32 %v17604_v40, %v2525_v33  ;;  %v3038_v22 = vpop.f32.mrb[1].mxu0  ;;  %v2527_v57 = vpop.f32.mrb[154].mxu1  ;;  %v19671_v37 = vld [vmem:[#allocation28_spill] sm:$0xff] }
 0x471   :  { %v3913_v0 = vmax.f32 %v3769_v53, 0.0  ;;  %v3915_v6 = vmax.f32 %v3771_v3, 0.0  ;;  %v3407_v46 = vmax.f32 %v17606_v44, %v3038_v22  ;;  %v3410_v47 = vmax.f32 %v17608_v62, %v2527_v57  ;;  %v3040_v63 = vpop.f32.mrb[2].mxu0  ;;  %v2529_v36 = vpop.f32.mrb[155].mxu1  ;;  %v13587_v44 = vld [vmem:[#allocation6 + $0x364] ss:$16 sps:$4 sm:$0xff]  }
 0x472   :  { %v3914_v55 = vmax.f32 %v3770_v13, 0.0  ;;  %v19672_v49 = vmax.f32 %v19670_v10, %v19671_v37  ;;  %v19674_v13 = vld [vmem:[#allocation26_spill] sm:$0xff]  ;;  %v3042_v53 = vpop.f32.mrb[3].mxu0  ;;  %7148 = vmatpush1.bf16.msra.mxu1 %v13579_v28  ;;  %8692 = vmatpush1.bf16.msra.mxu0 %v13582_v12 }
 0x473   :  { %v17657_v50 = vpack.c.bf16 %v3913_v0, %v3910_v21  ;;  %v19675_v41 = vmax.f32 %v19673_v17, %v19674_v13  ;;  %v17665_v62 = vpack.c.bf16 %v3915_v6, %v3912_v51  ;;  %v3614_v3 = vmax.f32 %v3404_v4, %v3407_v46  ;;  %7027 = vmatmul.mubr.bf16.gmra.mrb[4].mxu1 %v17341_v18  ;;  %v13585_v54 = vld [vmem:[#allocation6 + $0x360] ss:$16 sps:$4 sm:$0xff]   ;;  %v13593_v28 = vld [vmem:[#allocation6 + $0x384] ss:$16 sps:$4 sm:$0xff]   ;;  %v13588_v6 = vld [vmem:[#allocation6 + $0x368] ss:$16 sps:$4 sm:$0xff]  }
 0x474   :  { %v17655_v19 = vpack.c.bf16 %v3914_v55, %v3911_v48  ;;  %v3613_v40 = vmax.f32 %v19672_v49, %v3406_v42  ;;  %v3412_v48 = vmax.f32 %v17610_v45, %v3040_v63  ;;  %v3411_v21 = vmax.f32 %v17612_v11, %v2529_v36  ;;  %8571 = vmatmul.mubr.bf16.gmra.mrb[108].mxu0 %v17341_v18  ;;  %v19677_v42 = vld [vmem:[#allocation179_spill] sm:$0xff]  ;;  %v19680_v22 = vld [vmem:[#allocation178_spill] sm:$0xff]  ;;  %v19681_v11 = vld [vmem:[#allocation189_spill] sm:$0xff] }
 0x475   :  { %v3612_v32 = vmax.f32 %v19675_v41, %v3405_v38  ;;  %19676 = vst [vmem:[#allocation94_spill] sm:$0xff] %v17665_v62  ;;  %v3413_v55 = vmax.f32 %v17614_v43, %v3042_v53  ;;  %7036 = vmatprep.mubr.bf16.mxu1 %v17372_v34  ;;  %v19678_v4 = vld [vmem:[#allocation191_spill] sm:$0xff]  ;;  %v19682_v57 = vmax.f32 %v19680_v22, %v19681_v11  ;;  %v13605_v11 = vld [vmem:[#allocation6 + $0x3c4] ss:$16 sps:$4 sm:$0xff]  }
 0x476   :  { %19669 = vst [vmem:[#allocation84_spill] sm:$0xff] %v17655_v19  ;;  %v3773_v33 = vadd.f32 %v17015_v24, %v3613_v40  ;;  %v19679_v38 = vmax.f32 %v19677_v42, %v19678_v4  ;;  %8580 = vmatprep.mubr.bf16.mxu0 %v17372_v34  ;;  %v3774_v43 = vadd.f32 %v16716_v52, %v3614_v3  ;;  %v17683_v63 = vpop.f32.mrb[156].mxu1  ;;  %v13596_v36 = vld [vmem:[#allocation6 + $0x38c] ss:$16 sps:$4 sm:$0xff]   ;;  %v13594_v41 = vld [vmem:[#allocation6 + $0x388] ss:$16 sps:$4 sm:$0xff]  }
 0x477   :  { %v3772_v0 = vadd.f32 %v17020_v1, %v3612_v32  ;;  %v3615_v51 = vmax.f32 %v19682_v57, %v3411_v21  ;;  %v3617_v46 = vmax.f32 %v3410_v47, %v3413_v55  ;;  %7149 = vmatprep.subr.bf16.mxu1 %v13587_v44  ;;  %8693 = vmatprep.subr.bf16.mxu0 %v13590_v61  ;;  %v17687_v49 = vpop.f32.mrb[4].mxu0  ;;  %v17689_v40 = vpop.f32.mrb[157].mxu1  ;;  %v13591_v47 = vld [vmem:[#allocation6 + $0x380] ss:$16 sps:$4 sm:$0xff]   ;;  %v13599_v42 = vld [vmem:[#allocation6 + $0x3a4] ss:$16 sps:$4 sm:$0xff]  }
 0x478   :  { %v3616_v45 = vmax.f32 %v19679_v38, %v3412_v48  ;;  %7150 = vmatpush1.bf16.msra.mxu1 %v13585_v54  ;;  %v17692_v17 = vpop.f32.mrb[5].mxu0  ;;  %v17694_v13 = vpop.f32.mrb[158].mxu1  ;;  %v3917_v32 = vmax.f32 %v3773_v33, 0.0  ;;  %8694 = vmatpush1.bf16.msra.mxu0 %v13588_v6  ;;  %v3918_v21 = vmax.f32 %v3774_v43, 0.0  ;;  %v13602_v33 = vld [vmem:[#allocation6 + $0x3ac] ss:$16 sps:$4 sm:$0xff]  }
 0x479   :  { %v3775_v37 = vadd.f32 %v17020_v1, %v3615_v51  ;;  %v3777_v12 = vadd.f32 %v16716_v52, %v3617_v46  ;;  %7151 = vmatprep.subr.bf16.mxu1 %v13593_v28  ;;  %v3916_v53 = vmax.f32 %v3772_v0, 0.0  ;;  %v17696_v3 = vpop.f32.mrb[6].mxu0  ;;  %v17698_v48 = vpop.f32.mrb[159].mxu1  ;;  %8695 = vmatprep.subr.bf16.mxu0 %v13596_v36  ;;  %v13597_v0 = vld [vmem:[#allocation6 + $0x3a0] ss:$16 sps:$4 sm:$0xff]  }
 0x47a   :  { %v3776_v10 = vadd.f32 %v17015_v24, %v3616_v45  ;;  %v17700_v55 = vpop.f32.mrb[7].mxu0  ;;  %v13600_v22 = vld [vmem:[#allocation6 + $0x3a8] ss:$16 sps:$4 sm:$0xff]   ;;  %v13608_v6 = vld [vmem:[#allocation6 + $0x3cc] ss:$16 sps:$4 sm:$0xff]  }
 0x47b   :  { %v3919_v61 = vmax.f32 %v3775_v37, 0.0  ;;  %v3921_v54 = vmax.f32 %v3777_v12, 0.0  ;;  %7037 = vmatmul.mubr.bf16.gmra.mrb[8].mxu1 %v17374_v25  ;;  %v13603_v37 = vld [vmem:[#allocation6 + $0x3c0] ss:$16 sps:$4 sm:$0xff]  }
 0x47c   :  { %v3920_v44 = vmax.f32 %v3776_v10, 0.0  ;;  %8581 = vmatmul.mubr.bf16.gmra.mrb[112].mxu0 %v17374_v25  ;;  %7046 = vmatprep.mubr.bf16.mxu1 %v17435_v31  ;;  %v19686_v34 = vld [vmem:[#allocation200_spill] sm:$0xff] }
 0x47d   :  { %v17704_v38 = vpack.c.bf16 %v3919_v61, %v3916_v53  ;;  %v17707_v28 = vpack.c.bf16 %v3921_v54, %v3918_v21  ;;  %8590 = vmatprep.mubr.bf16.mxu0 %v17435_v31  ;;  %7152 = vmatpush1.bf16.msra.mxu1 %v13591_v47  ;;  %v13606_v47 = vld [vmem:[#allocation6 + $0x3c8] ss:$16 sps:$4 sm:$0xff]   ;;  %v13609_v53 = vld [vmem:[#allocation6 + $0x3e0] ss:$16 sps:$4 sm:$0xff]  }
 0x47e   :  { %v17702_v4 = vpack.c.bf16 %v3920_v44, %v3917_v32  ;;  %v17712_v45 = vpop.f32.mrb[160].mxu1  ;;  %8696 = vmatpush1.bf16.msra.mxu0 %v13594_v41  ;;  %7153 = vmatprep.subr.bf16.mxu1 %v13599_v42  ;;  %v13611_v41 = vld [vmem:[#allocation6 + $0x3e4] ss:$16 sps:$4 sm:$0xff]   ;;  %v13614_v32 = vld [vmem:[#allocation6 + $0x3ec] ss:$16 sps:$4 sm:$0xff]  }
 0x47f   :  { %19684 = vst [vmem:[#allocation97_spill] sm:$0xff] %v17707_v28  ;;  %v17714_v57 = vpop.f32.mrb[8].mxu0  ;;  %v17716_v51 = vpop.f32.mrb[161].mxu1  ;;  %8697 = vmatprep.subr.bf16.mxu0 %v13602_v33  ;;  %v13612_v61 = vld [vmem:[#allocation6 + $0x3e8] ss:$16 sps:$4 sm:$0xff]  }
 0x480   :  { %19683 = vst [vmem:[#allocation87_spill] sm:$0xff] %v17702_v4  ;;  %v17718_v43 = vpop.f32.mrb[9].mxu0  ;;  %v17720_v46 = vpop.f32.mrb[162].mxu1  ;;  %v13617_v33 = vld [vmem:[#allocation6 + $0x404] ss:$16 sps:$4 sm:$0xff]  }
 0x481   :  { %v17722_v36 = vpop.f32.mrb[10].mxu0  ;;  %v17724_v10 = vpop.f32.mrb[163].mxu1  ;;  %7154 = vmatpush1.bf16.msra.mxu1 %v13597_v0 }
 0x482   :  { %v17726_v12 = vpop.f32.mrb[11].mxu0  ;;  %8698 = vmatpush1.bf16.msra.mxu0 %v13600_v22  ;;  %7155 = vmatprep.subr.bf16.mxu1 %v13605_v11 }
 0x483   :  { %7047 = vmatmul.mubr.bf16.gmra.mrb[12].mxu1 %v17437_v56  ;;  %8699 = vmatprep.subr.bf16.mxu0 %v13608_v6 }
 0x484   :  { %8591 = vmatmul.mubr.bf16.gmra.mrb[116].mxu0 %v17437_v56  ;;  %7056 = vmatprep.mubr.bf16.mxu1 %v17480_v8 }
 0x485   :  { %8600 = vmatprep.mubr.bf16.mxu0 %v17480_v8  ;;  %7156 = vmatpush1.bf16.msra.mxu1 %v13603_v37 }
 0x486   :  { %v2553_v44 = vpop.f32.mrb[164].mxu1  ;;  %8700 = vmatpush1.bf16.msra.mxu0 %v13606_v47  ;;  %7157 = vmatprep.subr.bf16.mxu1 %v13611_v41  ;;  %v19685_v41 = vld [vmem:[#allocation32_spill] sm:$0xff] }
 0x487   :  { %v3416_v21 = vmax.f32 %v17683_v63, %v2553_v44  ;;  %v3066_v54 = vpop.f32.mrb[12].mxu0  ;;  %v2555_v42 = vpop.f32.mrb[165].mxu1  ;;  %8701 = vmatprep.subr.bf16.mxu0 %v13614_v32  ;;  %v19687_v63 = vmax.f32 %v19685_v41, %v19686_v34  ;;  %v19689_v32 = vld [vmem:[#allocation39_spill] sm:$0xff] }
 0x488   :  { %v3418_v0 = vmax.f32 %v17687_v49, %v3066_v54  ;;  %v3417_v22 = vmax.f32 %v17689_v40, %v2555_v42  ;;  %v3068_v11 = vpop.f32.mrb[13].mxu0  ;;  %v2557_v6 = vpop.f32.mrb[166].mxu1  ;;  %v19690_v28 = vmax.f32 %v19688_v30, %v19689_v32  ;;  %v19692_v30 = vld [vmem:[#allocation204_spill] sm:$0xff] }
 0x489   :  { %v3419_v8 = vmax.f32 %v17692_v17, %v3068_v11  ;;  %v3422_v37 = vmax.f32 %v17694_v13, %v2557_v6  ;;  %v3070_v31 = vpop.f32.mrb[14].mxu0  ;;  %v2559_v47 = vpop.f32.mrb[167].mxu1  ;;  %7158 = vmatpush1.bf16.msra.mxu1 %v13609_v53  ;;  %v13620_v17 = vld [vmem:[#allocation6 + $0x40c] ss:$16 sps:$4 sm:$0xff]  }
 0x48a   :  { %v3619_v44 = vmax.f32 %v19687_v63, %v3418_v0  ;;  %v3618_v62 = vmax.f32 %v19690_v28, %v3417_v22  ;;  %v3424_v49 = vmax.f32 %v17696_v3, %v3070_v31  ;;  %v3423_v40 = vmax.f32 %v17698_v48, %v2559_v47  ;;  %v3072_v54 = vpop.f32.mrb[15].mxu0  ;;  %8702 = vmatpush1.bf16.msra.mxu0 %v13612_v61  ;;  %v19691_v0 = vld [vmem:[#allocation195_spill] sm:$0xff]  ;;  %v19694_v31 = vld [vmem:[#allocation193_spill] sm:$0xff]  ;;  %v19695_v3 = vld [vmem:[#allocation202_spill] sm:$0xff] }
 0x48b   :  { %v3620_v42 = vmax.f32 %v3416_v21, %v3419_v8  ;;  %v3425_v13 = vmax.f32 %v17700_v55, %v3072_v54  ;;  %7057 = vmatmul.mubr.bf16.gmra.mrb[16].mxu1 %v17482_v7  ;;  %7320 = vmatprep.subr.bf16.mxu1 %v13617_v33  ;;  %v19693_v28 = vmax.f32 %v19691_v0, %v19692_v30 }
 0x48c   :  { %v3779_v34 = vadd.f32 %v17015_v24, %v3619_v44  ;;  %v3778_v53 = vadd.f32 %v17020_v1, %v3618_v62  ;;  %v19696_v48 = vmax.f32 %v19694_v31, %v19695_v3  ;;  %8601 = vmatmul.mubr.bf16.gmra.mrb[120].mxu0 %v17482_v7  ;;  %7066 = vmatprep.mubr.bf16.mxu1 %v17543_v5  ;;  %v19698_v31 = vld [vmem:[#allocation44_spill] sm:$0xff] }
 0x48d   :  { %v3622_v22 = vmax.f32 %v19693_v28, %v3424_v49  ;;  %v3780_v8 = vadd.f32 %v16716_v52, %v3620_v42  ;;  %v3623_v55 = vmax.f32 %v3422_v37, %v3425_v13  ;;  %8610 = vmatprep.mubr.bf16.mxu0 %v17543_v5  ;;  %8864 = vmatprep.subr.bf16.mxu0 %v13620_v17  ;;  %v19715_v5 = vld [vmem:[#allocation54_spill] sm:$0xff] }
 0x48e   :  { %v3621_v11 = vmax.f32 %v19696_v48, %v3423_v40  ;;  %v2563_v21 = vpop.f32.mrb[168].mxu1  ;;  %v3923_v33 = vmax.f32 %v3779_v34, 0.0  ;;  %v3922_v6 = vmax.f32 %v3778_v53, 0.0  ;;  %v19700_v48 = vld [vmem:[#allocation34_spill] sm:$0xff] }
 0x48f   :  { %v3782_v61 = vadd.f32 %v17015_v24, %v3622_v22  ;;  %v3783_v47 = vadd.f32 %v16716_v52, %v3623_v55  ;;  %v3428_v41 = vmax.f32 %v17712_v45, %v2563_v21  ;;  %v3076_v63 = vpop.f32.mrb[16].mxu0  ;;  %v2565_v44 = vpop.f32.mrb[169].mxu1  ;;  %v3924_v13 = vmax.f32 %v3780_v8, 0.0  ;;  %v19697_v22 = vld [vmem:[#allocation36_spill] sm:$0xff] }
 0x490   :  { %v3781_v62 = vadd.f32 %v17020_v1, %v3621_v11  ;;  %v3430_v49 = vmax.f32 %v17714_v57, %v3076_v63  ;;  %v3429_v40 = vmax.f32 %v17716_v51, %v2565_v44  ;;  %v3078_v54 = vpop.f32.mrb[17].mxu0  ;;  %v2567_v42 = vpop.f32.mrb[170].mxu1  ;;  %v19699_v3 = vmax.f32 %v19697_v22, %v19698_v31  ;;  %v19701_v51 = vld [vmem:[#allocation42_spill] sm:$0xff]  ;;  %v19705_v63 = vld [vmem:[#allocation208_spill] sm:$0xff] }
 0x491   :  { %v3926_v32 = vmax.f32 %v3782_v61, 0.0  ;;  %v3927_v0 = vmax.f32 %v3783_v47, 0.0  ;;  %v3431_v17 = vmax.f32 %v17718_v43, %v3078_v54  ;;  %v3434_v34 = vmax.f32 %v17720_v46, %v2567_v42  ;;  %v3080_v53 = vpop.f32.mrb[18].mxu0  ;;  %v2569_v30 = vpop.f32.mrb[171].mxu1  ;;  %v19704_v47 = vld [vmem:[#allocation199_spill] sm:$0xff] }
 0x492   :  { %v3925_v37 = vmax.f32 %v3781_v62, 0.0  ;;  %v3625_v57 = vmax.f32 %v19699_v3, %v3430_v49  ;;  %v19702_v11 = vmax.f32 %v19700_v48, %v19701_v51  ;;  %v3082_v8 = vpop.f32.mrb[19].mxu0  ;;  %v3436_v46 = vmax.f32 %v17722_v36, %v3080_v53  ;;  %v19708_v36 = vld [vmem:[#allocation206_spill] sm:$0xff] }
 0x493   :  { %v17767_v28 = vpack.c.bf16 %v3926_v32, %v3923_v33  ;;  %v17777_v61 = vpack.c.bf16 %v3927_v0, %v3924_v13  ;;  %v3626_v43 = vmax.f32 %v3428_v41, %v3431_v17  ;;  %v3435_v62 = vmax.f32 %v17724_v10, %v2569_v30  ;;  %7067 = vmatmul.mubr.bf16.gmra.mrb[20].mxu1 %v17545_v15  ;;  %v19707_v32 = vld [vmem:[#allocation197_spill] sm:$0xff] }
 0x494   :  { %v17769_v45 = vpack.c.bf16 %v3925_v37, %v3922_v6  ;;  %v3624_v55 = vmax.f32 %v19702_v11, %v3429_v40  ;;  %v3437_v21 = vmax.f32 %v17726_v12, %v3082_v8  ;;  %8611 = vmatmul.mubr.bf16.gmra.mrb[124].mxu0 %v17545_v15  ;;  %7076 = vmatprep.mubr.bf16.mxu1 %v17590_v29 }
 0x495   :  { %19703 = vst [vmem:[#allocation86_spill] sm:$0xff] %v17777_v61  ;;  %v3785_v33 = vadd.f32 %v17015_v24, %v3625_v57  ;;  %v19706_v44 = vmax.f32 %v19704_v47, %v19705_v63  ;;  %v19709_v37 = vmax.f32 %v19707_v32, %v19708_v36  ;;  %8620 = vmatprep.mubr.bf16.mxu0 %v17590_v29  ;;  %v19714_v29 = vld [vmem:[#allocation46_spill] sm:$0xff] }
 0x496   :  { %v3784_v6 = vadd.f32 %v17020_v1, %v3624_v55  ;;  %v3786_v12 = vadd.f32 %v16716_v52, %v3626_v43  ;;  %v3629_v49 = vmax.f32 %v3434_v34, %v3437_v21  ;;  %v2573_v40 = vpop.f32.mrb[172].mxu1 }
 0x497   :  { %v3628_v41 = vmax.f32 %v19706_v44, %v3436_v46  ;;  %v3627_v10 = vmax.f32 %v19709_v37, %v3435_v62  ;;  %v3086_v13 = vpop.f32.mrb[20].mxu0  ;;  %v2575_v0 = vpop.f32.mrb[173].mxu1  ;;  %v3929_v22 = vmax.f32 %v3785_v33, 0.0 }
 0x498   :  { %v3789_v17 = vadd.f32 %v16716_v52, %v3629_v49  ;;  %v3088_v53 = vpop.f32.mrb[21].mxu0  ;;  %v2577_v30 = vpop.f32.mrb[174].mxu1  ;;  %v3928_v31 = vmax.f32 %v3784_v6, 0.0  ;;  %v3930_v11 = vmax.f32 %v3786_v12, 0.0 }
 0x499   :  { %v3788_v54 = vadd.f32 %v17015_v24, %v3628_v41  ;;  %v3787_v42 = vadd.f32 %v17020_v1, %v3627_v10  ;;  %v3090_v48 = vpop.f32.mrb[22].mxu0  ;;  %v2579_v51 = vpop.f32.mrb[175].mxu1 }
 0x49a   :  { %v3933_v55 = vmax.f32 %v3789_v17, 0.0  ;;  %v3092_v34 = vpop.f32.mrb[23].mxu0 }
 0x49b   :  { %v3932_v3 = vmax.f32 %v3788_v54, 0.0  ;;  %v3931_v57 = vmax.f32 %v3787_v42, 0.0  ;;  %7077 = vmatmul.mubr.bf16.gmra.mrb[24].mxu1 %v17592_v9 }
 0x49c   :  { %v17803_v46 = vpack.c.bf16 %v3933_v55, %v3930_v11  ;;  %8621 = vmatmul.mubr.bf16.gmra.mrb[128].mxu0 %v17592_v9  ;;  %7086 = vmatprep.mubr.bf16.mxu1 %v17655_v19  ;;  %v19712_v11 = vld [vmem:[#allocation56_spill] sm:$0xff] }
 0x49d   :  { %v17798_v8 = vpack.c.bf16 %v3932_v3, %v3929_v22  ;;  %v17800_v43 = vpack.c.bf16 %v3931_v57, %v3928_v31  ;;  %8630 = vmatprep.mubr.bf16.mxu0 %v17655_v19  ;;  %v19711_v57 = vld [vmem:[#allocation48_spill] sm:$0xff] }
 0x49e   :  { %19710 = vst [vmem:[#allocation96_spill] sm:$0xff] %v17803_v46  ;;  %v17808_v62 = vpop.f32.mrb[176].mxu1  ;;  %v19713_v55 = vmax.f32 %v19711_v57, %v19712_v11  ;;  %v19716_v46 = vmax.f32 %v19714_v29, %v19715_v5 }
 0x49f   :  { %v17810_v21 = vpop.f32.mrb[24].mxu0  ;;  %v17812_v33 = vpop.f32.mrb[177].mxu1 }
 0x4a0   :  { %v17814_v6 = vpop.f32.mrb[25].mxu0  ;;  %v17816_v47 = vpop.f32.mrb[178].mxu1 }
 0x4a1   :  { %v17818_v63 = vpop.f32.mrb[26].mxu0  ;;  %v17820_v44 = vpop.f32.mrb[179].mxu1 }
 0x4a2   :  { %v17822_v41 = vpop.f32.mrb[27].mxu0 }
 0x4a3   :  { %7087 = vmatmul.mubr.bf16.gmra.mrb[28].mxu1 %v17657_v50 }
 0x4a4   :  { %8631 = vmatmul.mubr.bf16.gmra.mrb[132].mxu0 %v17657_v50  ;;  %7096 = vmatprep.mubr.bf16.mxu1 %v17702_v4 }
 0x4a5   :  { %8640 = vmatprep.mubr.bf16.mxu0 %v17702_v4 }
 0x4a6   :  { %v2593_v32 = vpop.f32.mrb[180].mxu1 }
 0x4a7   :  { %v3440_v36 = vmax.f32 %v2573_v40, %v2593_v32  ;;  %v3106_v37 = vpop.f32.mrb[28].mxu0  ;;  %v2595_v10 = vpop.f32.mrb[181].mxu1 }
 0x4a8   :  { %v3442_v12 = vmax.f32 %v3086_v13, %v3106_v37  ;;  %v3441_v49 = vmax.f32 %v2575_v0, %v2595_v10  ;;  %v3108_v54 = vpop.f32.mrb[29].mxu0  ;;  %v2597_v42 = vpop.f32.mrb[182].mxu1  ;;  %v19718_v37 = vld [vmem:[#allocation219_spill] sm:$0xff] }
 0x4a9   :  { %v3443_v17 = vmax.f32 %v3088_v53, %v3108_v54  ;;  %v3446_v22 = vmax.f32 %v2577_v30, %v2597_v42  ;;  %v3110_v31 = vpop.f32.mrb[30].mxu0  ;;  %v2599_v3 = vpop.f32.mrb[183].mxu1  ;;  %v19717_v30 = vld [vmem:[#allocation212_spill] sm:$0xff]  ;;  %v19721_v42 = vld [vmem:[#allocation217_spill] sm:$0xff] }
 0x4aa   :  { %v3631_v19 = vmax.f32 %v19713_v55, %v3442_v12  ;;  %v3630_v4 = vmax.f32 %v19716_v46, %v3441_v49  ;;  %v3448_v61 = vmax.f32 %v3090_v48, %v3110_v31  ;;  %v3447_v40 = vmax.f32 %v2579_v51, %v2599_v3  ;;  %v3112_v32 = vpop.f32.mrb[31].mxu0  ;;  %v19720_v12 = vld [vmem:[#allocation210_spill] sm:$0xff] }
 0x4ab   :  { %v3632_v27 = vmax.f32 %v3440_v36, %v3443_v17  ;;  %v3449_v13 = vmax.f32 %v3092_v34, %v3112_v32  ;;  %7097 = vmatmul.mubr.bf16.gmra.mrb[32].mxu1 %v17704_v38  ;;  %v19719_v10 = vmax.f32 %v19717_v30, %v19718_v37  ;;  %v19722_v57 = vmax.f32 %v19720_v12, %v19721_v42 }
 0x4ac   :  { %v3791_v0 = vadd.f32 %v17015_v24, %v3631_v19  ;;  %v3790_v53 = vadd.f32 %v17020_v1, %v3630_v4  ;;  %8641 = vmatmul.mubr.bf16.gmra.mrb[136].mxu0 %v17704_v38  ;;  %7106 = vmatprep.mubr.bf16.mxu1 %v17767_v28 }
 0x4ad   :  { %v3634_v54 = vmax.f32 %v19719_v10, %v3448_v61  ;;  %v3633_v5 = vmax.f32 %v19722_v57, %v3447_v40  ;;  %v3792_v29 = vadd.f32 %v16716_v52, %v3632_v27  ;;  %v3635_v48 = vmax.f32 %v3446_v22, %v3449_v13  ;;  %8650 = vmatprep.mubr.bf16.mxu0 %v17767_v28 }
 0x4ae   :  { %v2603_v51 = vpop.f32.mrb[184].mxu1  ;;  %v3935_v34 = vmax.f32 %v3791_v0, 0.0  ;;  %v3934_v61 = vmax.f32 %v3790_v53, 0.0  ;;  %v19723_v10 = vmax.f32 %v16842_v35, %v16908_v20 }
 0x4af   :  { %v3794_v19 = vadd.f32 %v17015_v24, %v3634_v54  ;;  %v3793_v4 = vadd.f32 %v17020_v1, %v3633_v5  ;;  %v3795_v46 = vadd.f32 %v16716_v52, %v3635_v48  ;;  %v3452_v36 = vmax.f32 %v17808_v62, %v2603_v51  ;;  %v3116_v49 = vpop.f32.mrb[32].mxu0  ;;  %v2605_v17 = vpop.f32.mrb[185].mxu1  ;;  %v19724_v54 = vld [vmem:[#allocation50_spill] sm:$0xff] }
 0x4b0   :  { %v3454_v22 = vmax.f32 %v17810_v21, %v3116_v49  ;;  %v3453_v3 = vmax.f32 %v17812_v33, %v2605_v17  ;;  %v3118_v11 = vpop.f32.mrb[33].mxu0  ;;  %v2607_v55 = vpop.f32.mrb[186].mxu1  ;;  %v3936_v40 = vmax.f32 %v3792_v29, 0.0  ;;  %v19725_v33 = vld [vmem:[#allocation58_spill] sm:$0xff] }
 0x4b1   :  { %v3938_v31 = vmax.f32 %v3794_v19, 0.0  ;;  %v3937_v27 = vmax.f32 %v3793_v4, 0.0  ;;  %v3939_v32 = vmax.f32 %v3795_v46, 0.0  ;;  %v3455_v13 = vmax.f32 %v17814_v6, %v3118_v11  ;;  %v3120_v53 = vpop.f32.mrb[34].mxu0  ;;  %v2609_v30 = vpop.f32.mrb[187].mxu1  ;;  %v19727_v19 = vld [vmem:[#allocation215_spill] sm:$0xff] }
 0x4b2   :  { %v3458_v0 = vmax.f32 %v17816_v47, %v2607_v55  ;;  %v3637_v21 = vmax.f32 %v19723_v10, %v3454_v22  ;;  %v19726_v12 = vmax.f32 %v19724_v54, %v19725_v33  ;;  %v3122_v57 = vpop.f32.mrb[35].mxu0  ;;  %v3460_v47 = vmax.f32 %v17818_v63, %v3120_v53  ;;  %v19728_v4 = vld [vmem:[#allocation222_spill] sm:$0xff]  ;;  %v19731_v63 = vld [vmem:[#allocation220_spill] sm:$0xff] }
 0x4b3   :  { %v17855_v37 = vpack.c.bf16 %v3938_v31, %v3935_v34  ;;  %v17857_v62 = vpack.c.bf16 %v3937_v27, %v3934_v61  ;;  %v17865_v5 = vpack.c.bf16 %v3939_v32, %v3936_v40  ;;  %v3638_v6 = vmax.f32 %v3452_v36, %v3455_v13  ;;  %7107 = vmatmul.mubr.bf16.gmra.mrb[36].mxu1 %v17769_v45  ;;  %v19730_v61 = vld [vmem:[#allocation213_spill] sm:$0xff] }
 0x4b4   :  { %v3636_v42 = vmax.f32 %v19726_v12, %v3453_v3  ;;  %v3459_v29 = vmax.f32 %v17820_v44, %v2609_v30  ;;  %v3461_v48 = vmax.f32 %v17822_v41, %v3122_v57  ;;  %8651 = vmatmul.mubr.bf16.gmra.mrb[140].mxu0 %v17769_v45  ;;  %7116 = vmatprep.mubr.bf16.mxu1 %v17798_v8 }
 0x4b5   :  { %v3797_v20 = vadd.f32 %v17015_v24, %v3637_v21  ;;  %v19729_v51 = vmax.f32 %v19727_v19, %v19728_v4  ;;  %v19732_v46 = vmax.f32 %v19730_v61, %v19731_v63  ;;  %8660 = vmatprep.mubr.bf16.mxu0 %v17798_v8  ;;  %v3798_v41 = vadd.f32 %v16716_v52, %v3638_v6  ;;  %v13618_v4 = vld [vmem:[#allocation6 + $0x408] ss:$16 sps:$4 sm:$0xff]   ;;  %v13621_v61 = vld [vmem:[#allocation6 + $0x420] ss:$16 sps:$4 sm:$0xff]  }
 0x4b6   :  { %v3796_v35 = vadd.f32 %v17020_v1, %v3636_v42  ;;  %v3641_v36 = vmax.f32 %v3458_v0, %v3461_v48  ;;  %v17883_v49 = vpop.f32.mrb[188].mxu1  ;;  %v13624_v63 = vld [vmem:[#allocation6 + $0x428] ss:$16 sps:$4 sm:$0xff]  }
 0x4b7   :  { %v3640_v34 = vmax.f32 %v19729_v51, %v3460_v47  ;;  %v3639_v44 = vmax.f32 %v19732_v46, %v3459_v29  ;;  %v3126_v27 = vpop.f32.mrb[36].mxu0  ;;  %v2615_v22 = vpop.f32.mrb[189].mxu1  ;;  %v3941_v40 = vmax.f32 %v3797_v20, 0.0  ;;  %v3942_v10 = vmax.f32 %v3798_v41, 0.0  ;;  %v13615_v20 = vld [vmem:[#allocation6 + $0x400] ss:$16 sps:$4 sm:$0xff]  }
 0x4b8   :  { %v3801_v3 = vadd.f32 %v16716_v52, %v3641_v36  ;;  %v17888_v11 = vpop.f32.mrb[37].mxu0  ;;  %v17890_v55 = vpop.f32.mrb[190].mxu1  ;;  %v3940_v32 = vmax.f32 %v3796_v35, 0.0  ;;  %v13629_v46 = vld [vmem:[#allocation6 + $0x444] ss:$16 sps:$4 sm:$0xff]  }
 0x4b9   :  { %v3800_v17 = vadd.f32 %v17015_v24, %v3640_v34  ;;  %v3799_v31 = vadd.f32 %v17020_v1, %v3639_v44  ;;  %v17892_v30 = vpop.f32.mrb[38].mxu0  ;;  %v17894_v0 = vpop.f32.mrb[191].mxu1  ;;  %v13623_v34 = vld [vmem:[#allocation6 + $0x424] ss:$16 sps:$4 sm:$0xff]   ;;  %v13632_v41 = vld [vmem:[#allocation6 + $0x44c] ss:$16 sps:$4 sm:$0xff]  }
 0x4ba   :  { %v3945_v21 = vmax.f32 %v3801_v3, 0.0  ;;  %v17896_v54 = vpop.f32.mrb[39].mxu0 }
 0x4bb   :  { %v3944_v13 = vmax.f32 %v3800_v17, 0.0  ;;  %v3943_v53 = vmax.f32 %v3799_v31, 0.0  ;;  %7117 = vmatmul.mubr.bf16.gmra.mrb[40].mxu1 %v17800_v43 }
 0x4bc   :  { %v17903_v42 = vpack.c.bf16 %v3945_v21, %v3942_v10  ;;  %8661 = vmatmul.mubr.bf16.gmra.mrb[144].mxu0 %v17800_v43  ;;  %7159 = vmatprep.mubr.bf16.mxu1 %v17175_v2 }
 0x4bd   :  { %v17898_v33 = vpack.c.bf16 %v3944_v13, %v3941_v40  ;;  %v17900_v12 = vpack.c.bf16 %v3943_v53, %v3940_v32  ;;  %8703 = vmatprep.mubr.bf16.mxu0 %v17175_v2  ;;  %v13626_v2 = vld [vmem:[#allocation6 + $0x42c] ss:$16 sps:$4 sm:$0xff]  }
 0x4be   :  { %v17908_v57 = vpop.f32.mrb[192].mxu1 }
 0x4bf   :  { %v17910_v6 = vpop.f32.mrb[40].mxu0  ;;  %v17912_v47 = vpop.f32.mrb[193].mxu1 }
 0x4c0   :  { %v17914_v29 = vpop.f32.mrb[41].mxu0  ;;  %v17916_v48 = vpop.f32.mrb[194].mxu1 }
 0x4c1   :  { %v17918_v35 = vpop.f32.mrb[42].mxu0  ;;  %v17920_v19 = vpop.f32.mrb[195].mxu1 }
 0x4c2   :  { %v17922_v51 = vpop.f32.mrb[43].mxu0 }
 0x4c3   :  { %7160 = vmatmul.mubr.bf16.vlgmr.msra.gmra.mrb[236].mxu1 %v17058_v14 }
 0x4c4   :  { %7321 = vmatpush1.bf16.msra.mxu1 %v13615_v20  ;;  %8704 = vmatmul.mubr.bf16.vlgmr.msra.gmra.mrb[84].mxu0 %v17058_v14  ;;  %v19734_v20 = vld [vmem:[#allocation27_spill] sm:$0xff] }
 0x4c5   :  { %8865 = vmatpush1.bf16.msra.mxu0 %v13618_v4  ;;  %7169 = vmatprep.mubr.bf16.mxu1 %v17182_v59 }
 0x4c6   :  { %8713 = vmatprep.mubr.bf16.mxu0 %v17182_v59  ;;  %v2633_v44 = vpop.f32.mrb[196].mxu1  ;;  %7322 = vmatprep.subr.bf16.mxu1 %v13623_v34  ;;  %v19733_v59 = vld [vmem:[#allocation65_spill] sm:$0xff]  ;;  %v19736_v34 = vld [vmem:[#allocation62_spill] sm:$0xff] }
 0x4c7   :  { %v3464_v36 = vmax.f32 %v17883_v49, %v2633_v44  ;;  %v3146_v17 = vpop.f32.mrb[44].mxu0  ;;  %v2635_v31 = vpop.f32.mrb[197].mxu1  ;;  %8866 = vmatprep.subr.bf16.mxu0 %v13626_v2  ;;  %v19735_v4 = vmax.f32 %v19733_v59, %v19734_v20  ;;  %v19737_v44 = vld [vmem:[#allocation25_spill] sm:$0xff]  ;;  %v19740_v59 = vld [vmem:[#allocation190_spill] sm:$0xff] }
 0x4c8   :  { %v3466_v3 = vmax.f32 %v3126_v27, %v3146_v17  ;;  %v3465_v40 = vmax.f32 %v2615_v22, %v2635_v31  ;;  %v3148_v32 = vpop.f32.mrb[45].mxu0  ;;  %v2637_v14 = vpop.f32.mrb[198].mxu1  ;;  %7323 = vmatpush1.bf16.msra.mxu1 %v13621_v61  ;;  %v19738_v2 = vmax.f32 %v19736_v34, %v19737_v44  ;;  %v13630_v31 = vld [vmem:[#allocation6 + $0x448] ss:$16 sps:$4 sm:$0xff]   ;;  %v13633_v34 = vld [vmem:[#allocation6 + $0x460] ss:$16 sps:$4 sm:$0xff]  }
 0x4c9   :  { %v3467_v13 = vmax.f32 %v17888_v11, %v3148_v32  ;;  %v3470_v53 = vmax.f32 %v17890_v55, %v2637_v14  ;;  %v3150_v10 = vpop.f32.mrb[46].mxu0  ;;  %v2639_v21 = vpop.f32.mrb[199].mxu1  ;;  %8867 = vmatpush1.bf16.msra.mxu0 %v13624_v63  ;;  %7324 = vmatprep.subr.bf16.mxu1 %v13629_v46  ;;  %v13627_v11 = vld [vmem:[#allocation6 + $0x440] ss:$16 sps:$4 sm:$0xff]   ;;  %v13635_v46 = vld [vmem:[#allocation6 + $0x464] ss:$16 sps:$4 sm:$0xff]  }
 0x4ca   :  { %v3643_v49 = vmax.f32 %v19735_v4, %v3466_v3  ;;  %v3642_v27 = vmax.f32 %v19738_v2, %v3465_v40  ;;  %v3472_v22 = vmax.f32 %v17892_v30, %v3150_v10  ;;  %v3471_v61 = vmax.f32 %v17894_v0, %v2639_v21  ;;  %v3152_v17 = vpop.f32.mrb[47].mxu0  ;;  %8868 = vmatprep.subr.bf16.mxu0 %v13632_v41  ;;  %v13638_v32 = vld [vmem:[#allocation6 + $0x46c] ss:$16 sps:$4 sm:$0xff]   ;;  %v19739_v40 = vld [vmem:[#allocation226_spill] sm:$0xff]  ;;  %v19742_v0 = vld [vmem:[#allocation224_spill] sm:$0xff] }
 0x4cb   :  { %v3644_v55 = vmax.f32 %v3464_v36, %v3467_v13  ;;  %v3473_v63 = vmax.f32 %v17896_v54, %v3152_v17  ;;  %7170 = vmatmul.mubr.bf16.gmra.mrb[240].mxu1 %v17089_v23  ;;  %v19741_v30 = vmax.f32 %v19739_v40, %v19740_v59  ;;  %v19743_v21 = vld [vmem:[#allocation188_spill] sm:$0xff] }
 0x4cc   :  { %v3803_v3 = vadd.f32 %v17015_v24, %v3643_v49  ;;  %v3802_v14 = vadd.f32 %v17020_v1, %v3642_v27  ;;  %v19744_v20 = vmax.f32 %v19742_v0, %v19743_v21  ;;  %8714 = vmatmul.mubr.bf16.gmra.mrb[88].mxu0 %v17089_v23  ;;  %7179 = vmatprep.mubr.bf16.mxu1 %v17245_v60  ;;  %v19748_v21 = vld [vmem:[#allocation31_spill] sm:$0xff] }
 0x4cd   :  { %v3646_v10 = vmax.f32 %v19741_v30, %v3472_v22  ;;  %v3804_v54 = vadd.f32 %v16716_v52, %v3644_v55  ;;  %v3647_v41 = vmax.f32 %v3470_v53, %v3473_v63  ;;  %8723 = vmatprep.mubr.bf16.mxu0 %v17245_v60  ;;  %7325 = vmatpush1.bf16.msra.mxu1 %v13627_v11 }
 0x4ce   :  { %v3645_v4 = vmax.f32 %v19744_v20, %v3471_v61  ;;  %v2643_v49 = vpop.f32.mrb[200].mxu1  ;;  %8869 = vmatpush1.bf16.msra.mxu0 %v13630_v31  ;;  %v3947_v44 = vmax.f32 %v3803_v3, 0.0  ;;  %v3946_v2 = vmax.f32 %v3802_v14, 0.0  ;;  %7326 = vmatprep.subr.bf16.mxu1 %v13635_v46 }
 0x4cf   :  { %v3806_v36 = vadd.f32 %v17015_v24, %v3646_v10  ;;  %v3807_v27 = vadd.f32 %v16716_v52, %v3647_v41  ;;  %v3476_v23 = vmax.f32 %v17908_v57, %v2643_v49  ;;  %v3156_v22 = vpop.f32.mrb[48].mxu0  ;;  %v2645_v53 = vpop.f32.mrb[201].mxu1  ;;  %8870 = vmatprep.subr.bf16.mxu0 %v13638_v32  ;;  %v3948_v31 = vmax.f32 %v3804_v54, 0.0  ;;  %v13636_v10 = vld [vmem:[#allocation6 + $0x468] ss:$16 sps:$4 sm:$0xff]  }
 0x4d0   :  { %v3805_v13 = vadd.f32 %v17020_v1, %v3645_v4  ;;  %v3478_v55 = vmax.f32 %v17910_v6, %v3156_v22  ;;  %v3477_v63 = vmax.f32 %v17912_v47, %v2645_v53  ;;  %v3158_v40 = vpop.f32.mrb[49].mxu0  ;;  %v2647_v11 = vpop.f32.mrb[202].mxu1  ;;  %v19747_v32 = vld [vmem:[#allocation182_spill] sm:$0xff]  ;;  %v19750_v47 = vld [vmem:[#allocation180_spill] sm:$0xff]  ;;  %v19751_v4 = vld [vmem:[#allocation29_spill] sm:$0xff] }
 0x4d1   :  { %v3950_v61 = vmax.f32 %v3806_v36, 0.0  ;;  %v3951_v59 = vmax.f32 %v3807_v27, 0.0  ;;  %v3479_v3 = vmax.f32 %v17914_v29, %v3158_v40  ;;  %v3482_v14 = vmax.f32 %v17916_v48, %v2647_v11  ;;  %v3160_v30 = vpop.f32.mrb[50].mxu0  ;;  %v2649_v57 = vpop.f32.mrb[203].mxu1  ;;  %7327 = vmatpush1.bf16.msra.mxu1 %v13633_v34  ;;  %v13641_v29 = vld [vmem:[#allocation6 + $0x484] ss:$16 sps:$4 sm:$0xff]  }
 0x4d2   :  { %v3949_v17 = vmax.f32 %v3805_v13, 0.0  ;;  %v19749_v6 = vmax.f32 %v19747_v32, %v19748_v21  ;;  %v19752_v41 = vmax.f32 %v19750_v47, %v19751_v4  ;;  %v3162_v36 = vpop.f32.mrb[51].mxu0  ;;  %v13644_v13 = vld [vmem:[#allocation6 + $0x48c] ss:$16 sps:$4 sm:$0xff]   ;;  %v13639_v27 = vld [vmem:[#allocation6 + $0x480] ss:$16 sps:$4 sm:$0xff]   ;;  %8871 = vmatpush1.bf16.msra.mxu0 %v13636_v10  ;;  %7328 = vmatprep.subr.bf16.mxu1 %v13641_v29 }
 0x4d3   :  { %v17961_v0 = vpack.c.bf16 %v3950_v61, %v3947_v44  ;;  %v17971_v48 = vpack.c.bf16 %v3951_v59, %v3948_v31  ;;  %v3650_v49 = vmax.f32 %v3476_v23, %v3479_v3  ;;  %v3484_v44 = vmax.f32 %v17918_v35, %v3160_v30  ;;  %7180 = vmatmul.mubr.bf16.gmra.mrb[244].mxu1 %v17156_v39  ;;  %v13647_v34 = vld [vmem:[#allocation6 + $0x4a4] ss:$16 sps:$4 sm:$0xff]   ;;  %v13642_v31 = vld [vmem:[#allocation6 + $0x488] ss:$16 sps:$4 sm:$0xff]   ;;  %v13650_v30 = vld [vmem:[#allocation6 + $0x4ac] ss:$16 sps:$4 sm:$0xff]  }
 0x4d4   :  { %v17963_v46 = vpack.c.bf16 %v3949_v17, %v3946_v2  ;;  %v3649_v20 = vmax.f32 %v19749_v6, %v3478_v55  ;;  %v3648_v54 = vmax.f32 %v19752_v41, %v3477_v63  ;;  %v3483_v2 = vmax.f32 %v17920_v19, %v2649_v57  ;;  %8724 = vmatmul.mubr.bf16.gmra.mrb[92].mxu0 %v17156_v39  ;;  %v19754_v17 = vld [vmem:[#allocation186_spill] sm:$0xff]  ;;  %v19757_v63 = vld [vmem:[#allocation184_spill] sm:$0xff] }
 0x4d5   :  { %19745 = vst [vmem:[#allocation64_spill] sm:$0xff] %v17961_v0  ;;  %19753 = vst [vmem:[#allocation111_spill] sm:$0xff] %v17971_v48  ;;  %v3485_v53 = vmax.f32 %v17922_v51, %v3162_v36  ;;  %7189 = vmatprep.mubr.bf16.mxu1 %v17278_v16  ;;  %v19755_v23 = vld [vmem:[#allocation194_spill] sm:$0xff]  ;;  %v19758_v19 = vld [vmem:[#allocation192_spill] sm:$0xff]  ;;  %8733 = vmatprep.mubr.bf16.mxu0 %v17278_v16  ;;  %v3810_v51 = vadd.f32 %v16716_v52, %v3650_v49 }
 0x4d6   :  { %19746 = vst [vmem:[#allocation100_spill] sm:$0xff] %v17963_v46  ;;  %v3809_v22 = vadd.f32 %v17015_v24, %v3649_v20  ;;  %v3808_v61 = vadd.f32 %v17020_v1, %v3648_v54  ;;  %v19756_v55 = vmax.f32 %v19754_v17, %v19755_v23  ;;  %v19759_v40 = vmax.f32 %v19757_v63, %v19758_v19  ;;  %v17989_v3 = vpop.f32.mrb[204].mxu1  ;;  %v13648_v4 = vld [vmem:[#allocation6 + $0x4a8] ss:$16 sps:$4 sm:$0xff]   ;;  %v13659_v63 = vld [vmem:[#allocation6 + $0x4e4] ss:$16 sps:$4 sm:$0xff]  }
 0x4d7   :  { %v3653_v59 = vmax.f32 %v3482_v14, %v3485_v53  ;;  %8872 = vmatprep.subr.bf16.mxu0 %v13644_v13  ;;  %v17993_v21 = vpop.f32.mrb[52].mxu0  ;;  %v17995_v6 = vpop.f32.mrb[205].mxu1  ;;  %7329 = vmatpush1.bf16.msra.mxu1 %v13639_v27  ;;  %v13645_v14 = vld [vmem:[#allocation6 + $0x4a0] ss:$16 sps:$4 sm:$0xff]   ;;  %v13653_v53 = vld [vmem:[#allocation6 + $0x4c4] ss:$16 sps:$4 sm:$0xff]  }
 0x4d8   :  { %v3652_v35 = vmax.f32 %v19756_v55, %v3484_v44  ;;  %v3651_v11 = vmax.f32 %v19759_v40, %v3483_v2  ;;  %v17998_v20 = vpop.f32.mrb[53].mxu0  ;;  %v18000_v47 = vpop.f32.mrb[206].mxu1  ;;  %7330 = vmatprep.subr.bf16.mxu1 %v13647_v34  ;;  %v3953_v41 = vmax.f32 %v3809_v22, 0.0  ;;  %v3952_v54 = vmax.f32 %v3808_v61, 0.0  ;;  %8873 = vmatpush1.bf16.msra.mxu0 %v13642_v31  ;;  %v13656_v22 = vld [vmem:[#allocation6 + $0x4cc] ss:$16 sps:$4 sm:$0xff]  }
 0x4d9   :  { %v3813_v10 = vadd.f32 %v16716_v52, %v3653_v59  ;;  %v18002_v13 = vpop.f32.mrb[54].mxu0  ;;  %v18004_v49 = vpop.f32.mrb[207].mxu1  ;;  %v3954_v44 = vmax.f32 %v3810_v51, 0.0  ;;  %8874 = vmatprep.subr.bf16.mxu0 %v13650_v30  ;;  %v13651_v61 = vld [vmem:[#allocation6 + $0x4c0] ss:$16 sps:$4 sm:$0xff]  }
 0x4da   :  { %v3812_v57 = vadd.f32 %v17015_v24, %v3652_v35  ;;  %v3811_v32 = vadd.f32 %v17020_v1, %v3651_v11  ;;  %v18006_v27 = vpop.f32.mrb[55].mxu0  ;;  %v13654_v35 = vld [vmem:[#allocation6 + $0x4c8] ss:$16 sps:$4 sm:$0xff]   ;;  %v13662_v11 = vld [vmem:[#allocation6 + $0x4ec] ss:$16 sps:$4 sm:$0xff]  }
 0x4db   :  { %v3957_v2 = vmax.f32 %v3813_v10, 0.0  ;;  %7190 = vmatmul.mubr.bf16.gmra.mrb[248].mxu1 %v17184_v58  ;;  %v13660_v10 = vld [vmem:[#allocation6 + $0x4e8] ss:$16 sps:$4 sm:$0xff]  }
 0x4dc   :  { %v3956_v36 = vmax.f32 %v3812_v57, 0.0  ;;  %v3955_v29 = vmax.f32 %v3811_v32, 0.0  ;;  %8734 = vmatmul.mubr.bf16.gmra.mrb[96].mxu0 %v17184_v58  ;;  %7199 = vmatprep.mubr.bf16.mxu1 %v17341_v18  ;;  %v13657_v57 = vld [vmem:[#allocation6 + $0x4e0] ss:$16 sps:$4 sm:$0xff]  }
 0x4dd   :  { %v18013_v34 = vpack.c.bf16 %v3957_v2, %v3954_v44  ;;  %8743 = vmatprep.mubr.bf16.mxu0 %v17341_v18  ;;  %7331 = vmatpush1.bf16.msra.mxu1 %v13645_v14  ;;  %v13665_v14 = vld [vmem:[#allocation6 + $0x504] ss:$16 sps:$4 sm:$0xff]  }
 0x4de   :  { %v18008_v17 = vpack.c.bf16 %v3956_v36, %v3953_v41  ;;  %v18010_v23 = vpack.c.bf16 %v3955_v29, %v3952_v54  ;;  %v18018_v55 = vpop.f32.mrb[208].mxu1  ;;  %8875 = vmatpush1.bf16.msra.mxu0 %v13648_v4  ;;  %7332 = vmatprep.subr.bf16.mxu1 %v13653_v53  ;;  %v19763_v4 = vld [vmem:[#allocation103_spill] sm:$0xff] }
 0x4df   :  { %19762 = vst [vmem:[#allocation66_spill] sm:$0xff] %v18013_v34  ;;  %v18020_v19 = vpop.f32.mrb[56].mxu0  ;;  %v18022_v40 = vpop.f32.mrb[209].mxu1  ;;  %8876 = vmatprep.subr.bf16.mxu0 %v13656_v22  ;;  %v13668_v41 = vld [vmem:[#allocation6 + $0x50c] ss:$16 sps:$4 sm:$0xff]  }
 0x4e0   :  { %19760 = vst [vmem:[#allocation98_spill] sm:$0xff] %v18008_v17  ;;  %19761 = vst [vmem:[#allocation109_spill] sm:$0xff] %v18010_v23  ;;  %v18024_v31 = vpop.f32.mrb[57].mxu0  ;;  %v18026_v51 = vpop.f32.mrb[210].mxu1  ;;  %v13663_v54 = vld [vmem:[#allocation6 + $0x500] ss:$16 sps:$4 sm:$0xff]  }
 0x4e1   :  { %v18028_v59 = vpop.f32.mrb[58].mxu0  ;;  %v18030_v30 = vpop.f32.mrb[211].mxu1  ;;  %7333 = vmatpush1.bf16.msra.mxu1 %v13651_v61  ;;  %v13666_v29 = vld [vmem:[#allocation6 + $0x508] ss:$16 sps:$4 sm:$0xff]   ;;  %v13671_v22 = vld [vmem:[#allocation6 + $0x524] ss:$16 sps:$4 sm:$0xff]  }
 0x4e2   :  { %v18032_v32 = vpop.f32.mrb[59].mxu0  ;;  %8877 = vmatpush1.bf16.msra.mxu0 %v13654_v35  ;;  %7334 = vmatprep.subr.bf16.mxu1 %v13659_v63  ;;  %v19765_v23 = vld [vmem:[#allocation43_spill] sm:$0xff]  ;;  %v19767_v17 = vld [vmem:[#allocation33_spill] sm:$0xff] }
 0x4e3   :  { %7200 = vmatmul.mubr.bf16.gmra.mrb[252].mxu1 %v19763_v4  ;;  %8878 = vmatprep.subr.bf16.mxu0 %v13662_v11 }
 0x4e4   :  { %8744 = vmatmul.mubr.bf16.gmra.mrb[100].mxu0 %v19763_v4  ;;  %7209 = vmatprep.mubr.bf16.mxu1 %v17374_v25 }
 0x4e5   :  { %8753 = vmatprep.mubr.bf16.mxu0 %v17374_v25  ;;  %7335 = vmatpush1.bf16.msra.mxu1 %v13657_v57 }
 0x4e6   :  { %v2673_v36 = vpop.f32.mrb[212].mxu1  ;;  %8879 = vmatpush1.bf16.msra.mxu0 %v13660_v10  ;;  %7336 = vmatprep.subr.bf16.mxu1 %v13665_v14  ;;  %v19764_v14 = vld [vmem:[#allocation35_spill] sm:$0xff] }
 0x4e7   :  { %v3488_v44 = vmax.f32 %v17989_v3, %v2673_v36  ;;  %v3186_v2 = vpop.f32.mrb[60].mxu0  ;;  %v2675_v53 = vpop.f32.mrb[213].mxu1  ;;  %8880 = vmatprep.subr.bf16.mxu0 %v13668_v41  ;;  %v19766_v3 = vmax.f32 %v19764_v14, %v19765_v23  ;;  %v19768_v41 = vld [vmem:[#allocation41_spill] sm:$0xff] }
 0x4e8   :  { %v3490_v61 = vmax.f32 %v17993_v21, %v3186_v2  ;;  %v3489_v35 = vmax.f32 %v17995_v6, %v2675_v53  ;;  %v3188_v63 = vpop.f32.mrb[61].mxu0  ;;  %v2677_v11 = vpop.f32.mrb[214].mxu1  ;;  %v19769_v46 = vmax.f32 %v19767_v17, %v19768_v41  ;;  %v13674_v53 = vld [vmem:[#allocation6 + $0x52c] ss:$16 sps:$4 sm:$0xff]   ;;  %v13672_v23 = vld [vmem:[#allocation6 + $0x528] ss:$16 sps:$4 sm:$0xff]  }
 0x4e9   :  { %v3491_v34 = vmax.f32 %v17998_v20, %v3188_v63  ;;  %v3494_v57 = vmax.f32 %v18000_v47, %v2677_v11  ;;  %v3190_v48 = vpop.f32.mrb[62].mxu0  ;;  %v2679_v10 = vpop.f32.mrb[215].mxu1  ;;  %7337 = vmatpush1.bf16.msra.mxu1 %v13663_v54  ;;  %v13669_v20 = vld [vmem:[#allocation6 + $0x520] ss:$16 sps:$4 sm:$0xff]  }
 0x4ea   :  { %v3655_v36 = vmax.f32 %v19766_v3, %v3490_v61  ;;  %v3654_v0 = vmax.f32 %v19769_v46, %v3489_v35  ;;  %v3496_v21 = vmax.f32 %v18002_v13, %v3190_v48  ;;  %v3495_v6 = vmax.f32 %v18004_v49, %v2679_v10  ;;  %v3192_v2 = vpop.f32.mrb[63].mxu0  ;;  %8881 = vmatpush1.bf16.msra.mxu0 %v13666_v29  ;;  %v19770_v54 = vld [vmem:[#allocation77_spill] sm:$0xff]  ;;  %v13677_v61 = vld [vmem:[#allocation6 + $0x544] ss:$16 sps:$4 sm:$0xff]   ;;  %v19772_v48 = vld [vmem:[#allocation207_spill] sm:$0xff] }
 0x4eb   :  { %v3656_v47 = vmax.f32 %v3488_v44, %v3491_v34  ;;  %v3497_v63 = vmax.f32 %v18006_v27, %v3192_v2  ;;  %7210 = vmatmul.mubr.bf16.gmra.mrb[0].mxu1 %v19770_v54  ;;  %7338 = vmatprep.subr.bf16.mxu1 %v13671_v22  ;;  %v19771_v17 = vld [vmem:[#allocation198_spill] sm:$0xff]  ;;  %v19774_v35 = vld [vmem:[#allocation196_spill] sm:$0xff]  ;;  %v19775_v29 = vld [vmem:[#allocation205_spill] sm:$0xff] }
 0x4ec   :  { %v3815_v11 = vadd.f32 %v17015_v24, %v3655_v36  ;;  %v3814_v46 = vadd.f32 %v17020_v1, %v3654_v0  ;;  %v19773_v13 = vmax.f32 %v19771_v17, %v19772_v48  ;;  %v19776_v10 = vmax.f32 %v19774_v35, %v19775_v29  ;;  %8754 = vmatmul.mubr.bf16.gmra.mrb[104].mxu0 %v19770_v54  ;;  %v13680_v27 = vld [vmem:[#allocation6 + $0x54c] ss:$16 sps:$4 sm:$0xff]   ;;  %v13675_v36 = vld [vmem:[#allocation6 + $0x540] ss:$16 sps:$4 sm:$0xff]  }
 0x4ed   :  { %v3816_v34 = vadd.f32 %v16716_v52, %v3656_v47  ;;  %v3659_v44 = vmax.f32 %v3494_v57, %v3497_v63  ;;  %7219 = vmatprep.mubr.bf16.mxu1 %v17437_v56  ;;  %8763 = vmatprep.mubr.bf16.mxu0 %v17437_v56 }
 0x4ee   :  { %v3658_v49 = vmax.f32 %v19773_v13, %v3496_v21  ;;  %v3657_v14 = vmax.f32 %v19776_v10, %v3495_v6  ;;  %v2683_v3 = vpop.f32.mrb[216].mxu1  ;;  %8882 = vmatprep.subr.bf16.mxu0 %v13674_v53  ;;  %7339 = vmatpush1.bf16.msra.mxu1 %v13669_v20  ;;  %v3959_v41 = vmax.f32 %v3815_v11, 0.0  ;;  %v3958_v21 = vmax.f32 %v3814_v46, 0.0  ;;  %v13678_v10 = vld [vmem:[#allocation6 + $0x548] ss:$16 sps:$4 sm:$0xff]  }
 0x4ef   :  { %v3819_v6 = vadd.f32 %v16716_v52, %v3659_v44  ;;  %v3500_v2 = vmax.f32 %v18018_v55, %v2683_v3  ;;  %v3196_v47 = vpop.f32.mrb[64].mxu0  ;;  %v2685_v57 = vpop.f32.mrb[217].mxu1  ;;  %8883 = vmatpush1.bf16.msra.mxu0 %v13672_v23  ;;  %7340 = vmatprep.subr.bf16.mxu1 %v13677_v61  ;;  %v3960_v20 = vmax.f32 %v3816_v34, 0.0 }
 0x4f0   :  { %v3818_v0 = vadd.f32 %v17015_v24, %v3658_v49  ;;  %v3817_v22 = vadd.f32 %v17020_v1, %v3657_v14  ;;  %v3502_v48 = vmax.f32 %v18020_v19, %v3196_v47  ;;  %v3501_v13 = vmax.f32 %v18022_v40, %v2685_v57  ;;  %v3198_v49 = vpop.f32.mrb[65].mxu0  ;;  %v2687_v53 = vpop.f32.mrb[218].mxu1  ;;  %8884 = vmatprep.subr.bf16.mxu0 %v13680_v27  ;;  %v19779_v14 = vld [vmem:[#allocation40_spill] sm:$0xff]  ;;  %v19780_v19 = vld [vmem:[#allocation47_spill] sm:$0xff] }
 0x4f1   :  { %v3963_v11 = vmax.f32 %v3819_v6, 0.0  ;;  %v3503_v46 = vmax.f32 %v18024_v31, %v3198_v49  ;;  %v3506_v35 = vmax.f32 %v18026_v51, %v2687_v53  ;;  %v3200_v55 = vpop.f32.mrb[66].mxu0  ;;  %v2689_v29 = vpop.f32.mrb[219].mxu1  ;;  %v19781_v44 = vmax.f32 %v19779_v14, %v19780_v19  ;;  %v13683_v31 = vld [vmem:[#allocation6 + $0x564] ss:$16 sps:$4 sm:$0xff]   ;;  %v19786_v57 = vld [vmem:[#allocation75_spill] sm:$0xff] }
 0x4f2   :  { %v3962_v63 = vmax.f32 %v3818_v0, 0.0  ;;  %v3961_v17 = vmax.f32 %v3817_v22, 0.0  ;;  %v19782_v0 = vld [vmem:[#allocation38_spill] sm:$0xff]  ;;  %v19783_v22 = vld [vmem:[#allocation45_spill] sm:$0xff]  ;;  %v3202_v3 = vpop.f32.mrb[67].mxu0  ;;  %7341 = vmatpush1.bf16.msra.mxu1 %v13675_v36  ;;  %v19787_v49 = vld [vmem:[#allocation203_spill] sm:$0xff] }
 0x4f3   :  { %v3661_v40 = vmax.f32 %v19781_v44, %v3502_v48  ;;  %v19784_v27 = vmax.f32 %v19782_v0, %v19783_v22  ;;  %v13686_v6 = vld [vmem:[#allocation6 + $0x56c] ss:$16 sps:$4 sm:$0xff]   ;;  %v18083_v51 = vpack.c.bf16 %v3963_v11, %v3960_v20  ;;  %v3662_v47 = vmax.f32 %v3500_v2, %v3503_v46  ;;  %7220 = vmatmul.mubr.bf16.gmra.mrb[4].mxu1 %v19786_v57  ;;  %v13689_v36 = vld [vmem:[#allocation6 + $0x584] ss:$16 sps:$4 sm:$0xff]  }
 0x4f4   :  { %v18073_v23 = vpack.c.bf16 %v3962_v63, %v3959_v41  ;;  %v18075_v61 = vpack.c.bf16 %v3961_v17, %v3958_v21  ;;  %v3508_v41 = vmax.f32 %v18028_v59, %v3200_v55  ;;  %v3507_v21 = vmax.f32 %v18030_v30, %v2689_v29  ;;  %v13681_v63 = vld [vmem:[#allocation6 + $0x560] ss:$16 sps:$4 sm:$0xff]   ;;  %8764 = vmatmul.mubr.bf16.gmra.mrb[108].mxu0 %v19786_v57  ;;  %v13684_v55 = vld [vmem:[#allocation6 + $0x568] ss:$16 sps:$4 sm:$0xff]   ;;  %v13692_v19 = vld [vmem:[#allocation6 + $0x58c] ss:$16 sps:$4 sm:$0xff]  }
 0x4f5   :  { %v3660_v34 = vmax.f32 %v19784_v27, %v3501_v13  ;;  %19785 = vst [vmem:[#allocation102_spill] sm:$0xff] %v18083_v51  ;;  %v3821_v17 = vadd.f32 %v17015_v24, %v3661_v40  ;;  %v3509_v48 = vmax.f32 %v18032_v32, %v3202_v3  ;;  %7229 = vmatprep.mubr.bf16.mxu1 %v17482_v7  ;;  %v19788_v2 = vld [vmem:[#allocation211_spill] sm:$0xff]  ;;  %v19790_v20 = vld [vmem:[#allocation201_spill] sm:$0xff] }
 0x4f6   :  { %19777 = vst [vmem:[#allocation104_spill] sm:$0xff] %v18073_v23  ;;  %19778 = vst [vmem:[#allocation114_spill] sm:$0xff] %v18075_v61  ;;  %v19789_v53 = vmax.f32 %v19787_v49, %v19788_v2  ;;  %v19791_v30 = vld [vmem:[#allocation209_spill] sm:$0xff]  ;;  %8773 = vmatprep.mubr.bf16.mxu0 %v17482_v7  ;;  %8885 = vmatpush1.bf16.msra.mxu0 %v13678_v10  ;;  %v3822_v32 = vadd.f32 %v16716_v52, %v3662_v47  ;;  %v18101_v14 = vpop.f32.mrb[220].mxu1  ;;  %v19798_v61 = vld [vmem:[#allocation59_spill] sm:$0xff] }
 0x4f7   :  { %v3820_v13 = vadd.f32 %v17020_v1, %v3660_v34  ;;  %v19792_v11 = vmax.f32 %v19790_v20, %v19791_v30  ;;  %v3665_v29 = vmax.f32 %v3506_v35, %v3509_v48  ;;  %7342 = vmatprep.subr.bf16.mxu1 %v13683_v31  ;;  %8886 = vmatprep.subr.bf16.mxu0 %v13686_v6  ;;  %v18105_v0 = vpop.f32.mrb[68].mxu0  ;;  %v18107_v22 = vpop.f32.mrb[221].mxu1  ;;  %v13687_v35 = vld [vmem:[#allocation6 + $0x580] ss:$16 sps:$4 sm:$0xff]   ;;  %v13690_v3 = vld [vmem:[#allocation6 + $0x588] ss:$16 sps:$4 sm:$0xff]  }
 0x4f8   :  { %v3664_v59 = vmax.f32 %v19789_v53, %v3508_v41  ;;  %7343 = vmatpush1.bf16.msra.mxu1 %v13681_v63  ;;  %v18110_v27 = vpop.f32.mrb[69].mxu0  ;;  %v18112_v34 = vpop.f32.mrb[222].mxu1  ;;  %v3965_v31 = vmax.f32 %v3821_v17, 0.0  ;;  %v3966_v49 = vmax.f32 %v3822_v32, 0.0  ;;  %v13695_v53 = vld [vmem:[#allocation6 + $0x5a4] ss:$16 sps:$4 sm:$0xff]  }
 0x4f9   :  { %v3663_v46 = vmax.f32 %v19792_v11, %v3507_v21  ;;  %v3825_v10 = vadd.f32 %v16716_v52, %v3665_v29  ;;  %7344 = vmatprep.subr.bf16.mxu1 %v13689_v36  ;;  %v3964_v6 = vmax.f32 %v3820_v13, 0.0  ;;  %v18114_v21 = vpop.f32.mrb[70].mxu0  ;;  %v18116_v48 = vpop.f32.mrb[223].mxu1  ;;  %v19795_v36 = vld [vmem:[#allocation76_spill] sm:$0xff]  ;;  %v13698_v17 = vld [vmem:[#allocation6 + $0x5ac] ss:$16 sps:$4 sm:$0xff]  }
 0x4fa   :  { %v3824_v44 = vadd.f32 %v17015_v24, %v3664_v59  ;;  %8887 = vmatpush1.bf16.msra.mxu0 %v13684_v55  ;;  %v18118_v2 = vpop.f32.mrb[71].mxu0  ;;  %v13693_v30 = vld [vmem:[#allocation6 + $0x5a0] ss:$16 sps:$4 sm:$0xff]   ;;  %v13701_v55 = vld [vmem:[#allocation6 + $0x5c4] ss:$16 sps:$4 sm:$0xff]  }
 0x4fb   :  { %v3823_v40 = vadd.f32 %v17020_v1, %v3663_v46  ;;  %v3969_v63 = vmax.f32 %v3825_v10, 0.0  ;;  %8888 = vmatprep.subr.bf16.mxu0 %v13692_v19  ;;  %7230 = vmatmul.mubr.bf16.gmra.mrb[8].mxu1 %v19795_v36  ;;  %v13696_v46 = vld [vmem:[#allocation6 + $0x5a8] ss:$16 sps:$4 sm:$0xff]   ;;  %v13704_v19 = vld [vmem:[#allocation6 + $0x5cc] ss:$16 sps:$4 sm:$0xff]  }
 0x4fc   :  { %v3968_v47 = vmax.f32 %v3824_v44, 0.0  ;;  %8774 = vmatmul.mubr.bf16.gmra.mrb[112].mxu0 %v19795_v36  ;;  %7239 = vmatprep.mubr.bf16.mxu1 %v17545_v15 }
 0x4fd   :  { %v3967_v41 = vmax.f32 %v3823_v40, 0.0  ;;  %v18125_v13 = vpack.c.bf16 %v3969_v63, %v3966_v49  ;;  %8783 = vmatprep.mubr.bf16.mxu0 %v17545_v15  ;;  %7345 = vmatpush1.bf16.msra.mxu1 %v13687_v35  ;;  %v13705_v49 = vld [vmem:[#allocation6 + $0x5e0] ss:$16 sps:$4 sm:$0xff]  }
 0x4fe   :  { %v18120_v59 = vpack.c.bf16 %v3968_v47, %v3965_v31  ;;  %v18130_v11 = vpop.f32.mrb[224].mxu1  ;;  %8889 = vmatpush1.bf16.msra.mxu0 %v13690_v3  ;;  %7346 = vmatprep.subr.bf16.mxu1 %v13695_v53  ;;  %v13699_v31 = vld [vmem:[#allocation6 + $0x5c0] ss:$16 sps:$4 sm:$0xff]   ;;  %v13707_v47 = vld [vmem:[#allocation6 + $0x5e4] ss:$16 sps:$4 sm:$0xff]  }
 0x4ff   :  { %v18122_v20 = vpack.c.bf16 %v3967_v41, %v3964_v6  ;;  %19796 = vst [vmem:[#allocation106_spill] sm:$0xff] %v18125_v13  ;;  %v18132_v32 = vpop.f32.mrb[72].mxu0  ;;  %v18134_v29 = vpop.f32.mrb[225].mxu1  ;;  %8890 = vmatprep.subr.bf16.mxu0 %v13698_v17  ;;  %v13702_v6 = vld [vmem:[#allocation6 + $0x5c8] ss:$16 sps:$4 sm:$0xff]  }
 0x500   :  { %19793 = vst [vmem:[#allocation113_spill] sm:$0xff] %v18120_v59  ;;  %v18136_v44 = vpop.f32.mrb[73].mxu0  ;;  %v18138_v40 = vpop.f32.mrb[226].mxu1  ;;  %v13710_v41 = vld [vmem:[#allocation6 + $0x5ec] ss:$16 sps:$4 sm:$0xff]  }
 0x501   :  { %19794 = vst [vmem:[#allocation72_spill] sm:$0xff] %v18122_v20  ;;  %v18140_v10 = vpop.f32.mrb[74].mxu0  ;;  %v18142_v35 = vpop.f32.mrb[227].mxu1  ;;  %7347 = vmatpush1.bf16.msra.mxu1 %v13693_v30  ;;  %v13708_v53 = vld [vmem:[#allocation6 + $0x5e8] ss:$16 sps:$4 sm:$0xff]  }
 0x502   :  { %v18144_v3 = vpop.f32.mrb[75].mxu0  ;;  %8891 = vmatpush1.bf16.msra.mxu0 %v13696_v46  ;;  %7348 = vmatprep.subr.bf16.mxu1 %v13701_v55  ;;  %v13713_v55 = vld [vmem:[#allocation6 + $0x604] ss:$16 sps:$4 sm:$0xff]  }
 0x503   :  { %7240 = vmatmul.mubr.bf16.gmra.mrb[12].mxu1 %v17445_v26  ;;  %8892 = vmatprep.subr.bf16.mxu0 %v13704_v19 }
 0x504   :  { %8784 = vmatmul.mubr.bf16.gmra.mrb[116].mxu0 %v17445_v26  ;;  %7249 = vmatprep.mubr.bf16.mxu1 %v17592_v9 }
 0x505   :  { %8793 = vmatprep.mubr.bf16.mxu0 %v17592_v9  ;;  %7349 = vmatpush1.bf16.msra.mxu1 %v13699_v31  ;;  %v19800_v9 = vld [vmem:[#allocation49_spill] sm:$0xff] }
 0x506   :  { %v2713_v63 = vpop.f32.mrb[228].mxu1  ;;  %8893 = vmatpush1.bf16.msra.mxu0 %v13702_v6  ;;  %7350 = vmatprep.subr.bf16.mxu1 %v13707_v47  ;;  %v19797_v47 = vld [vmem:[#allocation51_spill] sm:$0xff] }
 0x507   :  { %v3512_v17 = vmax.f32 %v18101_v14, %v2713_v63  ;;  %v3226_v30 = vpop.f32.mrb[76].mxu0  ;;  %v2715_v46 = vpop.f32.mrb[229].mxu1  ;;  %8894 = vmatprep.subr.bf16.mxu0 %v13710_v41  ;;  %v19799_v14 = vmax.f32 %v19797_v47, %v19798_v61  ;;  %v19801_v41 = vld [vmem:[#allocation57_spill] sm:$0xff] }
 0x508   :  { %v3514_v19 = vmax.f32 %v18105_v0, %v3226_v30  ;;  %v3513_v59 = vmax.f32 %v18107_v22, %v2715_v46  ;;  %v3228_v13 = vpop.f32.mrb[77].mxu0  ;;  %v2717_v23 = vpop.f32.mrb[230].mxu1  ;;  %v19802_v15 = vmax.f32 %v19800_v9, %v19801_v41  ;;  %v19804_v46 = vld [vmem:[#allocation214_spill] sm:$0xff]  ;;  %v19805_v9 = vld [vmem:[#allocation221_spill] sm:$0xff] }
 0x509   :  { %v3515_v51 = vmax.f32 %v18110_v27, %v3228_v13  ;;  %v3518_v31 = vmax.f32 %v18112_v34, %v2717_v23  ;;  %v3230_v20 = vpop.f32.mrb[78].mxu0  ;;  %v2719_v6 = vpop.f32.mrb[231].mxu1  ;;  %7351 = vmatpush1.bf16.msra.mxu1 %v13705_v49  ;;  %v13716_v27 = vld [vmem:[#allocation6 + $0x60c] ss:$16 sps:$4 sm:$0xff]   ;;  %v19803_v34 = vld [vmem:[#allocation88_spill] sm:$0xff] }
 0x50a   :  { %v3667_v63 = vmax.f32 %v19799_v14, %v3514_v19  ;;  %v3666_v7 = vmax.f32 %v19802_v15, %v3513_v59  ;;  %v3520_v0 = vmax.f32 %v18114_v21, %v3230_v20  ;;  %v3519_v22 = vmax.f32 %v18116_v48, %v2719_v6  ;;  %v3232_v30 = vpop.f32.mrb[79].mxu0  ;;  %8895 = vmatpush1.bf16.msra.mxu0 %v13708_v53  ;;  %v19807_v21 = vld [vmem:[#allocation52_spill] sm:$0xff] }
 0x50b   :  { %v3668_v13 = vmax.f32 %v3512_v17, %v3515_v51  ;;  %v3521_v23 = vmax.f32 %v18118_v2, %v3232_v30  ;;  %7250 = vmatmul.mubr.bf16.gmra.mrb[16].mxu1 %v19803_v34  ;;  %7513 = vmatprep.subr.bf16.mxu1 %v13713_v55  ;;  %v19806_v15 = vmax.f32 %v19804_v46, %v19805_v9  ;;  %v19808_v20 = vld [vmem:[#allocation60_spill] sm:$0xff] }
 0x50c   :  { %v3827_v61 = vadd.f32 %v17015_v24, %v3667_v63  ;;  %v3826_v49 = vadd.f32 %v17020_v1, %v3666_v7  ;;  %v19809_v48 = vmax.f32 %v19807_v21, %v19808_v20  ;;  %8794 = vmatmul.mubr.bf16.gmra.mrb[120].mxu0 %v19803_v34  ;;  %7259 = vmatprep.mubr.bf16.mxu1 %v17657_v50  ;;  %v19811_v21 = vld [vmem:[#allocation63_spill] sm:$0xff] }
 0x50d   :  { %v3670_v59 = vmax.f32 %v19806_v15, %v3520_v0  ;;  %v3828_v51 = vadd.f32 %v16716_v52, %v3668_v13  ;;  %v3671_v2 = vmax.f32 %v3518_v31, %v3521_v23  ;;  %8803 = vmatprep.mubr.bf16.mxu0 %v17657_v50  ;;  %9057 = vmatprep.subr.bf16.mxu0 %v13716_v27 }
 0x50e   :  { %v3669_v19 = vmax.f32 %v19809_v48, %v3519_v22  ;;  %v2723_v17 = vpop.f32.mrb[232].mxu1  ;;  %v3971_v55 = vmax.f32 %v3827_v61, 0.0  ;;  %v3970_v6 = vmax.f32 %v3826_v49, 0.0 }
 0x50f   :  { %v3830_v53 = vadd.f32 %v17015_v24, %v3670_v59  ;;  %v3831_v47 = vadd.f32 %v16716_v52, %v3671_v2  ;;  %v3524_v14 = vmax.f32 %v18130_v11, %v2723_v17  ;;  %v3236_v63 = vpop.f32.mrb[80].mxu0  ;;  %v2725_v41 = vpop.f32.mrb[233].mxu1  ;;  %v3972_v0 = vmax.f32 %v3828_v51, 0.0  ;;  %v19810_v11 = vld [vmem:[#allocation55_spill] sm:$0xff] }
 0x510   :  { %v3829_v7 = vadd.f32 %v17020_v1, %v3669_v19  ;;  %v3526_v22 = vmax.f32 %v18132_v32, %v3236_v63  ;;  %v3525_v30 = vmax.f32 %v18134_v29, %v2725_v41  ;;  %v3238_v13 = vpop.f32.mrb[81].mxu0  ;;  %v2727_v23 = vpop.f32.mrb[234].mxu1  ;;  %v19812_v20 = vmax.f32 %v19810_v11, %v19811_v21  ;;  %v19813_v19 = vld [vmem:[#allocation53_spill] sm:$0xff]  ;;  %v19817_v41 = vld [vmem:[#allocation218_spill] sm:$0xff] }
 0x511   :  { %v3974_v46 = vmax.f32 %v3830_v53, 0.0  ;;  %v3975_v9 = vmax.f32 %v3831_v47, 0.0  ;;  %v3527_v27 = vmax.f32 %v18136_v44, %v3238_v13  ;;  %v3530_v61 = vmax.f32 %v18138_v40, %v2727_v23  ;;  %v3240_v49 = vpop.f32.mrb[82].mxu0  ;;  %v2729_v15 = vpop.f32.mrb[235].mxu1  ;;  %v19814_v32 = vld [vmem:[#allocation61_spill] sm:$0xff] }
 0x512   :  { %v3973_v31 = vmax.f32 %v3829_v7, 0.0  ;;  %v3673_v48 = vmax.f32 %v19812_v20, %v3526_v22  ;;  %v19815_v51 = vmax.f32 %v19813_v19, %v19814_v32  ;;  %v3532_v2 = vmax.f32 %v18140_v10, %v3240_v49  ;;  %v3242_v53 = vpop.f32.mrb[83].mxu0 }
 0x513   :  { %v18194_v7 = vpack.c.bf16 %v3975_v9, %v3972_v0  ;;  %v3674_v44 = vmax.f32 %v3524_v14, %v3527_v27  ;;  %v3531_v40 = vmax.f32 %v18142_v35, %v2729_v15  ;;  %v3533_v17 = vmax.f32 %v18144_v3, %v3242_v53  ;;  %v19820_v14 = vld [vmem:[#allocation216_spill] sm:$0xff]  ;;  %v19821_v35 = vld [vmem:[#allocation223_spill] sm:$0xff] }
 0x514   :  { %v18185_v59 = vpack.c.bf16 %v3973_v31, %v3970_v6  ;;  %v3672_v29 = vmax.f32 %v19815_v51, %v3525_v30  ;;  %v19816_v6 = vld [vmem:[#allocation82_spill] sm:$0xff]  ;;  %v3833_v47 = vadd.f32 %v17015_v24, %v3673_v48  ;;  %v19818_v31 = vld [vmem:[#allocation225_spill] sm:$0xff]  ;;  %v19822_v0 = vmax.f32 %v19820_v14, %v19821_v35 }
 0x515   :  { %7260 = vmatmul.mubr.bf16.gmra.mrb[20].mxu1 %v19816_v6  ;;  %v19819_v22 = vmax.f32 %v19817_v41, %v19818_v31  ;;  %8804 = vmatmul.mubr.bf16.gmra.mrb[124].mxu0 %v19816_v6  ;;  %v3834_v10 = vadd.f32 %v16716_v52, %v3674_v44  ;;  %v3677_v13 = vmax.f32 %v3530_v61, %v3533_v17  ;;  %v13719_v53 = vld [vmem:[#allocation6 + $0x624] ss:$16 sps:$4 sm:$0xff]   ;;  %v13717_v17 = vld [vmem:[#allocation6 + $0x620] ss:$16 sps:$4 sm:$0xff]   ;;  %v13728_v41 = vld [vmem:[#allocation6 + $0x64c] ss:$16 sps:$4 sm:$0xff]  }
 0x516   :  { %v3832_v63 = vadd.f32 %v17020_v1, %v3672_v29  ;;  %7269 = vmatprep.mubr.bf16.mxu1 %v17704_v38  ;;  %v3675_v3 = vmax.f32 %v19822_v0, %v3531_v40  ;;  %8813 = vmatprep.mubr.bf16.mxu0 %v17704_v38  ;;  %v18211_v23 = vpack.c.bf16 %v3974_v46, %v3971_v55  ;;  %v3977_v15 = vmax.f32 %v3833_v47, 0.0  ;;  %v19823_v55 = vld [vmem:[#allocation95_spill] sm:$0xff]  ;;  %v19827_v46 = vld [vmem:[#allocation96_spill] sm:$0xff] }
 0x517   :  { %v3676_v30 = vmax.f32 %v19819_v22, %v3532_v2  ;;  %v3837_v49 = vadd.f32 %v16716_v52, %v3677_v13  ;;  %v3978_v20 = vmax.f32 %v3834_v10, 0.0  ;;  %v19824_v52 = vld [vmem:[#allocation94_spill] sm:$0xff]  ;;  %v19828_v44 = vld [vmem:[#allocation68_spill] sm:$0xff]  ;;  %v13722_v40 = vld [vmem:[#allocation6 + $0x62c] ss:$16 sps:$4 sm:$0xff]  }
 0x518   :  { %v3835_v27 = vadd.f32 %v17020_v1, %v3675_v3  ;;  %v3976_v21 = vmax.f32 %v3832_v63, 0.0  ;;  %v19825_v1 = vld [vmem:[#allocation97_spill] sm:$0xff]  ;;  %v13725_v63 = vld [vmem:[#allocation6 + $0x644] ss:$16 sps:$4 sm:$0xff]  }
 0x519   :  { %v3836_v9 = vadd.f32 %v17015_v24, %v3676_v30  ;;  %v3981_v19 = vmax.f32 %v3837_v49, 0.0  ;;  %v19826_v24 = vld [vmem:[#allocation86_spill] sm:$0xff]  ;;  %v19829_v30 = vld [vmem:[#allocation67_spill] sm:$0xff] }
 0x51a   :  { %v3979_v48 = vmax.f32 %v3835_v27, 0.0  ;;  %v13711_v29 = vld [vmem:[#allocation6 + $0x600] ss:$16 sps:$4 sm:$0xff]   ;;  %v13714_v2 = vld [vmem:[#allocation6 + $0x608] ss:$16 sps:$4 sm:$0xff]  }
 0x51b   :  { %v3980_v11 = vmax.f32 %v3836_v9, 0.0  ;;  %v18220_v61 = vpack.c.bf16 %v3981_v19, %v3978_v20  ;;  %v13720_v47 = vld [vmem:[#allocation6 + $0x628] ss:$16 sps:$4 sm:$0xff]   ;;  %v13731_v22 = vld [vmem:[#allocation6 + $0x664] ss:$16 sps:$4 sm:$0xff]  }
 0x51c   :  { %v18218_v51 = vpack.c.bf16 %v3979_v48, %v3976_v21  ;;  %v13726_v31 = vld [vmem:[#allocation6 + $0x648] ss:$16 sps:$4 sm:$0xff]   ;;  %v13734_v10 = vld [vmem:[#allocation6 + $0x66c] ss:$16 sps:$4 sm:$0xff]   ;;  %v13737_v35 = vld [vmem:[#allocation6 + $0x684] ss:$16 sps:$4 sm:$0xff]  }
 0x51d   :  { %v18216_v32 = vpack.c.bf16 %v3980_v11, %v3977_v15  ;;  %7270 = vmatmul.mubr.bf16.gmra.mrb[24].mxu1 %v19823_v55  ;;  %8814 = vmatmul.mubr.bf16.gmra.mrb[128].mxu0 %v19823_v55  ;;  %v13732_v14 = vld [vmem:[#allocation6 + $0x668] ss:$16 sps:$4 sm:$0xff]   ;;  %v13740_v0 = vld [vmem:[#allocation6 + $0x68c] ss:$16 sps:$4 sm:$0xff]   ;;  %v13735_v3 = vld [vmem:[#allocation6 + $0x680] ss:$16 sps:$4 sm:$0xff]  }
 0x51e   :  { %7279 = vmatprep.mubr.bf16.mxu1 %v17769_v45  ;;  %8823 = vmatprep.mubr.bf16.mxu0 %v17769_v45  ;;  %v13738_v13 = vld [vmem:[#allocation6 + $0x688] ss:$16 sps:$4 sm:$0xff]   ;;  %v13743_v9 = vld [vmem:[#allocation6 + $0x6a4] ss:$16 sps:$4 sm:$0xff]   ;;  %v13746_v49 = vld [vmem:[#allocation6 + $0x6ac] ss:$16 sps:$4 sm:$0xff]  }
 0x51f   :  { %v19830_v27 = vld [vmem:[#allocation74_spill] sm:$0xff]  ;;  %v13752_v20 = vld [vmem:[#allocation6 + $0x6cc] ss:$16 sps:$4 sm:$0xff]  }
 0x520   :  { %v13741_v15 = vld [vmem:[#allocation6 + $0x6a0] ss:$16 sps:$4 sm:$0xff]   ;;  %v13744_v11 = vld [vmem:[#allocation6 + $0x6a8] ss:$16 sps:$4 sm:$0xff]   ;;  %v13749_v21 = vld [vmem:[#allocation6 + $0x6c4] ss:$16 sps:$4 sm:$0xff]  }
 0x521   :  { %v13747_v48 = vld [vmem:[#allocation6 + $0x6c0] ss:$16 sps:$4 sm:$0xff]   ;;  %v13750_v19 = vld [vmem:[#allocation6 + $0x6c8] ss:$16 sps:$4 sm:$0xff]  }
 0x525   :  { %7280 = vmatmul.mubr.bf16.gmra.mrb[28].mxu1 %v19824_v52  ;;  %8824 = vmatmul.mubr.bf16.gmra.mrb[132].mxu0 %v19824_v52 }
 0x526   :  { %7289 = vmatprep.mubr.bf16.mxu1 %v17800_v43  ;;  %8833 = vmatprep.mubr.bf16.mxu0 %v17800_v43 }
 0x52d   :  { %7290 = vmatmul.mubr.bf16.gmra.mrb[32].mxu1 %v19825_v1  ;;  %8834 = vmatmul.mubr.bf16.gmra.mrb[136].mxu0 %v19825_v1 }
 0x52e   :  { %7299 = vmatprep.mubr.bf16.mxu1 %v17857_v62  ;;  %8843 = vmatprep.mubr.bf16.mxu0 %v17857_v62 }
 0x535   :  { %7300 = vmatmul.mubr.bf16.gmra.mrb[36].mxu1 %v19826_v24  ;;  %8844 = vmatmul.mubr.bf16.gmra.mrb[140].mxu0 %v19826_v24 }
 0x536   :  { %7309 = vmatprep.mubr.bf16.mxu1 %v17900_v12  ;;  %8853 = vmatprep.mubr.bf16.mxu0 %v17900_v12 }
 0x53d   :  { %7310 = vmatmul.mubr.bf16.gmra.mrb[40].mxu1 %v19827_v46  ;;  %8854 = vmatmul.mubr.bf16.gmra.mrb[144].mxu0 %v19827_v46 }
 0x53e   :  { %7352 = vmatprep.mubr.bf16.mxu1 %v17156_v39  ;;  %8896 = vmatprep.mubr.bf16.mxu0 %v17156_v39  ;;  %v13723_v39 = vld [vmem:[#allocation6 + $0x640] ss:$16 sps:$4 sm:$0xff]  }
 0x545   :  { %7353 = vmatmul.mubr.bf16.vlgmr.msra.gmra.mrb[236].mxu1 %v19828_v44  ;;  %8897 = vmatmul.mubr.bf16.vlgmr.msra.gmra.mrb[84].mxu0 %v19828_v44  ;;  %v13753_v44 = vld [vmem:[#allocation6 + $0x6e0] ss:$16 sps:$4 sm:$0xff]  }
 0x546   :  { %7514 = vmatpush1.bf16.msra.mxu1 %v13711_v29  ;;  %9058 = vmatpush1.bf16.msra.mxu0 %v13714_v2  ;;  %v13755_v29 = vld [vmem:[#allocation6 + $0x6e4] ss:$16 sps:$4 sm:$0xff]   ;;  %v19831_v2 = vld [vmem:[#allocation71_spill] sm:$0xff] }
 0x547   :  { %7362 = vmatprep.mubr.bf16.mxu1 %v17184_v58  ;;  %8906 = vmatprep.mubr.bf16.mxu0 %v17184_v58  ;;  %v13729_v58 = vld [vmem:[#allocation6 + $0x660] ss:$16 sps:$4 sm:$0xff]  }
 0x548   :  { %7515 = vmatprep.subr.bf16.mxu1 %v13719_v53  ;;  %9059 = vmatprep.subr.bf16.mxu0 %v13722_v40  ;;  %v13758_v53 = vld [vmem:[#allocation6 + $0x6ec] ss:$16 sps:$4 sm:$0xff]   ;;  %v13756_v40 = vld [vmem:[#allocation6 + $0x6e8] ss:$16 sps:$4 sm:$0xff]  }
 0x54a   :  { %7516 = vmatpush1.bf16.msra.mxu1 %v13717_v17  ;;  %9060 = vmatpush1.bf16.msra.mxu0 %v13720_v47  ;;  %v13761_v17 = vld [vmem:[#allocation6 + $0x704] ss:$16 sps:$4 sm:$0xff]   ;;  %v13764_v47 = vld [vmem:[#allocation6 + $0x70c] ss:$16 sps:$4 sm:$0xff]  }
 0x54b   :  { %7517 = vmatprep.subr.bf16.mxu1 %v13725_v63  ;;  %9061 = vmatprep.subr.bf16.mxu0 %v13728_v41  ;;  %v13759_v63 = vld [vmem:[#allocation6 + $0x700] ss:$16 sps:$4 sm:$0xff]   ;;  %v13762_v41 = vld [vmem:[#allocation6 + $0x708] ss:$16 sps:$4 sm:$0xff]  }
 0x54d   :  { %7363 = vmatmul.mubr.bf16.gmra.mrb[240].mxu1 %v19829_v30  ;;  %8907 = vmatmul.mubr.bf16.gmra.mrb[88].mxu0 %v19829_v30  ;;  %v13765_v30 = vld [vmem:[#allocation6 + $0x720] ss:$16 sps:$4 sm:$0xff]  }
 0x54e   :  { %7372 = vmatprep.mubr.bf16.mxu1 %v19763_v4  ;;  %8916 = vmatprep.mubr.bf16.mxu0 %v19763_v4 }
 0x54f   :  { %7518 = vmatpush1.bf16.msra.mxu1 %v13723_v39  ;;  %9062 = vmatpush1.bf16.msra.mxu0 %v13726_v31  ;;  %v13767_v39 = vld [vmem:[#allocation6 + $0x724] ss:$16 sps:$4 sm:$0xff]   ;;  %v19832_v31 = vld [vmem:[#allocation69_spill] sm:$0xff] }
 0x550   :  { %7519 = vmatprep.subr.bf16.mxu1 %v13731_v22  ;;  %9063 = vmatprep.subr.bf16.mxu0 %v13734_v10  ;;  %v13770_v22 = vld [vmem:[#allocation6 + $0x72c] ss:$16 sps:$4 sm:$0xff]   ;;  %v13768_v10 = vld [vmem:[#allocation6 + $0x728] ss:$16 sps:$4 sm:$0xff]  }
 0x553   :  { %7520 = vmatpush1.bf16.msra.mxu1 %v13729_v58  ;;  %9064 = vmatpush1.bf16.msra.mxu0 %v13732_v14  ;;  %v13773_v58 = vld [vmem:[#allocation6 + $0x744] ss:$16 sps:$4 sm:$0xff]   ;;  %v13776_v14 = vld [vmem:[#allocation6 + $0x74c] ss:$16 sps:$4 sm:$0xff]  }
 0x554   :  { %7521 = vmatprep.subr.bf16.mxu1 %v13737_v35  ;;  %9065 = vmatprep.subr.bf16.mxu0 %v13740_v0  ;;  %v13771_v35 = vld [vmem:[#allocation6 + $0x740] ss:$16 sps:$4 sm:$0xff]   ;;  %v13774_v0 = vld [vmem:[#allocation6 + $0x748] ss:$16 sps:$4 sm:$0xff]  }
 0x555   :  { %7373 = vmatmul.mubr.bf16.gmra.mrb[244].mxu1 %v19830_v27  ;;  %8917 = vmatmul.mubr.bf16.gmra.mrb[92].mxu0 %v19830_v27 }
 0x556   :  { %7382 = vmatprep.mubr.bf16.mxu1 %v19770_v54  ;;  %8926 = vmatprep.mubr.bf16.mxu0 %v19770_v54 }
 0x557   :  { %7522 = vmatpush1.bf16.msra.mxu1 %v13735_v3  ;;  %9066 = vmatpush1.bf16.msra.mxu0 %v13738_v13  ;;  %v13779_v3 = vld [vmem:[#allocation6 + $0x764] ss:$16 sps:$4 sm:$0xff]  }
 0x558   :  { %7523 = vmatprep.subr.bf16.mxu1 %v13743_v9  ;;  %9067 = vmatprep.subr.bf16.mxu0 %v13746_v49  ;;  %v19833_v13 = vld [vmem:[#allocation70_spill] sm:$0xff]  ;;  %v13782_v9 = vld [vmem:[#allocation6 + $0x76c] ss:$16 sps:$4 sm:$0xff]  }
 0x559   :  { %v13777_v49 = vld [vmem:[#allocation6 + $0x760] ss:$16 sps:$4 sm:$0xff]  }
 0x55b   :  { %7524 = vmatpush1.bf16.msra.mxu1 %v13741_v15  ;;  %9068 = vmatpush1.bf16.msra.mxu0 %v13744_v11  ;;  %v13780_v15 = vld [vmem:[#allocation6 + $0x768] ss:$16 sps:$4 sm:$0xff]   ;;  %v13785_v11 = vld [vmem:[#allocation6 + $0x784] ss:$16 sps:$4 sm:$0xff]  }
 0x55c   :  { %7525 = vmatprep.subr.bf16.mxu1 %v13749_v21  ;;  %9069 = vmatprep.subr.bf16.mxu0 %v13752_v20  ;;  %v13788_v21 = vld [vmem:[#allocation6 + $0x78c] ss:$16 sps:$4 sm:$0xff]   ;;  %v13783_v20 = vld [vmem:[#allocation6 + $0x780] ss:$16 sps:$4 sm:$0xff]  }
 0x55d   :  { %7383 = vmatmul.mubr.bf16.gmra.mrb[248].mxu1 %v19831_v2  ;;  %8927 = vmatmul.mubr.bf16.gmra.mrb[96].mxu0 %v19831_v2 }
 0x55e   :  { %7392 = vmatprep.mubr.bf16.mxu1 %v19786_v57  ;;  %8936 = vmatprep.mubr.bf16.mxu0 %v19786_v57 }
 0x55f   :  { %7526 = vmatpush1.bf16.msra.mxu1 %v13747_v48  ;;  %9070 = vmatpush1.bf16.msra.mxu0 %v13750_v19  ;;  %v13786_v48 = vld [vmem:[#allocation6 + $0x788] ss:$16 sps:$4 sm:$0xff]   ;;  %v13791_v19 = vld [vmem:[#allocation6 + $0x7a4] ss:$16 sps:$4 sm:$0xff]  }
 0x560   :  { %7527 = vmatprep.subr.bf16.mxu1 %v13755_v29  ;;  %9071 = vmatprep.subr.bf16.mxu0 %v13758_v53  ;;  %v19834_v29 = vld [vmem:[#allocation80_spill] sm:$0xff]  ;;  %v13794_v53 = vld [vmem:[#allocation6 + $0x7ac] ss:$16 sps:$4 sm:$0xff]  }
 0x563   :  { %7528 = vmatpush1.bf16.msra.mxu1 %v13753_v44  ;;  %9072 = vmatpush1.bf16.msra.mxu0 %v13756_v40  ;;  %v13789_v44 = vld [vmem:[#allocation6 + $0x7a0] ss:$16 sps:$4 sm:$0xff]   ;;  %v13792_v40 = vld [vmem:[#allocation6 + $0x7a8] ss:$16 sps:$4 sm:$0xff]  }
 0x564   :  { %7529 = vmatprep.subr.bf16.mxu1 %v13761_v17  ;;  %9073 = vmatprep.subr.bf16.mxu0 %v13764_v47  ;;  %v13797_v17 = vld [vmem:[#allocation6 + $0x7c4] ss:$16 sps:$4 sm:$0xff]   ;;  %v13800_v47 = vld [vmem:[#allocation6 + $0x7cc] ss:$16 sps:$4 sm:$0xff]  }
 0x565   :  { %7393 = vmatmul.mubr.bf16.gmra.mrb[252].mxu1 %v19832_v31  ;;  %8937 = vmatmul.mubr.bf16.gmra.mrb[100].mxu0 %v19832_v31 }
 0x566   :  { %7402 = vmatprep.mubr.bf16.mxu1 %v19795_v36  ;;  %8946 = vmatprep.mubr.bf16.mxu0 %v19795_v36 }
 0x567   :  { %7530 = vmatpush1.bf16.msra.mxu1 %v13759_v63  ;;  %9074 = vmatpush1.bf16.msra.mxu0 %v13762_v41  ;;  %v13795_v63 = vld [vmem:[#allocation6 + $0x7c0] ss:$16 sps:$4 sm:$0xff]   ;;  %v13798_v41 = vld [vmem:[#allocation6 + $0x7c8] ss:$16 sps:$4 sm:$0xff]  }
 0x568   :  { %7531 = vmatprep.subr.bf16.mxu1 %v13767_v39  ;;  %9075 = vmatprep.subr.bf16.mxu0 %v13770_v22  ;;  %v13803_v39 = vld [vmem:[#allocation6 + $0x7e4] ss:$16 sps:$4 sm:$0xff]  }
 0x569   :  { %v19835_v22 = vld [vmem:[#allocation90_spill] sm:$0xff] }
 0x56b   :  { %7532 = vmatpush1.bf16.msra.mxu1 %v13765_v30  ;;  %9076 = vmatpush1.bf16.msra.mxu0 %v13768_v10  ;;  %v13806_v30 = vld [vmem:[#allocation6 + $0x7ec] ss:$16 sps:$4 sm:$0xff]   ;;  %v13801_v10 = vld [vmem:[#allocation6 + $0x7e0] ss:$16 sps:$4 sm:$0xff]  }
 0x56c   :  { %7533 = vmatprep.subr.bf16.mxu1 %v13773_v58  ;;  %9077 = vmatprep.subr.bf16.mxu0 %v13776_v14  ;;  %v13804_v58 = vld [vmem:[#allocation6 + $0x7e8] ss:$16 sps:$4 sm:$0xff]   ;;  %v13809_v14 = vld [vmem:[#allocation6 + $0x804] ss:$16 sps:$4 sm:$0xff]  }
 0x56d   :  { %7403 = vmatmul.mubr.bf16.gmra.mrb[0].mxu1 %v19833_v13  ;;  %8947 = vmatmul.mubr.bf16.gmra.mrb[104].mxu0 %v19833_v13 }
 0x56e   :  { %7412 = vmatprep.mubr.bf16.mxu1 %v17445_v26  ;;  %8956 = vmatprep.mubr.bf16.mxu0 %v17445_v26 }
 0x56f   :  { %7534 = vmatpush1.bf16.msra.mxu1 %v13771_v35  ;;  %9078 = vmatpush1.bf16.msra.mxu0 %v13774_v0  ;;  %v13812_v35 = vld [vmem:[#allocation6 + $0x80c] ss:$16 sps:$4 sm:$0xff]  }
 0x570   :  { %7535 = vmatprep.subr.bf16.mxu1 %v13779_v3  ;;  %9079 = vmatprep.subr.bf16.mxu0 %v13782_v9  ;;  %v19836_v0 = vld [vmem:[#allocation83_spill] sm:$0xff]  ;;  %v19837_v3 = vld [vmem:[#allocation92_spill] sm:$0xff] }
 0x571   :  { %v19838_v9 = vld [vmem:[#allocation84_spill] sm:$0xff] }
 0x573   :  { %7536 = vmatpush1.bf16.msra.mxu1 %v13777_v49  ;;  %9080 = vmatpush1.bf16.msra.mxu0 %v13780_v15  ;;  %v19839_v49 = vld [vmem:[#allocation87_spill] sm:$0xff] }
 0x574   :  { %7537 = vmatprep.subr.bf16.mxu1 %v13785_v11  ;;  %9081 = vmatprep.subr.bf16.mxu0 %v13788_v21  ;;  %v13807_v15 = vld [vmem:[#allocation6 + $0x800] ss:$16 sps:$4 sm:$0xff]   ;;  %v13810_v11 = vld [vmem:[#allocation6 + $0x808] ss:$16 sps:$4 sm:$0xff]   ;;  %v13815_v21 = vld [vmem:[#allocation6 + $0x824] ss:$16 sps:$4 sm:$0xff]  }
 0x575   :  { %7413 = vmatmul.mubr.bf16.gmra.mrb[4].mxu1 %v19834_v29  ;;  %8957 = vmatmul.mubr.bf16.gmra.mrb[108].mxu0 %v19834_v29 }
 0x576   :  { %7422 = vmatprep.mubr.bf16.mxu1 %v19803_v34  ;;  %8966 = vmatprep.mubr.bf16.mxu0 %v19803_v34 }
 0x577   :  { %7538 = vmatpush1.bf16.msra.mxu1 %v13783_v20  ;;  %9082 = vmatpush1.bf16.msra.mxu0 %v13786_v48  ;;  %v13818_v20 = vld [vmem:[#allocation6 + $0x82c] ss:$16 sps:$4 sm:$0xff]   ;;  %v13813_v48 = vld [vmem:[#allocation6 + $0x820] ss:$16 sps:$4 sm:$0xff]  }
 0x578   :  { %7539 = vmatprep.subr.bf16.mxu1 %v13791_v19  ;;  %9083 = vmatprep.subr.bf16.mxu0 %v13794_v53  ;;  %v13816_v19 = vld [vmem:[#allocation6 + $0x828] ss:$16 sps:$4 sm:$0xff]   ;;  %v13821_v53 = vld [vmem:[#allocation6 + $0x844] ss:$16 sps:$4 sm:$0xff]  }
 0x57b   :  { %7540 = vmatpush1.bf16.msra.mxu1 %v13789_v44  ;;  %9084 = vmatpush1.bf16.msra.mxu0 %v13792_v40  ;;  %v13824_v44 = vld [vmem:[#allocation6 + $0x84c] ss:$16 sps:$4 sm:$0xff]   ;;  %v13822_v40 = vld [vmem:[#allocation6 + $0x848] ss:$16 sps:$4 sm:$0xff]  }
 0x57c   :  { %7541 = vmatprep.subr.bf16.mxu1 %v13797_v17  ;;  %9085 = vmatprep.subr.bf16.mxu0 %v13800_v47  ;;  %v13827_v17 = vld [vmem:[#allocation6 + $0x864] ss:$16 sps:$4 sm:$0xff]   ;;  %v13828_v47 = vld [vmem:[#allocation6 + $0x868] ss:$16 sps:$4 sm:$0xff]  }
 0x57d   :  { %7423 = vmatmul.mubr.bf16.gmra.mrb[8].mxu1 %v19835_v22  ;;  %8967 = vmatmul.mubr.bf16.gmra.mrb[112].mxu0 %v19835_v22 }
 0x57e   :  { %7432 = vmatprep.mubr.bf16.mxu1 %v19816_v6  ;;  %8976 = vmatprep.mubr.bf16.mxu0 %v19816_v6 }
 0x57f   :  { %7542 = vmatpush1.bf16.msra.mxu1 %v13795_v63  ;;  %9086 = vmatpush1.bf16.msra.mxu0 %v13798_v41  ;;  %v13833_v63 = vld [vmem:[#allocation6 + $0x884] ss:$16 sps:$4 sm:$0xff]   ;;  %v13836_v41 = vld [vmem:[#allocation6 + $0x88c] ss:$16 sps:$4 sm:$0xff]  }
 0x580   :  { %7543 = vmatprep.subr.bf16.mxu1 %v13803_v39  ;;  %9087 = vmatprep.subr.bf16.mxu0 %v13806_v30  ;;  %v13831_v39 = vld [vmem:[#allocation6 + $0x880] ss:$16 sps:$4 sm:$0xff]   ;;  %v13834_v30 = vld [vmem:[#allocation6 + $0x888] ss:$16 sps:$4 sm:$0xff]  }
 0x583   :  { %7544 = vmatpush1.bf16.msra.mxu1 %v13801_v10  ;;  %9088 = vmatpush1.bf16.msra.mxu0 %v13804_v58  ;;  %v13839_v10 = vld [vmem:[#allocation6 + $0x8a4] ss:$16 sps:$4 sm:$0xff]   ;;  %v13837_v58 = vld [vmem:[#allocation6 + $0x8a0] ss:$16 sps:$4 sm:$0xff]  }
 0x584   :  { %7706 = vmatprep.subr.bf16.mxu1 %v13809_v14  ;;  %9250 = vmatprep.subr.bf16.mxu0 %v13812_v35  ;;  %v13840_v14 = vld [vmem:[#allocation6 + $0x8a8] ss:$16 sps:$4 sm:$0xff]   ;;  %v13845_v35 = vld [vmem:[#allocation6 + $0x8c4] ss:$16 sps:$4 sm:$0xff]  }
 0x585   :  { %7433 = vmatmul.mubr.bf16.gmra.mrb[12].mxu1 %v19836_v0  ;;  %8977 = vmatmul.mubr.bf16.gmra.mrb[116].mxu0 %v19836_v0 }
 0x586   :  { %7442 = vmatprep.mubr.bf16.mxu1 %v19823_v55  ;;  %8986 = vmatprep.mubr.bf16.mxu0 %v19823_v55 }
 0x58d   :  { %7443 = vmatmul.mubr.bf16.gmra.mrb[16].mxu1 %v19837_v3  ;;  %8987 = vmatmul.mubr.bf16.gmra.mrb[120].mxu0 %v19837_v3 }
 0x58e   :  { %7452 = vmatprep.mubr.bf16.mxu1 %v19824_v52  ;;  %8996 = vmatprep.mubr.bf16.mxu0 %v19824_v52 }
 0x595   :  { %7453 = vmatmul.mubr.bf16.gmra.mrb[20].mxu1 %v19838_v9  ;;  %8997 = vmatmul.mubr.bf16.gmra.mrb[124].mxu0 %v19838_v9 }
 0x596   :  { %7462 = vmatprep.mubr.bf16.mxu1 %v19825_v1  ;;  %9006 = vmatprep.mubr.bf16.mxu0 %v19825_v1 }
 0x59d   :  { %7463 = vmatmul.mubr.bf16.gmra.mrb[24].mxu1 %v19839_v49  ;;  %9007 = vmatmul.mubr.bf16.gmra.mrb[128].mxu0 %v19839_v49 }
 0x59e   :  { %7472 = vmatprep.mubr.bf16.mxu1 %v19826_v24  ;;  %9016 = vmatprep.mubr.bf16.mxu0 %v19826_v24 }
 0x5a5   :  { %7473 = vmatmul.mubr.bf16.gmra.mrb[28].mxu1 %v17767_v28  ;;  %9017 = vmatmul.mubr.bf16.gmra.mrb[132].mxu0 %v17767_v28 }
 0x5a6   :  { %7482 = vmatprep.mubr.bf16.mxu1 %v19827_v46  ;;  %9026 = vmatprep.mubr.bf16.mxu0 %v19827_v46 }
 0x5ad   :  { %7483 = vmatmul.mubr.bf16.gmra.mrb[32].mxu1 %v17798_v8  ;;  %9027 = vmatmul.mubr.bf16.gmra.mrb[136].mxu0 %v17798_v8 }
 0x5ae   :  { %7492 = vmatprep.mubr.bf16.mxu1 %v17865_v5  ;;  %9036 = vmatprep.mubr.bf16.mxu0 %v17865_v5 }
 0x5b5   :  { %7493 = vmatmul.mubr.bf16.gmra.mrb[36].mxu1 %v17855_v37  ;;  %9037 = vmatmul.mubr.bf16.gmra.mrb[140].mxu0 %v17855_v37 }
 0x5b6   :  { %7502 = vmatprep.mubr.bf16.mxu1 %v17903_v42  ;;  %9046 = vmatprep.mubr.bf16.mxu0 %v17903_v42 }
 0x5bd   :  { %7503 = vmatmul.mubr.bf16.gmra.mrb[40].mxu1 %v17898_v33  ;;  %9047 = vmatmul.mubr.bf16.gmra.mrb[144].mxu0 %v17898_v33 }
 0x5be   :  { %7545 = vmatprep.mubr.bf16.mxu1 %v19830_v27  ;;  %9089 = vmatprep.mubr.bf16.mxu0 %v19830_v27  ;;  %v13819_v27 = vld [vmem:[#allocation6 + $0x840] ss:$16 sps:$4 sm:$0xff]  }
 0x5c5   :  { %7546 = vmatmul.mubr.bf16.vlgmr.msra.gmra.mrb[236].mxu1 %v17245_v60  ;;  %9090 = vmatmul.mubr.bf16.vlgmr.msra.gmra.mrb[84].mxu0 %v17245_v60  ;;  %v13830_v60 = vld [vmem:[#allocation6 + $0x86c] ss:$16 sps:$4 sm:$0xff]  }
 0x5c6   :  { %7707 = vmatpush1.bf16.msra.mxu1 %v13807_v15  ;;  %9251 = vmatpush1.bf16.msra.mxu0 %v13810_v11  ;;  %v13848_v15 = vld [vmem:[#allocation6 + $0x8cc] ss:$16 sps:$4 sm:$0xff]   ;;  %v13843_v11 = vld [vmem:[#allocation6 + $0x8c0] ss:$16 sps:$4 sm:$0xff]  }
 0x5c7   :  { %7555 = vmatprep.mubr.bf16.mxu1 %v19831_v2  ;;  %9099 = vmatprep.mubr.bf16.mxu0 %v19831_v2  ;;  %v13825_v2 = vld [vmem:[#allocation6 + $0x860] ss:$16 sps:$4 sm:$0xff]  }
 0x5c8   :  { %7708 = vmatprep.subr.bf16.mxu1 %v13815_v21  ;;  %9252 = vmatprep.subr.bf16.mxu0 %v13818_v20  ;;  %v13846_v21 = vld [vmem:[#allocation6 + $0x8c8] ss:$16 sps:$4 sm:$0xff]   ;;  %v13851_v20 = vld [vmem:[#allocation6 + $0x8e4] ss:$16 sps:$4 sm:$0xff]  }
 0x5ca   :  { %7709 = vmatpush1.bf16.msra.mxu1 %v13813_v48  ;;  %9253 = vmatpush1.bf16.msra.mxu0 %v13816_v19  ;;  %v13854_v48 = vld [vmem:[#allocation6 + $0x8ec] ss:$16 sps:$4 sm:$0xff]   ;;  %v13849_v19 = vld [vmem:[#allocation6 + $0x8e0] ss:$16 sps:$4 sm:$0xff]  }
 0x5cb   :  { %7710 = vmatprep.subr.bf16.mxu1 %v13821_v53  ;;  %9254 = vmatprep.subr.bf16.mxu0 %v13824_v44  ;;  %v13852_v53 = vld [vmem:[#allocation6 + $0x8e8] ss:$16 sps:$4 sm:$0xff]   ;;  %v13857_v44 = vld [vmem:[#allocation6 + $0x904] ss:$16 sps:$4 sm:$0xff]  }
 0x5cd   :  { %7556 = vmatmul.mubr.bf16.gmra.mrb[240].mxu1 %v17278_v16  ;;  %9100 = vmatmul.mubr.bf16.gmra.mrb[88].mxu0 %v17278_v16  ;;  %v13842_v16 = vld [vmem:[#allocation6 + $0x8ac] ss:$16 sps:$4 sm:$0xff]  }
 0x5ce   :  { %7565 = vmatprep.mubr.bf16.mxu1 %v19832_v31  ;;  %9109 = vmatprep.mubr.bf16.mxu0 %v19832_v31 }
 0x5cf   :  { %7711 = vmatpush1.bf16.msra.mxu1 %v13819_v27  ;;  %9255 = vmatpush1.bf16.msra.mxu0 %v13822_v40  ;;  %v13860_v27 = vld [vmem:[#allocation6 + $0x90c] ss:$16 sps:$4 sm:$0xff]   ;;  %v13855_v40 = vld [vmem:[#allocation6 + $0x900] ss:$16 sps:$4 sm:$0xff]  }
 0x5d0   :  { %7712 = vmatprep.subr.bf16.mxu1 %v13827_v17  ;;  %9256 = vmatprep.subr.bf16.mxu0 %v13830_v60  ;;  %v13858_v17 = vld [vmem:[#allocation6 + $0x908] ss:$16 sps:$4 sm:$0xff]   ;;  %v13863_v60 = vld [vmem:[#allocation6 + $0x924] ss:$16 sps:$4 sm:$0xff]  }
 0x5d3   :  { %7713 = vmatpush1.bf16.msra.mxu1 %v13825_v2  ;;  %9257 = vmatpush1.bf16.msra.mxu0 %v13828_v47  ;;  %v13866_v2 = vld [vmem:[#allocation6 + $0x92c] ss:$16 sps:$4 sm:$0xff]   ;;  %v13861_v47 = vld [vmem:[#allocation6 + $0x920] ss:$16 sps:$4 sm:$0xff]  }
 0x5d4   :  { %7714 = vmatprep.subr.bf16.mxu1 %v13833_v63  ;;  %9258 = vmatprep.subr.bf16.mxu0 %v13836_v41  ;;  %v13864_v63 = vld [vmem:[#allocation6 + $0x928] ss:$16 sps:$4 sm:$0xff]   ;;  %v13869_v41 = vld [vmem:[#allocation6 + $0x944] ss:$16 sps:$4 sm:$0xff]  }
 0x5d5   :  { %7566 = vmatmul.mubr.bf16.gmra.mrb[244].mxu1 %v17341_v18  ;;  %9110 = vmatmul.mubr.bf16.gmra.mrb[92].mxu0 %v17341_v18 }
 0x5d6   :  { %7575 = vmatprep.mubr.bf16.mxu1 %v19833_v13  ;;  %9119 = vmatprep.mubr.bf16.mxu0 %v19833_v13 }
 0x5d7   :  { %7715 = vmatpush1.bf16.msra.mxu1 %v13831_v39  ;;  %9259 = vmatpush1.bf16.msra.mxu0 %v13834_v30  ;;  %v13872_v39 = vld [vmem:[#allocation6 + $0x94c] ss:$16 sps:$4 sm:$0xff]   ;;  %v13867_v30 = vld [vmem:[#allocation6 + $0x940] ss:$16 sps:$4 sm:$0xff]  }
 0x5d8   :  { %7716 = vmatprep.subr.bf16.mxu1 %v13839_v10  ;;  %9260 = vmatprep.subr.bf16.mxu0 %v13842_v16  ;;  %v13870_v10 = vld [vmem:[#allocation6 + $0x948] ss:$16 sps:$4 sm:$0xff]   ;;  %v13875_v16 = vld [vmem:[#allocation6 + $0x964] ss:$16 sps:$4 sm:$0xff]  }
 0x5db   :  { %7717 = vmatpush1.bf16.msra.mxu1 %v13837_v58  ;;  %9261 = vmatpush1.bf16.msra.mxu0 %v13840_v14  ;;  %v19840_v58 = vld [vmem:[#allocation78_spill] sm:$0xff]  ;;  %v13878_v14 = vld [vmem:[#allocation6 + $0x96c] ss:$16 sps:$4 sm:$0xff]  }
 0x5dc   :  { %7718 = vmatprep.subr.bf16.mxu1 %v13845_v35  ;;  %9262 = vmatprep.subr.bf16.mxu0 %v13848_v15  ;;  %v13873_v35 = vld [vmem:[#allocation6 + $0x960] ss:$16 sps:$4 sm:$0xff]   ;;  %v13876_v15 = vld [vmem:[#allocation6 + $0x968] ss:$16 sps:$4 sm:$0xff]  }
 0x5dd   :  { %7576 = vmatmul.mubr.bf16.gmra.mrb[248].mxu1 %v17374_v25  ;;  %9120 = vmatmul.mubr.bf16.gmra.mrb[96].mxu0 %v17374_v25 }
 0x5de   :  { %7585 = vmatprep.mubr.bf16.mxu1 %v19834_v29  ;;  %9129 = vmatprep.mubr.bf16.mxu0 %v19834_v29 }
 0x5df   :  { %7719 = vmatpush1.bf16.msra.mxu1 %v13843_v11  ;;  %9263 = vmatpush1.bf16.msra.mxu0 %v13846_v21  ;;  %v13881_v11 = vld [vmem:[#allocation6 + $0x984] ss:$16 sps:$4 sm:$0xff]   ;;  %v13884_v21 = vld [vmem:[#allocation6 + $0x98c] ss:$16 sps:$4 sm:$0xff]  }
 0x5e0   :  { %7720 = vmatprep.subr.bf16.mxu1 %v13851_v20  ;;  %9264 = vmatprep.subr.bf16.mxu0 %v13854_v48  ;;  %v13879_v20 = vld [vmem:[#allocation6 + $0x980] ss:$16 sps:$4 sm:$0xff]   ;;  %v13882_v48 = vld [vmem:[#allocation6 + $0x988] ss:$16 sps:$4 sm:$0xff]  }
 0x5e3   :  { %7721 = vmatpush1.bf16.msra.mxu1 %v13849_v19  ;;  %9265 = vmatpush1.bf16.msra.mxu0 %v13852_v53  ;;  %v13887_v19 = vld [vmem:[#allocation6 + $0x9a4] ss:$16 sps:$4 sm:$0xff]   ;;  %v19841_v53 = vld [vmem:[#allocation93_spill] sm:$0xff] }
 0x5e4   :  { %7722 = vmatprep.subr.bf16.mxu1 %v13857_v44  ;;  %9266 = vmatprep.subr.bf16.mxu0 %v13860_v27  ;;  %v13890_v44 = vld [vmem:[#allocation6 + $0x9ac] ss:$16 sps:$4 sm:$0xff]   ;;  %v13885_v27 = vld [vmem:[#allocation6 + $0x9a0] ss:$16 sps:$4 sm:$0xff]  }
 0x5e5   :  { %7586 = vmatmul.mubr.bf16.gmra.mrb[252].mxu1 %v17437_v56  ;;  %9130 = vmatmul.mubr.bf16.gmra.mrb[100].mxu0 %v17437_v56 }
 0x5e6   :  { %7595 = vmatprep.mubr.bf16.mxu1 %v19835_v22  ;;  %9139 = vmatprep.mubr.bf16.mxu0 %v19835_v22 }
 0x5e7   :  { %7723 = vmatpush1.bf16.msra.mxu1 %v13855_v40  ;;  %9267 = vmatpush1.bf16.msra.mxu0 %v13858_v17  ;;  %v13888_v40 = vld [vmem:[#allocation6 + $0x9a8] ss:$16 sps:$4 sm:$0xff]   ;;  %v13893_v17 = vld [vmem:[#allocation6 + $0x9c4] ss:$16 sps:$4 sm:$0xff]  }
 0x5e8   :  { %7724 = vmatprep.subr.bf16.mxu1 %v13863_v60  ;;  %9268 = vmatprep.subr.bf16.mxu0 %v13866_v2  ;;  %v13896_v60 = vld [vmem:[#allocation6 + $0x9cc] ss:$16 sps:$4 sm:$0xff]   ;;  %v13891_v2 = vld [vmem:[#allocation6 + $0x9c0] ss:$16 sps:$4 sm:$0xff]  }
 0x5eb   :  { %7725 = vmatpush1.bf16.msra.mxu1 %v13861_v47  ;;  %9269 = vmatpush1.bf16.msra.mxu0 %v13864_v63  ;;  %v13894_v47 = vld [vmem:[#allocation6 + $0x9c8] ss:$16 sps:$4 sm:$0xff]   ;;  %v13899_v63 = vld [vmem:[#allocation6 + $0x9e4] ss:$16 sps:$4 sm:$0xff]  }
 0x5ec   :  { %7726 = vmatprep.subr.bf16.mxu1 %v13869_v41  ;;  %9270 = vmatprep.subr.bf16.mxu0 %v13872_v39  ;;  %v19842_v41 = vld [vmem:[#allocation85_spill] sm:$0xff] }
 0x5ed   :  { %7596 = vmatmul.mubr.bf16.gmra.mrb[0].mxu1 %v19840_v58  ;;  %9140 = vmatmul.mubr.bf16.gmra.mrb[104].mxu0 %v19840_v58  ;;  %v13902_v39 = vld [vmem:[#allocation6 + $0x9ec] ss:$16 sps:$4 sm:$0xff]  }
 0x5ee   :  { %7605 = vmatprep.mubr.bf16.mxu1 %v19836_v0  ;;  %9149 = vmatprep.mubr.bf16.mxu0 %v19836_v0 }
 0x5ef   :  { %7727 = vmatpush1.bf16.msra.mxu1 %v13867_v30  ;;  %9271 = vmatpush1.bf16.msra.mxu0 %v13870_v10  ;;  %v13897_v30 = vld [vmem:[#allocation6 + $0x9e0] ss:$16 sps:$4 sm:$0xff]   ;;  %v13900_v10 = vld [vmem:[#allocation6 + $0x9e8] ss:$16 sps:$4 sm:$0xff]  }
 0x5f0   :  { %7728 = vmatprep.subr.bf16.mxu1 %v13875_v16  ;;  %9272 = vmatprep.subr.bf16.mxu0 %v13878_v14  ;;  %v13905_v16 = vld [vmem:[#allocation6 + $0xa04] ss:$16 sps:$4 sm:$0xff]   ;;  %v13908_v14 = vld [vmem:[#allocation6 + $0xa0c] ss:$16 sps:$4 sm:$0xff]  }
 0x5f3   :  { %7729 = vmatpush1.bf16.msra.mxu1 %v13873_v35  ;;  %9273 = vmatpush1.bf16.msra.mxu0 %v13876_v15  ;;  %v19843_v35 = vld [vmem:[#allocation64_spill] sm:$0xff] }
 0x5f4   :  { %7730 = vmatprep.subr.bf16.mxu1 %v13881_v11  ;;  %9274 = vmatprep.subr.bf16.mxu0 %v13884_v21  ;;  %v19844_v15 = vld [vmem:[#allocation100_spill] sm:$0xff]  ;;  %v19845_v11 = vld [vmem:[#allocation98_spill] sm:$0xff]  ;;  %v19846_v21 = vld [vmem:[#allocation109_spill] sm:$0xff] }
 0x5f5   :  { %7606 = vmatmul.mubr.bf16.gmra.mrb[4].mxu1 %v19841_v53  ;;  %9150 = vmatmul.mubr.bf16.gmra.mrb[108].mxu0 %v19841_v53 }
 0x5f6   :  { %7615 = vmatprep.mubr.bf16.mxu1 %v19837_v3  ;;  %9159 = vmatprep.mubr.bf16.mxu0 %v19837_v3 }
 0x5f7   :  { %7731 = vmatpush1.bf16.msra.mxu1 %v13879_v20  ;;  %9275 = vmatpush1.bf16.msra.mxu0 %v13882_v48  ;;  %v13903_v20 = vld [vmem:[#allocation6 + $0xa00] ss:$16 sps:$4 sm:$0xff]   ;;  %v13906_v48 = vld [vmem:[#allocation6 + $0xa08] ss:$16 sps:$4 sm:$0xff]  }
 0x5f8   :  { %7732 = vmatprep.subr.bf16.mxu1 %v13887_v19  ;;  %9276 = vmatprep.subr.bf16.mxu0 %v13890_v44  ;;  %v13911_v19 = vld [vmem:[#allocation6 + $0xa24] ss:$16 sps:$4 sm:$0xff]   ;;  %v13914_v44 = vld [vmem:[#allocation6 + $0xa2c] ss:$16 sps:$4 sm:$0xff]  }
 0x5fb   :  { %7733 = vmatpush1.bf16.msra.mxu1 %v13885_v27  ;;  %9277 = vmatpush1.bf16.msra.mxu0 %v13888_v40  ;;  %v13909_v27 = vld [vmem:[#allocation6 + $0xa20] ss:$16 sps:$4 sm:$0xff]   ;;  %v13912_v40 = vld [vmem:[#allocation6 + $0xa28] ss:$16 sps:$4 sm:$0xff]  }
 0x5fc   :  { %7734 = vmatprep.subr.bf16.mxu1 %v13893_v17  ;;  %9278 = vmatprep.subr.bf16.mxu0 %v13896_v60  ;;  %v13917_v17 = vld [vmem:[#allocation6 + $0xa44] ss:$16 sps:$4 sm:$0xff]   ;;  %v13920_v60 = vld [vmem:[#allocation6 + $0xa4c] ss:$16 sps:$4 sm:$0xff]  }
 0x5fd   :  { %7616 = vmatmul.mubr.bf16.gmra.mrb[8].mxu1 %v19842_v41  ;;  %9160 = vmatmul.mubr.bf16.gmra.mrb[112].mxu0 %v19842_v41 }
 0x5fe   :  { %7625 = vmatprep.mubr.bf16.mxu1 %v19838_v9  ;;  %9169 = vmatprep.mubr.bf16.mxu0 %v19838_v9 }
 0x5ff   :  { %7735 = vmatpush1.bf16.msra.mxu1 %v13891_v2  ;;  %9279 = vmatpush1.bf16.msra.mxu0 %v13894_v47  ;;  %v13918_v2 = vld [vmem:[#allocation6 + $0xa48] ss:$16 sps:$4 sm:$0xff]   ;;  %v13923_v47 = vld [vmem:[#allocation6 + $0xa64] ss:$16 sps:$4 sm:$0xff]  }
 0x600   :  { %7736 = vmatprep.subr.bf16.mxu1 %v13899_v63  ;;  %9280 = vmatprep.subr.bf16.mxu0 %v13902_v39  ;;  %v13924_v63 = vld [vmem:[#allocation6 + $0xa68] ss:$16 sps:$4 sm:$0xff]   ;;  %v13929_v39 = vld [vmem:[#allocation6 + $0xa84] ss:$16 sps:$4 sm:$0xff]  }
 0x603   :  { %7737 = vmatpush1.bf16.msra.mxu1 %v13897_v30  ;;  %9281 = vmatpush1.bf16.msra.mxu0 %v13900_v10  ;;  %v13932_v30 = vld [vmem:[#allocation6 + $0xa8c] ss:$16 sps:$4 sm:$0xff]   ;;  %v13927_v10 = vld [vmem:[#allocation6 + $0xa80] ss:$16 sps:$4 sm:$0xff]  }
 0x604   :  { %7899 = vmatprep.subr.bf16.mxu1 %v13905_v16  ;;  %9443 = vmatprep.subr.bf16.mxu0 %v13908_v14  ;;  %v13930_v16 = vld [vmem:[#allocation6 + $0xa88] ss:$16 sps:$4 sm:$0xff]   ;;  %v13935_v14 = vld [vmem:[#allocation6 + $0xaa4] ss:$16 sps:$4 sm:$0xff]  }
 0x605   :  { %7626 = vmatmul.mubr.bf16.gmra.mrb[12].mxu1 %v17657_v50  ;;  %9170 = vmatmul.mubr.bf16.gmra.mrb[116].mxu0 %v17657_v50 }
 0x606   :  { %7635 = vmatprep.mubr.bf16.mxu1 %v19839_v49  ;;  %9179 = vmatprep.mubr.bf16.mxu0 %v19839_v49 }
 0x60d   :  { %7636 = vmatmul.mubr.bf16.gmra.mrb[16].mxu1 %v17704_v38  ;;  %9180 = vmatmul.mubr.bf16.gmra.mrb[120].mxu0 %v17704_v38 }
 0x60e   :  { %7645 = vmatprep.mubr.bf16.mxu1 %v17767_v28  ;;  %9189 = vmatprep.mubr.bf16.mxu0 %v17767_v28 }
 0x615   :  { %7646 = vmatmul.mubr.bf16.gmra.mrb[20].mxu1 %v17769_v45  ;;  %9190 = vmatmul.mubr.bf16.gmra.mrb[124].mxu0 %v17769_v45 }
 0x616   :  { %7655 = vmatprep.mubr.bf16.mxu1 %v17798_v8  ;;  %9199 = vmatprep.mubr.bf16.mxu0 %v17798_v8 }
 0x61d   :  { %7656 = vmatmul.mubr.bf16.gmra.mrb[24].mxu1 %v17800_v43  ;;  %9200 = vmatmul.mubr.bf16.gmra.mrb[128].mxu0 %v17800_v43 }
 0x61e   :  { %7665 = vmatprep.mubr.bf16.mxu1 %v17855_v37  ;;  %9209 = vmatprep.mubr.bf16.mxu0 %v17855_v37 }
 0x625   :  { %7666 = vmatmul.mubr.bf16.gmra.mrb[28].mxu1 %v17857_v62  ;;  %9210 = vmatmul.mubr.bf16.gmra.mrb[132].mxu0 %v17857_v62 }
 0x626   :  { %7675 = vmatprep.mubr.bf16.mxu1 %v17898_v33  ;;  %9219 = vmatprep.mubr.bf16.mxu0 %v17898_v33 }
 0x62d   :  { %7676 = vmatmul.mubr.bf16.gmra.mrb[32].mxu1 %v17900_v12  ;;  %9220 = vmatmul.mubr.bf16.gmra.mrb[136].mxu0 %v17900_v12 }
 0x62e   :  { %7685 = vmatprep.mubr.bf16.mxu1 %v19843_v35  ;;  %9229 = vmatprep.mubr.bf16.mxu0 %v19843_v35 }
 0x635   :  { %7686 = vmatmul.mubr.bf16.gmra.mrb[36].mxu1 %v19844_v15  ;;  %9230 = vmatmul.mubr.bf16.gmra.mrb[140].mxu0 %v19844_v15 }
 0x636   :  { %7695 = vmatprep.mubr.bf16.mxu1 %v19845_v11  ;;  %9239 = vmatprep.mubr.bf16.mxu0 %v19845_v11 }
 0x63d   :  { %7696 = vmatmul.mubr.bf16.gmra.mrb[40].mxu1 %v19846_v21  ;;  %9240 = vmatmul.mubr.bf16.gmra.mrb[144].mxu0 %v19846_v21 }
 0x63e   :  { %7738 = vmatprep.mubr.bf16.mxu1 %v17341_v18  ;;  %9282 = vmatprep.mubr.bf16.mxu0 %v17341_v18  ;;  %v13915_v18 = vld [vmem:[#allocation6 + $0xa40] ss:$16 sps:$4 sm:$0xff]  }
 0x645   :  { %7739 = vmatmul.mubr.bf16.vlgmr.msra.gmra.mrb[236].mxu1 %v19763_v4  ;;  %9283 = vmatmul.mubr.bf16.vlgmr.msra.gmra.mrb[84].mxu0 %v19763_v4  ;;  %v13926_v4 = vld [vmem:[#allocation6 + $0xa6c] ss:$16 sps:$4 sm:$0xff]  }
 0x646   :  { %7900 = vmatpush1.bf16.msra.mxu1 %v13903_v20  ;;  %9444 = vmatpush1.bf16.msra.mxu0 %v13906_v48  ;;  %v13933_v20 = vld [vmem:[#allocation6 + $0xaa0] ss:$16 sps:$4 sm:$0xff]   ;;  %v13936_v48 = vld [vmem:[#allocation6 + $0xaa8] ss:$16 sps:$4 sm:$0xff]  }
 0x647   :  { %7748 = vmatprep.mubr.bf16.mxu1 %v17374_v25  ;;  %9292 = vmatprep.mubr.bf16.mxu0 %v17374_v25  ;;  %v13921_v25 = vld [vmem:[#allocation6 + $0xa60] ss:$16 sps:$4 sm:$0xff]  }
 0x648   :  { %7901 = vmatprep.subr.bf16.mxu1 %v13911_v19  ;;  %9445 = vmatprep.subr.bf16.mxu0 %v13914_v44  ;;  %v13941_v19 = vld [vmem:[#allocation6 + $0xac4] ss:$16 sps:$4 sm:$0xff]   ;;  %v13944_v44 = vld [vmem:[#allocation6 + $0xacc] ss:$16 sps:$4 sm:$0xff]  }
 0x64a   :  { %7902 = vmatpush1.bf16.msra.mxu1 %v13909_v27  ;;  %9446 = vmatpush1.bf16.msra.mxu0 %v13912_v40  ;;  %v13939_v27 = vld [vmem:[#allocation6 + $0xac0] ss:$16 sps:$4 sm:$0xff]   ;;  %v13942_v40 = vld [vmem:[#allocation6 + $0xac8] ss:$16 sps:$4 sm:$0xff]  }
 0x64b   :  { %7903 = vmatprep.subr.bf16.mxu1 %v13917_v17  ;;  %9447 = vmatprep.subr.bf16.mxu0 %v13920_v60  ;;  %v13947_v17 = vld [vmem:[#allocation6 + $0xae4] ss:$16 sps:$4 sm:$0xff]   ;;  %v13950_v60 = vld [vmem:[#allocation6 + $0xaec] ss:$16 sps:$4 sm:$0xff]  }
 0x64d   :  { %7749 = vmatmul.mubr.bf16.gmra.mrb[240].mxu1 %v19770_v54  ;;  %9293 = vmatmul.mubr.bf16.gmra.mrb[88].mxu0 %v19770_v54  ;;  %v13938_v54 = vld [vmem:[#allocation6 + $0xaac] ss:$16 sps:$4 sm:$0xff]  }
 0x64e   :  { %7758 = vmatprep.mubr.bf16.mxu1 %v17437_v56  ;;  %9302 = vmatprep.mubr.bf16.mxu0 %v17437_v56 }
 0x64f   :  { %7904 = vmatpush1.bf16.msra.mxu1 %v13915_v18  ;;  %9448 = vmatpush1.bf16.msra.mxu0 %v13918_v2  ;;  %v13945_v18 = vld [vmem:[#allocation6 + $0xae0] ss:$16 sps:$4 sm:$0xff]   ;;  %v13948_v2 = vld [vmem:[#allocation6 + $0xae8] ss:$16 sps:$4 sm:$0xff]  }
 0x650   :  { %7905 = vmatprep.subr.bf16.mxu1 %v13923_v47  ;;  %9449 = vmatprep.subr.bf16.mxu0 %v13926_v4  ;;  %v13953_v47 = vld [vmem:[#allocation6 + $0xb04] ss:$16 sps:$4 sm:$0xff]   ;;  %v13956_v4 = vld [vmem:[#allocation6 + $0xb0c] ss:$16 sps:$4 sm:$0xff]  }
 0x653   :  { %7906 = vmatpush1.bf16.msra.mxu1 %v13921_v25  ;;  %9450 = vmatpush1.bf16.msra.mxu0 %v13924_v63  ;;  %v13951_v25 = vld [vmem:[#allocation6 + $0xb00] ss:$16 sps:$4 sm:$0xff]   ;;  %v13954_v63 = vld [vmem:[#allocation6 + $0xb08] ss:$16 sps:$4 sm:$0xff]  }
 0x654   :  { %7907 = vmatprep.subr.bf16.mxu1 %v13929_v39  ;;  %9451 = vmatprep.subr.bf16.mxu0 %v13932_v30  ;;  %v13959_v39 = vld [vmem:[#allocation6 + $0xb24] ss:$16 sps:$4 sm:$0xff]   ;;  %v13962_v30 = vld [vmem:[#allocation6 + $0xb2c] ss:$16 sps:$4 sm:$0xff]  }
 0x655   :  { %7759 = vmatmul.mubr.bf16.gmra.mrb[244].mxu1 %v19786_v57  ;;  %9303 = vmatmul.mubr.bf16.gmra.mrb[92].mxu0 %v19786_v57 }
 0x656   :  { %7768 = vmatprep.mubr.bf16.mxu1 %v19840_v58  ;;  %9312 = vmatprep.mubr.bf16.mxu0 %v19840_v58 }
 0x657   :  { %7908 = vmatpush1.bf16.msra.mxu1 %v13927_v10  ;;  %9452 = vmatpush1.bf16.msra.mxu0 %v13930_v16  ;;  %v13957_v10 = vld [vmem:[#allocation6 + $0xb20] ss:$16 sps:$4 sm:$0xff]   ;;  %v13960_v16 = vld [vmem:[#allocation6 + $0xb28] ss:$16 sps:$4 sm:$0xff]  }
 0x658   :  { %7909 = vmatprep.subr.bf16.mxu1 %v13935_v14  ;;  %9453 = vmatprep.subr.bf16.mxu0 %v13938_v54  ;;  %v13965_v14 = vld [vmem:[#allocation6 + $0xb44] ss:$16 sps:$4 sm:$0xff]   ;;  %v13968_v54 = vld [vmem:[#allocation6 + $0xb4c] ss:$16 sps:$4 sm:$0xff]  }
 0x65b   :  { %7910 = vmatpush1.bf16.msra.mxu1 %v13933_v20  ;;  %9454 = vmatpush1.bf16.msra.mxu0 %v13936_v48  ;;  %v13963_v20 = vld [vmem:[#allocation6 + $0xb40] ss:$16 sps:$4 sm:$0xff]   ;;  %v13966_v48 = vld [vmem:[#allocation6 + $0xb48] ss:$16 sps:$4 sm:$0xff]  }
 0x65c   :  { %7911 = vmatprep.subr.bf16.mxu1 %v13941_v19  ;;  %9455 = vmatprep.subr.bf16.mxu0 %v13944_v44  ;;  %v13971_v19 = vld [vmem:[#allocation6 + $0xb64] ss:$16 sps:$4 sm:$0xff]   ;;  %v13974_v44 = vld [vmem:[#allocation6 + $0xb6c] ss:$16 sps:$4 sm:$0xff]  }
 0x65d   :  { %7769 = vmatmul.mubr.bf16.gmra.mrb[248].mxu1 %v19795_v36  ;;  %9313 = vmatmul.mubr.bf16.gmra.mrb[96].mxu0 %v19795_v36 }
 0x65e   :  { %7778 = vmatprep.mubr.bf16.mxu1 %v19841_v53  ;;  %9322 = vmatprep.mubr.bf16.mxu0 %v19841_v53 }
 0x65f   :  { %7912 = vmatpush1.bf16.msra.mxu1 %v13939_v27  ;;  %9456 = vmatpush1.bf16.msra.mxu0 %v13942_v40  ;;  %v13969_v27 = vld [vmem:[#allocation6 + $0xb60] ss:$16 sps:$4 sm:$0xff]   ;;  %v13972_v40 = vld [vmem:[#allocation6 + $0xb68] ss:$16 sps:$4 sm:$0xff]  }
 0x660   :  { %7913 = vmatprep.subr.bf16.mxu1 %v13947_v17  ;;  %9457 = vmatprep.subr.bf16.mxu0 %v13950_v60  ;;  %v13977_v17 = vld [vmem:[#allocation6 + $0xb84] ss:$16 sps:$4 sm:$0xff]   ;;  %v13980_v60 = vld [vmem:[#allocation6 + $0xb8c] ss:$16 sps:$4 sm:$0xff]  }
 0x663   :  { %7914 = vmatpush1.bf16.msra.mxu1 %v13945_v18  ;;  %9458 = vmatpush1.bf16.msra.mxu0 %v13948_v2  ;;  %v13975_v18 = vld [vmem:[#allocation6 + $0xb80] ss:$16 sps:$4 sm:$0xff]   ;;  %v13978_v2 = vld [vmem:[#allocation6 + $0xb88] ss:$16 sps:$4 sm:$0xff]  }
 0x664   :  { %7915 = vmatprep.subr.bf16.mxu1 %v13953_v47  ;;  %9459 = vmatprep.subr.bf16.mxu0 %v13956_v4  ;;  %v13983_v47 = vld [vmem:[#allocation6 + $0xba4] ss:$16 sps:$4 sm:$0xff]   ;;  %v13986_v4 = vld [vmem:[#allocation6 + $0xbac] ss:$16 sps:$4 sm:$0xff]  }
 0x665   :  { %7779 = vmatmul.mubr.bf16.gmra.mrb[252].mxu1 %v17445_v26  ;;  %9323 = vmatmul.mubr.bf16.gmra.mrb[100].mxu0 %v17445_v26 }
 0x666   :  { %7788 = vmatprep.mubr.bf16.mxu1 %v19842_v41  ;;  %9332 = vmatprep.mubr.bf16.mxu0 %v19842_v41 }
 0x667   :  { %7916 = vmatpush1.bf16.msra.mxu1 %v13951_v25  ;;  %9460 = vmatpush1.bf16.msra.mxu0 %v13954_v63  ;;  %v13981_v25 = vld [vmem:[#allocation6 + $0xba0] ss:$16 sps:$4 sm:$0xff]   ;;  %v13984_v63 = vld [vmem:[#allocation6 + $0xba8] ss:$16 sps:$4 sm:$0xff]  }
 0x668   :  { %7917 = vmatprep.subr.bf16.mxu1 %v13959_v39  ;;  %9461 = vmatprep.subr.bf16.mxu0 %v13962_v30  ;;  %v13989_v39 = vld [vmem:[#allocation6 + $0xbc4] ss:$16 sps:$4 sm:$0xff]   ;;  %v13992_v30 = vld [vmem:[#allocation6 + $0xbcc] ss:$16 sps:$4 sm:$0xff]  }
 0x66b   :  { %7918 = vmatpush1.bf16.msra.mxu1 %v13957_v10  ;;  %9462 = vmatpush1.bf16.msra.mxu0 %v13960_v16  ;;  %v13987_v10 = vld [vmem:[#allocation6 + $0xbc0] ss:$16 sps:$4 sm:$0xff]   ;;  %v13990_v16 = vld [vmem:[#allocation6 + $0xbc8] ss:$16 sps:$4 sm:$0xff]  }
 0x66c   :  { %7919 = vmatprep.subr.bf16.mxu1 %v13965_v14  ;;  %9463 = vmatprep.subr.bf16.mxu0 %v13968_v54  ;;  %v13995_v14 = vld [vmem:[#allocation6 + $0xbe4] ss:$16 sps:$4 sm:$0xff]   ;;  %v13998_v54 = vld [vmem:[#allocation6 + $0xbec] ss:$16 sps:$4 sm:$0xff]  }
 0x66d   :  { %7789 = vmatmul.mubr.bf16.gmra.mrb[0].mxu1 %v19803_v34  ;;  %9333 = vmatmul.mubr.bf16.gmra.mrb[104].mxu0 %v19803_v34 }
 0x66e   :  { %7798 = vmatprep.mubr.bf16.mxu1 %v17657_v50  ;;  %9342 = vmatprep.mubr.bf16.mxu0 %v17657_v50 }
 0x66f   :  { %7920 = vmatpush1.bf16.msra.mxu1 %v13963_v20  ;;  %9464 = vmatpush1.bf16.msra.mxu0 %v13966_v48  ;;  %v13993_v20 = vld [vmem:[#allocation6 + $0xbe0] ss:$16 sps:$4 sm:$0xff]   ;;  %v13996_v48 = vld [vmem:[#allocation6 + $0xbe8] ss:$16 sps:$4 sm:$0xff]  }
 0x670   :  { %7921 = vmatprep.subr.bf16.mxu1 %v13971_v19  ;;  %9465 = vmatprep.subr.bf16.mxu0 %v13974_v44  ;;  %v14001_v19 = vld [vmem:[#allocation6 + $0xc04] ss:$16 sps:$4 sm:$0xff]   ;;  %v14004_v44 = vld [vmem:[#allocation6 + $0xc0c] ss:$16 sps:$4 sm:$0xff]  }
 0x673   :  { %7922 = vmatpush1.bf16.msra.mxu1 %v13969_v27  ;;  %9466 = vmatpush1.bf16.msra.mxu0 %v13972_v40  ;;  %v19847_v27 = vld [vmem:[#allocation114_spill] sm:$0xff]  ;;  %v19848_v40 = vld [vmem:[#allocation111_spill] sm:$0xff] }
 0x674   :  { %7923 = vmatprep.subr.bf16.mxu1 %v13977_v17  ;;  %9467 = vmatprep.subr.bf16.mxu0 %v13980_v60  ;;  %v19849_v17 = vld [vmem:[#allocation72_spill] sm:$0xff]  ;;  %v19850_v60 = vld [vmem:[#allocation66_spill] sm:$0xff] }
 0x675   :  { %7799 = vmatmul.mubr.bf16.gmra.mrb[4].mxu1 %v19816_v6  ;;  %9343 = vmatmul.mubr.bf16.gmra.mrb[108].mxu0 %v19816_v6 }
 0x676   :  { %7808 = vmatprep.mubr.bf16.mxu1 %v17704_v38  ;;  %9352 = vmatprep.mubr.bf16.mxu0 %v17704_v38 }
 0x677   :  { %7924 = vmatpush1.bf16.msra.mxu1 %v13975_v18  ;;  %9468 = vmatpush1.bf16.msra.mxu0 %v13978_v2  ;;  %v13999_v18 = vld [vmem:[#allocation6 + $0xc00] ss:$16 sps:$4 sm:$0xff]   ;;  %v14002_v2 = vld [vmem:[#allocation6 + $0xc08] ss:$16 sps:$4 sm:$0xff]  }
 0x678   :  { %7925 = vmatprep.subr.bf16.mxu1 %v13983_v47  ;;  %9469 = vmatprep.subr.bf16.mxu0 %v13986_v4  ;;  %v14007_v47 = vld [vmem:[#allocation6 + $0xc24] ss:$16 sps:$4 sm:$0xff]   ;;  %v14010_v4 = vld [vmem:[#allocation6 + $0xc2c] ss:$16 sps:$4 sm:$0xff]  }
 0x67b   :  { %7926 = vmatpush1.bf16.msra.mxu1 %v13981_v25  ;;  %9470 = vmatpush1.bf16.msra.mxu0 %v13984_v63  ;;  %v14005_v25 = vld [vmem:[#allocation6 + $0xc20] ss:$16 sps:$4 sm:$0xff]   ;;  %v14008_v63 = vld [vmem:[#allocation6 + $0xc28] ss:$16 sps:$4 sm:$0xff]  }
 0x67c   :  { %7927 = vmatprep.subr.bf16.mxu1 %v13989_v39  ;;  %9471 = vmatprep.subr.bf16.mxu0 %v13992_v30  ;;  %v14013_v39 = vld [vmem:[#allocation6 + $0xc44] ss:$16 sps:$4 sm:$0xff]   ;;  %v14016_v30 = vld [vmem:[#allocation6 + $0xc4c] ss:$16 sps:$4 sm:$0xff]  }
 0x67d   :  { %7809 = vmatmul.mubr.bf16.gmra.mrb[8].mxu1 %v19823_v55  ;;  %9353 = vmatmul.mubr.bf16.gmra.mrb[112].mxu0 %v19823_v55 }
 0x67e   :  { %7818 = vmatprep.mubr.bf16.mxu1 %v17769_v45  ;;  %9362 = vmatprep.mubr.bf16.mxu0 %v17769_v45 }
 0x67f   :  { %7928 = vmatpush1.bf16.msra.mxu1 %v13987_v10  ;;  %9472 = vmatpush1.bf16.msra.mxu0 %v13990_v16  ;;  %v14014_v10 = vld [vmem:[#allocation6 + $0xc48] ss:$16 sps:$4 sm:$0xff]   ;;  %v14019_v16 = vld [vmem:[#allocation6 + $0xc64] ss:$16 sps:$4 sm:$0xff]  }
 0x680   :  { %7929 = vmatprep.subr.bf16.mxu1 %v13995_v14  ;;  %9473 = vmatprep.subr.bf16.mxu0 %v13998_v54  ;;  %v14020_v14 = vld [vmem:[#allocation6 + $0xc68] ss:$16 sps:$4 sm:$0xff]   ;;  %v14025_v54 = vld [vmem:[#allocation6 + $0xc84] ss:$16 sps:$4 sm:$0xff]  }
 0x683   :  { %7930 = vmatpush1.bf16.msra.mxu1 %v13993_v20  ;;  %9474 = vmatpush1.bf16.msra.mxu0 %v13996_v48  ;;  %v14028_v20 = vld [vmem:[#allocation6 + $0xc8c] ss:$16 sps:$4 sm:$0xff]   ;;  %v14023_v48 = vld [vmem:[#allocation6 + $0xc80] ss:$16 sps:$4 sm:$0xff]  }
 0x684   :  { %8092 = vmatprep.subr.bf16.mxu1 %v14001_v19  ;;  %9636 = vmatprep.subr.bf16.mxu0 %v14004_v44  ;;  %v14026_v19 = vld [vmem:[#allocation6 + $0xc88] ss:$16 sps:$4 sm:$0xff]   ;;  %v14031_v44 = vld [vmem:[#allocation6 + $0xca4] ss:$16 sps:$4 sm:$0xff]  }
 0x685   :  { %7819 = vmatmul.mubr.bf16.gmra.mrb[12].mxu1 %v19824_v52  ;;  %9363 = vmatmul.mubr.bf16.gmra.mrb[116].mxu0 %v19824_v52 }
 0x686   :  { %7828 = vmatprep.mubr.bf16.mxu1 %v17800_v43  ;;  %9372 = vmatprep.mubr.bf16.mxu0 %v17800_v43 }
 0x68d   :  { %7829 = vmatmul.mubr.bf16.gmra.mrb[16].mxu1 %v19825_v1  ;;  %9373 = vmatmul.mubr.bf16.gmra.mrb[120].mxu0 %v19825_v1 }
 0x68e   :  { %7838 = vmatprep.mubr.bf16.mxu1 %v17857_v62  ;;  %9382 = vmatprep.mubr.bf16.mxu0 %v17857_v62 }
 0x695   :  { %7839 = vmatmul.mubr.bf16.gmra.mrb[20].mxu1 %v19826_v24  ;;  %9383 = vmatmul.mubr.bf16.gmra.mrb[124].mxu0 %v19826_v24 }
 0x696   :  { %7848 = vmatprep.mubr.bf16.mxu1 %v17900_v12  ;;  %9392 = vmatprep.mubr.bf16.mxu0 %v17900_v12 }
 0x69d   :  { %7849 = vmatmul.mubr.bf16.gmra.mrb[24].mxu1 %v19827_v46  ;;  %9393 = vmatmul.mubr.bf16.gmra.mrb[128].mxu0 %v19827_v46 }
 0x69e   :  { %7858 = vmatprep.mubr.bf16.mxu1 %v19844_v15  ;;  %9402 = vmatprep.mubr.bf16.mxu0 %v19844_v15 }
 0x6a5   :  { %7859 = vmatmul.mubr.bf16.gmra.mrb[28].mxu1 %v17865_v5  ;;  %9403 = vmatmul.mubr.bf16.gmra.mrb[132].mxu0 %v17865_v5 }
 0x6a6   :  { %7868 = vmatprep.mubr.bf16.mxu1 %v19846_v21  ;;  %9412 = vmatprep.mubr.bf16.mxu0 %v19846_v21 }
 0x6ad   :  { %7869 = vmatmul.mubr.bf16.gmra.mrb[32].mxu1 %v17903_v42  ;;  %9413 = vmatmul.mubr.bf16.gmra.mrb[136].mxu0 %v17903_v42 }
 0x6ae   :  { %7878 = vmatprep.mubr.bf16.mxu1 %v19847_v27  ;;  %9422 = vmatprep.mubr.bf16.mxu0 %v19847_v27 }
 0x6b5   :  { %7879 = vmatmul.mubr.bf16.gmra.mrb[36].mxu1 %v19848_v40  ;;  %9423 = vmatmul.mubr.bf16.gmra.mrb[140].mxu0 %v19848_v40 }
 0x6b6   :  { %7888 = vmatprep.mubr.bf16.mxu1 %v19849_v17  ;;  %9432 = vmatprep.mubr.bf16.mxu0 %v19849_v17 }
 0x6bd   :  { %7889 = vmatmul.mubr.bf16.gmra.mrb[40].mxu1 %v19850_v60  ;;  %9433 = vmatmul.mubr.bf16.gmra.mrb[144].mxu0 %v19850_v60 }
 0x6be   :  { %7931 = vmatprep.mubr.bf16.mxu1 %v19786_v57  ;;  %9475 = vmatprep.mubr.bf16.mxu0 %v19786_v57  ;;  %v14011_v57 = vld [vmem:[#allocation6 + $0xc40] ss:$16 sps:$4 sm:$0xff]  }
 0x6c5   :  { %7932 = vmatmul.mubr.bf16.vlgmr.msra.gmra.mrb[236].mxu1 %v19832_v31  ;;  %9476 = vmatmul.mubr.bf16.vlgmr.msra.gmra.mrb[84].mxu0 %v19832_v31  ;;  %v14022_v31 = vld [vmem:[#allocation6 + $0xc6c] ss:$16 sps:$4 sm:$0xff]  }
 0x6c6   :  { %8093 = vmatpush1.bf16.msra.mxu1 %v13999_v18  ;;  %9637 = vmatpush1.bf16.msra.mxu0 %v14002_v2  ;;  %v14029_v18 = vld [vmem:[#allocation6 + $0xca0] ss:$16 sps:$4 sm:$0xff]   ;;  %v14032_v2 = vld [vmem:[#allocation6 + $0xca8] ss:$16 sps:$4 sm:$0xff]  }
 0x6c7   :  { %7941 = vmatprep.mubr.bf16.mxu1 %v19795_v36  ;;  %9485 = vmatprep.mubr.bf16.mxu0 %v19795_v36  ;;  %v14017_v36 = vld [vmem:[#allocation6 + $0xc60] ss:$16 sps:$4 sm:$0xff]  }
 0x6c8   :  { %8094 = vmatprep.subr.bf16.mxu1 %v14007_v47  ;;  %9638 = vmatprep.subr.bf16.mxu0 %v14010_v4  ;;  %v14037_v47 = vld [vmem:[#allocation6 + $0xcc4] ss:$16 sps:$4 sm:$0xff]   ;;  %v14040_v4 = vld [vmem:[#allocation6 + $0xccc] ss:$16 sps:$4 sm:$0xff]  }
 0x6ca   :  { %8095 = vmatpush1.bf16.msra.mxu1 %v14005_v25  ;;  %9639 = vmatpush1.bf16.msra.mxu0 %v14008_v63  ;;  %v14035_v25 = vld [vmem:[#allocation6 + $0xcc0] ss:$16 sps:$4 sm:$0xff]   ;;  %v14038_v63 = vld [vmem:[#allocation6 + $0xcc8] ss:$16 sps:$4 sm:$0xff]  }
 0x6cb   :  { %8096 = vmatprep.subr.bf16.mxu1 %v14013_v39  ;;  %9640 = vmatprep.subr.bf16.mxu0 %v14016_v30  ;;  %v14043_v39 = vld [vmem:[#allocation6 + $0xce4] ss:$16 sps:$4 sm:$0xff]   ;;  %v14046_v30 = vld [vmem:[#allocation6 + $0xcec] ss:$16 sps:$4 sm:$0xff]  }
 0x6cd   :  { %7942 = vmatmul.mubr.bf16.gmra.mrb[240].mxu1 %v19833_v13  ;;  %9486 = vmatmul.mubr.bf16.gmra.mrb[88].mxu0 %v19833_v13  ;;  %v14034_v13 = vld [vmem:[#allocation6 + $0xcac] ss:$16 sps:$4 sm:$0xff]  }
 0x6ce   :  { %7951 = vmatprep.mubr.bf16.mxu1 %v17445_v26  ;;  %9495 = vmatprep.mubr.bf16.mxu0 %v17445_v26 }
 0x6cf   :  { %8097 = vmatpush1.bf16.msra.mxu1 %v14011_v57  ;;  %9641 = vmatpush1.bf16.msra.mxu0 %v14014_v10  ;;  %v14041_v57 = vld [vmem:[#allocation6 + $0xce0] ss:$16 sps:$4 sm:$0xff]   ;;  %v14044_v10 = vld [vmem:[#allocation6 + $0xce8] ss:$16 sps:$4 sm:$0xff]  }
 0x6d0   :  { %8098 = vmatprep.subr.bf16.mxu1 %v14019_v16  ;;  %9642 = vmatprep.subr.bf16.mxu0 %v14022_v31  ;;  %v14049_v16 = vld [vmem:[#allocation6 + $0xd04] ss:$16 sps:$4 sm:$0xff]   ;;  %v14052_v31 = vld [vmem:[#allocation6 + $0xd0c] ss:$16 sps:$4 sm:$0xff]  }
 0x6d3   :  { %8099 = vmatpush1.bf16.msra.mxu1 %v14017_v36  ;;  %9643 = vmatpush1.bf16.msra.mxu0 %v14020_v14  ;;  %v14047_v36 = vld [vmem:[#allocation6 + $0xd00] ss:$16 sps:$4 sm:$0xff]   ;;  %v14050_v14 = vld [vmem:[#allocation6 + $0xd08] ss:$16 sps:$4 sm:$0xff]  }
 0x6d4   :  { %8100 = vmatprep.subr.bf16.mxu1 %v14025_v54  ;;  %9644 = vmatprep.subr.bf16.mxu0 %v14028_v20  ;;  %v14055_v54 = vld [vmem:[#allocation6 + $0xd24] ss:$16 sps:$4 sm:$0xff]   ;;  %v14058_v20 = vld [vmem:[#allocation6 + $0xd2c] ss:$16 sps:$4 sm:$0xff]  }
 0x6d5   :  { %7952 = vmatmul.mubr.bf16.gmra.mrb[244].mxu1 %v19834_v29  ;;  %9496 = vmatmul.mubr.bf16.gmra.mrb[92].mxu0 %v19834_v29 }
 0x6d6   :  { %7961 = vmatprep.mubr.bf16.mxu1 %v19803_v34  ;;  %9505 = vmatprep.mubr.bf16.mxu0 %v19803_v34 }
 0x6d7   :  { %8101 = vmatpush1.bf16.msra.mxu1 %v14023_v48  ;;  %9645 = vmatpush1.bf16.msra.mxu0 %v14026_v19  ;;  %v14053_v48 = vld [vmem:[#allocation6 + $0xd20] ss:$16 sps:$4 sm:$0xff]   ;;  %v14056_v19 = vld [vmem:[#allocation6 + $0xd28] ss:$16 sps:$4 sm:$0xff]  }
 0x6d8   :  { %8102 = vmatprep.subr.bf16.mxu1 %v14031_v44  ;;  %9646 = vmatprep.subr.bf16.mxu0 %v14034_v13  ;;  %v14061_v44 = vld [vmem:[#allocation6 + $0xd44] ss:$16 sps:$4 sm:$0xff]   ;;  %v14064_v13 = vld [vmem:[#allocation6 + $0xd4c] ss:$16 sps:$4 sm:$0xff]  }
 0x6db   :  { %8103 = vmatpush1.bf16.msra.mxu1 %v14029_v18  ;;  %9647 = vmatpush1.bf16.msra.mxu0 %v14032_v2  ;;  %v14059_v18 = vld [vmem:[#allocation6 + $0xd40] ss:$16 sps:$4 sm:$0xff]   ;;  %v14062_v2 = vld [vmem:[#allocation6 + $0xd48] ss:$16 sps:$4 sm:$0xff]  }
 0x6dc   :  { %8104 = vmatprep.subr.bf16.mxu1 %v14037_v47  ;;  %9648 = vmatprep.subr.bf16.mxu0 %v14040_v4  ;;  %v14067_v47 = vld [vmem:[#allocation6 + $0xd64] ss:$16 sps:$4 sm:$0xff]   ;;  %v14070_v4 = vld [vmem:[#allocation6 + $0xd6c] ss:$16 sps:$4 sm:$0xff]  }
 0x6dd   :  { %7962 = vmatmul.mubr.bf16.gmra.mrb[248].mxu1 %v19835_v22  ;;  %9506 = vmatmul.mubr.bf16.gmra.mrb[96].mxu0 %v19835_v22 }
 0x6de   :  { %7971 = vmatprep.mubr.bf16.mxu1 %v19816_v6  ;;  %9515 = vmatprep.mubr.bf16.mxu0 %v19816_v6 }
 0x6df   :  { %8105 = vmatpush1.bf16.msra.mxu1 %v14035_v25  ;;  %9649 = vmatpush1.bf16.msra.mxu0 %v14038_v63  ;;  %v14065_v25 = vld [vmem:[#allocation6 + $0xd60] ss:$16 sps:$4 sm:$0xff]   ;;  %v14068_v63 = vld [vmem:[#allocation6 + $0xd68] ss:$16 sps:$4 sm:$0xff]  }
 0x6e0   :  { %8106 = vmatprep.subr.bf16.mxu1 %v14043_v39  ;;  %9650 = vmatprep.subr.bf16.mxu0 %v14046_v30  ;;  %v14073_v39 = vld [vmem:[#allocation6 + $0xd84] ss:$16 sps:$4 sm:$0xff]   ;;  %v14076_v30 = vld [vmem:[#allocation6 + $0xd8c] ss:$16 sps:$4 sm:$0xff]  }
 0x6e3   :  { %8107 = vmatpush1.bf16.msra.mxu1 %v14041_v57  ;;  %9651 = vmatpush1.bf16.msra.mxu0 %v14044_v10  ;;  %v14071_v57 = vld [vmem:[#allocation6 + $0xd80] ss:$16 sps:$4 sm:$0xff]   ;;  %v14074_v10 = vld [vmem:[#allocation6 + $0xd88] ss:$16 sps:$4 sm:$0xff]  }
 0x6e4   :  { %8108 = vmatprep.subr.bf16.mxu1 %v14049_v16  ;;  %9652 = vmatprep.subr.bf16.mxu0 %v14052_v31  ;;  %v14079_v16 = vld [vmem:[#allocation6 + $0xda4] ss:$16 sps:$4 sm:$0xff]   ;;  %v14082_v31 = vld [vmem:[#allocation6 + $0xdac] ss:$16 sps:$4 sm:$0xff]  }
 0x6e5   :  { %7972 = vmatmul.mubr.bf16.gmra.mrb[252].mxu1 %v19836_v0  ;;  %9516 = vmatmul.mubr.bf16.gmra.mrb[100].mxu0 %v19836_v0 }
 0x6e6   :  { %7981 = vmatprep.mubr.bf16.mxu1 %v19823_v55  ;;  %9525 = vmatprep.mubr.bf16.mxu0 %v19823_v55 }
 0x6e7   :  { %8109 = vmatpush1.bf16.msra.mxu1 %v14047_v36  ;;  %9653 = vmatpush1.bf16.msra.mxu0 %v14050_v14  ;;  %v14077_v36 = vld [vmem:[#allocation6 + $0xda0] ss:$16 sps:$4 sm:$0xff]   ;;  %v14080_v14 = vld [vmem:[#allocation6 + $0xda8] ss:$16 sps:$4 sm:$0xff]  }
 0x6e8   :  { %8110 = vmatprep.subr.bf16.mxu1 %v14055_v54  ;;  %9654 = vmatprep.subr.bf16.mxu0 %v14058_v20  ;;  %v14085_v54 = vld [vmem:[#allocation6 + $0xdc4] ss:$16 sps:$4 sm:$0xff]   ;;  %v14088_v20 = vld [vmem:[#allocation6 + $0xdcc] ss:$16 sps:$4 sm:$0xff]  }
 0x6eb   :  { %8111 = vmatpush1.bf16.msra.mxu1 %v14053_v48  ;;  %9655 = vmatpush1.bf16.msra.mxu0 %v14056_v19  ;;  %v14083_v48 = vld [vmem:[#allocation6 + $0xdc0] ss:$16 sps:$4 sm:$0xff]   ;;  %v14086_v19 = vld [vmem:[#allocation6 + $0xdc8] ss:$16 sps:$4 sm:$0xff]  }
 0x6ec   :  { %8112 = vmatprep.subr.bf16.mxu1 %v14061_v44  ;;  %9656 = vmatprep.subr.bf16.mxu0 %v14064_v13  ;;  %v14091_v44 = vld [vmem:[#allocation6 + $0xde4] ss:$16 sps:$4 sm:$0xff]   ;;  %v14094_v13 = vld [vmem:[#allocation6 + $0xdec] ss:$16 sps:$4 sm:$0xff]  }
 0x6ed   :  { %7982 = vmatmul.mubr.bf16.gmra.mrb[0].mxu1 %v19837_v3  ;;  %9526 = vmatmul.mubr.bf16.gmra.mrb[104].mxu0 %v19837_v3 }
 0x6ee   :  { %7991 = vmatprep.mubr.bf16.mxu1 %v19824_v52  ;;  %9535 = vmatprep.mubr.bf16.mxu0 %v19824_v52 }
 0x6ef   :  { %8113 = vmatpush1.bf16.msra.mxu1 %v14059_v18  ;;  %9657 = vmatpush1.bf16.msra.mxu0 %v14062_v2  ;;  %v14089_v18 = vld [vmem:[#allocation6 + $0xde0] ss:$16 sps:$4 sm:$0xff]   ;;  %v14092_v2 = vld [vmem:[#allocation6 + $0xde8] ss:$16 sps:$4 sm:$0xff]  }
 0x6f0   :  { %8114 = vmatprep.subr.bf16.mxu1 %v14067_v47  ;;  %9658 = vmatprep.subr.bf16.mxu0 %v14070_v4  ;;  %v14097_v47 = vld [vmem:[#allocation6 + $0xe04] ss:$16 sps:$4 sm:$0xff]   ;;  %v14100_v4 = vld [vmem:[#allocation6 + $0xe0c] ss:$16 sps:$4 sm:$0xff]  }
 0x6f3   :  { %8115 = vmatpush1.bf16.msra.mxu1 %v14065_v25  ;;  %9659 = vmatpush1.bf16.msra.mxu0 %v14068_v63  ;;  %v19851_v25 = vld [vmem:[#allocation102_spill] sm:$0xff]  ;;  %v19852_v63 = vld [vmem:[#allocation104_spill] sm:$0xff] }
 0x6f4   :  { %8116 = vmatprep.subr.bf16.mxu1 %v14073_v39  ;;  %9660 = vmatprep.subr.bf16.mxu0 %v14076_v30  ;;  %v19853_v39 = vld [vmem:[#allocation106_spill] sm:$0xff]  ;;  %v19854_v30 = vld [vmem:[#allocation113_spill] sm:$0xff] }
 0x6f5   :  { %7992 = vmatmul.mubr.bf16.gmra.mrb[4].mxu1 %v19838_v9  ;;  %9536 = vmatmul.mubr.bf16.gmra.mrb[108].mxu0 %v19838_v9 }
 0x6f6   :  { %8001 = vmatprep.mubr.bf16.mxu1 %v19825_v1  ;;  %9545 = vmatprep.mubr.bf16.mxu0 %v19825_v1 }
 0x6f7   :  { %8117 = vmatpush1.bf16.msra.mxu1 %v14071_v57  ;;  %9661 = vmatpush1.bf16.msra.mxu0 %v14074_v10  ;;  %v14095_v57 = vld [vmem:[#allocation6 + $0xe00] ss:$16 sps:$4 sm:$0xff]   ;;  %v14098_v10 = vld [vmem:[#allocation6 + $0xe08] ss:$16 sps:$4 sm:$0xff]  }
 0x6f8   :  { %8118 = vmatprep.subr.bf16.mxu1 %v14079_v16  ;;  %9662 = vmatprep.subr.bf16.mxu0 %v14082_v31  ;;  %v14103_v16 = vld [vmem:[#allocation6 + $0xe24] ss:$16 sps:$4 sm:$0xff]   ;;  %v14106_v31 = vld [vmem:[#allocation6 + $0xe2c] ss:$16 sps:$4 sm:$0xff]  }
 0x6fb   :  { %8119 = vmatpush1.bf16.msra.mxu1 %v14077_v36  ;;  %9663 = vmatpush1.bf16.msra.mxu0 %v14080_v14  ;;  %v14101_v36 = vld [vmem:[#allocation6 + $0xe20] ss:$16 sps:$4 sm:$0xff]   ;;  %v14104_v14 = vld [vmem:[#allocation6 + $0xe28] ss:$16 sps:$4 sm:$0xff]  }
 0x6fc   :  { %8120 = vmatprep.subr.bf16.mxu1 %v14085_v54  ;;  %9664 = vmatprep.subr.bf16.mxu0 %v14088_v20  ;;  %v14109_v54 = vld [vmem:[#allocation6 + $0xe44] ss:$16 sps:$4 sm:$0xff]   ;;  %v14112_v20 = vld [vmem:[#allocation6 + $0xe4c] ss:$16 sps:$4 sm:$0xff]  }
 0x6fd   :  { %8002 = vmatmul.mubr.bf16.gmra.mrb[8].mxu1 %v19839_v49  ;;  %9546 = vmatmul.mubr.bf16.gmra.mrb[112].mxu0 %v19839_v49 }
 0x6fe   :  { %8011 = vmatprep.mubr.bf16.mxu1 %v19826_v24  ;;  %9555 = vmatprep.mubr.bf16.mxu0 %v19826_v24 }
 0x6ff   :  { %8121 = vmatpush1.bf16.msra.mxu1 %v14083_v48  ;;  %9665 = vmatpush1.bf16.msra.mxu0 %v14086_v19  ;;  %v14110_v48 = vld [vmem:[#allocation6 + $0xe48] ss:$16 sps:$4 sm:$0xff]   ;;  %v14115_v19 = vld [vmem:[#allocation6 + $0xe64] ss:$16 sps:$4 sm:$0xff]  }
 0x700   :  { %8122 = vmatprep.subr.bf16.mxu1 %v14091_v44  ;;  %9666 = vmatprep.subr.bf16.mxu0 %v14094_v13  ;;  %v14116_v44 = vld [vmem:[#allocation6 + $0xe68] ss:$16 sps:$4 sm:$0xff]   ;;  %v14121_v13 = vld [vmem:[#allocation6 + $0xe84] ss:$16 sps:$4 sm:$0xff]  }
 0x703   :  { %8123 = vmatpush1.bf16.msra.mxu1 %v14089_v18  ;;  %9667 = vmatpush1.bf16.msra.mxu0 %v14092_v2  ;;  %v14124_v18 = vld [vmem:[#allocation6 + $0xe8c] ss:$16 sps:$4 sm:$0xff]   ;;  %v14119_v2 = vld [vmem:[#allocation6 + $0xe80] ss:$16 sps:$4 sm:$0xff]  }
 0x704   :  { %8285 = vmatprep.subr.bf16.mxu1 %v14097_v47  ;;  %9829 = vmatprep.subr.bf16.mxu0 %v14100_v4  ;;  %v14122_v47 = vld [vmem:[#allocation6 + $0xe88] ss:$16 sps:$4 sm:$0xff]   ;;  %v14127_v4 = vld [vmem:[#allocation6 + $0xea4] ss:$16 sps:$4 sm:$0xff]  }
 0x705   :  { %8012 = vmatmul.mubr.bf16.gmra.mrb[12].mxu1 %v17767_v28  ;;  %9556 = vmatmul.mubr.bf16.gmra.mrb[116].mxu0 %v17767_v28 }
 0x706   :  { %8021 = vmatprep.mubr.bf16.mxu1 %v19827_v46  ;;  %9565 = vmatprep.mubr.bf16.mxu0 %v19827_v46 }
 0x70d   :  { %8022 = vmatmul.mubr.bf16.gmra.mrb[16].mxu1 %v17798_v8  ;;  %9566 = vmatmul.mubr.bf16.gmra.mrb[120].mxu0 %v17798_v8 }
 0x70e   :  { %8031 = vmatprep.mubr.bf16.mxu1 %v17865_v5  ;;  %9575 = vmatprep.mubr.bf16.mxu0 %v17865_v5 }
 0x715   :  { %8032 = vmatmul.mubr.bf16.gmra.mrb[20].mxu1 %v17855_v37  ;;  %9576 = vmatmul.mubr.bf16.gmra.mrb[124].mxu0 %v17855_v37 }
 0x716   :  { %8041 = vmatprep.mubr.bf16.mxu1 %v17903_v42  ;;  %9585 = vmatprep.mubr.bf16.mxu0 %v17903_v42 }
 0x71d   :  { %8042 = vmatmul.mubr.bf16.gmra.mrb[24].mxu1 %v17898_v33  ;;  %9586 = vmatmul.mubr.bf16.gmra.mrb[128].mxu0 %v17898_v33 }
 0x71e   :  { %8051 = vmatprep.mubr.bf16.mxu1 %v19848_v40  ;;  %9595 = vmatprep.mubr.bf16.mxu0 %v19848_v40 }
 0x725   :  { %8052 = vmatmul.mubr.bf16.gmra.mrb[28].mxu1 %v19843_v35  ;;  %9596 = vmatmul.mubr.bf16.gmra.mrb[132].mxu0 %v19843_v35 }
 0x726   :  { %8061 = vmatprep.mubr.bf16.mxu1 %v19850_v60  ;;  %9605 = vmatprep.mubr.bf16.mxu0 %v19850_v60 }
 0x72d   :  { %8062 = vmatmul.mubr.bf16.gmra.mrb[32].mxu1 %v19845_v11  ;;  %9606 = vmatmul.mubr.bf16.gmra.mrb[136].mxu0 %v19845_v11 }
 0x72e   :  { %8071 = vmatprep.mubr.bf16.mxu1 %v19851_v25  ;;  %9615 = vmatprep.mubr.bf16.mxu0 %v19851_v25 }
 0x735   :  { %8072 = vmatmul.mubr.bf16.gmra.mrb[36].mxu1 %v19852_v63  ;;  %9616 = vmatmul.mubr.bf16.gmra.mrb[140].mxu0 %v19852_v63 }
 0x736   :  { %8081 = vmatprep.mubr.bf16.mxu1 %v19853_v39  ;;  %9625 = vmatprep.mubr.bf16.mxu0 %v19853_v39 }
 0x73d   :  { %8082 = vmatmul.mubr.bf16.gmra.mrb[40].mxu1 %v19854_v30  ;;  %9626 = vmatmul.mubr.bf16.gmra.mrb[144].mxu0 %v19854_v30 }
 0x73e   :  { %8124 = vmatprep.mubr.bf16.mxu1 %v19834_v29  ;;  %9668 = vmatprep.mubr.bf16.mxu0 %v19834_v29  ;;  %v14107_v29 = vld [vmem:[#allocation6 + $0xe40] ss:$16 sps:$4 sm:$0xff]  }
 0x745   :  { %8125 = vmatmul.mubr.bf16.vlgmr.msra.gmra.mrb[236].mxu1 %v17437_v56  ;;  %9669 = vmatmul.mubr.bf16.vlgmr.msra.gmra.mrb[84].mxu0 %v17437_v56  ;;  %v14118_v56 = vld [vmem:[#allocation6 + $0xe6c] ss:$16 sps:$4 sm:$0xff]  }
 0x746   :  { %8286 = vmatpush1.bf16.msra.mxu1 %v14095_v57  ;;  %9830 = vmatpush1.bf16.msra.mxu0 %v14098_v10  ;;  %v14128_v57 = vld [vmem:[#allocation6 + $0xea8] ss:$16 sps:$4 sm:$0xff]   ;;  %v14133_v10 = vld [vmem:[#allocation6 + $0xec4] ss:$16 sps:$4 sm:$0xff]  }
 0x747   :  { %8134 = vmatprep.mubr.bf16.mxu1 %v19835_v22  ;;  %9678 = vmatprep.mubr.bf16.mxu0 %v19835_v22  ;;  %v14113_v22 = vld [vmem:[#allocation6 + $0xe60] ss:$16 sps:$4 sm:$0xff]  }
 0x748   :  { %8287 = vmatprep.subr.bf16.mxu1 %v14103_v16  ;;  %9831 = vmatprep.subr.bf16.mxu0 %v14106_v31  ;;  %v14136_v16 = vld [vmem:[#allocation6 + $0xecc] ss:$16 sps:$4 sm:$0xff]   ;;  %v14131_v31 = vld [vmem:[#allocation6 + $0xec0] ss:$16 sps:$4 sm:$0xff]  }
 0x74a   :  { %8288 = vmatpush1.bf16.msra.mxu1 %v14101_v36  ;;  %9832 = vmatpush1.bf16.msra.mxu0 %v14104_v14  ;;  %v14134_v36 = vld [vmem:[#allocation6 + $0xec8] ss:$16 sps:$4 sm:$0xff]   ;;  %v14139_v14 = vld [vmem:[#allocation6 + $0xee4] ss:$16 sps:$4 sm:$0xff]  }
 0x74b   :  { %8289 = vmatprep.subr.bf16.mxu1 %v14109_v54  ;;  %9833 = vmatprep.subr.bf16.mxu0 %v14112_v20  ;;  %v14140_v54 = vld [vmem:[#allocation6 + $0xee8] ss:$16 sps:$4 sm:$0xff]  }
 0x74d   :  { %8135 = vmatmul.mubr.bf16.gmra.mrb[240].mxu1 %v19840_v58  ;;  %9679 = vmatmul.mubr.bf16.gmra.mrb[88].mxu0 %v19840_v58  ;;  %v14130_v58 = vld [vmem:[#allocation6 + $0xeac] ss:$16 sps:$4 sm:$0xff]  }
 0x74e   :  { %8144 = vmatprep.mubr.bf16.mxu1 %v19836_v0  ;;  %9688 = vmatprep.mubr.bf16.mxu0 %v19836_v0  ;;  %v14125_v0 = vld [vmem:[#allocation6 + $0xea0] ss:$16 sps:$4 sm:$0xff]  }
 0x74f   :  { %8290 = vmatpush1.bf16.msra.mxu1 %v14107_v29  ;;  %9834 = vmatpush1.bf16.msra.mxu0 %v14110_v48 }
 0x750   :  { %8291 = vmatprep.subr.bf16.mxu1 %v14115_v19  ;;  %9835 = vmatprep.subr.bf16.mxu0 %v14118_v56 }
 0x753   :  { %8292 = vmatpush1.bf16.msra.mxu1 %v14113_v22  ;;  %9836 = vmatpush1.bf16.msra.mxu0 %v14116_v44 }
 0x754   :  { %8293 = vmatprep.subr.bf16.mxu1 %v14121_v13  ;;  %9837 = vmatprep.subr.bf16.mxu0 %v14124_v18 }
 0x755   :  { %8145 = vmatmul.mubr.bf16.gmra.mrb[244].mxu1 %v19841_v53  ;;  %9689 = vmatmul.mubr.bf16.gmra.mrb[92].mxu0 %v19841_v53  ;;  %v14142_v53 = vld [vmem:[#allocation6 + $0xeec] ss:$16 sps:$4 sm:$0xff]  }
 0x756   :  { %8154 = vmatprep.mubr.bf16.mxu1 %v19837_v3  ;;  %9698 = vmatprep.mubr.bf16.mxu0 %v19837_v3  ;;  %v14137_v3 = vld [vmem:[#allocation6 + $0xee0] ss:$16 sps:$4 sm:$0xff]  }
 0x757   :  { %8294 = vmatpush1.bf16.msra.mxu1 %v14119_v2  ;;  %9838 = vmatpush1.bf16.msra.mxu0 %v14122_v47  ;;  %v10022_v47 = vld [vmem:[#allocation7] sm:$0x3] }
 0x758   :  { %8295 = vmatprep.subr.bf16.mxu1 %v14127_v4  ;;  %9839 = vmatprep.subr.bf16.mxu0 %v14130_v58 }
 0x75b   :  { %8296 = vmatpush1.bf16.msra.mxu1 %v14125_v0  ;;  %9840 = vmatpush1.bf16.msra.mxu0 %v14128_v57 }
 0x75c   :  { %8297 = vmatprep.subr.bf16.mxu1 %v14133_v10  ;;  %9841 = vmatprep.subr.bf16.mxu0 %v14136_v16  ;;  %v19855_v10 = vld [vmem:[#allocation37_spill] sm:$0xff] }
 0x75d   :  { %8155 = vmatmul.mubr.bf16.gmra.mrb[248].mxu1 %v19842_v41  ;;  %9699 = vmatmul.mubr.bf16.gmra.mrb[96].mxu0 %v19842_v41  ;;  %v14172_v41 = vld [vmem:[#allocation9 + $0x94] ss:$8 sps:$4 sm:$0xff]   ;;  %v19856_v16 = vsub.s32 0, %v19855_v10 }
 0x75e   :  { %8164 = vmatprep.mubr.bf16.mxu1 %v19838_v9  ;;  %9708 = vmatprep.mubr.bf16.mxu0 %v19838_v9  ;;  %v14169_v9 = vld [vmem:[#allocation9 + $0x84] ss:$8 sps:$4 sm:$0xff]  }
 0x75f   :  { %8298 = vmatpush1.bf16.msra.mxu1 %v14131_v31  ;;  %9842 = vmatpush1.bf16.msra.mxu0 %v14134_v36  ;;  %v18626_v31 = vrot.slane %v10022_v47, %v19856_v16 }
 0x760   :  { %8299 = vmatprep.subr.bf16.mxu1 %v14139_v14  ;;  %9843 = vmatprep.subr.bf16.mxu0 %v14142_v53 }
 0x763   :  { %8300 = vmatpush1.bf16.msra.mxu1 %v14137_v3  ;;  %9844 = vmatpush1.bf16.msra.mxu0 %v14140_v54  ;;  %v19857_v54 = vsub.s32 1, %v19855_v10  ;;  %v14199_v10 = vld [vmem:[#allocation9 + $0x124] ss:$8 sps:$4 sm:$0xff]  }
 0x765   :  { %8165 = vmatmul.mubr.bf16.gmra.mrb[252].mxu1 %v17657_v50  ;;  %9709 = vmatmul.mubr.bf16.gmra.mrb[100].mxu0 %v17657_v50  ;;  %v14145_v50 = vld [vmem:[#allocation9 + $0x4] ss:$8 sps:$4 sm:$0xff]  }
 0x766   :  { %8174 = vmatprep.mubr.bf16.mxu1 %v19839_v49  ;;  %9718 = vmatprep.mubr.bf16.mxu0 %v19839_v49  ;;  %v14167_v49 = vld [vmem:[#allocation9 + $0x80] ss:$8 sps:$4 sm:$0xff]  }
 0x767   :  { %10786 = vmatprep.subr.bf16.mxu1 %v14145_v50  ;;  %v18630_v50 = vrot.slane %v10022_v47, %v19857_v54 }
 0x76d   :  { %8175 = vmatmul.mubr.bf16.gmra.mrb[0].mxu1 %v17704_v38  ;;  %9719 = vmatmul.mubr.bf16.gmra.mrb[104].mxu0 %v17704_v38  ;;  %v14562_v38 = vmov 0  }
 0x76e   :  { %8184 = vmatprep.mubr.bf16.mxu1 %v17767_v28  ;;  %9728 = vmatprep.mubr.bf16.mxu0 %v17767_v28  ;;  %v14143_v28 = vld [vmem:[#allocation9] ss:$8 sps:$4 sm:$0xff]  }
 0x775   :  { %8185 = vmatmul.mubr.bf16.gmra.mrb[4].mxu1 %v17769_v45  ;;  %9729 = vmatmul.mubr.bf16.gmra.mrb[108].mxu0 %v17769_v45  ;;  %v14148_v45 = vld [vmem:[#allocation9 + $0x14] ss:$8 sps:$4 sm:$0xff]  }
 0x776   :  { %8194 = vmatprep.mubr.bf16.mxu1 %v17798_v8  ;;  %9738 = vmatprep.mubr.bf16.mxu0 %v17798_v8  ;;  %v14146_v8 = vld [vmem:[#allocation9 + $0x10] ss:$8 sps:$4 sm:$0xff]  }
 0x77d   :  { %8195 = vmatmul.mubr.bf16.gmra.mrb[8].mxu1 %v17800_v43  ;;  %9739 = vmatmul.mubr.bf16.gmra.mrb[112].mxu0 %v17800_v43  ;;  %v14151_v43 = vld [vmem:[#allocation9 + $0x24] ss:$8 sps:$4 sm:$0xff]  }
 0x77e   :  { %8204 = vmatprep.mubr.bf16.mxu1 %v17855_v37  ;;  %9748 = vmatprep.mubr.bf16.mxu0 %v17855_v37  ;;  %v14149_v37 = vld [vmem:[#allocation9 + $0x20] ss:$8 sps:$4 sm:$0xff]  }
 0x785   :  { %8205 = vmatmul.mubr.bf16.gmra.mrb[12].mxu1 %v17857_v62  ;;  %9749 = vmatmul.mubr.bf16.gmra.mrb[116].mxu0 %v17857_v62  ;;  %v14154_v62 = vld [vmem:[#allocation9 + $0x34] ss:$8 sps:$4 sm:$0xff]  }
 0x786   :  { %8214 = vmatprep.mubr.bf16.mxu1 %v17898_v33  ;;  %9758 = vmatprep.mubr.bf16.mxu0 %v17898_v33  ;;  %v14157_v33 = vld [vmem:[#allocation9 + $0x44] ss:$8 sps:$4 sm:$0xff]  }
 0x78d   :  { %8215 = vmatmul.mubr.bf16.gmra.mrb[16].mxu1 %v17900_v12  ;;  %9759 = vmatmul.mubr.bf16.gmra.mrb[120].mxu0 %v17900_v12  ;;  %v14155_v12 = vld [vmem:[#allocation9 + $0x40] ss:$8 sps:$4 sm:$0xff]  }
 0x78e   :  { %8224 = vmatprep.mubr.bf16.mxu1 %v19843_v35  ;;  %9768 = vmatprep.mubr.bf16.mxu0 %v19843_v35  ;;  %v14175_v35 = vld [vmem:[#allocation9 + $0xa4] ss:$8 sps:$4 sm:$0xff]  }
 0x795   :  { %8225 = vmatmul.mubr.bf16.gmra.mrb[20].mxu1 %v19844_v15  ;;  %9769 = vmatmul.mubr.bf16.gmra.mrb[124].mxu0 %v19844_v15  ;;  %v14173_v15 = vld [vmem:[#allocation9 + $0xa0] ss:$8 sps:$4 sm:$0xff]  }
 0x796   :  { %8234 = vmatprep.mubr.bf16.mxu1 %v19845_v11  ;;  %9778 = vmatprep.mubr.bf16.mxu0 %v19845_v11  ;;  %v14178_v11 = vld [vmem:[#allocation9 + $0xb4] ss:$8 sps:$4 sm:$0xff]  }
 0x79d   :  { %8235 = vmatmul.mubr.bf16.gmra.mrb[24].mxu1 %v19846_v21  ;;  %9779 = vmatmul.mubr.bf16.gmra.mrb[128].mxu0 %v19846_v21  ;;  %v14181_v21 = vld [vmem:[#allocation9 + $0xc4] ss:$8 sps:$4 sm:$0xff]  }
 0x79e   :  { %8244 = vmatprep.mubr.bf16.mxu1 %v19852_v63  ;;  %9788 = vmatprep.mubr.bf16.mxu0 %v19852_v63 }
 0x7a5   :  { %8245 = vmatmul.mubr.bf16.gmra.mrb[28].mxu1 %v19847_v27  ;;  %9789 = vmatmul.mubr.bf16.gmra.mrb[132].mxu0 %v19847_v27  ;;  %v14179_v27 = vld [vmem:[#allocation9 + $0xc0] ss:$8 sps:$4 sm:$0xff]  }
 0x7a6   :  { %8254 = vmatprep.mubr.bf16.mxu1 %v19854_v30  ;;  %9798 = vmatprep.mubr.bf16.mxu0 %v19854_v30 }
 0x7ad   :  { %8255 = vmatmul.mubr.bf16.gmra.mrb[32].mxu1 %v19849_v17  ;;  %9799 = vmatmul.mubr.bf16.gmra.mrb[136].mxu0 %v19849_v17  ;;  %v14193_v17 = vld [vmem:[#allocation9 + $0x104] ss:$8 sps:$4 sm:$0xff]  }
 0x7ae   :  { %8264 = vmatprep.mubr.bf16.mxu1 %v18211_v23  ;;  %9808 = vmatprep.mubr.bf16.mxu0 %v18211_v23  ;;  %v14163_v23 = vld [vmem:[#allocation9 + $0x64] ss:$8 sps:$4 sm:$0xff]  }
 0x7b5   :  { %8265 = vmatmul.mubr.bf16.gmra.mrb[36].mxu1 %v18185_v59  ;;  %9809 = vmatmul.mubr.bf16.gmra.mrb[140].mxu0 %v18185_v59  ;;  %v14160_v59 = vld [vmem:[#allocation9 + $0x54] ss:$8 sps:$4 sm:$0xff]  }
 0x7b6   :  { %8274 = vmatprep.mubr.bf16.mxu1 %v18216_v32  ;;  %9818 = vmatprep.mubr.bf16.mxu0 %v18216_v32  ;;  %v14161_v32 = vld [vmem:[#allocation9 + $0x60] ss:$8 sps:$4 sm:$0xff]  }
 0x7bd   :  { %8275 = vmatmul.mubr.bf16.gmra.mrb[40].mxu1 %v18218_v51  ;;  %9819 = vmatmul.mubr.bf16.gmra.mrb[144].mxu0 %v18218_v51  ;;  %v14166_v51 = vld [vmem:[#allocation9 + $0x74] ss:$8 sps:$4 sm:$0xff]  }
 0x7be   :  { %8317 = vmatprep.mubr.bf16.mxu1 %v14562_v38  ;;  %9861 = vmatprep.mubr.bf16.mxu0 %v14562_v38 }
 0x7c5   :  { %8318 = vmatmul.mubr.bf16.vlgmr.msra.gmra.mrb[236].mxu1 %v17445_v26  ;;  %9862 = vmatmul.mubr.bf16.vlgmr.msra.gmra.mrb[84].mxu0 %v17445_v26  ;;  %v14152_v26 = vld [vmem:[#allocation9 + $0x30] ss:$8 sps:$4 sm:$0xff]  }
 0x7c6   :  { %8327 = vmatprep.mubr.bf16.mxu1 %v14562_v38  ;;  %9871 = vmatprep.mubr.bf16.mxu0 %v14562_v38 }
 0x7c7   :  { %10787 = vmatpush1.bf16.msra.mxu1 %v14143_v28 }
 0x7c8   :  { %10788 = vmatprep.subr.bf16.mxu1 %v14148_v45 }
 0x7cb   :  { %10789 = vmatpush1.bf16.msra.mxu1 %v14146_v8 }
 0x7cc   :  { %10790 = vmatprep.subr.bf16.mxu1 %v14151_v43 }
 0x7cd   :  { %8328 = vmatmul.mubr.bf16.gmra.mrb[240].mxu1 %v19803_v34  ;;  %9872 = vmatmul.mubr.bf16.gmra.mrb[88].mxu0 %v19803_v34  ;;  %v14158_v34 = vld [vmem:[#allocation9 + $0x50] ss:$8 sps:$4 sm:$0xff]  }
 0x7ce   :  { %8337 = vmatprep.mubr.bf16.mxu1 %v14562_v38  ;;  %9881 = vmatprep.mubr.bf16.mxu0 %v14562_v38 }
 0x7cf   :  { %10791 = vmatpush1.bf16.msra.mxu1 %v14149_v37 }
 0x7d0   :  { %10792 = vmatprep.subr.bf16.mxu1 %v14154_v62 }
 0x7d3   :  { %10793 = vmatpush1.bf16.msra.mxu1 %v14152_v26 }
 0x7d4   :  { %10794 = vmatprep.subr.bf16.mxu1 %v14157_v33 }
 0x7d5   :  { %8338 = vmatmul.mubr.bf16.gmra.mrb[244].mxu1 %v19816_v6  ;;  %9882 = vmatmul.mubr.bf16.gmra.mrb[92].mxu0 %v19816_v6  ;;  %v14164_v6 = vld [vmem:[#allocation9 + $0x70] ss:$8 sps:$4 sm:$0xff]  }
 0x7d6   :  { %8347 = vmatprep.mubr.bf16.mxu1 %v14562_v38  ;;  %9891 = vmatprep.mubr.bf16.mxu0 %v14562_v38 }
 0x7d7   :  { %10795 = vmatpush1.bf16.msra.mxu1 %v14155_v12 }
 0x7d8   :  { %10796 = vmatprep.subr.bf16.mxu1 %v14160_v59 }
 0x7db   :  { %10797 = vmatpush1.bf16.msra.mxu1 %v14158_v34 }
 0x7dc   :  { %10798 = vmatprep.subr.bf16.mxu1 %v14163_v23 }
 0x7dd   :  { %8348 = vmatmul.mubr.bf16.gmra.mrb[248].mxu1 %v19823_v55  ;;  %9892 = vmatmul.mubr.bf16.gmra.mrb[96].mxu0 %v19823_v55  ;;  %v14170_v55 = vld [vmem:[#allocation9 + $0x90] ss:$8 sps:$4 sm:$0xff]  }
 0x7de   :  { %8357 = vmatprep.mubr.bf16.mxu1 %v14562_v38  ;;  %9901 = vmatprep.mubr.bf16.mxu0 %v14562_v38 }
 0x7df   :  { %10799 = vmatpush1.bf16.msra.mxu1 %v14161_v32 }
 0x7e0   :  { %10800 = vmatprep.subr.bf16.mxu1 %v14166_v51 }
 0x7e3   :  { %10801 = vmatpush1.bf16.msra.mxu1 %v14164_v6 }
 0x7e4   :  { %10802 = vmatprep.subr.bf16.mxu1 %v14169_v9 }
 0x7e5   :  { %8358 = vmatmul.mubr.bf16.gmra.mrb[252].mxu1 %v19824_v52  ;;  %9902 = vmatmul.mubr.bf16.gmra.mrb[100].mxu0 %v19824_v52  ;;  %v14176_v52 = vld [vmem:[#allocation9 + $0xb0] ss:$8 sps:$4 sm:$0xff]  }
 0x7e6   :  { %8367 = vmatprep.mubr.bf16.mxu1 %v14562_v38  ;;  %9911 = vmatprep.mubr.bf16.mxu0 %v14562_v38 }
 0x7e7   :  { %10803 = vmatpush1.bf16.msra.mxu1 %v14167_v49 }
 0x7e8   :  { %10804 = vmatprep.subr.bf16.mxu1 %v14172_v41 }
 0x7eb   :  { %10805 = vmatpush1.bf16.msra.mxu1 %v14170_v55 }
 0x7ec   :  { %10806 = vmatprep.subr.bf16.mxu1 %v14175_v35 }
 0x7ed   :  { %8368 = vmatmul.mubr.bf16.gmra.mrb[0].mxu1 %v19825_v1  ;;  %9912 = vmatmul.mubr.bf16.gmra.mrb[104].mxu0 %v19825_v1  ;;  %v14184_v1 = vld [vmem:[#allocation9 + $0xd4] ss:$8 sps:$4 sm:$0xff]  }
 0x7ee   :  { %8377 = vmatprep.mubr.bf16.mxu1 %v14562_v38  ;;  %9921 = vmatprep.mubr.bf16.mxu0 %v14562_v38 }
 0x7ef   :  { %10807 = vmatpush1.bf16.msra.mxu1 %v14173_v15 }
 0x7f0   :  { %10808 = vmatprep.subr.bf16.mxu1 %v14178_v11 }
 0x7f3   :  { %10809 = vmatpush1.bf16.msra.mxu1 %v14176_v52 }
 0x7f4   :  { %10810 = vmatprep.subr.bf16.mxu1 %v14181_v21 }
 0x7f5   :  { %8378 = vmatmul.mubr.bf16.gmra.mrb[4].mxu1 %v19826_v24  ;;  %9922 = vmatmul.mubr.bf16.gmra.mrb[108].mxu0 %v19826_v24  ;;  %v14187_v24 = vld [vmem:[#allocation9 + $0xe4] ss:$8 sps:$4 sm:$0xff]  }
 0x7f6   :  { %8387 = vmatprep.mubr.bf16.mxu1 %v14562_v38  ;;  %9931 = vmatprep.mubr.bf16.mxu0 %v14562_v38 }
 0x7f7   :  { %10811 = vmatpush1.bf16.msra.mxu1 %v14179_v27 }
 0x7f8   :  { %10812 = vmatprep.subr.bf16.mxu1 %v14184_v1 }
 0x7fd   :  { %8388 = vmatmul.mubr.bf16.gmra.mrb[8].mxu1 %v19827_v46  ;;  %9932 = vmatmul.mubr.bf16.gmra.mrb[112].mxu0 %v19827_v46  ;;  %v14188_v46 = vld [vmem:[#allocation9 + $0xf0] ss:$8 sps:$4 sm:$0xff]  }
 0x7fe   :  { %8397 = vmatprep.mubr.bf16.mxu1 %v14562_v38  ;;  %9941 = vmatprep.mubr.bf16.mxu0 %v14562_v38 }
 0x805   :  { %8398 = vmatmul.mubr.bf16.gmra.mrb[12].mxu1 %v17865_v5  ;;  %9942 = vmatmul.mubr.bf16.gmra.mrb[116].mxu0 %v17865_v5  ;;  %v14182_v5 = vld [vmem:[#allocation9 + $0xd0] ss:$8 sps:$4 sm:$0xff]  }
 0x806   :  { %8407 = vmatprep.mubr.bf16.mxu1 %v14562_v38  ;;  %9951 = vmatprep.mubr.bf16.mxu0 %v14562_v38 }
 0x807   :  { %10813 = vmatpush1.bf16.msra.mxu1 %v14182_v5 }
 0x808   :  { %10814 = vmatprep.subr.bf16.mxu1 %v14187_v24 }
 0x80d   :  { %8408 = vmatmul.mubr.bf16.gmra.mrb[16].mxu1 %v17903_v42  ;;  %9952 = vmatmul.mubr.bf16.gmra.mrb[120].mxu0 %v17903_v42  ;;  %v14185_v42 = vld [vmem:[#allocation9 + $0xe0] ss:$8 sps:$4 sm:$0xff]  }
 0x80e   :  { %8417 = vmatprep.mubr.bf16.mxu1 %v14562_v38  ;;  %9961 = vmatprep.mubr.bf16.mxu0 %v14562_v38 }
 0x80f   :  { %10815 = vmatpush1.bf16.msra.mxu1 %v14185_v42 }
 0x815   :  { %8418 = vmatmul.mubr.bf16.gmra.mrb[20].mxu1 %v19848_v40  ;;  %9962 = vmatmul.mubr.bf16.gmra.mrb[124].mxu0 %v19848_v40  ;;  %v14190_v40 = vld [vmem:[#allocation9 + $0xf4] ss:$8 sps:$4 sm:$0xff]  }
 0x816   :  { %8427 = vmatprep.mubr.bf16.mxu1 %v14562_v38  ;;  %9971 = vmatprep.mubr.bf16.mxu0 %v14562_v38 }
 0x817   :  { %10816 = vmatprep.subr.bf16.mxu1 %v14190_v40 }
 0x818   :  { %10817 = vmatpush1.bf16.msra.mxu1 %v14188_v46 }
 0x819   :  { %10859 = vmatprep.subr.bf16.mxu1 %v14193_v17 }
 0x81d   :  { %8428 = vmatmul.mubr.bf16.gmra.mrb[24].mxu1 %v19850_v60  ;;  %9972 = vmatmul.mubr.bf16.gmra.mrb[128].mxu0 %v19850_v60 }
 0x81e   :  { %8437 = vmatprep.mubr.bf16.mxu1 %v14562_v38  ;;  %9981 = vmatprep.mubr.bf16.mxu0 %v14562_v38 }
 0x825   :  { %8438 = vmatmul.mubr.bf16.gmra.mrb[28].mxu1 %v19851_v25  ;;  %9982 = vmatmul.mubr.bf16.gmra.mrb[132].mxu0 %v19851_v25 }
 0x826   :  { %8447 = vmatprep.mubr.bf16.mxu1 %v14562_v38  ;;  %9991 = vmatprep.mubr.bf16.mxu0 %v14562_v38 }
 0x82d   :  { %8448 = vmatmul.mubr.bf16.gmra.mrb[32].mxu1 %v19853_v39  ;;  %9992 = vmatmul.mubr.bf16.gmra.mrb[136].mxu0 %v19853_v39 }
 0x82e   :  { %8457 = vmatprep.mubr.bf16.mxu1 %v14562_v38  ;;  %10001 = vmatprep.mubr.bf16.mxu0 %v14562_v38 }
 0x835   :  { %8458 = vmatmul.mubr.bf16.gmra.mrb[36].mxu1 %v18194_v7  ;;  %10002 = vmatmul.mubr.bf16.gmra.mrb[140].mxu0 %v18194_v7 }
 0x836   :  { %8467 = vmatprep.mubr.bf16.mxu1 %v14562_v38  ;;  %10011 = vmatprep.mubr.bf16.mxu0 %v14562_v38 }
 0x83d   :  { %8468 = vmatmul.mubr.bf16.gmra.mrb[40].mxu1 %v18220_v61  ;;  %10012 = vmatmul.mubr.bf16.gmra.mrb[144].mxu0 %v18220_v61 }
 0x898   :  { %v8319_v60 = vpop.f32.mrb[236].mxu1  ;;  %v9863_v25 = vpop.f32.mrb[84].mxu0 }
 0x899   :  { %v8321_v63 = vpop.f32.mrb[237].mxu1  ;;  %v9865_v39 = vpop.f32.mrb[85].mxu0 }
 0x89a   :  { %v8323_v30 = vpop.f32.mrb[238].mxu1  ;;  %v9867_v20 = vpop.f32.mrb[86].mxu0 }
 0x89b   :  { %v8325_v29 = vpop.f32.mrb[239].mxu1  ;;  %v9869_v7 = vpop.f32.mrb[87].mxu0 }
 0x8a0   :  { %v8329_v48 = vpop.f32.mrb[240].mxu1  ;;  %v9873_v19 = vpop.f32.mrb[88].mxu0 }
 0x8a1   :  { %v8331_v56 = vpop.f32.mrb[241].mxu1  ;;  %v9875_v22 = vpop.f32.mrb[89].mxu0 }
 0x8a2   :  { %v8333_v44 = vpop.f32.mrb[242].mxu1  ;;  %v9877_v13 = vpop.f32.mrb[90].mxu0 }
 0x8a3   :  { %v8335_v18 = vpop.f32.mrb[243].mxu1  ;;  %v9879_v2 = vpop.f32.mrb[91].mxu0 }
 0x8a8   :  { %v8339_v4 = vpop.f32.mrb[244].mxu1  ;;  %v9883_v61 = vpop.f32.mrb[92].mxu0 }
 0x8a9   :  { %v10023_v58 = vmax.f32 %v8319_v60, %v8339_v4  ;;  %v8341_v0 = vpop.f32.mrb[245].mxu1  ;;  %v10025_v57 = vmax.f32 %v9863_v25, %v9883_v61  ;;  %v9885_v14 = vpop.f32.mrb[93].mxu0 }
 0x8aa   :  { %v10024_v36 = vmax.f32 %v8321_v63, %v8341_v0  ;;  %v8343_v53 = vpop.f32.mrb[246].mxu1  ;;  %v10026_v3 = vmax.f32 %v9865_v39, %v9885_v14  ;;  %v9887_v28 = vpop.f32.mrb[94].mxu0 }
 0x8ab   :  { %v10027_v38 = vmax.f32 %v8323_v30, %v8343_v53  ;;  %v8345_v45 = vpop.f32.mrb[247].mxu1  ;;  %v10087_v8 = vmax.f32 %v10023_v58, %v10025_v57  ;;  %v10029_v43 = vmax.f32 %v9867_v20, %v9887_v28  ;;  %v9889_v62 = vpop.f32.mrb[95].mxu0  ;;  %v14197_v28 = vld [vmem:[#allocation9 + $0x120] ss:$8 sps:$4 sm:$0xff]  }
 0x8ac   :  { %v10028_v37 = vmax.f32 %v8325_v29, %v8345_v45  ;;  %v10088_v26 = vmax.f32 %v10024_v36, %v10026_v3  ;;  %v10030_v33 = vmax.f32 %v9869_v7, %v9889_v62  ;;  %v14191_v29 = vld [vmem:[#allocation9 + $0x100] ss:$8 sps:$4 sm:$0xff]   ;;  %v14202_v45 = vld [vmem:[#allocation9 + $0x134] ss:$8 sps:$4 sm:$0xff]   ;;  %v14200_v62 = vld [vmem:[#allocation9 + $0x130] ss:$8 sps:$4 sm:$0xff]  }
 0x8ad   :  { %v10130_v12 = vadd.f32 %v18626_v31, %v10087_v8  ;;  %v10089_v59 = vmax.f32 %v10027_v38, %v10029_v43 }
 0x8ae   :  { %v10131_v34 = vadd.f32 %v18630_v50, %v10088_v26  ;;  %v10090_v23 = vmax.f32 %v10028_v37, %v10030_v33 }
 0x8af   :  { %v10132_v32 = vadd.f32 %v18626_v31, %v10089_v59  ;;  %v10162_v55 = vmax.f32 %v10130_v12, 0.0  ;;  %v14205_v12 = vld [vmem:[#allocation9 + $0x144] ss:$8 sps:$4 sm:$0xff]  }
 0x8b0   :  { %v8349_v51 = vpop.f32.mrb[248].mxu1  ;;  %v10133_v6 = vadd.f32 %v18630_v50, %v10090_v23  ;;  %v9893_v49 = vpop.f32.mrb[96].mxu0  ;;  %v10163_v27 = vmax.f32 %v10131_v34, 0.0 }
 0x8b1   :  { %v10031_v9 = vmax.f32 %v8329_v48, %v8349_v51  ;;  %v8351_v41 = vpop.f32.mrb[249].mxu1  ;;  %v10164_v35 = vmax.f32 %v10132_v32, 0.0  ;;  %v10033_v15 = vmax.f32 %v9873_v19, %v9893_v49  ;;  %v9895_v52 = vpop.f32.mrb[97].mxu0  ;;  %v14196_v19 = vld [vmem:[#allocation9 + $0x114] ss:$8 sps:$4 sm:$0xff]  }
 0x8b2   :  { %v10032_v11 = vmax.f32 %v8331_v56, %v8351_v41  ;;  %v8353_v21 = vpop.f32.mrb[250].mxu1  ;;  %v10165_v5 = vmax.f32 %v10133_v6, 0.0  ;;  %v10034_v1 = vmax.f32 %v9875_v22, %v9895_v52  ;;  %v9897_v24 = vpop.f32.mrb[98].mxu0  ;;  %v14203_v32 = vld [vmem:[#allocation9 + $0x140] ss:$8 sps:$4 sm:$0xff]  }
 0x8b3   :  { %v10035_v42 = vmax.f32 %v8333_v44, %v8353_v21  ;;  %v8355_v46 = vpop.f32.mrb[251].mxu1  ;;  %v10194_v40 = vpack.c.bf16 %v10164_v35, %v10162_v55  ;;  %v10091_v17 = vmax.f32 %v10031_v9, %v10033_v15  ;;  %v10037_v60 = vmax.f32 %v9877_v13, %v9897_v24  ;;  %v9899_v63 = vpop.f32.mrb[99].mxu0  ;;  %v14208_v51 = vld [vmem:[#allocation9 + $0x154] ss:$8 sps:$4 sm:$0xff]   ;;  %v14206_v55 = vld [vmem:[#allocation9 + $0x150] ss:$8 sps:$4 sm:$0xff]  }
 0x8b4   :  { %v10036_v25 = vmax.f32 %v8335_v18, %v8355_v46  ;;  %v10092_v39 = vmax.f32 %v10032_v11, %v10034_v1  ;;  %v10038_v30 = vmax.f32 %v9879_v2, %v9899_v63  ;;  %v10195_v20 = vpack.c.bf16 %v10165_v5, %v10163_v27  ;;  %v14194_v2 = vld [vmem:[#allocation9 + $0x110] ss:$8 sps:$4 sm:$0xff]   ;;  %v14211_v21 = vld [vmem:[#allocation9 + $0x164] ss:$8 sps:$4 sm:$0xff]   ;;  %v14209_v63 = vld [vmem:[#allocation9 + $0x160] ss:$8 sps:$4 sm:$0xff]  }
 0x8b5   :  { %v10134_v7 = vadd.f32 %v18626_v31, %v10091_v17  ;;  %v10093_v48 = vmax.f32 %v10035_v42, %v10037_v60 }
 0x8b6   :  { %v10135_v56 = vadd.f32 %v18630_v50, %v10092_v39  ;;  %v10094_v47 = vmax.f32 %v10036_v25, %v10038_v30  ;;  %10818 = vmatprep.mubr.bf16.mxu1 %v10195_v20  ;;  %v14214_v20 = vld [vmem:[#allocation9 + $0x174] ss:$8 sps:$4 sm:$0xff]  }
 0x8b7   :  { %v10136_v22 = vadd.f32 %v18626_v31, %v10093_v48  ;;  %10819 = vmatmul.mubr.bf16.vlgmr.msra.gmra.mrb[44].mxu1 %v10194_v40  ;;  %v10166_v58 = vmax.f32 %v10134_v7, 0.0 }
 0x8b8   :  { %v8359_v44 = vpop.f32.mrb[252].mxu1  ;;  %v10137_v13 = vadd.f32 %v18630_v50, %v10094_v47  ;;  %10860 = vmatpush1.bf16.msra.mxu1 %v14191_v29  ;;  %v9903_v18 = vpop.f32.mrb[100].mxu0  ;;  %v10167_v16 = vmax.f32 %v10135_v56, 0.0 }
 0x8b9   :  { %v8361_v4 = vpop.f32.mrb[253].mxu1  ;;  %v10168_v61 = vmax.f32 %v10136_v22, 0.0  ;;  %v9905_v0 = vpop.f32.mrb[101].mxu0  ;;  %10861 = vmatprep.subr.bf16.mxu1 %v14196_v19 }
 0x8ba   :  { %v8363_v57 = vpop.f32.mrb[254].mxu1  ;;  %v10169_v36 = vmax.f32 %v10137_v13, 0.0  ;;  %v9907_v14 = vpop.f32.mrb[102].mxu0  ;;  %v14212_v13 = vld [vmem:[#allocation9 + $0x170] ss:$8 sps:$4 sm:$0xff]  }
 0x8bb   :  { %v8365_v53 = vpop.f32.mrb[255].mxu1  ;;  %v10196_v3 = vpack.c.bf16 %v10168_v61, %v10166_v58  ;;  %v9909_v54 = vpop.f32.mrb[103].mxu0 }
 0x8bc   :  { %10862 = vmatpush1.bf16.msra.mxu1 %v14194_v2  ;;  %v10197_v38 = vpack.c.bf16 %v10169_v36, %v10167_v16 }
 0x8bd   :  { %10863 = vmatprep.subr.bf16.mxu1 %v14199_v10 }
 0x8be   :  { %10828 = vmatprep.mubr.bf16.mxu1 %v10197_v38 }
 0x8bf   :  { %10829 = vmatmul.mubr.bf16.gmra.mrb[48].mxu1 %v10196_v3 }
 0x8c0   :  { %v18640_v8 = vpop.f32.mrb[0].mxu1  ;;  %10864 = vmatpush1.bf16.msra.mxu1 %v14197_v28  ;;  %v18642_v43 = vpop.f32.mrb[104].mxu0 }
 0x8c1   :  { %v18644_v37 = vpop.f32.mrb[1].mxu1  ;;  %v18646_v26 = vpop.f32.mrb[105].mxu0  ;;  %10865 = vmatprep.subr.bf16.mxu1 %v14202_v45 }
 0x8c2   :  { %v18648_v33 = vpop.f32.mrb[2].mxu1  ;;  %v18650_v59 = vpop.f32.mrb[106].mxu0 }
 0x8c3   :  { %v18652_v34 = vpop.f32.mrb[3].mxu1  ;;  %v18654_v23 = vpop.f32.mrb[107].mxu0 }
 0x8c4   :  { %10866 = vmatpush1.bf16.msra.mxu1 %v14200_v62 }
 0x8c5   :  { %10867 = vmatprep.subr.bf16.mxu1 %v14205_v12  ;;  %v14215_v12 = vld [vmem:[#allocation9 + $0x180] ss:$8 sps:$4 sm:$0xff]  }
 0x8c8   :  { %v8379_v6 = vpop.f32.mrb[4].mxu1  ;;  %10868 = vmatpush1.bf16.msra.mxu1 %v14203_v32  ;;  %v9923_v49 = vpop.f32.mrb[108].mxu0 }
 0x8c9   :  { %v10039_v9 = vmax.f32 %v8359_v44, %v8379_v6  ;;  %v8381_v41 = vpop.f32.mrb[5].mxu1  ;;  %v10041_v35 = vmax.f32 %v9903_v18, %v9923_v49  ;;  %v9925_v11 = vpop.f32.mrb[109].mxu0  ;;  %10869 = vmatprep.subr.bf16.mxu1 %v14208_v51 }
 0x8ca   :  { %v10040_v15 = vmax.f32 %v8361_v4, %v8381_v41  ;;  %v8383_v52 = vpop.f32.mrb[6].mxu1  ;;  %v10042_v27 = vmax.f32 %v9905_v0, %v9925_v11  ;;  %v9927_v1 = vpop.f32.mrb[110].mxu0  ;;  %v14218_v41 = vld [vmem:[#allocation9 + $0x190] ss:$8 sps:$4 sm:$0xff]  }
 0x8cb   :  { %v10043_v5 = vmax.f32 %v8363_v57, %v8383_v52  ;;  %v8385_v42 = vpop.f32.mrb[7].mxu1  ;;  %v10095_v24 = vmax.f32 %v10039_v9, %v10041_v35  ;;  %v10045_v46 = vmax.f32 %v9907_v14, %v9927_v1  ;;  %v9929_v17 = vpop.f32.mrb[111].mxu0  ;;  %v14217_v57 = vld [vmem:[#allocation9 + $0x184] ss:$8 sps:$4 sm:$0xff]  }
 0x8cc   :  { %v10044_v40 = vmax.f32 %v8365_v53, %v8385_v42  ;;  %v10096_v60 = vmax.f32 %v10040_v15, %v10042_v27  ;;  %v10046_v25 = vmax.f32 %v9909_v54, %v9929_v17  ;;  %10870 = vmatpush1.bf16.msra.mxu1 %v14206_v55  ;;  %v14223_v52 = vld [vmem:[#allocation9 + $0x1a4] ss:$8 sps:$4 sm:$0xff]   ;;  %v14226_v17 = vld [vmem:[#allocation9 + $0x1b4] ss:$8 sps:$4 sm:$0xff]  }
 0x8cd   :  { %v10138_v39 = vadd.f32 %v18626_v31, %v10095_v24  ;;  %v10097_v30 = vmax.f32 %v10043_v5, %v10045_v46  ;;  %10871 = vmatprep.subr.bf16.mxu1 %v14211_v21 }
 0x8ce   :  { %v10139_v29 = vadd.f32 %v18630_v50, %v10096_v60  ;;  %v10098_v7 = vmax.f32 %v10044_v40, %v10046_v25  ;;  %v14221_v40 = vld [vmem:[#allocation9 + $0x1a0] ss:$8 sps:$4 sm:$0xff]  }
 0x8cf   :  { %v10140_v48 = vadd.f32 %v18626_v31, %v10097_v30  ;;  %v10170_v18 = vmax.f32 %v10138_v39, 0.0  ;;  %v14224_v39 = vld [vmem:[#allocation9 + $0x1b0] ss:$8 sps:$4 sm:$0xff]  }
 0x8d0   :  { %v8389_v19 = vpop.f32.mrb[8].mxu1  ;;  %v10141_v56 = vadd.f32 %v18630_v50, %v10098_v7  ;;  %10872 = vmatpush1.bf16.msra.mxu1 %v14209_v63  ;;  %v9933_v22 = vpop.f32.mrb[112].mxu0  ;;  %v10171_v10 = vmax.f32 %v10139_v29, 0.0  ;;  %v14229_v29 = vld [vmem:[#allocation9 + $0x1c4] ss:$8 sps:$4 sm:$0xff]  }
 0x8d1   :  { %v10047_v47 = vmax.f32 %v18640_v8, %v8389_v19  ;;  %v8391_v44 = vpop.f32.mrb[9].mxu1  ;;  %v10172_v4 = vmax.f32 %v10140_v48, 0.0  ;;  %v10049_v2 = vmax.f32 %v18642_v43, %v9933_v22  ;;  %v9935_v61 = vpop.f32.mrb[113].mxu0  ;;  %10873 = vmatprep.subr.bf16.mxu1 %v14214_v20 }
 0x8d2   :  { %v10048_v58 = vmax.f32 %v18644_v37, %v8391_v44  ;;  %v8393_v0 = vpop.f32.mrb[10].mxu1  ;;  %v10173_v16 = vmax.f32 %v10141_v56, 0.0  ;;  %v10050_v36 = vmax.f32 %v18646_v26, %v9935_v61  ;;  %v9937_v53 = vpop.f32.mrb[114].mxu0  ;;  %v14227_v56 = vld [vmem:[#allocation9 + $0x1c0] ss:$8 sps:$4 sm:$0xff]  }
 0x8d3   :  { %v10051_v14 = vmax.f32 %v18648_v33, %v8393_v0  ;;  %v8395_v3 = vpop.f32.mrb[11].mxu1  ;;  %v18665_v54 = vpack.c.bf16 %v10172_v4, %v10170_v18  ;;  %v10099_v38 = vmax.f32 %v10047_v47, %v10049_v2  ;;  %v10053_v28 = vmax.f32 %v18650_v59, %v9937_v53  ;;  %v9939_v8 = vpop.f32.mrb[115].mxu0  ;;  %v14220_v33 = vld [vmem:[#allocation9 + $0x194] ss:$8 sps:$4 sm:$0xff]   ;;  %v14230_v4 = vld [vmem:[#allocation9 + $0x1d0] ss:$8 sps:$4 sm:$0xff]  }
 0x8d4   :  { %v10052_v45 = vmax.f32 %v18652_v34, %v8395_v3  ;;  %v10100_v43 = vmax.f32 %v10048_v58, %v10050_v36  ;;  %v10054_v37 = vmax.f32 %v18654_v23, %v9939_v8  ;;  %10874 = vmatpush1.bf16.msra.mxu1 %v14212_v13  ;;  %v10199_v62 = vpack.c.bf16 %v10173_v16, %v10171_v10  ;;  %v14232_v47 = vld [vmem:[#allocation9 + $0x1d4] ss:$8 sps:$4 sm:$0xff]  }
 0x8d5   :  { %v10142_v26 = vadd.f32 %v18626_v31, %v10099_v38  ;;  %v10101_v32 = vmax.f32 %v10051_v14, %v10053_v28  ;;  %10875 = vmatprep.subr.bf16.mxu1 %v14217_v57  ;;  %v14235_v57 = vld [vmem:[#allocation9 + $0x1e4] ss:$8 sps:$4 sm:$0xff]  }
 0x8d6   :  { %v10143_v51 = vadd.f32 %v18630_v50, %v10100_v43  ;;  %v10102_v6 = vmax.f32 %v10052_v45, %v10054_v37  ;;  %10838 = vmatprep.mubr.bf16.mxu1 %v10199_v62  ;;  %v14233_v43 = vld [vmem:[#allocation9 + $0x1e0] ss:$8 sps:$4 sm:$0xff]  }
 0x8d7   :  { %v10144_v59 = vadd.f32 %v18626_v31, %v10101_v32  ;;  %10839 = vmatmul.mubr.bf16.gmra.mrb[52].mxu1 %v18665_v54  ;;  %v10174_v55 = vmax.f32 %v10142_v26, 0.0 }
 0x8d8   :  { %v8399_v34 = vpop.f32.mrb[12].mxu1  ;;  %v10145_v9 = vadd.f32 %v18630_v50, %v10102_v6  ;;  %10876 = vmatpush1.bf16.msra.mxu1 %v14215_v12  ;;  %v9943_v23 = vpop.f32.mrb[116].mxu0  ;;  %v10175_v21 = vmax.f32 %v10143_v51, 0.0  ;;  %v14238_v12 = vld [vmem:[#allocation9 + $0x1f4] ss:$8 sps:$4 sm:$0xff]  }
 0x8d9   :  { %v8401_v49 = vpop.f32.mrb[13].mxu1  ;;  %v10176_v35 = vmax.f32 %v10144_v59, 0.0  ;;  %v9945_v15 = vpop.f32.mrb[117].mxu0  ;;  %10877 = vmatprep.subr.bf16.mxu1 %v14220_v33 }
 0x8da   :  { %v8403_v11 = vpop.f32.mrb[14].mxu1  ;;  %v10177_v27 = vmax.f32 %v10145_v9, 0.0  ;;  %v9947_v5 = vpop.f32.mrb[118].mxu0 }
 0x8db   :  { %v8405_v1 = vpop.f32.mrb[15].mxu1  ;;  %v18675_v42 = vpack.c.bf16 %v10176_v35, %v10174_v55  ;;  %v9949_v24 = vpop.f32.mrb[119].mxu0 }
 0x8dc   :  { %10878 = vmatpush1.bf16.msra.mxu1 %v14218_v41  ;;  %v18677_v46 = vpack.c.bf16 %v10177_v27, %v10175_v21 }
 0x8dd   :  { %10879 = vmatprep.subr.bf16.mxu1 %v14223_v52  ;;  %v14241_v52 = vld [vmem:[#allocation9 + $0x204] ss:$8 sps:$4 sm:$0xff]  }
 0x8de   :  { %10848 = vmatprep.mubr.bf16.mxu1 %v18677_v46 }
 0x8df   :  { %10849 = vmatmul.mubr.bf16.gmra.mrb[56].mxu1 %v18675_v42 }
 0x8e0   :  { %v18681_v60 = vpop.f32.mrb[16].mxu1  ;;  %10880 = vmatpush1.bf16.msra.mxu1 %v14221_v40  ;;  %v18683_v25 = vpop.f32.mrb[120].mxu0  ;;  %10891 = vmatprep.mubr.bf16.mxu1 %v10199_v62 }
 0x8e1   :  { %v18685_v63 = vpop.f32.mrb[17].mxu1  ;;  %v18687_v30 = vpop.f32.mrb[121].mxu0  ;;  %10881 = vmatprep.subr.bf16.mxu1 %v14226_v17 }
 0x8e2   :  { %v18689_v20 = vpop.f32.mrb[18].mxu1  ;;  %v18691_v7 = vpop.f32.mrb[122].mxu0 }
 0x8e3   :  { %v18693_v48 = vpop.f32.mrb[19].mxu1  ;;  %v18695_v19 = vpop.f32.mrb[123].mxu0 }
 0x8e4   :  { %10882 = vmatpush1.bf16.msra.mxu1 %v14224_v39 }
 0x8e5   :  { %10883 = vmatprep.subr.bf16.mxu1 %v14229_v29 }
 0x8e8   :  { %v8419_v22 = vpop.f32.mrb[20].mxu1  ;;  %10884 = vmatpush1.bf16.msra.mxu1 %v14227_v56  ;;  %v9963_v13 = vpop.f32.mrb[124].mxu0 }
 0x8e9   :  { %v10055_v44 = vmax.f32 %v8399_v34, %v8419_v22  ;;  %v8421_v18 = vpop.f32.mrb[21].mxu1  ;;  %v10057_v2 = vmax.f32 %v9943_v23, %v9963_v13  ;;  %v9965_v61 = vpop.f32.mrb[125].mxu0  ;;  %10885 = vmatprep.subr.bf16.mxu1 %v14232_v47  ;;  %v14236_v23 = vld [vmem:[#allocation9 + $0x1f0] ss:$8 sps:$4 sm:$0xff]   ;;  %v14239_v47 = vld [vmem:[#allocation9 + $0x200] ss:$8 sps:$4 sm:$0xff]  }
 0x8ea   :  { %v10056_v58 = vmax.f32 %v8401_v49, %v8421_v18  ;;  %v8423_v0 = vpop.f32.mrb[22].mxu1  ;;  %v10058_v10 = vmax.f32 %v9945_v15, %v9965_v61  ;;  %v9967_v36 = vpop.f32.mrb[126].mxu0 }
 0x8eb   :  { %v10059_v16 = vmax.f32 %v8403_v11, %v8423_v0  ;;  %v8425_v14 = vpop.f32.mrb[23].mxu1  ;;  %v10103_v53 = vmax.f32 %v10055_v44, %v10057_v2  ;;  %v10061_v3 = vmax.f32 %v9947_v5, %v9967_v36  ;;  %v9969_v28 = vpop.f32.mrb[127].mxu0  ;;  %v14244_v44 = vld [vmem:[#allocation9 + $0x214] ss:$8 sps:$4 sm:$0xff]  }
 0x8ec   :  { %v10060_v38 = vmax.f32 %v8405_v1, %v8425_v14  ;;  %v10104_v45 = vmax.f32 %v10056_v58, %v10058_v10  ;;  %v10062_v8 = vmax.f32 %v9949_v24, %v9969_v28  ;;  %10886 = vmatpush1.bf16.msra.mxu1 %v14230_v4  ;;  %v14242_v58 = vld [vmem:[#allocation9 + $0x210] ss:$8 sps:$4 sm:$0xff]   ;;  %v14245_v28 = vld [vmem:[#allocation9 + $0x220] ss:$8 sps:$4 sm:$0xff]  }
 0x8ed   :  { %v10146_v37 = vadd.f32 %v18626_v31, %v10103_v53  ;;  %v10105_v62 = vmax.f32 %v10059_v16, %v10061_v3  ;;  %10887 = vmatprep.subr.bf16.mxu1 %v14235_v57  ;;  %v14247_v16 = vld [vmem:[#allocation9 + $0x224] ss:$8 sps:$4 sm:$0xff]  }
 0x8ee   :  { %v10147_v26 = vadd.f32 %v18630_v50, %v10104_v45  ;;  %v10106_v32 = vmax.f32 %v10060_v38, %v10062_v8  ;;  %v14250_v45 = vld [vmem:[#allocation9 + $0x234] ss:$8 sps:$4 sm:$0xff]  }
 0x8ef   :  { %v10148_v33 = vadd.f32 %v18626_v31, %v10105_v62  ;;  %v10178_v49 = vmax.f32 %v10146_v37, 0.0  ;;  %v14248_v62 = vld [vmem:[#allocation9 + $0x230] ss:$8 sps:$4 sm:$0xff]  }
 0x8f0   :  { %v8429_v51 = vpop.f32.mrb[24].mxu1  ;;  %v10149_v6 = vadd.f32 %v18630_v50, %v10106_v32  ;;  %10888 = vmatpush1.bf16.msra.mxu1 %v14233_v43  ;;  %v9973_v34 = vpop.f32.mrb[128].mxu0  ;;  %v10179_v21 = vmax.f32 %v10147_v26, 0.0  ;;  %v14253_v32 = vld [vmem:[#allocation9 + $0x244] ss:$8 sps:$4 sm:$0xff]  }
 0x8f1   :  { %v10063_v59 = vmax.f32 %v18681_v60, %v8429_v51  ;;  %v8431_v9 = vpop.f32.mrb[25].mxu1  ;;  %v10180_v41 = vmax.f32 %v10148_v33, 0.0  ;;  %v10065_v55 = vmax.f32 %v18683_v25, %v9973_v34  ;;  %v9975_v15 = vpop.f32.mrb[129].mxu0  ;;  %10889 = vmatprep.subr.bf16.mxu1 %v14238_v12 }
 0x8f2   :  { %v10064_v35 = vmax.f32 %v18685_v63, %v8431_v9  ;;  %v8433_v11 = vpop.f32.mrb[26].mxu1  ;;  %v10181_v27 = vmax.f32 %v10149_v6, 0.0  ;;  %v10066_v5 = vmax.f32 %v18687_v30, %v9975_v15  ;;  %v9977_v24 = vpop.f32.mrb[130].mxu0  ;;  %v14251_v6 = vld [vmem:[#allocation9 + $0x240] ss:$8 sps:$4 sm:$0xff]  }
 0x8f3   :  { %v10067_v1 = vmax.f32 %v18689_v20, %v8433_v11  ;;  %v8435_v40 = vpop.f32.mrb[27].mxu1  ;;  %v18706_v17 = vpack.c.bf16 %v10180_v41, %v10178_v49  ;;  %v10107_v60 = vmax.f32 %v10063_v59, %v10065_v55  ;;  %v10069_v39 = vmax.f32 %v18691_v7, %v9977_v24  ;;  %v9979_v63 = vpop.f32.mrb[131].mxu0  ;;  %v14256_v59 = vld [vmem:[#allocation9 + $0x254] ss:$8 sps:$4 sm:$0xff]   ;;  %v14254_v41 = vld [vmem:[#allocation9 + $0x250] ss:$8 sps:$4 sm:$0xff]  }
 0x8f4   :  { %v10068_v25 = vmax.f32 %v18693_v48, %v8435_v40  ;;  %v10108_v29 = vmax.f32 %v10064_v35, %v10066_v5  ;;  %v10070_v56 = vmax.f32 %v18695_v19, %v9979_v63  ;;  %10890 = vmatpush1.bf16.msra.mxu1 %v14236_v23  ;;  %v18711_v22 = vpack.c.bf16 %v10181_v27, %v10179_v21 }
 0x8f5   :  { %v10150_v30 = vadd.f32 %v18626_v31, %v10107_v60  ;;  %v10109_v20 = vmax.f32 %v10067_v1, %v10069_v39  ;;  %10932 = vmatprep.subr.bf16.mxu1 %v14241_v52  ;;  %v14259_v52 = vld [vmem:[#allocation9 + $0x264] ss:$8 sps:$4 sm:$0xff]  }
 0x8f6   :  { %v10151_v13 = vadd.f32 %v18630_v50, %v10108_v29  ;;  %v10110_v18 = vmax.f32 %v10068_v25, %v10070_v56  ;;  %v14257_v29 = vld [vmem:[#allocation9 + $0x260] ss:$8 sps:$4 sm:$0xff]  }
 0x8f7   :  { %v10152_v7 = vadd.f32 %v18626_v31, %v10109_v20  ;;  %10892 = vmatmul.mubr.bf16.vlgmr.msra.gmra.mrb[44].mxu1 %v18665_v54  ;;  %v10182_v61 = vmax.f32 %v10150_v30, 0.0  ;;  %v14262_v30 = vld [vmem:[#allocation9 + $0x274] ss:$8 sps:$4 sm:$0xff]  }
 0x8f8   :  { %v8439_v48 = vpop.f32.mrb[28].mxu1  ;;  %v10153_v4 = vadd.f32 %v18630_v50, %v10110_v18  ;;  %10901 = vmatprep.mubr.bf16.mxu1 %v18677_v46  ;;  %10933 = vmatpush1.bf16.msra.mxu1 %v14239_v47  ;;  %v9983_v19 = vpop.f32.mrb[132].mxu0  ;;  %v10183_v36 = vmax.f32 %v10151_v13, 0.0 }
 0x8f9   :  { %v8441_v2 = vpop.f32.mrb[29].mxu1  ;;  %v10184_v0 = vmax.f32 %v10152_v7, 0.0  ;;  %v9985_v57 = vpop.f32.mrb[133].mxu0  ;;  %10934 = vmatprep.subr.bf16.mxu1 %v14244_v44 }
 0x8fa   :  { %v8443_v10 = vpop.f32.mrb[30].mxu1  ;;  %v10185_v14 = vmax.f32 %v10153_v4, 0.0  ;;  %v9987_v53 = vpop.f32.mrb[134].mxu0 }
 0x8fb   :  { %v8445_v3 = vpop.f32.mrb[31].mxu1  ;;  %v18719_v54 = vpack.c.bf16 %v10184_v0, %v10182_v61  ;;  %v9989_v38 = vpop.f32.mrb[135].mxu0 }
 0x8fc   :  { %10935 = vmatpush1.bf16.msra.mxu1 %v14242_v58  ;;  %v18721_v46 = vpack.c.bf16 %v10185_v14, %v10183_v36  ;;  %v14265_v36 = vld [vmem:[#allocation9 + $0x284] ss:$8 sps:$4 sm:$0xff]  }
 0x8fd   :  { %10936 = vmatprep.subr.bf16.mxu1 %v14247_v16 }
 0x8ff   :  { %10902 = vmatmul.mubr.bf16.gmra.mrb[48].mxu1 %v18675_v42 }
 0x900   :  { %v18724_v8 = vpop.f32.mrb[32].mxu1  ;;  %10911 = vmatprep.mubr.bf16.mxu1 %v18711_v22  ;;  %10937 = vmatpush1.bf16.msra.mxu1 %v14245_v28  ;;  %v18727_v43 = vpop.f32.mrb[136].mxu0 }
 0x901   :  { %v18729_v37 = vpop.f32.mrb[33].mxu1  ;;  %v18731_v12 = vpop.f32.mrb[137].mxu0  ;;  %10938 = vmatprep.subr.bf16.mxu1 %v14250_v45 }
 0x902   :  { %v18733_v26 = vpop.f32.mrb[34].mxu1  ;;  %v18735_v33 = vpop.f32.mrb[138].mxu0 }
 0x903   :  { %v18737_v51 = vpop.f32.mrb[35].mxu1  ;;  %v18739_v42 = vpop.f32.mrb[139].mxu0 }
 0x904   :  { %10939 = vmatpush1.bf16.msra.mxu1 %v14248_v62 }
 0x905   :  { %10940 = vmatprep.subr.bf16.mxu1 %v14253_v32 }
 0x907   :  { %10912 = vmatmul.mubr.bf16.gmra.mrb[52].mxu1 %v18706_v17 }
 0x908   :  { %v8459_v34 = vpop.f32.mrb[36].mxu1  ;;  %10921 = vmatprep.mubr.bf16.mxu1 %v18721_v46  ;;  %10941 = vmatpush1.bf16.msra.mxu1 %v14251_v6  ;;  %v10003_v23 = vpop.f32.mrb[140].mxu0 }
 0x909   :  { %v10071_v9 = vmax.f32 %v8439_v48, %v8459_v34  ;;  %v8461_v49 = vpop.f32.mrb[37].mxu1  ;;  %v10073_v55 = vmax.f32 %v9983_v19, %v10003_v23  ;;  %v10005_v15 = vpop.f32.mrb[141].mxu0  ;;  %10942 = vmatprep.subr.bf16.mxu1 %v14256_v59  ;;  %v14263_v59 = vld [vmem:[#allocation9 + $0x280] ss:$8 sps:$4 sm:$0xff]  }
 0x90a   :  { %v10072_v35 = vmax.f32 %v8441_v2, %v8461_v49  ;;  %v8463_v11 = vpop.f32.mrb[38].mxu1  ;;  %v10074_v21 = vmax.f32 %v9985_v57, %v10005_v15  ;;  %v10007_v5 = vpop.f32.mrb[142].mxu0  ;;  %v14260_v2 = vld [vmem:[#allocation9 + $0x270] ss:$8 sps:$4 sm:$0xff]  }
 0x90b   :  { %v10075_v27 = vmax.f32 %v8443_v10, %v8463_v11  ;;  %v8465_v1 = vpop.f32.mrb[39].mxu1  ;;  %v10111_v24 = vmax.f32 %v10071_v9, %v10073_v55  ;;  %v10077_v40 = vmax.f32 %v9987_v53, %v10007_v5  ;;  %v10009_v39 = vpop.f32.mrb[143].mxu0  ;;  %v14274_v5 = vld [vmem:[#allocation9 + $0x2b4] ss:$8 sps:$4 sm:$0xff]  }
 0x90c   :  { %v10076_v60 = vmax.f32 %v8445_v3, %v8465_v1  ;;  %v10112_v25 = vmax.f32 %v10072_v35, %v10074_v21  ;;  %v10078_v63 = vmax.f32 %v9989_v38, %v10009_v39  ;;  %10943 = vmatpush1.bf16.msra.mxu1 %v14254_v41  ;;  %v14269_v21 = vld [vmem:[#allocation9 + $0x2a0] ss:$8 sps:$4 sm:$0xff]   ;;  %v14272_v1 = vld [vmem:[#allocation9 + $0x2b0] ss:$8 sps:$4 sm:$0xff]  }
 0x90d   :  { %v10154_v56 = vadd.f32 %v18626_v31, %v10111_v24  ;;  %v10113_v47 = vmax.f32 %v10075_v27, %v10077_v40  ;;  %10944 = vmatprep.subr.bf16.mxu1 %v14259_v52  ;;  %v14280_v24 = vld [vmem:[#allocation9 + $0x2d4] ss:$8 sps:$4 sm:$0xff]   ;;  %v14278_v40 = vld [vmem:[#allocation9 + $0x2d0] ss:$8 sps:$4 sm:$0xff]   ;;  %v14281_v39 = vld [vmem:[#allocation9 + $0x2e0] ss:$8 sps:$4 sm:$0xff]  }
 0x90e   :  { %v10155_v20 = vadd.f32 %v18630_v50, %v10112_v25  ;;  %v10114_v44 = vmax.f32 %v10076_v60, %v10078_v63  ;;  %v14283_v60 = vld [vmem:[#allocation9 + $0x2e4] ss:$8 sps:$4 sm:$0xff]   ;;  %v14286_v25 = vld [vmem:[#allocation9 + $0x2f4] ss:$8 sps:$4 sm:$0xff]  }
 0x90f   :  { %v10156_v13 = vadd.f32 %v18626_v31, %v10113_v47  ;;  %10922 = vmatmul.mubr.bf16.gmra.mrb[56].mxu1 %v18719_v54  ;;  %v10186_v58 = vmax.f32 %v10154_v56, 0.0  ;;  %v11032_v63 = vld [vmem:[#allocation12] sm:$0xff]  ;;  %v14284_v56 = vld [vmem:[#allocation9 + $0x2f0] ss:$8 sps:$4 sm:$0xff]  }
 0x910   :  { %v8469_v18 = vpop.f32.mrb[40].mxu1  ;;  %v10157_v7 = vadd.f32 %v18630_v50, %v10114_v44  ;;  %10945 = vmatpush1.bf16.msra.mxu1 %v14257_v29  ;;  %10964 = vmatprep.mubr.bf16.mxu1 %v18711_v22  ;;  %v10013_v4 = vpop.f32.mrb[144].mxu0  ;;  %v10187_v14 = vmax.f32 %v10155_v20, 0.0  ;;  %v11033_v29 = vld [vmem:[#allocation12 + $0x8] sm:$0xff]  ;;  %v11035_v20 = vld [vmem:[#allocation12 + $0x18] sm:$0xff] }
 0x911   :  { %v10079_v48 = vmax.f32 %v18724_v8, %v8469_v18  ;;  %v8471_v19 = vpop.f32.mrb[41].mxu1  ;;  %v10188_v61 = vmax.f32 %v10156_v13, 0.0  ;;  %v10081_v0 = vmax.f32 %v18727_v43, %v10013_v4  ;;  %v10015_v10 = vpop.f32.mrb[145].mxu0  ;;  %10946 = vmatprep.subr.bf16.mxu1 %v14262_v30  ;;  %v12302_v47 = vpack.c.bf16 %v11033_v29, %v11032_v63  ;;  %v11034_v30 = vld [vmem:[#allocation12 + $0x10] sm:$0xff]  ;;  %v11036_v13 = vld [vmem:[#allocation12 + $0x20] sm:$0xff]  ;;  %v11037_v18 = vld [vmem:[#allocation12 + $0x28] sm:$0xff] }
 0x912   :  { %v10080_v57 = vmax.f32 %v18729_v37, %v8471_v19  ;;  %v8473_v16 = vpop.f32.mrb[42].mxu1  ;;  %v10189_v53 = vmax.f32 %v10157_v7, 0.0  ;;  %v10082_v3 = vmax.f32 %v18731_v12, %v10015_v10  ;;  %v10017_v38 = vpop.f32.mrb[146].mxu0  ;;  %v12306_v44 = vpack.c.bf16 %v11035_v20, %v11034_v30  ;;  %v11041_v4 = vld [vmem:[#allocation12 + $0x48] sm:$0xff]  ;;  %v11150_v30 = vld [vmem:[%s18833_s9 + $0x30] sm:$0xff]  ;;  %v11151_v20 = vld [vmem:[%s18833_s9 + $0x38] sm:$0xff] }
 0x913   :  { %v10083_v22 = vmax.f32 %v18733_v26, %v8473_v16  ;;  %v8475_v28 = vpop.f32.mrb[43].mxu1  ;;  %v10206_v45 = vpack.c.bf16 %v10188_v61, %v10186_v58  ;;  %v10115_v8 = vmax.f32 %v10079_v48, %v10081_v0  ;;  %v10085_v62 = vmax.f32 %v18735_v33, %v10017_v38  ;;  %v10019_v32 = vpop.f32.mrb[147].mxu0  ;;  %v14268_v26 = vld [vmem:[#allocation9 + $0x294] ss:$8 sps:$4 sm:$0xff]   ;;  %v11044_v0 = vld [vmem:[#allocation12 + $0x60] sm:$0xff] }
 0x914   :  { %v10084_v43 = vmax.f32 %v18737_v51, %v8475_v28  ;;  %v10116_v37 = vmax.f32 %v10080_v57, %v10082_v3  ;;  %v10086_v6 = vmax.f32 %v18739_v42, %v10019_v32  ;;  %10947 = vmatpush1.bf16.msra.mxu1 %v14260_v2  ;;  %v10207_v34 = vpack.c.bf16 %v10189_v53, %v10187_v14  ;;  %v14266_v51 = vld [vmem:[#allocation9 + $0x290] ss:$8 sps:$4 sm:$0xff]   ;;  %v14271_v42 = vld [vmem:[#allocation9 + $0x2a4] ss:$8 sps:$4 sm:$0xff]  }
 0x915   :  { %v10158_v9 = vadd.f32 %v18626_v31, %v10115_v8  ;;  %v10117_v12 = vmax.f32 %v10083_v22, %v10085_v62  ;;  %10948 = vmatprep.subr.bf16.mxu1 %v14265_v36  ;;  %v12310_v7 = vpack.c.bf16 %v11037_v18, %v11036_v13  ;;  %v11039_v48 = vld [vmem:[#allocation12 + $0x38] sm:$0xff]  ;;  %v11042_v2 = vld [vmem:[#allocation12 + $0x50] sm:$0xff]  ;;  %v11045_v57 = vld [vmem:[#allocation12 + $0x68] sm:$0xff] }
 0x916   :  { %v10159_v23 = vadd.f32 %v18630_v50, %v10116_v37  ;;  %v10118_v49 = vmax.f32 %v10084_v43, %v10086_v6  ;;  %v11043_v58 = vld [vmem:[#allocation12 + $0x58] sm:$0xff]  ;;  %v12326_v10 = vpack.c.bf16 %v11045_v57, %v11044_v0  ;;  %v11046_v16 = vld [vmem:[#allocation12 + $0x70] sm:$0xff]  ;;  %v11144_v53 = vld [vmem:[%s18833_s9] sm:$0xff] }
 0x917   :  { %v10160_v41 = vadd.f32 %v18626_v31, %v10117_v12  ;;  %v10190_v55 = vmax.f32 %v10158_v9, 0.0  ;;  %v14277_v31 = vld [vmem:[#allocation9 + $0x2c4] ss:$8 sps:$4 sm:$0xff]   ;;  %v12322_v61 = vpack.c.bf16 %v11043_v58, %v11042_v2  ;;  %v11047_v36 = vld [vmem:[#allocation12 + $0x78] sm:$0xff]  ;;  %v11145_v3 = vld [vmem:[%s18833_s9 + $0x8] sm:$0xff] }
 0x918   :  { %v10161_v33 = vadd.f32 %v18630_v50, %v10118_v49  ;;  %10949 = vmatpush1.bf16.msra.mxu1 %v14263_v59  ;;  %v10191_v15 = vmax.f32 %v10159_v23, 0.0  ;;  %v14275_v50 = vld [vmem:[#allocation9 + $0x2c0] ss:$8 sps:$4 sm:$0xff]   ;;  %v12330_v14 = vpack.c.bf16 %v11047_v36, %v11046_v16  ;;  %v12334_v22 = vpack.c.bf16 %v11145_v3, %v11144_v53  ;;  %v11157_v58 = vld [vmem:[%s18833_s9 + $0x68] sm:$0xff] }
 0x919   :  { %v10192_v35 = vmax.f32 %v10160_v41, 0.0  ;;  %10950 = vmatprep.subr.bf16.mxu1 %v14268_v26  ;;  %v12156_v49 = vld [vmem:[#allocation10] ss:$0 sm:$0xff]  ;;  %v11156_v2 = vld [vmem:[%s18833_s9 + $0x60] sm:$0xff]  ;;  %v11159_v57 = vld [vmem:[%s18833_s9 + $0x78] sm:$0xff] }
 0x91a   :  { %v10193_v11 = vmax.f32 %v10161_v33, 0.0  ;;  %v11158_v0 = vld [vmem:[%s18833_s9 + $0x70] sm:$0xff]  ;;  %v11256_v16 = vld [vmem:[#allocation16] sm:$0xff]  ;;  %v11257_v36 = vld [vmem:[#allocation16 + $0x8] sm:$0xff] }
 0x91b   :  { %v10208_v52 = vpack.c.bf16 %v10192_v35, %v10190_v55  ;;  %v11146_v35 = vld [vmem:[%s18833_s9 + $0x10] sm:$0xff]  ;;  %v12157_v53 = vld [vmem:[#allocation13] ss:$0 sm:$0xff] }
 0x91c   :  { %10951 = vmatpush1.bf16.msra.mxu1 %v14266_v51  ;;  %v10209_v27 = vpack.c.bf16 %v10193_v11, %v10191_v15 }
 0x91d   :  { %10952 = vmatprep.subr.bf16.mxu1 %v14271_v42  ;;  %v11147_v42 = vld [vmem:[%s18833_s9 + $0x18] sm:$0xff] }
 0x920   :  { %10953 = vmatpush1.bf16.msra.mxu1 %v14269_v21 }
 0x921   :  { %10954 = vmatprep.subr.bf16.mxu1 %v14274_v5 }
 0x924   :  { %10955 = vmatpush1.bf16.msra.mxu1 %v14272_v1 }
 0x925   :  { %10956 = vmatprep.subr.bf16.mxu1 %v14277_v31 }
 0x928   :  { %10957 = vmatpush1.bf16.msra.mxu1 %v14275_v50  ;;  %v12338_v50 = vpack.c.bf16 %v11147_v42, %v11146_v35 }
 0x929   :  { %10958 = vmatprep.subr.bf16.mxu1 %v14280_v24 }
 0x92c   :  { %10959 = vmatpush1.bf16.msra.mxu1 %v14278_v40 }
 0x92d   :  { %10960 = vmatprep.subr.bf16.mxu1 %v14283_v60  ;;  %v11148_v60 = vld [vmem:[%s18833_s9 + $0x20] sm:$0xff] }
 0x930   :  { %10961 = vmatpush1.bf16.msra.mxu1 %v14281_v39  ;;  %v11149_v39 = vld [vmem:[%s18833_s9 + $0x28] sm:$0xff] }
 0x931   :  { %10962 = vmatprep.subr.bf16.mxu1 %v14286_v25 }
 0x934   :  { %10963 = vmatpush1.bf16.msra.mxu1 %v14284_v56 }
 0x935   :  { %12303 = vmatprep.subr.bf16.mxu1 %v12302_v47 }
 0x937   :  { %10965 = vmatmul.mubr.bf16.vlgmr.msra.gmra.mrb[44].mxu1 %v18706_v17  ;;  %v11038_v17 = vld [vmem:[#allocation12 + $0x30] sm:$0xff] }
 0x938   :  { %10974 = vmatprep.mubr.bf16.mxu1 %v18721_v46  ;;  %12305 = vmatpush3.bf16.msra.mxu1 %v12302_v47  ;;  %v12314_v46 = vpack.c.bf16 %v11039_v48, %v11038_v17  ;;  %v12342_v47 = vpack.c.bf16 %v11149_v39, %v11148_v60  ;;  %v11152_v17 = vld [vmem:[%s18833_s9 + $0x40] sm:$0xff]  ;;  %v11153_v48 = vld [vmem:[%s18833_s9 + $0x48] sm:$0xff] }
 0x939   :  { %12307 = vmatprep.subr.bf16.mxu1 %v12306_v44 }
 0x93c   :  { %12309 = vmatpush3.bf16.msra.mxu1 %v12306_v44 }
 0x93d   :  { %12311 = vmatprep.subr.bf16.mxu1 %v12310_v7 }
 0x93f   :  { %10975 = vmatmul.mubr.bf16.gmra.mrb[48].mxu1 %v18719_v54  ;;  %v11040_v54 = vld [vmem:[#allocation12 + $0x40] sm:$0xff] }
 0x940   :  { %10984 = vmatprep.mubr.bf16.mxu1 %v10207_v34  ;;  %12313 = vmatpush3.bf16.msra.mxu1 %v12310_v7  ;;  %v12318_v19 = vpack.c.bf16 %v11041_v4, %v11040_v54  ;;  %v12346_v7 = vpack.c.bf16 %v11151_v20, %v11150_v30  ;;  %v11154_v54 = vld [vmem:[%s18833_s9 + $0x50] sm:$0xff]  ;;  %v11155_v4 = vld [vmem:[%s18833_s9 + $0x58] sm:$0xff] }
 0x941   :  { %12315 = vmatprep.subr.bf16.mxu1 %v12314_v46 }
 0x944   :  { %12317 = vmatpush3.bf16.msra.mxu1 %v12314_v46  ;;  %v12350_v46 = vpack.c.bf16 %v11153_v48, %v11152_v17 }
 0x945   :  { %12319 = vmatprep.subr.bf16.mxu1 %v12318_v19 }
 0x947   :  { %10985 = vmatmul.mubr.bf16.gmra.mrb[52].mxu1 %v10206_v45 }
 0x948   :  { %10994 = vmatprep.mubr.bf16.mxu1 %v10209_v27  ;;  %12321 = vmatpush3.bf16.msra.mxu1 %v12318_v19  ;;  %v12354_v19 = vpack.c.bf16 %v11155_v4, %v11154_v54 }
 0x949   :  { %12323 = vmatprep.subr.bf16.mxu1 %v12322_v61 }
 0x94c   :  { %12325 = vmatpush3.bf16.msra.mxu1 %v12322_v61  ;;  %v12358_v61 = vpack.c.bf16 %v11157_v58, %v11156_v2 }
 0x94d   :  { %12327 = vmatprep.subr.bf16.mxu1 %v12326_v10 }
 0x94f   :  { %10995 = vmatmul.mubr.bf16.gmra.mrb[56].mxu1 %v10208_v52 }
 0x950   :  { %12329 = vmatpush3.bf16.msra.mxu1 %v12326_v10  ;;  %v12362_v10 = vpack.c.bf16 %v11159_v57, %v11158_v0 }
 0x951   :  { %12331 = vmatprep.subr.bf16.mxu1 %v12330_v14 }
 0x954   :  { %12333 = vmatpush3.bf16.msra.mxu1 %v12330_v14  ;;  %v12366_v14 = vpack.c.bf16 %v11257_v36, %v11256_v16 }
 0x955   :  { %12335 = vmatprep.subr.bf16.mxu1 %v12334_v22 }
 0xa0a   :  { %v10966_v38 = vpop.f32.mrb[44].mxu1 }
 0xa0b   :  { %v10968_v28 = vpop.f32.mrb[45].mxu1 }
 0xa0c   :  { %v10970_v45 = vpop.f32.mrb[46].mxu1 }
 0xa0d   :  { %v10972_v8 = vpop.f32.mrb[47].mxu1 }
 0xa12   :  { %v10976_v62 = vpop.f32.mrb[48].mxu1 }
 0xa13   :  { %v10978_v43 = vpop.f32.mrb[49].mxu1 }
 0xa14   :  { %v10980_v32 = vpop.f32.mrb[50].mxu1 }
 0xa15   :  { %v10982_v37 = vpop.f32.mrb[51].mxu1 }
 0xa1a   :  { %v10986_v6 = vpop.f32.mrb[52].mxu1 }
 0xa1b   :  { %v11006_v59 = vmax.f32 %v10966_v38, %v10986_v6  ;;  %v10988_v34 = vpop.f32.mrb[53].mxu1 }
 0xa1c   :  { %v11007_v9 = vmax.f32 %v10968_v28, %v10988_v34  ;;  %v10990_v12 = vpop.f32.mrb[54].mxu1  ;;  %v11258_v34 = vld [vmem:[#allocation16 + $0x10] sm:$0xff] }
 0xa1d   :  { %v11008_v26 = vmax.f32 %v10970_v45, %v10990_v12  ;;  %v10992_v23 = vpop.f32.mrb[55].mxu1 }
 0xa1e   :  { %v11014_v41 = vmax.f32 %v11006_v59, %v11007_v9  ;;  %v11009_v33 = vmax.f32 %v10972_v8, %v10992_v23  ;;  %v11259_v9 = vld [vmem:[#allocation16 + $0x18] sm:$0xff] }
 0xa1f   :  { %v12370_v12 = vpack.c.bf16 %v11259_v9, %v11258_v34 }
 0xa20   :  { %v11015_v51 = vmax.f32 %v11008_v26, %v11009_v33  ;;  %v11024_v55 = vadd.f32 %v12156_v49, %v11014_v41  ;;  %v12158_v26 = vld [vmem:[#allocation15] ss:$0 sm:$0xff] }
 0xa22   :  { %v11025_v15 = vadd.f32 %v12156_v49, %v11015_v51  ;;  %v10996_v11 = vpop.f32.mrb[56].mxu1  ;;  %v11028_v52 = vmax.f32 %v11024_v55, 0.0 }
 0xa23   :  { %v11010_v21 = vmax.f32 %v10976_v62, %v10996_v11  ;;  %v10998_v27 = vpop.f32.mrb[57].mxu1 }
 0xa24   :  { %v11029_v5 = vmax.f32 %v11025_v15, 0.0  ;;  %v11011_v1 = vmax.f32 %v10978_v43, %v10998_v27  ;;  %v11000_v31 = vpop.f32.mrb[58].mxu1  ;;  %12244 = vmatprep.mubr.f32.mxu1 %v11028_v52  ;;  %v12159_v27 = vld [vmem:[#allocation18] ss:$0 sm:$0xff] }
 0xa25   :  { %v11012_v24 = vmax.f32 %v10980_v32, %v11000_v31  ;;  %v11002_v40 = vpop.f32.mrb[59].mxu1 }
 0xa26   :  { %v11016_v25 = vmax.f32 %v11010_v21, %v11011_v1  ;;  %v11013_v63 = vmax.f32 %v10982_v37, %v11002_v40  ;;  %12245 = vmatmul.mubr.f32.vlgmr.msra.gmra.mrb[60].mxu1 %v11029_v5 }
 0xa27   :  { %12337 = vmatpush3.bf16.msra.mxu1 %v12334_v22 }
 0xa28   :  { %v11017_v29 = vmax.f32 %v11012_v24, %v11013_v63  ;;  %v11026_v56 = vadd.f32 %v12156_v49, %v11016_v25  ;;  %12339 = vmatprep.subr.bf16.mxu1 %v12338_v50 }
 0xa2a   :  { %v11027_v44 = vadd.f32 %v12156_v49, %v11017_v29  ;;  %v11030_v13 = vmax.f32 %v11026_v56, 0.0 }
 0xa2b   :  { %12341 = vmatpush3.bf16.msra.mxu1 %v12338_v50 }
 0xa2c   :  { %v11031_v18 = vmax.f32 %v11027_v44, 0.0  ;;  %12247 = vmatprep.mubr.f32.mxu1 %v11030_v13  ;;  %12343 = vmatprep.subr.bf16.mxu1 %v12342_v47 }
 0xa2e   :  { %12248 = vmatmul.mubr.f32.gmra.mrb[62].mxu1 %v11031_v18 }
 0xa2f   :  { %12345 = vmatpush3.bf16.msra.mxu1 %v12342_v47 }
 0xa30   :  { %12347 = vmatprep.subr.bf16.mxu1 %v12346_v7 }
 0xa33   :  { %12349 = vmatpush3.bf16.msra.mxu1 %v12346_v7 }
 0xa34   :  { %12351 = vmatprep.subr.bf16.mxu1 %v12350_v46 }
 0xa37   :  { %12353 = vmatpush3.bf16.msra.mxu1 %v12350_v46 }
 0xa38   :  { %12355 = vmatprep.subr.bf16.mxu1 %v12354_v19 }
 0xa3b   :  { %12357 = vmatpush3.bf16.msra.mxu1 %v12354_v19 }
 0xa3c   :  { %12359 = vmatprep.subr.bf16.mxu1 %v12358_v61 }
 0xa3f   :  { %12361 = vmatpush3.bf16.msra.mxu1 %v12358_v61 }
 0xa40   :  { %12363 = vmatprep.subr.bf16.mxu1 %v12362_v10 }
 0xa43   :  { %12365 = vmatpush3.bf16.msra.mxu1 %v12362_v10 }
 0xa44   :  { %12367 = vmatprep.subr.bf16.mxu1 %v12366_v14 }
 0xaf9   :  { %v12246_v3 = vpop.f32.mrb[60].mxu1 }
 0xafa   :  { %v11127_v22 = vadd.f32 %v12246_v3, %v12157_v53  ;;  %v11121_v38 = vpop.f32.mrb[61].mxu1 }
 0xafb   :  { %v11122_v28 = vadd.f32 %v12157_v53, %v11121_v38 }
 0xafc   :  { %v11141_v8 = vmax.f32 %v11127_v22, 0.0 }
 0xafd   :  { %v11140_v45 = vmax.f32 %v11122_v28, 0.0 }
 0xaff   :  { %12282 = vmatprep.mubr.f32.mxu1 %v11140_v45 }
 0xb00   :  { %12283 = vmatmul.mubr.f32.vlgmr.msra.gmra.mrb[64].mxu1 %v11141_v8 }
 0xb01   :  { %v12249_v62 = vpop.f32.mrb[62].mxu1  ;;  %12369 = vmatpush3.bf16.msra.mxu1 %v12366_v14 }
 0xb02   :  { %v11137_v43 = vadd.f32 %v12249_v62, %v12157_v53  ;;  %v11131_v32 = vpop.f32.mrb[63].mxu1  ;;  %12371 = vmatprep.subr.bf16.mxu1 %v12370_v12 }
 0xb03   :  { %v11132_v37 = vadd.f32 %v12157_v53, %v11131_v32 }
 0xb04   :  { %v11143_v59 = vmax.f32 %v11137_v43, 0.0 }
 0xb05   :  { %v11142_v6 = vmax.f32 %v11132_v37, 0.0  ;;  %12373 = vmatpush3.bf16.msra.mxu1 %v12370_v12 }
 0xb07   :  { %12285 = vmatprep.mubr.f32.mxu1 %v11142_v6 }
 0xb08   :  { %12286 = vmatmul.mubr.f32.gmra.mrb[66].mxu1 %v11143_v59 }
 0xbd3   :  { %v12284_v23 = vpop.f32.mrb[64].mxu1 }
 0xbd4   :  { %v11239_v49 = vadd.f32 %v12284_v23, %v12158_v26  ;;  %v11233_v41 = vpop.f32.mrb[65].mxu1 }
 0xbd5   :  { %v11234_v33 = vadd.f32 %v12158_v26, %v11233_v41 }
 0xbd6   :  { %v11253_v55 = vmax.f32 %v11239_v49, 0.0 }
 0xbd7   :  { %v11252_v51 = vmax.f32 %v11234_v33, 0.0 }
 0xbd9   :  { %12296 = vmatprep.mubr.msk.f32.mxu1 %vm11267_vm6, %v11252_v51 }
 0xbda   :  { %12297 = vmatmul.mubr.msk.f32.vlgmr.msra.gmra.mrb[68].mxu1 %vm11267_vm6, %v11253_v55 }
 0xbdb   :  { %v12287_v35 = vpop.f32.mrb[66].mxu1 }
 0xbdc   :  { %v11249_v42 = vadd.f32 %v12287_v35, %v12158_v26  ;;  %v11243_v15 = vpop.f32.mrb[67].mxu1 }
 0xbdd   :  { %v11244_v11 = vadd.f32 %v12158_v26, %v11243_v15 }
 0xbde   :  { %v11255_v21 = vmax.f32 %v11249_v42, 0.0 }
 0xbdf   :  { %v11254_v52 = vmax.f32 %v11244_v11, 0.0 }
 0xbe1   :  { %12299 = vmatprep.mubr.msk.f32.mxu1 %vm11267_vm6, %v11254_v52 }
 0xbe2   :  { %12300 = vmatmul.mubr.msk.f32.gmra.mrb[70].mxu1 %vm11267_vm6, %v11255_v21 }
 0xcad   :  { %v12298_v5 = vpop.f32.mrb[68].mxu1 }
 0xcae   :  { %v11352_v1 = vadd.f32 %v12298_v5, %v12159_v27  ;;  %v11346_v31 = vpop.f32.mrb[69].mxu1 }
 0xcaf   :  { %v11347_v50 = vadd.f32 %v12159_v27, %v11346_v31 }
 0xcb0   :  { %11366 = vst [vmem:[%s18837_s13 + $0x8] sm:$0xff] %v11352_v1 }
 0xcb1   :  { %11365 = vst [vmem:[%s18837_s13] sm:$0xff] %v11347_v50 }
 0xcb5   :  { %v12301_v24 = vpop.f32.mrb[70].mxu1 }
 0xcb6   :  { %v11362_v40 = vadd.f32 %v12301_v24, %v12159_v27  ;;  %v11356_v60 = vpop.f32.mrb[71].mxu1 }
 0xcb7   :  { %v11357_v39 = vadd.f32 %v12159_v27, %v11356_v60 }
 0xcb8   :  { %11368 = vst [vmem:[%s18837_s13 + $0x18] sm:$0xff] %v11362_v40 }
 0xcb9   :  { %11367 = vst [vmem:[%s18837_s13 + $0x10] sm:$0xff] %v11357_v39 }
 0xcba   :  { %11373 = vsyncpa [#allocation3], 1 }
 0xcbb   :  { %11374 = vsyncpa [#allocation5], 1 }
 0xcbc   :  { %11375 = vsyncpa [#allocation8], 1 }
 0xcbd   :  { %11376 = vsyncpa [#allocation11], 1 }
 0xcbe   :  { %11377 = vsyncpa [#allocation14], 1 }
 0xcbf   :  { %11378 = vsyncpa [#allocation17], 1 }

</bundles_post_ra>
